<compile_context>
chip_gen: v7x
topology: tpu7x:2x2x1
jax: 0.10.0
libtpu: 0.0.40
codegen_flags: <defaults>
</compile_context>

<pallas_src>
import numpy as np
import jax
import jax.numpy as jnp
from jax.experimental import pallas as pl
from jax.experimental.pallas import tpu as pltpu

E = 256      # LSTM input_size (fixed by the module)
H = 128      # n_hidden
NC = 4       # n_class
B = 8        # batch (module hardcodes 70 only for the zero init states; zeros are batch-agnostic)
S = 8        # sequence length


def _vmem():
    return pl.BlockSpec(memory_space=pltpu.MemorySpace.VMEM)


def bilstm_attention_kernel(x_ref, wih_ref, b_ref, whh_ref, woutT_ref, bout_ref,
                            logits_ref, soft_ref,
                            xw_sc):
    """Fused bidirectional LSTM + attention_net + final Linear, all in VMEM.

    x_ref:    (S*B, E)        time-major input, flattened (row s*B + b)
    wih_ref:  (E, 8H)         [W_ih_fwd^T | W_ih_bwd^T]
    b_ref:    (1, 8H)         [b_ih_f+b_hh_f | b_ih_b+b_hh_b]
    whh_ref:  (2H, 8H)        block-diag: [W_hh_f^T  0 ; 0  W_hh_b^T]
    woutT:    (2H, NC), bout: (1, NC)
    xw_sc:    (S*B, 8H)       VMEM scratch for the hoisted input projection
    """
    # ---- hoisted input projection for both directions (one MXU pass),
    # parked in VMEM scratch so it is not live in vregs across the recurrence.
    xw_sc[...] = (jnp.dot(x_ref[...], wih_ref[...],
                          preferred_element_type=jnp.float32) + b_ref[...])

    def half_cell(gates, off, c):
        i = jax.nn.sigmoid(gates[:, off + 0 * H: off + 1 * H])
        f = jax.nn.sigmoid(gates[:, off + 1 * H: off + 2 * H])
        g = jnp.tanh(gates[:, off + 2 * H: off + 3 * H])
        o = jax.nn.sigmoid(gates[:, off + 3 * H: off + 4 * H])
        c_new = f * c + i * g
        h_new = o * jnp.tanh(c_new)
        return h_new, c_new

    hf = jnp.zeros((B, H), jnp.float32)
    cf = jnp.zeros((B, H), jnp.float32)
    hb = jnp.zeros((B, H), jnp.float32)
    cb = jnp.zeros((B, H), jnp.float32)
    outs_f = [None] * S
    outs_b = [None] * S

    # ---- fully unrolled recurrence. One K=256 block-diagonal W_hh matmul per
    # step produces [gates_fwd | gates_bwd]; forward reads time t, backward
    # reads time S-1-t of the precomputed projection.
    for t in range(S):
        tb = S - 1 - t
        pre = jnp.concatenate(
            [xw_sc[t * B:(t + 1) * B, 0:4 * H],          # (B, 4H) fwd slab
             xw_sc[tb * B:(tb + 1) * B, 4 * H:8 * H]],   # (B, 4H) bwd slab
            axis=1)                                       # (B, 8H)
        h_cat = jnp.concatenate([hf, hb], axis=1)         # (B, 2H)
        gates = pre + jnp.dot(h_cat, whh_ref[...],
                              preferred_element_type=jnp.float32)  # (B, 8H)
        hf, cf = half_cell(gates, 0, cf)
        hb, cb = half_cell(gates, 4 * H, cb)
        outs_f[t] = hf
        outs_b[tb] = hb

    # ---- torch quirk: hidden = final_hidden_state.view(-1, 2H, 1) is a raw
    # row-major reinterpretation of the (2, B, H) buffer:
    #   hid_lo[b] = cat(hf, hb)[2b],  hid_hi[b] = cat(hf, hb)[2b+1]
    # Built with value-level sublane slices + concat (exact, no masked stores).
    halves = [hf, hb]

    def hid_row(idx):
        src = halves[idx // B]
        r = idx % B
        return src[r:r + 1, :]                             # (1, H)

    hid_lo = jnp.concatenate([hid_row(2 * b) for b in range(B)], axis=0)      # (B, H)
    hid_hi = jnp.concatenate([hid_row(2 * b + 1) for b in range(B)], axis=0)  # (B, H)

    # ---- attention scores, softmax and context, fully vectorized on stacked
    # (S, B, H) values (stacking along the leading dim is layout-free).
    stacked_f = jnp.stack(outs_f, axis=0)                  # (S, B, H)
    stacked_b = jnp.stack(outs_b, axis=0)                  # (S, B, H)

    prod = stacked_f * hid_lo[None, :, :] + stacked_b * hid_hi[None, :, :]
    scores = jnp.sum(prod, axis=-1, keepdims=True)         # (S, B, 1)
    scores = scores - jnp.max(scores, axis=0, keepdims=True)
    e = jnp.exp(scores)
    soft = e / jnp.sum(e, axis=0, keepdims=True)           # (S, B, 1) softmax over seq

    # context[b, :] = sum_s soft[s, b] * lstm_output[b, s, :]
    ctx_lo = jnp.sum(stacked_f * soft, axis=0)             # (B, H)
    ctx_hi = jnp.sum(stacked_b * soft, axis=0)             # (B, H)

    # ---- final Linear fused into one matmul: [ctx_lo | ctx_hi] @ W_out^T + b
    ctx = jnp.concatenate([ctx_lo, ctx_hi], axis=1)        # (B, 2H)
    logits_ref[...] = (jnp.dot(ctx, woutT_ref[...],
                               preferred_element_type=jnp.float32)
                       + bout_ref[...])
    # (B, S) attention output assembled from the per-step (B, 1) columns.
    soft_ref[...] = jnp.concatenate([soft[s] for s in range(S)], axis=1)


def prepare_params(params):
    """One-time (init-side) repack of the PyTorch-layout parameters.

    * W_ih of both directions concatenated into a single (E, 8H) matrix with
      the biases folded alongside.
    * W_hh of both directions packed into ONE block-diagonal (2H, 8H) matrix so
      the recurrence uses a single K=256 matmul per step (fills v6e/v7x MXU).
    * output Linear stored (2H, NC).
    No per-call transposes remain in the forward wrapper.
    """
    (wihf, whhf, bihf, bhhf, wihb, whhb, bihb, bhhb, wout, bout) = params
    wih_cat = jnp.concatenate([wihf.T, wihb.T], axis=1)                 # (E, 8H)
    b_cat = jnp.concatenate([bihf + bhhf, bihb + bhhb]).reshape(1, 8 * H)
    whh_blk = jnp.zeros((2 * H, 8 * H), jnp.float32)
    whh_blk = whh_blk.at[0:H, 0:4 * H].set(whhf.T)
    whh_blk = whh_blk.at[H:2 * H, 4 * H:8 * H].set(whhb.T)              # (2H, 8H)
    return (wih_cat, b_cat, whh_blk, wout.T, bout.reshape(1, NC))


def bilstm_attention_forward(x_bse, prep):
    wih_cat, b_cat, whh_blk, wout_t, bout2 = prep
    # torch: input.permute(1, 0, 2) -> time-major; flatten (S, B) for the
    # hoisted projection so the kernel does no reshape.
    x_flat = jnp.transpose(x_bse, (1, 0, 2)).reshape(S * B, E)          # (S*B, E)

    logits, soft = pl.pallas_call(
        bilstm_attention_kernel,
        out_shape=(jax.ShapeDtypeStruct((B, NC), jnp.float32),
                   jax.ShapeDtypeStruct((B, S), jnp.float32)),
        in_specs=[_vmem() for _ in range(6)],
        out_specs=(_vmem(), _vmem()),
        scratch_shapes=[pltpu.VMEM((S * B, 8 * H), jnp.float32)],  # hoisted x@W_ih
    )(x_flat, wih_cat, b_cat, whh_blk, wout_t, bout2)
    return logits, soft


def reference_forward(x_bse, params):
    """Pure-JAX reference mirroring the PyTorch forward exactly."""
    (wihf, whhf, bihf, bhhf, wihb, whhb, bihb, bhhb, wout, bout) = params
    xt = jnp.transpose(x_bse, (1, 0, 2))

    def cell(xx, h, c, wih, whh, bih, bhh):
        gates = xx @ wih.T + h @ whh.T + bih + bhh
        i = jax.nn.sigmoid(gates[:, :H])
        f = jax.nn.sigmoid(gates[:, H:2 * H])
        g = jnp.tanh(gates[:, 2 * H:3 * H])
        o = jax.nn.sigmoid(gates[:, 3 * H:])
        c2 = f * c + i * g
        return o * jnp.tanh(c2), c2

    hf = cf = hb = cb = jnp.zeros((B, H), jnp.float32)
    outs_f = [None] * S
    outs_b = [None] * S
    for t in range(S):
        hf, cf = cell(xt[t], hf, cf, wihf, whhf, bihf, bhhf)
        outs_f[t] = hf
        tb = S - 1 - t
        hb, cb = cell(xt[tb], hb, cb, wihb, whhb, bihb, bhhb)
        outs_b[tb] = hb
    out = jnp.concatenate([jnp.stack(outs_f), jnp.stack(outs_b)], axis=-1)  # (S, B, 2H)
    out_bsd = jnp.transpose(out, (1, 0, 2))
    hidden = jnp.stack([hf, hb], axis=0).reshape(B, 2 * H)   # torch view(-1, 2H) quirk
    attn = jnp.sum(out_bsd * hidden[:, None, :], axis=-1)
    soft = jax.nn.softmax(attn, axis=1)
    context = jnp.sum(out_bsd * soft[:, :, None], axis=1)
    logits = context @ wout.T + bout
    return logits, soft


if __name__ == "__main__":
    key = jax.random.PRNGKey(0)
    keys = jax.random.split(key, 11)
    bnd = float(1.0 / np.sqrt(H))

    def u(kk, shape, bound):
        return jax.random.uniform(kk, shape, jnp.float32, -bound, bound)

    # nn.LSTM(256, 128, bidirectional=True) parameters (both directions), torch layout
    wihf = u(keys[0], (4 * H, E), bnd); whhf = u(keys[1], (4 * H, H), bnd)
    bihf = u(keys[2], (4 * H,), bnd);   bhhf = u(keys[3], (4 * H,), bnd)
    wihb = u(keys[4], (4 * H, E), bnd); whhb = u(keys[5], (4 * H, H), bnd)
    bihb = u(keys[6], (4 * H,), bnd);   bhhb = u(keys[7], (4 * H,), bnd)
    # nn.Linear(256, 4)
    bnd2 = float(1.0 / np.sqrt(2 * H))
    wout = u(keys[8], (NC, 2 * H), bnd2); bout = u(keys[9], (NC,), bnd2)
    params = (wihf, whhf, bihf, bhhf, wihb, whhb, bihb, bhhb, wout, bout)

    x = jax.random.normal(keys[10], (B, S, E), jnp.float32)

    prep = prepare_params(params)           # one-time repack; no per-call transposes
    fwd = jax.jit(bilstm_attention_forward)
    logits, attention = fwd(x, prep)
    jax.block_until_ready((logits, attention))

    ref_logits, ref_attn = reference_forward(x, params)
    np.testing.assert_allclose(np.asarray(logits), np.asarray(ref_logits),
                               rtol=5e-3, atol=5e-3)
    np.testing.assert_allclose(np.asarray(attention), np.asarray(ref_attn),
                               rtol=5e-3, atol=5e-3)

    # TODO(synk): torch returns attention as a numpy array (.data.numpy()); here it is a jnp array.
    print("KERNEL_OK")
</pallas_src>

<mosaic_0001>
module attributes {stable_mosaic.version = 11 : i64} {
  func.func @bilstm_attention_kernel(%arg0: memref<64x256xf32, #tpu.memory_space<vmem>>, %arg1: memref<256x1024xf32, #tpu.memory_space<vmem>>, %arg2: memref<1x1024xf32, #tpu.memory_space<vmem>>, %arg3: memref<256x1024xf32, #tpu.memory_space<vmem>>, %arg4: memref<256x4xf32, #tpu.memory_space<vmem>>, %arg5: memref<1x4xf32, #tpu.memory_space<vmem>>, %arg6: memref<8x4xf32, #tpu.memory_space<vmem>>, %arg7: memref<8x8xf32, #tpu.memory_space<vmem>>, %arg8: memref<64x1024xf32, #tpu.memory_space<vmem>>) attributes {dimension_semantics = [], scalar_prefetch = 0 : i64, scratch_operands = 1 : i64, tpu.core_type = #tpu.core_type<tc>} {
    %c0 = arith.constant 0 : index
    %c0_0 = arith.constant 0 : index
    %0 = vector.load %arg0[%c0, %c0_0] : memref<64x256xf32, #tpu.memory_space<vmem>>, vector<64x256xf32>
    %c0_1 = arith.constant 0 : index
    %c0_2 = arith.constant 0 : index
    %1 = vector.load %arg1[%c0_1, %c0_2] : memref<256x1024xf32, #tpu.memory_space<vmem>>, vector<256x1024xf32>
    %cst = arith.constant dense<0.000000e+00> : vector<64x1024xf32>
    %2 = tpu.matmul %0, %1, %cst {dimension_numbers = #tpu.dot_dimension_numbers<[1], [0], [0], [1], [0, 0, 1, 1], [], []>} : vector<64x256xf32>, vector<256x1024xf32>, vector<64x1024xf32> -> vector<64x1024xf32>
    %c0_3 = arith.constant 0 : index
    %c0_4 = arith.constant 0 : index
    %3 = vector.load %arg2[%c0_3, %c0_4] : memref<1x1024xf32, #tpu.memory_space<vmem>>, vector<1x1024xf32>
    %4 = vector.broadcast %3 : vector<1x1024xf32> to vector<64x1024xf32>
    %5 = arith.addf %2, %4 : vector<64x1024xf32>
    %c0_5 = arith.constant 0 : index
    %c0_6 = arith.constant 0 : index
    %6 = vector.load %arg8[%c0_5, %c0_6] : memref<64x1024xf32, #tpu.memory_space<vmem>>, vector<64x1024xf32>
    tpu.vector_store %arg8[%c0_5, %c0_6], %5 {strides = array<i32>} : memref<64x1024xf32, #tpu.memory_space<vmem>>, vector<64x1024xf32>,
    %cst_7 = arith.constant 0.000000e+00 : f32
    %7 = vector.broadcast %cst_7 : f32 to vector<8x128xf32>
    %cst_8 = arith.constant 0.000000e+00 : f32
    %8 = vector.broadcast %cst_8 : f32 to vector<8x128xf32>
    %cst_9 = arith.constant 0.000000e+00 : f32
    %9 = vector.broadcast %cst_9 : f32 to vector<8x128xf32>
    %cst_10 = arith.constant 0.000000e+00 : f32
    %10 = vector.broadcast %cst_10 : f32 to vector<8x128xf32>
    %c0_11 = arith.constant 0 : index
    %c0_12 = arith.constant 0 : index
    %11 = vector.load %arg8[%c0_11, %c0_12] : memref<64x1024xf32, #tpu.memory_space<vmem>>, vector<8x512xf32>
    %c56 = arith.constant 56 : index
    %c512 = arith.constant 512 : index
    %12 = vector.load %arg8[%c56, %c512] : memref<64x1024xf32, #tpu.memory_space<vmem>>, vector<8x512xf32>
    %13 = tpu.concatenate %11, %12 in 1 : vector<8x512xf32>, vector<8x512xf32> -> vector<8x1024xf32>
    %14 = tpu.concatenate %7, %9 in 1 : vector<8x128xf32>, vector<8x128xf32> -> vector<8x256xf32>
    %c0_13 = arith.constant 0 : index
    %c0_14 = arith.constant 0 : index
    %15 = vector.load %arg3[%c0_13, %c0_14] : memref<256x1024xf32, #tpu.memory_space<vmem>>, vector<256x1024xf32>
    %cst_15 = arith.constant dense<0.000000e+00> : vector<8x1024xf32>
    %16 = tpu.matmul %14, %15, %cst_15 {dimension_numbers = #tpu.dot_dimension_numbers<[1], [0], [0], [1], [0, 0, 1, 1], [], []>} : vector<8x256xf32>, vector<256x1024xf32>, vector<8x1024xf32> -> vector<8x1024xf32>
    %17 = arith.addf %13, %16 : vector<8x1024xf32>
    %18 = vector.extract_strided_slice %17 {offsets = [0, 0], sizes = [8, 128], strides = [1, 1]} : vector<8x1024xf32> to vector<8x128xf32>
    %19 = arith.negf %18 : vector<8x128xf32>
    %20 = math.exp %19 : vector<8x128xf32>
    %cst_16 = arith.constant 1.000000e+00 : f32
    %21 = vector.broadcast %cst_16 : f32 to vector<8x128xf32>
    %22 = arith.addf %21, %20 : vector<8x128xf32>
    %23 = arith.divf %21, %22 : vector<8x128xf32>
    %24 = vector.extract_strided_slice %17 {offsets = [0, 128], sizes = [8, 128], strides = [1, 1]} : vector<8x1024xf32> to vector<8x128xf32>
    %25 = arith.negf %24 : vector<8x128xf32>
    %26 = math.exp %25 : vector<8x128xf32>
    %cst_17 = arith.constant 1.000000e+00 : f32
    %27 = vector.broadcast %cst_17 : f32 to vector<8x128xf32>
    %28 = arith.addf %27, %26 : vector<8x128xf32>
    %29 = arith.divf %27, %28 : vector<8x128xf32>
    %30 = vector.extract_strided_slice %17 {offsets = [0, 256], sizes = [8, 128], strides = [1, 1]} : vector<8x1024xf32> to vector<8x128xf32>
    %31 = math.tanh %30 : vector<8x128xf32>
    %32 = vector.extract_strided_slice %17 {offsets = [0, 384], sizes = [8, 128], strides = [1, 1]} : vector<8x1024xf32> to vector<8x128xf32>
    %33 = arith.negf %32 : vector<8x128xf32>
    %34 = math.exp %33 : vector<8x128xf32>
    %cst_18 = arith.constant 1.000000e+00 : f32
    %35 = vector.broadcast %cst_18 : f32 to vector<8x128xf32>
    %36 = arith.addf %35, %34 : vector<8x128xf32>
    %37 = arith.divf %35, %36 : vector<8x128xf32>
    %38 = arith.mulf %29, %8 : vector<8x128xf32>
    %39 = arith.mulf %23, %31 : vector<8x128xf32>
    %40 = arith.addf %38, %39 : vector<8x128xf32>
    %41 = math.tanh %40 : vector<8x128xf32>
    %42 = arith.mulf %37, %41 : vector<8x128xf32>
    %43 = vector.extract_strided_slice %17 {offsets = [0, 512], sizes = [8, 128], strides = [1, 1]} : vector<8x1024xf32> to vector<8x128xf32>
    %44 = arith.negf %43 : vector<8x128xf32>
    %45 = math.exp %44 : vector<8x128xf32>
    %cst_19 = arith.constant 1.000000e+00 : f32
    %46 = vector.broadcast %cst_19 : f32 to vector<8x128xf32>
    %47 = arith.addf %46, %45 : vector<8x128xf32>
    %48 = arith.divf %46, %47 : vector<8x128xf32>
    %49 = vector.extract_strided_slice %17 {offsets = [0, 640], sizes = [8, 128], strides = [1, 1]} : vector<8x1024xf32> to vector<8x128xf32>
    %50 = arith.negf %49 : vector<8x128xf32>
    %51 = math.exp %50 : vector<8x128xf32>
    %cst_20 = arith.constant 1.000000e+00 : f32
    %52 = vector.broadcast %cst_20 : f32 to vector<8x128xf32>
    %53 = arith.addf %52, %51 : vector<8x128xf32>
    %54 = arith.divf %52, %53 : vector<8x128xf32>
    %55 = vector.extract_strided_slice %17 {offsets = [0, 768], sizes = [8, 128], strides = [1, 1]} : vector<8x1024xf32> to vector<8x128xf32>
    %56 = math.tanh %55 : vector<8x128xf32>
    %57 = vector.extract_strided_slice %17 {offsets = [0, 896], sizes = [8, 128], strides = [1, 1]} : vector<8x1024xf32> to vector<8x128xf32>
    %58 = arith.negf %57 : vector<8x128xf32>
    %59 = math.exp %58 : vector<8x128xf32>
    %cst_21 = arith.constant 1.000000e+00 : f32
    %60 = vector.broadcast %cst_21 : f32 to vector<8x128xf32>
    %61 = arith.addf %60, %59 : vector<8x128xf32>
    %62 = arith.divf %60, %61 : vector<8x128xf32>
    %63 = arith.mulf %54, %10 : vector<8x128xf32>
    %64 = arith.mulf %48, %56 : vector<8x128xf32>
    %65 = arith.addf %63, %64 : vector<8x128xf32>
    %66 = math.tanh %65 : vector<8x128xf32>
    %67 = arith.mulf %62, %66 : vector<8x128xf32>
    %c8 = arith.constant 8 : index
    %c0_22 = arith.constant 0 : index
    %68 = vector.load %arg8[%c8, %c0_22] : memref<64x1024xf32, #tpu.memory_space<vmem>>, vector<8x512xf32>
    %c48 = arith.constant 48 : index
    %c512_23 = arith.constant 512 : index
    %69 = vector.load %arg8[%c48, %c512_23] : memref<64x1024xf32, #tpu.memory_space<vmem>>, vector<8x512xf32>
    %70 = tpu.concatenate %68, %69 in 1 : vector<8x512xf32>, vector<8x512xf32> -> vector<8x1024xf32>
    %71 = tpu.concatenate %42, %67 in 1 : vector<8x128xf32>, vector<8x128xf32> -> vector<8x256xf32>
    %c0_24 = arith.constant 0 : index
    %c0_25 = arith.constant 0 : index
    %72 = vector.load %arg3[%c0_24, %c0_25] : memref<256x1024xf32, #tpu.memory_space<vmem>>, vector<256x1024xf32>
    %cst_26 = arith.constant dense<0.000000e+00> : vector<8x1024xf32>
    %73 = tpu.matmul %71, %72, %cst_26 {dimension_numbers = #tpu.dot_dimension_numbers<[1], [0], [0], [1], [0, 0, 1, 1], [], []>} : vector<8x256xf32>, vector<256x1024xf32>, vector<8x1024xf32> -> vector<8x1024xf32>
    %74 = arith.addf %70, %73 : vector<8x1024xf32>
    %75 = vector.extract_strided_slice %74 {offsets = [0, 0], sizes = [8, 128], strides = [1, 1]} : vector<8x1024xf32> to vector<8x128xf32>
    %76 = arith.negf %75 : vector<8x128xf32>
    %77 = math.exp %76 : vector<8x128xf32>
    %cst_27 = arith.constant 1.000000e+00 : f32
    %78 = vector.broadcast %cst_27 : f32 to vector<8x128xf32>
    %79 = arith.addf %78, %77 : vector<8x128xf32>
    %80 = arith.divf %78, %79 : vector<8x128xf32>
    %81 = vector.extract_strided_slice %74 {offsets = [0, 128], sizes = [8, 128], strides = [1, 1]} : vector<8x1024xf32> to vector<8x128xf32>
    %82 = arith.negf %81 : vector<8x128xf32>
    %83 = math.exp %82 : vector<8x128xf32>
    %cst_28 = arith.constant 1.000000e+00 : f32
    %84 = vector.broadcast %cst_28 : f32 to vector<8x128xf32>
    %85 = arith.addf %84, %83 : vector<8x128xf32>
    %86 = arith.divf %84, %85 : vector<8x128xf32>
    %87 = vector.extract_strided_slice %74 {offsets = [0, 256], sizes = [8, 128], strides = [1, 1]} : vector<8x1024xf32> to vector<8x128xf32>
    %88 = math.tanh %87 : vector<8x128xf32>
    %89 = vector.extract_strided_slice %74 {offsets = [0, 384], sizes = [8, 128], strides = [1, 1]} : vector<8x1024xf32> to vector<8x128xf32>
    %90 = arith.negf %89 : vector<8x128xf32>
    %91 = math.exp %90 : vector<8x128xf32>
    %cst_29 = arith.constant 1.000000e+00 : f32
    %92 = vector.broadcast %cst_29 : f32 to vector<8x128xf32>
    %93 = arith.addf %92, %91 : vector<8x128xf32>
    %94 = arith.divf %92, %93 : vector<8x128xf32>
    %95 = arith.mulf %86, %40 : vector<8x128xf32>
    %96 = arith.mulf %80, %88 : vector<8x128xf32>
    %97 = arith.addf %95, %96 : vector<8x128xf32>
    %98 = math.tanh %97 : vector<8x128xf32>
    %99 = arith.mulf %94, %98 : vector<8x128xf32>
    %100 = vector.extract_strided_slice %74 {offsets = [0, 512], sizes = [8, 128], strides = [1, 1]} : vector<8x1024xf32> to vector<8x128xf32>
    %101 = arith.negf %100 : vector<8x128xf32>
    %102 = math.exp %101 : vector<8x128xf32>
    %cst_30 = arith.constant 1.000000e+00 : f32
    %103 = vector.broadcast %cst_30 : f32 to vector<8x128xf32>
    %104 = arith.addf %103, %102 : vector<8x128xf32>
    %105 = arith.divf %103, %104 : vector<8x128xf32>
    %106 = vector.extract_strided_slice %74 {offsets = [0, 640], sizes = [8, 128], strides = [1, 1]} : vector<8x1024xf32> to vector<8x128xf32>
    %107 = arith.negf %106 : vector<8x128xf32>
    %108 = math.exp %107 : vector<8x128xf32>
    %cst_31 = arith.constant 1.000000e+00 : f32
    %109 = vector.broadcast %cst_31 : f32 to vector<8x128xf32>
    %110 = arith.addf %109, %108 : vector<8x128xf32>
    %111 = arith.divf %109, %110 : vector<8x128xf32>
    %112 = vector.extract_strided_slice %74 {offsets = [0, 768], sizes = [8, 128], strides = [1, 1]} : vector<8x1024xf32> to vector<8x128xf32>
    %113 = math.tanh %112 : vector<8x128xf32>
    %114 = vector.extract_strided_slice %74 {offsets = [0, 896], sizes = [8, 128], strides = [1, 1]} : vector<8x1024xf32> to vector<8x128xf32>
    %115 = arith.negf %114 : vector<8x128xf32>
    %116 = math.exp %115 : vector<8x128xf32>
    %cst_32 = arith.constant 1.000000e+00 : f32
    %117 = vector.broadcast %cst_32 : f32 to vector<8x128xf32>
    %118 = arith.addf %117, %116 : vector<8x128xf32>
    %119 = arith.divf %117, %118 : vector<8x128xf32>
    %120 = arith.mulf %111, %65 : vector<8x128xf32>
    %121 = arith.mulf %105, %113 : vector<8x128xf32>
    %122 = arith.addf %120, %121 : vector<8x128xf32>
    %123 = math.tanh %122 : vector<8x128xf32>
    %124 = arith.mulf %119, %123 : vector<8x128xf32>
    %c16 = arith.constant 16 : index
    %c0_33 = arith.constant 0 : index
    %125 = vector.load %arg8[%c16, %c0_33] : memref<64x1024xf32, #tpu.memory_space<vmem>>, vector<8x512xf32>
    %c40 = arith.constant 40 : index
    %c512_34 = arith.constant 512 : index
    %126 = vector.load %arg8[%c40, %c512_34] : memref<64x1024xf32, #tpu.memory_space<vmem>>, vector<8x512xf32>
    %127 = tpu.concatenate %125, %126 in 1 : vector<8x512xf32>, vector<8x512xf32> -> vector<8x1024xf32>
    %128 = tpu.concatenate %99, %124 in 1 : vector<8x128xf32>, vector<8x128xf32> -> vector<8x256xf32>
    %c0_35 = arith.constant 0 : index
    %c0_36 = arith.constant 0 : index
    %129 = vector.load %arg3[%c0_35, %c0_36] : memref<256x1024xf32, #tpu.memory_space<vmem>>, vector<256x1024xf32>
    %cst_37 = arith.constant dense<0.000000e+00> : vector<8x1024xf32>
    %130 = tpu.matmul %128, %129, %cst_37 {dimension_numbers = #tpu.dot_dimension_numbers<[1], [0], [0], [1], [0, 0, 1, 1], [], []>} : vector<8x256xf32>, vector<256x1024xf32>, vector<8x1024xf32> -> vector<8x1024xf32>
    %131 = arith.addf %127, %130 : vector<8x1024xf32>
    %132 = vector.extract_strided_slice %131 {offsets = [0, 0], sizes = [8, 128], strides = [1, 1]} : vector<8x1024xf32> to vector<8x128xf32>
    %133 = arith.negf %132 : vector<8x128xf32>
    %134 = math.exp %133 : vector<8x128xf32>
    %cst_38 = arith.constant 1.000000e+00 : f32
    %135 = vector.broadcast %cst_38 : f32 to vector<8x128xf32>
    %136 = arith.addf %135, %134 : vector<8x128xf32>
    %137 = arith.divf %135, %136 : vector<8x128xf32>
    %138 = vector.extract_strided_slice %131 {offsets = [0, 128], sizes = [8, 128], strides = [1, 1]} : vector<8x1024xf32> to vector<8x128xf32>
    %139 = arith.negf %138 : vector<8x128xf32>
    %140 = math.exp %139 : vector<8x128xf32>
    %cst_39 = arith.constant 1.000000e+00 : f32
    %141 = vector.broadcast %cst_39 : f32 to vector<8x128xf32>
    %142 = arith.addf %141, %140 : vector<8x128xf32>
    %143 = arith.divf %141, %142 : vector<8x128xf32>
    %144 = vector.extract_strided_slice %131 {offsets = [0, 256], sizes = [8, 128], strides = [1, 1]} : vector<8x1024xf32> to vector<8x128xf32>
    %145 = math.tanh %144 : vector<8x128xf32>
    %146 = vector.extract_strided_slice %131 {offsets = [0, 384], sizes = [8, 128], strides = [1, 1]} : vector<8x1024xf32> to vector<8x128xf32>
    %147 = arith.negf %146 : vector<8x128xf32>
    %148 = math.exp %147 : vector<8x128xf32>
    %cst_40 = arith.constant 1.000000e+00 : f32
    %149 = vector.broadcast %cst_40 : f32 to vector<8x128xf32>
    %150 = arith.addf %149, %148 : vector<8x128xf32>
    %151 = arith.divf %149, %150 : vector<8x128xf32>
    %152 = arith.mulf %143, %97 : vector<8x128xf32>
    %153 = arith.mulf %137, %145 : vector<8x128xf32>
    %154 = arith.addf %152, %153 : vector<8x128xf32>
    %155 = math.tanh %154 : vector<8x128xf32>
    %156 = arith.mulf %151, %155 : vector<8x128xf32>
    %157 = vector.extract_strided_slice %131 {offsets = [0, 512], sizes = [8, 128], strides = [1, 1]} : vector<8x1024xf32> to vector<8x128xf32>
    %158 = arith.negf %157 : vector<8x128xf32>
    %159 = math.exp %158 : vector<8x128xf32>
    %cst_41 = arith.constant 1.000000e+00 : f32
    %160 = vector.broadcast %cst_41 : f32 to vector<8x128xf32>
    %161 = arith.addf %160, %159 : vector<8x128xf32>
    %162 = arith.divf %160, %161 : vector<8x128xf32>
    %163 = vector.extract_strided_slice %131 {offsets = [0, 640], sizes = [8, 128], strides = [1, 1]} : vector<8x1024xf32> to vector<8x128xf32>
    %164 = arith.negf %163 : vector<8x128xf32>
    %165 = math.exp %164 : vector<8x128xf32>
    %cst_42 = arith.constant 1.000000e+00 : f32
    %166 = vector.broadcast %cst_42 : f32 to vector<8x128xf32>
    %167 = arith.addf %166, %165 : vector<8x128xf32>
    %168 = arith.divf %166, %167 : vector<8x128xf32>
    %169 = vector.extract_strided_slice %131 {offsets = [0, 768], sizes = [8, 128], strides = [1, 1]} : vector<8x1024xf32> to vector<8x128xf32>
    %170 = math.tanh %169 : vector<8x128xf32>
    %171 = vector.extract_strided_slice %131 {offsets = [0, 896], sizes = [8, 128], strides = [1, 1]} : vector<8x1024xf32> to vector<8x128xf32>
    %172 = arith.negf %171 : vector<8x128xf32>
    %173 = math.exp %172 : vector<8x128xf32>
    %cst_43 = arith.constant 1.000000e+00 : f32
    %174 = vector.broadcast %cst_43 : f32 to vector<8x128xf32>
    %175 = arith.addf %174, %173 : vector<8x128xf32>
    %176 = arith.divf %174, %175 : vector<8x128xf32>
    %177 = arith.mulf %168, %122 : vector<8x128xf32>
    %178 = arith.mulf %162, %170 : vector<8x128xf32>
    %179 = arith.addf %177, %178 : vector<8x128xf32>
    %180 = math.tanh %179 : vector<8x128xf32>
    %181 = arith.mulf %176, %180 : vector<8x128xf32>
    %c24 = arith.constant 24 : index
    %c0_44 = arith.constant 0 : index
    %182 = vector.load %arg8[%c24, %c0_44] : memref<64x1024xf32, #tpu.memory_space<vmem>>, vector<8x512xf32>
    %c32 = arith.constant 32 : index
    %c512_45 = arith.constant 512 : index
    %183 = vector.load %arg8[%c32, %c512_45] : memref<64x1024xf32, #tpu.memory_space<vmem>>, vector<8x512xf32>
    %184 = tpu.concatenate %182, %183 in 1 : vector<8x512xf32>, vector<8x512xf32> -> vector<8x1024xf32>
    %185 = tpu.concatenate %156, %181 in 1 : vector<8x128xf32>, vector<8x128xf32> -> vector<8x256xf32>
    %c0_46 = arith.constant 0 : index
    %c0_47 = arith.constant 0 : index
    %186 = vector.load %arg3[%c0_46, %c0_47] : memref<256x1024xf32, #tpu.memory_space<vmem>>, vector<256x1024xf32>
    %cst_48 = arith.constant dense<0.000000e+00> : vector<8x1024xf32>
    %187 = tpu.matmul %185, %186, %cst_48 {dimension_numbers = #tpu.dot_dimension_numbers<[1], [0], [0], [1], [0, 0, 1, 1], [], []>} : vector<8x256xf32>, vector<256x1024xf32>, vector<8x1024xf32> -> vector<8x1024xf32>
    %188 = arith.addf %184, %187 : vector<8x1024xf32>
    %189 = vector.extract_strided_slice %188 {offsets = [0, 0], sizes = [8, 128], strides = [1, 1]} : vector<8x1024xf32> to vector<8x128xf32>
    %190 = arith.negf %189 : vector<8x128xf32>
    %191 = math.exp %190 : vector<8x128xf32>
    %cst_49 = arith.constant 1.000000e+00 : f32
    %192 = vector.broadcast %cst_49 : f32 to vector<8x128xf32>
    %193 = arith.addf %192, %191 : vector<8x128xf32>
    %194 = arith.divf %192, %193 : vector<8x128xf32>
    %195 = vector.extract_strided_slice %188 {offsets = [0, 128], sizes = [8, 128], strides = [1, 1]} : vector<8x1024xf32> to vector<8x128xf32>
    %196 = arith.negf %195 : vector<8x128xf32>
    %197 = math.exp %196 : vector<8x128xf32>
    %cst_50 = arith.constant 1.000000e+00 : f32
    %198 = vector.broadcast %cst_50 : f32 to vector<8x128xf32>
    %199 = arith.addf %198, %197 : vector<8x128xf32>
    %200 = arith.divf %198, %199 : vector<8x128xf32>
    %201 = vector.extract_strided_slice %188 {offsets = [0, 256], sizes = [8, 128], strides = [1, 1]} : vector<8x1024xf32> to vector<8x128xf32>
    %202 = math.tanh %201 : vector<8x128xf32>
    %203 = vector.extract_strided_slice %188 {offsets = [0, 384], sizes = [8, 128], strides = [1, 1]} : vector<8x1024xf32> to vector<8x128xf32>
    %204 = arith.negf %203 : vector<8x128xf32>
    %205 = math.exp %204 : vector<8x128xf32>
    %cst_51 = arith.constant 1.000000e+00 : f32
    %206 = vector.broadcast %cst_51 : f32 to vector<8x128xf32>
    %207 = arith.addf %206, %205 : vector<8x128xf32>
    %208 = arith.divf %206, %207 : vector<8x128xf32>
    %209 = arith.mulf %200, %154 : vector<8x128xf32>
    %210 = arith.mulf %194, %202 : vector<8x128xf32>
    %211 = arith.addf %209, %210 : vector<8x128xf32>
    %212 = math.tanh %211 : vector<8x128xf32>
    %213 = arith.mulf %208, %212 : vector<8x128xf32>
    %214 = vector.extract_strided_slice %188 {offsets = [0, 512], sizes = [8, 128], strides = [1, 1]} : vector<8x1024xf32> to vector<8x128xf32>
    %215 = arith.negf %214 : vector<8x128xf32>
    %216 = math.exp %215 : vector<8x128xf32>
    %cst_52 = arith.constant 1.000000e+00 : f32
    %217 = vector.broadcast %cst_52 : f32 to vector<8x128xf32>
    %218 = arith.addf %217, %216 : vector<8x128xf32>
    %219 = arith.divf %217, %218 : vector<8x128xf32>
    %220 = vector.extract_strided_slice %188 {offsets = [0, 640], sizes = [8, 128], strides = [1, 1]} : vector<8x1024xf32> to vector<8x128xf32>
    %221 = arith.negf %220 : vector<8x128xf32>
    %222 = math.exp %221 : vector<8x128xf32>
    %cst_53 = arith.constant 1.000000e+00 : f32
    %223 = vector.broadcast %cst_53 : f32 to vector<8x128xf32>
    %224 = arith.addf %223, %222 : vector<8x128xf32>
    %225 = arith.divf %223, %224 : vector<8x128xf32>
    %226 = vector.extract_strided_slice %188 {offsets = [0, 768], sizes = [8, 128], strides = [1, 1]} : vector<8x1024xf32> to vector<8x128xf32>
    %227 = math.tanh %226 : vector<8x128xf32>
    %228 = vector.extract_strided_slice %188 {offsets = [0, 896], sizes = [8, 128], strides = [1, 1]} : vector<8x1024xf32> to vector<8x128xf32>
    %229 = arith.negf %228 : vector<8x128xf32>
    %230 = math.exp %229 : vector<8x128xf32>
    %cst_54 = arith.constant 1.000000e+00 : f32
    %231 = vector.broadcast %cst_54 : f32 to vector<8x128xf32>
    %232 = arith.addf %231, %230 : vector<8x128xf32>
    %233 = arith.divf %231, %232 : vector<8x128xf32>
    %234 = arith.mulf %225, %179 : vector<8x128xf32>
    %235 = arith.mulf %219, %227 : vector<8x128xf32>
    %236 = arith.addf %234, %235 : vector<8x128xf32>
    %237 = math.tanh %236 : vector<8x128xf32>
    %238 = arith.mulf %233, %237 : vector<8x128xf32>
    %c32_55 = arith.constant 32 : index
    %c0_56 = arith.constant 0 : index
    %239 = vector.load %arg8[%c32_55, %c0_56] : memref<64x1024xf32, #tpu.memory_space<vmem>>, vector<8x512xf32>
    %c24_57 = arith.constant 24 : index
    %c512_58 = arith.constant 512 : index
    %240 = vector.load %arg8[%c24_57, %c512_58] : memref<64x1024xf32, #tpu.memory_space<vmem>>, vector<8x512xf32>
    %241 = tpu.concatenate %239, %240 in 1 : vector<8x512xf32>, vector<8x512xf32> -> vector<8x1024xf32>
    %242 = tpu.concatenate %213, %238 in 1 : vector<8x128xf32>, vector<8x128xf32> -> vector<8x256xf32>
    %c0_59 = arith.constant 0 : index
    %c0_60 = arith.constant 0 : index
    %243 = vector.load %arg3[%c0_59, %c0_60] : memref<256x1024xf32, #tpu.memory_space<vmem>>, vector<256x1024xf32>
    %cst_61 = arith.constant dense<0.000000e+00> : vector<8x1024xf32>
    %244 = tpu.matmul %242, %243, %cst_61 {dimension_numbers = #tpu.dot_dimension_numbers<[1], [0], [0], [1], [0, 0, 1, 1], [], []>} : vector<8x256xf32>, vector<256x1024xf32>, vector<8x1024xf32> -> vector<8x1024xf32>
    %245 = arith.addf %241, %244 : vector<8x1024xf32>
    %246 = vector.extract_strided_slice %245 {offsets = [0, 0], sizes = [8, 128], strides = [1, 1]} : vector<8x1024xf32> to vector<8x128xf32>
    %247 = arith.negf %246 : vector<8x128xf32>
    %248 = math.exp %247 : vector<8x128xf32>
    %cst_62 = arith.constant 1.000000e+00 : f32
    %249 = vector.broadcast %cst_62 : f32 to vector<8x128xf32>
    %250 = arith.addf %249, %248 : vector<8x128xf32>
    %251 = arith.divf %249, %250 : vector<8x128xf32>
    %252 = vector.extract_strided_slice %245 {offsets = [0, 128], sizes = [8, 128], strides = [1, 1]} : vector<8x1024xf32> to vector<8x128xf32>
    %253 = arith.negf %252 : vector<8x128xf32>
    %254 = math.exp %253 : vector<8x128xf32>
    %cst_63 = arith.constant 1.000000e+00 : f32
    %255 = vector.broadcast %cst_63 : f32 to vector<8x128xf32>
    %256 = arith.addf %255, %254 : vector<8x128xf32>
    %257 = arith.divf %255, %256 : vector<8x128xf32>
    %258 = vector.extract_strided_slice %245 {offsets = [0, 256], sizes = [8, 128], strides = [1, 1]} : vector<8x1024xf32> to vector<8x128xf32>
    %259 = math.tanh %258 : vector<8x128xf32>
    %260 = vector.extract_strided_slice %245 {offsets = [0, 384], sizes = [8, 128], strides = [1, 1]} : vector<8x1024xf32> to vector<8x128xf32>
    %261 = arith.negf %260 : vector<8x128xf32>
    %262 = math.exp %261 : vector<8x128xf32>
    %cst_64 = arith.constant 1.000000e+00 : f32
    %263 = vector.broadcast %cst_64 : f32 to vector<8x128xf32>
    %264 = arith.addf %263, %262 : vector<8x128xf32>
    %265 = arith.divf %263, %264 : vector<8x128xf32>
    %266 = arith.mulf %257, %211 : vector<8x128xf32>
    %267 = arith.mulf %251, %259 : vector<8x128xf32>
    %268 = arith.addf %266, %267 : vector<8x128xf32>
    %269 = math.tanh %268 : vector<8x128xf32>
    %270 = arith.mulf %265, %269 : vector<8x128xf32>
    %271 = vector.extract_strided_slice %245 {offsets = [0, 512], sizes = [8, 128], strides = [1, 1]} : vector<8x1024xf32> to vector<8x128xf32>
    %272 = arith.negf %271 : vector<8x128xf32>
    %273 = math.exp %272 : vector<8x128xf32>
    %cst_65 = arith.constant 1.000000e+00 : f32
    %274 = vector.broadcast %cst_65 : f32 to vector<8x128xf32>
    %275 = arith.addf %274, %273 : vector<8x128xf32>
    %276 = arith.divf %274, %275 : vector<8x128xf32>
    %277 = vector.extract_strided_slice %245 {offsets = [0, 640], sizes = [8, 128], strides = [1, 1]} : vector<8x1024xf32> to vector<8x128xf32>
    %278 = arith.negf %277 : vector<8x128xf32>
    %279 = math.exp %278 : vector<8x128xf32>
    %cst_66 = arith.constant 1.000000e+00 : f32
    %280 = vector.broadcast %cst_66 : f32 to vector<8x128xf32>
    %281 = arith.addf %280, %279 : vector<8x128xf32>
    %282 = arith.divf %280, %281 : vector<8x128xf32>
    %283 = vector.extract_strided_slice %245 {offsets = [0, 768], sizes = [8, 128], strides = [1, 1]} : vector<8x1024xf32> to vector<8x128xf32>
    %284 = math.tanh %283 : vector<8x128xf32>
    %285 = vector.extract_strided_slice %245 {offsets = [0, 896], sizes = [8, 128], strides = [1, 1]} : vector<8x1024xf32> to vector<8x128xf32>
    %286 = arith.negf %285 : vector<8x128xf32>
    %287 = math.exp %286 : vector<8x128xf32>
    %cst_67 = arith.constant 1.000000e+00 : f32
    %288 = vector.broadcast %cst_67 : f32 to vector<8x128xf32>
    %289 = arith.addf %288, %287 : vector<8x128xf32>
    %290 = arith.divf %288, %289 : vector<8x128xf32>
    %291 = arith.mulf %282, %236 : vector<8x128xf32>
    %292 = arith.mulf %276, %284 : vector<8x128xf32>
    %293 = arith.addf %291, %292 : vector<8x128xf32>
    %294 = math.tanh %293 : vector<8x128xf32>
    %295 = arith.mulf %290, %294 : vector<8x128xf32>
    %c40_68 = arith.constant 40 : index
    %c0_69 = arith.constant 0 : index
    %296 = vector.load %arg8[%c40_68, %c0_69] : memref<64x1024xf32, #tpu.memory_space<vmem>>, vector<8x512xf32>
    %c16_70 = arith.constant 16 : index
    %c512_71 = arith.constant 512 : index
    %297 = vector.load %arg8[%c16_70, %c512_71] : memref<64x1024xf32, #tpu.memory_space<vmem>>, vector<8x512xf32>
    %298 = tpu.concatenate %296, %297 in 1 : vector<8x512xf32>, vector<8x512xf32> -> vector<8x1024xf32>
    %299 = tpu.concatenate %270, %295 in 1 : vector<8x128xf32>, vector<8x128xf32> -> vector<8x256xf32>
    %c0_72 = arith.constant 0 : index
    %c0_73 = arith.constant 0 : index
    %300 = vector.load %arg3[%c0_72, %c0_73] : memref<256x1024xf32, #tpu.memory_space<vmem>>, vector<256x1024xf32>
    %cst_74 = arith.constant dense<0.000000e+00> : vector<8x1024xf32>
    %301 = tpu.matmul %299, %300, %cst_74 {dimension_numbers = #tpu.dot_dimension_numbers<[1], [0], [0], [1], [0, 0, 1, 1], [], []>} : vector<8x256xf32>, vector<256x1024xf32>, vector<8x1024xf32> -> vector<8x1024xf32>
    %302 = arith.addf %298, %301 : vector<8x1024xf32>
    %303 = vector.extract_strided_slice %302 {offsets = [0, 0], sizes = [8, 128], strides = [1, 1]} : vector<8x1024xf32> to vector<8x128xf32>
    %304 = arith.negf %303 : vector<8x128xf32>
    %305 = math.exp %304 : vector<8x128xf32>
    %cst_75 = arith.constant 1.000000e+00 : f32
    %306 = vector.broadcast %cst_75 : f32 to vector<8x128xf32>
    %307 = arith.addf %306, %305 : vector<8x128xf32>
    %308 = arith.divf %306, %307 : vector<8x128xf32>
    %309 = vector.extract_strided_slice %302 {offsets = [0, 128], sizes = [8, 128], strides = [1, 1]} : vector<8x1024xf32> to vector<8x128xf32>
    %310 = arith.negf %309 : vector<8x128xf32>
    %311 = math.exp %310 : vector<8x128xf32>
    %cst_76 = arith.constant 1.000000e+00 : f32
    %312 = vector.broadcast %cst_76 : f32 to vector<8x128xf32>
    %313 = arith.addf %312, %311 : vector<8x128xf32>
    %314 = arith.divf %312, %313 : vector<8x128xf32>
    %315 = vector.extract_strided_slice %302 {offsets = [0, 256], sizes = [8, 128], strides = [1, 1]} : vector<8x1024xf32> to vector<8x128xf32>
    %316 = math.tanh %315 : vector<8x128xf32>
    %317 = vector.extract_strided_slice %302 {offsets = [0, 384], sizes = [8, 128], strides = [1, 1]} : vector<8x1024xf32> to vector<8x128xf32>
    %318 = arith.negf %317 : vector<8x128xf32>
    %319 = math.exp %318 : vector<8x128xf32>
    %cst_77 = arith.constant 1.000000e+00 : f32
    %320 = vector.broadcast %cst_77 : f32 to vector<8x128xf32>
    %321 = arith.addf %320, %319 : vector<8x128xf32>
    %322 = arith.divf %320, %321 : vector<8x128xf32>
    %323 = arith.mulf %314, %268 : vector<8x128xf32>
    %324 = arith.mulf %308, %316 : vector<8x128xf32>
    %325 = arith.addf %323, %324 : vector<8x128xf32>
    %326 = math.tanh %325 : vector<8x128xf32>
    %327 = arith.mulf %322, %326 : vector<8x128xf32>
    %328 = vector.extract_strided_slice %302 {offsets = [0, 512], sizes = [8, 128], strides = [1, 1]} : vector<8x1024xf32> to vector<8x128xf32>
    %329 = arith.negf %328 : vector<8x128xf32>
    %330 = math.exp %329 : vector<8x128xf32>
    %cst_78 = arith.constant 1.000000e+00 : f32
    %331 = vector.broadcast %cst_78 : f32 to vector<8x128xf32>
    %332 = arith.addf %331, %330 : vector<8x128xf32>
    %333 = arith.divf %331, %332 : vector<8x128xf32>
    %334 = vector.extract_strided_slice %302 {offsets = [0, 640], sizes = [8, 128], strides = [1, 1]} : vector<8x1024xf32> to vector<8x128xf32>
    %335 = arith.negf %334 : vector<8x128xf32>
    %336 = math.exp %335 : vector<8x128xf32>
    %cst_79 = arith.constant 1.000000e+00 : f32
    %337 = vector.broadcast %cst_79 : f32 to vector<8x128xf32>
    %338 = arith.addf %337, %336 : vector<8x128xf32>
    %339 = arith.divf %337, %338 : vector<8x128xf32>
    %340 = vector.extract_strided_slice %302 {offsets = [0, 768], sizes = [8, 128], strides = [1, 1]} : vector<8x1024xf32> to vector<8x128xf32>
    %341 = math.tanh %340 : vector<8x128xf32>
    %342 = vector.extract_strided_slice %302 {offsets = [0, 896], sizes = [8, 128], strides = [1, 1]} : vector<8x1024xf32> to vector<8x128xf32>
    %343 = arith.negf %342 : vector<8x128xf32>
    %344 = math.exp %343 : vector<8x128xf32>
    %cst_80 = arith.constant 1.000000e+00 : f32
    %345 = vector.broadcast %cst_80 : f32 to vector<8x128xf32>
    %346 = arith.addf %345, %344 : vector<8x128xf32>
    %347 = arith.divf %345, %346 : vector<8x128xf32>
    %348 = arith.mulf %339, %293 : vector<8x128xf32>
    %349 = arith.mulf %333, %341 : vector<8x128xf32>
    %350 = arith.addf %348, %349 : vector<8x128xf32>
    %351 = math.tanh %350 : vector<8x128xf32>
    %352 = arith.mulf %347, %351 : vector<8x128xf32>
    %c48_81 = arith.constant 48 : index
    %c0_82 = arith.constant 0 : index
    %353 = vector.load %arg8[%c48_81, %c0_82] : memref<64x1024xf32, #tpu.memory_space<vmem>>, vector<8x512xf32>
    %c8_83 = arith.constant 8 : index
    %c512_84 = arith.constant 512 : index
    %354 = vector.load %arg8[%c8_83, %c512_84] : memref<64x1024xf32, #tpu.memory_space<vmem>>, vector<8x512xf32>
    %355 = tpu.concatenate %353, %354 in 1 : vector<8x512xf32>, vector<8x512xf32> -> vector<8x1024xf32>
    %356 = tpu.concatenate %327, %352 in 1 : vector<8x128xf32>, vector<8x128xf32> -> vector<8x256xf32>
    %c0_85 = arith.constant 0 : index
    %c0_86 = arith.constant 0 : index
    %357 = vector.load %arg3[%c0_85, %c0_86] : memref<256x1024xf32, #tpu.memory_space<vmem>>, vector<256x1024xf32>
    %cst_87 = arith.constant dense<0.000000e+00> : vector<8x1024xf32>
    %358 = tpu.matmul %356, %357, %cst_87 {dimension_numbers = #tpu.dot_dimension_numbers<[1], [0], [0], [1], [0, 0, 1, 1], [], []>} : vector<8x256xf32>, vector<256x1024xf32>, vector<8x1024xf32> -> vector<8x1024xf32>
    %359 = arith.addf %355, %358 : vector<8x1024xf32>
    %360 = vector.extract_strided_slice %359 {offsets = [0, 0], sizes = [8, 128], strides = [1, 1]} : vector<8x1024xf32> to vector<8x128xf32>
    %361 = arith.negf %360 : vector<8x128xf32>
    %362 = math.exp %361 : vector<8x128xf32>
    %cst_88 = arith.constant 1.000000e+00 : f32
    %363 = vector.broadcast %cst_88 : f32 to vector<8x128xf32>
    %364 = arith.addf %363, %362 : vector<8x128xf32>
    %365 = arith.divf %363, %364 : vector<8x128xf32>
    %366 = vector.extract_strided_slice %359 {offsets = [0, 128], sizes = [8, 128], strides = [1, 1]} : vector<8x1024xf32> to vector<8x128xf32>
    %367 = arith.negf %366 : vector<8x128xf32>
    %368 = math.exp %367 : vector<8x128xf32>
    %cst_89 = arith.constant 1.000000e+00 : f32
    %369 = vector.broadcast %cst_89 : f32 to vector<8x128xf32>
    %370 = arith.addf %369, %368 : vector<8x128xf32>
    %371 = arith.divf %369, %370 : vector<8x128xf32>
    %372 = vector.extract_strided_slice %359 {offsets = [0, 256], sizes = [8, 128], strides = [1, 1]} : vector<8x1024xf32> to vector<8x128xf32>
    %373 = math.tanh %372 : vector<8x128xf32>
    %374 = vector.extract_strided_slice %359 {offsets = [0, 384], sizes = [8, 128], strides = [1, 1]} : vector<8x1024xf32> to vector<8x128xf32>
    %375 = arith.negf %374 : vector<8x128xf32>
    %376 = math.exp %375 : vector<8x128xf32>
    %cst_90 = arith.constant 1.000000e+00 : f32
    %377 = vector.broadcast %cst_90 : f32 to vector<8x128xf32>
    %378 = arith.addf %377, %376 : vector<8x128xf32>
    %379 = arith.divf %377, %378 : vector<8x128xf32>
    %380 = arith.mulf %371, %325 : vector<8x128xf32>
    %381 = arith.mulf %365, %373 : vector<8x128xf32>
    %382 = arith.addf %380, %381 : vector<8x128xf32>
    %383 = math.tanh %382 : vector<8x128xf32>
    %384 = arith.mulf %379, %383 : vector<8x128xf32>
    %385 = vector.extract_strided_slice %359 {offsets = [0, 512], sizes = [8, 128], strides = [1, 1]} : vector<8x1024xf32> to vector<8x128xf32>
    %386 = arith.negf %385 : vector<8x128xf32>
    %387 = math.exp %386 : vector<8x128xf32>
    %cst_91 = arith.constant 1.000000e+00 : f32
    %388 = vector.broadcast %cst_91 : f32 to vector<8x128xf32>
    %389 = arith.addf %388, %387 : vector<8x128xf32>
    %390 = arith.divf %388, %389 : vector<8x128xf32>
    %391 = vector.extract_strided_slice %359 {offsets = [0, 640], sizes = [8, 128], strides = [1, 1]} : vector<8x1024xf32> to vector<8x128xf32>
    %392 = arith.negf %391 : vector<8x128xf32>
    %393 = math.exp %392 : vector<8x128xf32>
    %cst_92 = arith.constant 1.000000e+00 : f32
    %394 = vector.broadcast %cst_92 : f32 to vector<8x128xf32>
    %395 = arith.addf %394, %393 : vector<8x128xf32>
    %396 = arith.divf %394, %395 : vector<8x128xf32>
    %397 = vector.extract_strided_slice %359 {offsets = [0, 768], sizes = [8, 128], strides = [1, 1]} : vector<8x1024xf32> to vector<8x128xf32>
    %398 = math.tanh %397 : vector<8x128xf32>
    %399 = vector.extract_strided_slice %359 {offsets = [0, 896], sizes = [8, 128], strides = [1, 1]} : vector<8x1024xf32> to vector<8x128xf32>
    %400 = arith.negf %399 : vector<8x128xf32>
    %401 = math.exp %400 : vector<8x128xf32>
    %cst_93 = arith.constant 1.000000e+00 : f32
    %402 = vector.broadcast %cst_93 : f32 to vector<8x128xf32>
    %403 = arith.addf %402, %401 : vector<8x128xf32>
    %404 = arith.divf %402, %403 : vector<8x128xf32>
    %405 = arith.mulf %396, %350 : vector<8x128xf32>
    %406 = arith.mulf %390, %398 : vector<8x128xf32>
    %407 = arith.addf %405, %406 : vector<8x128xf32>
    %408 = math.tanh %407 : vector<8x128xf32>
    %409 = arith.mulf %404, %408 : vector<8x128xf32>
    %c56_94 = arith.constant 56 : index
    %c0_95 = arith.constant 0 : index
    %410 = vector.load %arg8[%c56_94, %c0_95] : memref<64x1024xf32, #tpu.memory_space<vmem>>, vector<8x512xf32>
    %c0_96 = arith.constant 0 : index
    %c512_97 = arith.constant 512 : index
    %411 = vector.load %arg8[%c0_96, %c512_97] : memref<64x1024xf32, #tpu.memory_space<vmem>>, vector<8x512xf32>
    %412 = tpu.concatenate %410, %411 in 1 : vector<8x512xf32>, vector<8x512xf32> -> vector<8x1024xf32>
    %413 = tpu.concatenate %384, %409 in 1 : vector<8x128xf32>, vector<8x128xf32> -> vector<8x256xf32>
    %c0_98 = arith.constant 0 : index
    %c0_99 = arith.constant 0 : index
    %414 = vector.load %arg3[%c0_98, %c0_99] : memref<256x1024xf32, #tpu.memory_space<vmem>>, vector<256x1024xf32>
    %cst_100 = arith.constant dense<0.000000e+00> : vector<8x1024xf32>
    %415 = tpu.matmul %413, %414, %cst_100 {dimension_numbers = #tpu.dot_dimension_numbers<[1], [0], [0], [1], [0, 0, 1, 1], [], []>} : vector<8x256xf32>, vector<256x1024xf32>, vector<8x1024xf32> -> vector<8x1024xf32>
    %416 = arith.addf %412, %415 : vector<8x1024xf32>
    %417 = vector.extract_strided_slice %416 {offsets = [0, 0], sizes = [8, 128], strides = [1, 1]} : vector<8x1024xf32> to vector<8x128xf32>
    %418 = arith.negf %417 : vector<8x128xf32>
    %419 = math.exp %418 : vector<8x128xf32>
    %cst_101 = arith.constant 1.000000e+00 : f32
    %420 = vector.broadcast %cst_101 : f32 to vector<8x128xf32>
    %421 = arith.addf %420, %419 : vector<8x128xf32>
    %422 = arith.divf %420, %421 : vector<8x128xf32>
    %423 = vector.extract_strided_slice %416 {offsets = [0, 128], sizes = [8, 128], strides = [1, 1]} : vector<8x1024xf32> to vector<8x128xf32>
    %424 = arith.negf %423 : vector<8x128xf32>
    %425 = math.exp %424 : vector<8x128xf32>
    %cst_102 = arith.constant 1.000000e+00 : f32
    %426 = vector.broadcast %cst_102 : f32 to vector<8x128xf32>
    %427 = arith.addf %426, %425 : vector<8x128xf32>
    %428 = arith.divf %426, %427 : vector<8x128xf32>
    %429 = vector.extract_strided_slice %416 {offsets = [0, 256], sizes = [8, 128], strides = [1, 1]} : vector<8x1024xf32> to vector<8x128xf32>
    %430 = math.tanh %429 : vector<8x128xf32>
    %431 = vector.extract_strided_slice %416 {offsets = [0, 384], sizes = [8, 128], strides = [1, 1]} : vector<8x1024xf32> to vector<8x128xf32>
    %432 = arith.negf %431 : vector<8x128xf32>
    %433 = math.exp %432 : vector<8x128xf32>
    %cst_103 = arith.constant 1.000000e+00 : f32
    %434 = vector.broadcast %cst_103 : f32 to vector<8x128xf32>
    %435 = arith.addf %434, %433 : vector<8x128xf32>
    %436 = arith.divf %434, %435 : vector<8x128xf32>
    %437 = arith.mulf %428, %382 : vector<8x128xf32>
    %438 = arith.mulf %422, %430 : vector<8x128xf32>
    %439 = arith.addf %437, %438 : vector<8x128xf32>
    %440 = math.tanh %439 : vector<8x128xf32>
    %441 = arith.mulf %436, %440 : vector<8x128xf32>
    %442 = vector.extract_strided_slice %416 {offsets = [0, 512], sizes = [8, 128], strides = [1, 1]} : vector<8x1024xf32> to vector<8x128xf32>
    %443 = arith.negf %442 : vector<8x128xf32>
    %444 = math.exp %443 : vector<8x128xf32>
    %cst_104 = arith.constant 1.000000e+00 : f32
    %445 = vector.broadcast %cst_104 : f32 to vector<8x128xf32>
    %446 = arith.addf %445, %444 : vector<8x128xf32>
    %447 = arith.divf %445, %446 : vector<8x128xf32>
    %448 = vector.extract_strided_slice %416 {offsets = [0, 640], sizes = [8, 128], strides = [1, 1]} : vector<8x1024xf32> to vector<8x128xf32>
    %449 = arith.negf %448 : vector<8x128xf32>
    %450 = math.exp %449 : vector<8x128xf32>
    %cst_105 = arith.constant 1.000000e+00 : f32
    %451 = vector.broadcast %cst_105 : f32 to vector<8x128xf32>
    %452 = arith.addf %451, %450 : vector<8x128xf32>
    %453 = arith.divf %451, %452 : vector<8x128xf32>
    %454 = vector.extract_strided_slice %416 {offsets = [0, 768], sizes = [8, 128], strides = [1, 1]} : vector<8x1024xf32> to vector<8x128xf32>
    %455 = math.tanh %454 : vector<8x128xf32>
    %456 = vector.extract_strided_slice %416 {offsets = [0, 896], sizes = [8, 128], strides = [1, 1]} : vector<8x1024xf32> to vector<8x128xf32>
    %457 = arith.negf %456 : vector<8x128xf32>
    %458 = math.exp %457 : vector<8x128xf32>
    %cst_106 = arith.constant 1.000000e+00 : f32
    %459 = vector.broadcast %cst_106 : f32 to vector<8x128xf32>
    %460 = arith.addf %459, %458 : vector<8x128xf32>
    %461 = arith.divf %459, %460 : vector<8x128xf32>
    %462 = arith.mulf %453, %407 : vector<8x128xf32>
    %463 = arith.mulf %447, %455 : vector<8x128xf32>
    %464 = arith.addf %462, %463 : vector<8x128xf32>
    %465 = math.tanh %464 : vector<8x128xf32>
    %466 = arith.mulf %461, %465 : vector<8x128xf32>
    %467 = vector.extract_strided_slice %441 {offsets = [0, 0], sizes = [1, 128], strides = [1, 1]} : vector<8x128xf32> to vector<1x128xf32>
    %468 = vector.extract_strided_slice %441 {offsets = [2, 0], sizes = [1, 128], strides = [1, 1]} : vector<8x128xf32> to vector<1x128xf32>
    %469 = vector.extract_strided_slice %441 {offsets = [4, 0], sizes = [1, 128], strides = [1, 1]} : vector<8x128xf32> to vector<1x128xf32>
    %470 = vector.extract_strided_slice %441 {offsets = [6, 0], sizes = [1, 128], strides = [1, 1]} : vector<8x128xf32> to vector<1x128xf32>
    %471 = vector.extract_strided_slice %466 {offsets = [0, 0], sizes = [1, 128], strides = [1, 1]} : vector<8x128xf32> to vector<1x128xf32>
    %472 = vector.extract_strided_slice %466 {offsets = [2, 0], sizes = [1, 128], strides = [1, 1]} : vector<8x128xf32> to vector<1x128xf32>
    %473 = vector.extract_strided_slice %466 {offsets = [4, 0], sizes = [1, 128], strides = [1, 1]} : vector<8x128xf32> to vector<1x128xf32>
    %474 = vector.extract_strided_slice %466 {offsets = [6, 0], sizes = [1, 128], strides = [1, 1]} : vector<8x128xf32> to vector<1x128xf32>
    %475 = tpu.concatenate %467, %468, %469, %470, %471, %472, %473, %474 in 0 : vector<1x128xf32>, vector<1x128xf32>, vector<1x128xf32>, vector<1x128xf32>, vector<1x128xf32>, vector<1x128xf32>, vector<1x128xf32>, vector<1x128xf32> -> vector<8x128xf32>
    %476 = vector.extract_strided_slice %441 {offsets = [1, 0], sizes = [1, 128], strides = [1, 1]} : vector<8x128xf32> to vector<1x128xf32>
    %477 = vector.extract_strided_slice %441 {offsets = [3, 0], sizes = [1, 128], strides = [1, 1]} : vector<8x128xf32> to vector<1x128xf32>
    %478 = vector.extract_strided_slice %441 {offsets = [5, 0], sizes = [1, 128], strides = [1, 1]} : vector<8x128xf32> to vector<1x128xf32>
    %479 = vector.extract_strided_slice %441 {offsets = [7, 0], sizes = [1, 128], strides = [1, 1]} : vector<8x128xf32> to vector<1x128xf32>
    %480 = vector.extract_strided_slice %466 {offsets = [1, 0], sizes = [1, 128], strides = [1, 1]} : vector<8x128xf32> to vector<1x128xf32>
    %481 = vector.extract_strided_slice %466 {offsets = [3, 0], sizes = [1, 128], strides = [1, 1]} : vector<8x128xf32> to vector<1x128xf32>
    %482 = vector.extract_strided_slice %466 {offsets = [5, 0], sizes = [1, 128], strides = [1, 1]} : vector<8x128xf32> to vector<1x128xf32>
    %483 = vector.extract_strided_slice %466 {offsets = [7, 0], sizes = [1, 128], strides = [1, 1]} : vector<8x128xf32> to vector<1x128xf32>
    %484 = tpu.concatenate %476, %477, %478, %479, %480, %481, %482, %483 in 0 : vector<1x128xf32>, vector<1x128xf32>, vector<1x128xf32>, vector<1x128xf32>, vector<1x128xf32>, vector<1x128xf32>, vector<1x128xf32>, vector<1x128xf32> -> vector<8x128xf32>
    %485 = vector.shape_cast %42 : vector<8x128xf32> to vector<1x8x128xf32>
    %486 = vector.shape_cast %99 : vector<8x128xf32> to vector<1x8x128xf32>
    %487 = vector.shape_cast %156 : vector<8x128xf32> to vector<1x8x128xf32>
    %488 = vector.shape_cast %213 : vector<8x128xf32> to vector<1x8x128xf32>
    %489 = vector.shape_cast %270 : vector<8x128xf32> to vector<1x8x128xf32>
    %490 = vector.shape_cast %327 : vector<8x128xf32> to vector<1x8x128xf32>
    %491 = vector.shape_cast %384 : vector<8x128xf32> to vector<1x8x128xf32>
    %492 = vector.shape_cast %441 : vector<8x128xf32> to vector<1x8x128xf32>
    %493 = tpu.concatenate %485, %486, %487, %488, %489, %490, %491, %492 in 0 : vector<1x8x128xf32>, vector<1x8x128xf32>, vector<1x8x128xf32>, vector<1x8x128xf32>, vector<1x8x128xf32>, vector<1x8x128xf32>, vector<1x8x128xf32>, vector<1x8x128xf32> -> vector<8x8x128xf32>
    %494 = vector.shape_cast %466 : vector<8x128xf32> to vector<1x8x128xf32>
    %495 = vector.shape_cast %409 : vector<8x128xf32> to vector<1x8x128xf32>
    %496 = vector.shape_cast %352 : vector<8x128xf32> to vector<1x8x128xf32>
    %497 = vector.shape_cast %295 : vector<8x128xf32> to vector<1x8x128xf32>
    %498 = vector.shape_cast %238 : vector<8x128xf32> to vector<1x8x128xf32>
    %499 = vector.shape_cast %181 : vector<8x128xf32> to vector<1x8x128xf32>
    %500 = vector.shape_cast %124 : vector<8x128xf32> to vector<1x8x128xf32>
    %501 = vector.shape_cast %67 : vector<8x128xf32> to vector<1x8x128xf32>
    %502 = tpu.concatenate %494, %495, %496, %497, %498, %499, %500, %501 in 0 : vector<1x8x128xf32>, vector<1x8x128xf32>, vector<1x8x128xf32>, vector<1x8x128xf32>, vector<1x8x128xf32>, vector<1x8x128xf32>, vector<1x8x128xf32>, vector<1x8x128xf32> -> vector<8x8x128xf32>
    %503 = vector.shape_cast %475 : vector<8x128xf32> to vector<1x8x128xf32>
    %504 = vector.broadcast %503 : vector<1x8x128xf32> to vector<8x8x128xf32>
    %505 = arith.mulf %493, %504 : vector<8x8x128xf32>
    %506 = vector.shape_cast %484 : vector<8x128xf32> to vector<1x8x128xf32>
    %507 = vector.broadcast %506 : vector<1x8x128xf32> to vector<8x8x128xf32>
    %508 = arith.mulf %502, %507 : vector<8x8x128xf32>
    %509 = arith.addf %505, %508 : vector<8x8x128xf32>
    %cst_107 = arith.constant dense<0.000000e+00> : vector<8x8xf32>
    %510 = vector.multi_reduction <add>, %509, %cst_107 [2] : vector<8x8x128xf32> to vector<8x8xf32>
    %511 = vector.shape_cast %510 : vector<8x8xf32> to vector<8x8x1xf32>
    %cst_108 = arith.constant dense<0xFF800000> : vector<8x1xf32>
    %512 = vector.multi_reduction <maximumf>, %511, %cst_108 [0] : vector<8x8x1xf32> to vector<8x1xf32>
    %513 = vector.shape_cast %512 : vector<8x1xf32> to vector<1x8x1xf32>
    %514 = vector.broadcast %513 : vector<1x8x1xf32> to vector<8x8x1xf32>
    %515 = arith.subf %511, %514 : vector<8x8x1xf32>
    %516 = math.exp %515 : vector<8x8x1xf32>
    %cst_109 = arith.constant dense<0.000000e+00> : vector<8x1xf32>
    %517 = vector.multi_reduction <add>, %516, %cst_109 [0] : vector<8x8x1xf32> to vector<8x1xf32>
    %518 = vector.shape_cast %517 : vector<8x1xf32> to vector<1x8x1xf32>
    %519 = vector.broadcast %518 : vector<1x8x1xf32> to vector<8x8x1xf32>
    %520 = arith.divf %516, %519 : vector<8x8x1xf32>
    %521 = vector.broadcast %520 : vector<8x8x1xf32> to vector<8x8x128xf32>
    %522 = arith.mulf %493, %521 : vector<8x8x128xf32>
    %cst_110 = arith.constant dense<0.000000e+00> : vector<8x128xf32>
    %523 = vector.multi_reduction <add>, %522, %cst_110 [0] : vector<8x8x128xf32> to vector<8x128xf32>
    %524 = vector.broadcast %520 : vector<8x8x1xf32> to vector<8x8x128xf32>
    %525 = arith.mulf %502, %524 : vector<8x8x128xf32>
    %cst_111 = arith.constant dense<0.000000e+00> : vector<8x128xf32>
    %526 = vector.multi_reduction <add>, %525, %cst_111 [0] : vector<8x8x128xf32> to vector<8x128xf32>
    %527 = tpu.concatenate %523, %526 in 1 : vector<8x128xf32>, vector<8x128xf32> -> vector<8x256xf32>
    %c0_112 = arith.constant 0 : index
    %c0_113 = arith.constant 0 : index
    %528 = vector.load %arg4[%c0_112, %c0_113] : memref<256x4xf32, #tpu.memory_space<vmem>>, vector<256x4xf32>
    %cst_114 = arith.constant dense<0.000000e+00> : vector<8x4xf32>
    %529 = tpu.matmul %527, %528, %cst_114 {dimension_numbers = #tpu.dot_dimension_numbers<[1], [0], [0], [1], [0, 0, 1, 1], [], []>} : vector<8x256xf32>, vector<256x4xf32>, vector<8x4xf32> -> vector<8x4xf32>
    %c0_115 = arith.constant 0 : index
    %c0_116 = arith.constant 0 : index
    %530 = vector.load %arg5[%c0_115, %c0_116] : memref<1x4xf32, #tpu.memory_space<vmem>>, vector<1x4xf32>
    %531 = vector.broadcast %530 : vector<1x4xf32> to vector<8x4xf32>
    %532 = arith.addf %529, %531 : vector<8x4xf32>
    %c0_117 = arith.constant 0 : index
    %c0_118 = arith.constant 0 : index
    %533 = vector.load %arg6[%c0_117, %c0_118] : memref<8x4xf32, #tpu.memory_space<vmem>>, vector<8x4xf32>
    tpu.vector_store %arg6[%c0_117, %c0_118], %532 {strides = array<i32>} : memref<8x4xf32, #tpu.memory_space<vmem>>, vector<8x4xf32>,
    %534 = vector.extract_strided_slice %520 {offsets = [0, 0, 0], sizes = [1, 8, 1], strides = [1, 1, 1]} : vector<8x8x1xf32> to vector<1x8x1xf32>
    %535 = vector.shape_cast %534 : vector<1x8x1xf32> to vector<8x1xf32>
    %536 = vector.extract_strided_slice %520 {offsets = [1, 0, 0], sizes = [1, 8, 1], strides = [1, 1, 1]} : vector<8x8x1xf32> to vector<1x8x1xf32>
    %537 = vector.shape_cast %536 : vector<1x8x1xf32> to vector<8x1xf32>
    %538 = vector.extract_strided_slice %520 {offsets = [2, 0, 0], sizes = [1, 8, 1], strides = [1, 1, 1]} : vector<8x8x1xf32> to vector<1x8x1xf32>
    %539 = vector.shape_cast %538 : vector<1x8x1xf32> to vector<8x1xf32>
    %540 = vector.extract_strided_slice %520 {offsets = [3, 0, 0], sizes = [1, 8, 1], strides = [1, 1, 1]} : vector<8x8x1xf32> to vector<1x8x1xf32>
    %541 = vector.shape_cast %540 : vector<1x8x1xf32> to vector<8x1xf32>
    %542 = vector.extract_strided_slice %520 {offsets = [4, 0, 0], sizes = [1, 8, 1], strides = [1, 1, 1]} : vector<8x8x1xf32> to vector<1x8x1xf32>
    %543 = vector.shape_cast %542 : vector<1x8x1xf32> to vector<8x1xf32>
    %544 = vector.extract_strided_slice %520 {offsets = [5, 0, 0], sizes = [1, 8, 1], strides = [1, 1, 1]} : vector<8x8x1xf32> to vector<1x8x1xf32>
    %545 = vector.shape_cast %544 : vector<1x8x1xf32> to vector<8x1xf32>
    %546 = vector.extract_strided_slice %520 {offsets = [6, 0, 0], sizes = [1, 8, 1], strides = [1, 1, 1]} : vector<8x8x1xf32> to vector<1x8x1xf32>
    %547 = vector.shape_cast %546 : vector<1x8x1xf32> to vector<8x1xf32>
    %548 = vector.extract_strided_slice %520 {offsets = [7, 0, 0], sizes = [1, 8, 1], strides = [1, 1, 1]} : vector<8x8x1xf32> to vector<1x8x1xf32>
    %549 = vector.shape_cast %548 : vector<1x8x1xf32> to vector<8x1xf32>
    %550 = tpu.concatenate %535, %537, %539, %541, %543, %545, %547, %549 in 1 : vector<8x1xf32>, vector<8x1xf32>, vector<8x1xf32>, vector<8x1xf32>, vector<8x1xf32>, vector<8x1xf32>, vector<8x1xf32>, vector<8x1xf32> -> vector<8x8xf32>
    %c0_119 = arith.constant 0 : index
    %c0_120 = arith.constant 0 : index
    %551 = vector.load %arg7[%c0_119, %c0_120] : memref<8x8xf32, #tpu.memory_space<vmem>>, vector<8x8xf32>
    tpu.vector_store %arg7[%c0_119, %c0_120], %550 {strides = array<i32>} : memref<8x8xf32, #tpu.memory_space<vmem>>, vector<8x8xf32>,
    return
  }
}

</mosaic_0001>

<bundles_post_ra>
// kernel: bilstm_attention_forward.1
= control target key start
LH: loop header
LB: loop body
LE: loop exit
PB: predicated region body
PF: predicated region fallthrough
CT: control target
= control target key end

     0   :  { %13 = vsyncpa [#allocation4], 0  ;;  %s9019_s0 = inlined_call_operand.vmem [shape: f32[64,256], index: 0, kind: input, shape index: {}]   ;;  %s9020_s1 = inlined_call_operand.hbm [shape: f32[256,1024], index: 1, kind: input, shape index: {}]   ;;  %s9021_s2 = inlined_call_operand.vmem [shape: f32[1,1024], index: 2, kind: input, shape index: {}]   ;;  %s9022_s3 = inlined_call_operand.hbm [shape: f32[256,1024], index: 3, kind: input, shape index: {}]   ;;  %s9023_s4 = inlined_call_operand.vmem [shape: f32[256,4], index: 4, kind: input, shape index: {}]   ;;  %s9024_s5 = inlined_call_operand.vmem [shape: f32[1,4], index: 5, kind: input, shape index: {}]   ;;  %s9025_s6 = inlined_call_operand.vmem [shape: f32[8,4], index: 6, kind: output, shape index: {0}]   ;;  %s9026_s7 = inlined_call_operand.hbm [shape: f32[8,8], index: 7, kind: output, shape index: {1}]  }
   0x1   :  { %14 = vsyncpa [#allocation7], 0 }
   0x2   :  { %15 = vsyncpa [#allocation5], 0  ;;  %s7126_s24 = smov [#allocation3]   ;;  %s7054_s28 = scalar_lea.hbm %s9020_s1, 32768 }
   0x3   :  { %s23_s25 = sshll.u32 %s7126_s24, 4  ;;  %p7055_p0 = scmp.ne.s32.totalorder %s9020_s1, %s7054_s28  ;;  %s24_s25 = int_to_ptr.vmem [resolvable:$true] %s23_s25 }
   0x4   :  { %p7058_p1 = scmp.lt.u32.totalorder %s7054_s28, %s9020_s1 }
   0x6   :  { %p7060_p2 = pnand %p7058_p1, %p7055_p0 }
   0x8   :  { %7063 = shalt.err (!%p7060_p2)
}
   0x9   :  { %s7064_s10 = scalar_lea.vmem %s24_s25, 32768  ;;  %p7069_p4 = scmp.lt.s32.totalorder %s24_s25, %s24_s25 }
   0xa   :  { %p7065_p3 = scmp.ne.s32.totalorder %s24_s25, %s7064_s10  ;;  %p7070_p5 = scmp.lt.s32.totalorder %s7064_s10, %s7064_s10 }
   0xc   :  { %p7071_p6 = por %p7070_p5, %p7069_p4 }
   0xe   :  { %p7072_p7 = pnand %p7071_p6, %p7065_p3 }
  0x10   :  { %7075 = shalt.err (!%p7072_p7)
}
  0x11   :  { %s7127_s11 = smov 1024   ;;  %s7128_s12 = smov 64  }
  0x12   :  { %29 = dma.hbm_to_vmem [thread:$0]  %s9020_s1, 32768, %s24_s25, [#allocation4], %s7127_s11, %s7127_s11, %s7128_s12  }
  0x13   :  { %s7129_s15 = smov [#allocation6]   ;;  %s7076_s19 = scalar_lea.hbm %s9022_s3, 32768 }
  0x14   :  { %s37_s16 = sshll.u32 %s7129_s15, 4  ;;  %p7077_p8 = scmp.ne.s32.totalorder %s9022_s3, %s7076_s19  ;;  %s38_s16 = int_to_ptr.vmem [resolvable:$true] %s37_s16 }
  0x15   :  { %p7080_p9 = scmp.lt.u32.totalorder %s7076_s19, %s9022_s3 }
  0x17   :  { %p7082_p10 = pnand %p7080_p9, %p7077_p8 }
  0x19   :  { %7085 = shalt.err (!%p7082_p10)
}
  0x1a   :  { %s7086_s24 = scalar_lea.vmem %s38_s16, 32768  ;;  %p7091_p12 = scmp.lt.s32.totalorder %s38_s16, %s38_s16 }
  0x1b   :  { %p7087_p11 = scmp.ne.s32.totalorder %s38_s16, %s7086_s24  ;;  %p7092_p13 = scmp.lt.s32.totalorder %s7086_s24, %s7086_s24 }
  0x1d   :  { %p7093_p0 = por %p7092_p13, %p7091_p12 }
  0x1f   :  { %p7094_p1 = pnand %p7093_p0, %p7087_p11 }
  0x21   :  { %7097 = shalt.err (!%p7094_p1)
}
  0x22   :  { %43 = dma.hbm_to_vmem [thread:$0]  %s9022_s3, 32768, %s38_s16, [#allocation7], %s7127_s11, %s7127_s11, %s7128_s12  }
  0x23   :  { %7120 = dma.done.wait [#allocation4], 32768  }
  0x24   :  { %7121 = vsyncadd [#allocation4], 4294934528 }
  0x25   :  { %7122 = dma.done.wait [#allocation7], 32768  }
  0x26   :  { %7123 = vsyncadd [#allocation7], 4294934528  ;;  %v71_v0 = vld [vmem:[#allocation3 + $0x8] sm:$0xff]  ;;  %v73_v2 = vld [vmem:[#allocation3 + $0x18] sm:$0xff]  ;;  %vm3940_vm0 = vcmask 1040384   ;;  %vm3942_vm1 = vcmask 1041408  }
  0x27   :  { %v79_v1 = vld [vmem:[#allocation3 + $0x48] sm:$0xff]  ;;  %v81_v4 = vld [vmem:[#allocation3 + $0x58] sm:$0xff]  ;;  %v70_v5 = vld [vmem:[#allocation3] sm:$0xff]  ;;  %vm3944_vm2 = vcmask 1042432   ;;  %vm3946_vm3 = vcmask 1043456   ;;  %vm3948_vm4 = vcmask 1044480  }
  0x28   :  { %v4310_v3 = vpack.c.bf16 %v79_v1, %v71_v0  ;;  %v78_v6 = vld [vmem:[#allocation3 + $0x40] sm:$0xff]  ;;  %v4374_v7 = vpack.c.bf16 %v81_v4, %v73_v2  ;;  %v72_v9 = vld [vmem:[#allocation3 + $0x10] sm:$0xff]  ;;  %v87_v11 = vld [vmem:[#allocation3 + $0x88] sm:$0xff]  ;;  %vm3950_vm5 = vcmask 1045504   ;;  %vm3952_vm6 = vcmask 1046528  }
  0x29   :  { %v4312_v8 = vpack.c.bf16 %v78_v6, %v70_v5  ;;  %v80_v10 = vld [vmem:[#allocation3 + $0x50] sm:$0xff]  ;;  %v95_v13 = vld [vmem:[#allocation3 + $0xc8] sm:$0xff]  ;;  %v89_v14 = vld [vmem:[#allocation3 + $0x98] sm:$0xff]  ;;  %vm4191_vm7 = vcmask 7168   ;;  %vm4189_vm8 = vcmask 31744   ;;  %vm4193_vm9 = vcmask 15360  }
  0x2a   :  { %4311 = vmatprep.subr.bf16.mxu0 %v4310_v3  ;;  %v4376_v12 = vpack.c.bf16 %v80_v10, %v72_v9  ;;  %v97_v15 = vld [vmem:[#allocation3 + $0xd8] sm:$0xff]  ;;  %4375 = vmatprep.subr.bf16.mxu1 %v4374_v7  ;;  %v4314_v16 = vpack.c.bf16 %v95_v13, %v87_v11  ;;  %v86_v18 = vld [vmem:[#allocation3 + $0x80] sm:$0xff]  ;;  %v88_v20 = vld [vmem:[#allocation3 + $0x90] sm:$0xff]  ;;  %vm4195_vm10 = vcmask 23552   ;;  %vm4198_vm11 = vcmask 39936  }
  0x2b   :  { %4313 = vmatpush1.bf16.msra.mxu0 %v4312_v8  ;;  %v4378_v17 = vpack.c.bf16 %v97_v15, %v89_v14  ;;  %v94_v19 = vld [vmem:[#allocation3 + $0xc0] sm:$0xff]  ;;  %v96_v22 = vld [vmem:[#allocation3 + $0xd0] sm:$0xff]  ;;  %v103_v23 = vld [vmem:[#allocation3 + $0x108] sm:$0xff]  ;;  %vm4200_vm12 = vcmask 48128   ;;  %vm4202_vm13 = vcmask 56320   ;;  %vm4204_vm14 = vcmask 64512  }
  0x2c   :  { %4377 = vmatpush1.bf16.msra.mxu1 %v4376_v12  ;;  %v4316_v21 = vpack.c.bf16 %v94_v19, %v86_v18  ;;  %v111_v24 = vld [vmem:[#allocation3 + $0x148] sm:$0xff]  ;;  %4315 = vmatprep.subr.bf16.mxu0 %v4314_v16  ;;  %v4380_v25 = vpack.c.bf16 %v96_v22, %v88_v20  ;;  %v105_v27 = vld [vmem:[#allocation3 + $0x118] sm:$0xff]  ;;  %v102_v29 = vld [vmem:[#allocation3 + $0x100] sm:$0xff] }
  0x2d   :  { %4379 = vmatprep.subr.bf16.mxu1 %v4378_v17  ;;  %v4318_v26 = vpack.c.bf16 %v111_v24, %v103_v23  ;;  %v113_v28 = vld [vmem:[#allocation3 + $0x158] sm:$0xff]  ;;  %v110_v31 = vld [vmem:[#allocation3 + $0x140] sm:$0xff]  ;;  %v104_v32 = vld [vmem:[#allocation3 + $0x110] sm:$0xff] }
  0x2e   :  { %v4382_v30 = vpack.c.bf16 %v113_v28, %v105_v27  ;;  %v112_v33 = vld [vmem:[#allocation3 + $0x150] sm:$0xff]  ;;  %v4320_v34 = vpack.c.bf16 %v110_v31, %v102_v29  ;;  %v119_v35 = vld [vmem:[#allocation3 + $0x188] sm:$0xff]  ;;  %v121_v37 = vld [vmem:[#allocation3 + $0x198] sm:$0xff] }
  0x2f   :  { %4317 = vmatpush1.bf16.msra.mxu0 %v4316_v21  ;;  %v127_v36 = vld [vmem:[#allocation3 + $0x1c8] sm:$0xff]  ;;  %v4384_v38 = vpack.c.bf16 %v112_v33, %v104_v32  ;;  %v129_v40 = vld [vmem:[#allocation3 + $0x1d8] sm:$0xff]  ;;  %v118_v41 = vld [vmem:[#allocation3 + $0x180] sm:$0xff] }
  0x30   :  { %4381 = vmatpush1.bf16.msra.mxu1 %v4380_v25  ;;  %4319 = vmatprep.subr.bf16.mxu0 %v4318_v26  ;;  %v4322_v39 = vpack.c.bf16 %v127_v36, %v119_v35  ;;  %v126_v42 = vld [vmem:[#allocation3 + $0x1c0] sm:$0xff]  ;;  %v4386_v43 = vpack.c.bf16 %v129_v40, %v121_v37  ;;  %v120_v44 = vld [vmem:[#allocation3 + $0x190] sm:$0xff]  ;;  %v135_v46 = vld [vmem:[#allocation3 + $0x208] sm:$0xff] }
  0x31   :  { %4383 = vmatprep.subr.bf16.mxu1 %v4382_v30  ;;  %v128_v45 = vld [vmem:[#allocation3 + $0x1d0] sm:$0xff]  ;;  %v143_v47 = vld [vmem:[#allocation3 + $0x248] sm:$0xff]  ;;  %v137_v48 = vld [vmem:[#allocation3 + $0x218] sm:$0xff]  ;;  %v4324_v50 = vpack.c.bf16 %v126_v42, %v118_v41 }
  0x32   :  { %v145_v49 = vld [vmem:[#allocation3 + $0x258] sm:$0xff]  ;;  %v4388_v51 = vpack.c.bf16 %v128_v45, %v120_v44  ;;  %v4326_v52 = vpack.c.bf16 %v143_v47, %v135_v46  ;;  %v134_v53 = vld [vmem:[#allocation3 + $0x200] sm:$0xff]  ;;  %v136_v55 = vld [vmem:[#allocation3 + $0x210] sm:$0xff] }
  0x33   :  { %4321 = vmatpush1.bf16.msra.mxu0 %v4320_v34  ;;  %v142_v54 = vld [vmem:[#allocation3 + $0x240] sm:$0xff]  ;;  %v4390_v56 = vpack.c.bf16 %v145_v49, %v137_v48  ;;  %v144_v57 = vld [vmem:[#allocation3 + $0x250] sm:$0xff]  ;;  %v151_v58 = vld [vmem:[#allocation3 + $0x288] sm:$0xff] }
  0x34   :  { %4385 = vmatpush1.bf16.msra.mxu1 %v4384_v38  ;;  %4323 = vmatprep.subr.bf16.mxu0 %v4322_v39  ;;  %v159_v59 = vld [vmem:[#allocation3 + $0x2c8] sm:$0xff]  ;;  %v153_v60 = vld [vmem:[#allocation3 + $0x298] sm:$0xff]  ;;  %v4328_v62 = vpack.c.bf16 %v142_v54, %v134_v53  ;;  %v4392_v63 = vpack.c.bf16 %v144_v57, %v136_v55  ;;  %v150_v1 = vld [vmem:[#allocation3 + $0x280] sm:$0xff] }
  0x35   :  { %4387 = vmatprep.subr.bf16.mxu1 %v4386_v43  ;;  %v161_v61 = vld [vmem:[#allocation3 + $0x2d8] sm:$0xff]  ;;  %v4330_v0 = vpack.c.bf16 %v159_v59, %v151_v58  ;;  %v158_v2 = vld [vmem:[#allocation3 + $0x2c0] sm:$0xff]  ;;  %v152_v3 = vld [vmem:[#allocation3 + $0x290] sm:$0xff] }
  0x36   :  { %v4394_v4 = vpack.c.bf16 %v161_v61, %v153_v60  ;;  %v160_v5 = vld [vmem:[#allocation3 + $0x2d0] sm:$0xff]  ;;  %v167_v6 = vld [vmem:[#allocation3 + $0x308] sm:$0xff]  ;;  %v169_v8 = vld [vmem:[#allocation3 + $0x318] sm:$0xff]  ;;  %v4332_v10 = vpack.c.bf16 %v158_v2, %v150_v1 }
  0x37   :  { %4325 = vmatpush1.bf16.msra.mxu0 %v4324_v50  ;;  %v175_v7 = vld [vmem:[#allocation3 + $0x348] sm:$0xff]  ;;  %v177_v9 = vld [vmem:[#allocation3 + $0x358] sm:$0xff]  ;;  %v4396_v11 = vpack.c.bf16 %v160_v5, %v152_v3  ;;  %v166_v13 = vld [vmem:[#allocation3 + $0x300] sm:$0xff] }
  0x38   :  { %4389 = vmatpush1.bf16.msra.mxu1 %v4388_v51  ;;  %4327 = vmatprep.subr.bf16.mxu0 %v4326_v52  ;;  %v4334_v12 = vpack.c.bf16 %v175_v7, %v167_v6  ;;  %v174_v14 = vld [vmem:[#allocation3 + $0x340] sm:$0xff]  ;;  %v168_v15 = vld [vmem:[#allocation3 + $0x310] sm:$0xff]  ;;  %v4398_v16 = vpack.c.bf16 %v177_v9, %v169_v8  ;;  %v183_v18 = vld [vmem:[#allocation3 + $0x388] sm:$0xff] }
  0x39   :  { %4391 = vmatprep.subr.bf16.mxu1 %v4390_v56  ;;  %v176_v17 = vld [vmem:[#allocation3 + $0x350] sm:$0xff]  ;;  %v191_v19 = vld [vmem:[#allocation3 + $0x3c8] sm:$0xff]  ;;  %v185_v20 = vld [vmem:[#allocation3 + $0x398] sm:$0xff]  ;;  %v4336_v22 = vpack.c.bf16 %v174_v14, %v166_v13 }
  0x3a   :  { %v193_v21 = vld [vmem:[#allocation3 + $0x3d8] sm:$0xff]  ;;  %v4400_v23 = vpack.c.bf16 %v176_v17, %v168_v15  ;;  %v4338_v24 = vpack.c.bf16 %v191_v19, %v183_v18  ;;  %v182_v25 = vld [vmem:[#allocation3 + $0x380] sm:$0xff]  ;;  %v184_v27 = vld [vmem:[#allocation3 + $0x390] sm:$0xff] }
  0x3b   :  { %4329 = vmatpush1.bf16.msra.mxu0 %v4328_v62  ;;  %v190_v26 = vld [vmem:[#allocation3 + $0x3c0] sm:$0xff]  ;;  %v4402_v28 = vpack.c.bf16 %v193_v21, %v185_v20  ;;  %v192_v29 = vld [vmem:[#allocation3 + $0x3d0] sm:$0xff]  ;;  %v199_v30 = vld [vmem:[#allocation3 + $0x408] sm:$0xff] }
  0x3c   :  { %4393 = vmatpush1.bf16.msra.mxu1 %v4392_v63  ;;  %4331 = vmatprep.subr.bf16.mxu0 %v4330_v0  ;;  %v207_v31 = vld [vmem:[#allocation3 + $0x448] sm:$0xff]  ;;  %v201_v32 = vld [vmem:[#allocation3 + $0x418] sm:$0xff]  ;;  %v4340_v34 = vpack.c.bf16 %v190_v26, %v182_v25  ;;  %v4404_v35 = vpack.c.bf16 %v192_v29, %v184_v27  ;;  %v198_v37 = vld [vmem:[#allocation3 + $0x400] sm:$0xff] }
  0x3d   :  { %4395 = vmatprep.subr.bf16.mxu1 %v4394_v4  ;;  %v209_v33 = vld [vmem:[#allocation3 + $0x458] sm:$0xff]  ;;  %v4342_v36 = vpack.c.bf16 %v207_v31, %v199_v30  ;;  %v206_v38 = vld [vmem:[#allocation3 + $0x440] sm:$0xff]  ;;  %v200_v39 = vld [vmem:[#allocation3 + $0x410] sm:$0xff] }
  0x3e   :  { %v4406_v40 = vpack.c.bf16 %v209_v33, %v201_v32  ;;  %v208_v41 = vld [vmem:[#allocation3 + $0x450] sm:$0xff]  ;;  %v215_v42 = vld [vmem:[#allocation3 + $0x488] sm:$0xff]  ;;  %v217_v44 = vld [vmem:[#allocation3 + $0x498] sm:$0xff]  ;;  %v4344_v46 = vpack.c.bf16 %v206_v38, %v198_v37 }
  0x3f   :  { %4333 = vmatpush1.bf16.msra.mxu0 %v4332_v10  ;;  %v223_v43 = vld [vmem:[#allocation3 + $0x4c8] sm:$0xff]  ;;  %v225_v45 = vld [vmem:[#allocation3 + $0x4d8] sm:$0xff]  ;;  %v4408_v47 = vpack.c.bf16 %v208_v41, %v200_v39  ;;  %v214_v49 = vld [vmem:[#allocation3 + $0x480] sm:$0xff] }
  0x40   :  { %4397 = vmatpush1.bf16.msra.mxu1 %v4396_v11  ;;  %4335 = vmatprep.subr.bf16.mxu0 %v4334_v12  ;;  %v4346_v48 = vpack.c.bf16 %v223_v43, %v215_v42  ;;  %v222_v50 = vld [vmem:[#allocation3 + $0x4c0] sm:$0xff]  ;;  %v216_v51 = vld [vmem:[#allocation3 + $0x490] sm:$0xff]  ;;  %v4410_v52 = vpack.c.bf16 %v225_v45, %v217_v44  ;;  %v231_v54 = vld [vmem:[#allocation3 + $0x508] sm:$0xff] }
  0x41   :  { %4399 = vmatprep.subr.bf16.mxu1 %v4398_v16  ;;  %v224_v53 = vld [vmem:[#allocation3 + $0x4d0] sm:$0xff]  ;;  %v239_v55 = vld [vmem:[#allocation3 + $0x548] sm:$0xff]  ;;  %v233_v56 = vld [vmem:[#allocation3 + $0x518] sm:$0xff]  ;;  %v4348_v58 = vpack.c.bf16 %v222_v50, %v214_v49 }
  0x42   :  { %v241_v57 = vld [vmem:[#allocation3 + $0x558] sm:$0xff]  ;;  %v4412_v59 = vpack.c.bf16 %v224_v53, %v216_v51  ;;  %v4350_v60 = vpack.c.bf16 %v239_v55, %v231_v54  ;;  %v230_v61 = vld [vmem:[#allocation3 + $0x500] sm:$0xff]  ;;  %v232_v63 = vld [vmem:[#allocation3 + $0x510] sm:$0xff] }
  0x43   :  { %4337 = vmatpush1.bf16.msra.mxu0 %v4336_v22  ;;  %v238_v62 = vld [vmem:[#allocation3 + $0x540] sm:$0xff]  ;;  %v4414_v0 = vpack.c.bf16 %v241_v57, %v233_v56  ;;  %v240_v1 = vld [vmem:[#allocation3 + $0x550] sm:$0xff]  ;;  %v247_v2 = vld [vmem:[#allocation3 + $0x588] sm:$0xff] }
  0x44   :  { %4401 = vmatpush1.bf16.msra.mxu1 %v4400_v23  ;;  %4339 = vmatprep.subr.bf16.mxu0 %v4338_v24  ;;  %v255_v3 = vld [vmem:[#allocation3 + $0x5c8] sm:$0xff]  ;;  %v249_v4 = vld [vmem:[#allocation3 + $0x598] sm:$0xff]  ;;  %v4352_v6 = vpack.c.bf16 %v238_v62, %v230_v61  ;;  %v246_v7 = vld [vmem:[#allocation3 + $0x580] sm:$0xff]  ;;  %v4416_v8 = vpack.c.bf16 %v240_v1, %v232_v63 }
  0x45   :  { %4403 = vmatprep.subr.bf16.mxu1 %v4402_v28  ;;  %v257_v5 = vld [vmem:[#allocation3 + $0x5d8] sm:$0xff]  ;;  %v4354_v9 = vpack.c.bf16 %v255_v3, %v247_v2  ;;  %v254_v10 = vld [vmem:[#allocation3 + $0x5c0] sm:$0xff]  ;;  %v248_v11 = vld [vmem:[#allocation3 + $0x590] sm:$0xff] }
  0x46   :  { %v256_v12 = vld [vmem:[#allocation3 + $0x5d0] sm:$0xff]  ;;  %v4418_v13 = vpack.c.bf16 %v257_v5, %v249_v4  ;;  %v263_v14 = vld [vmem:[#allocation3 + $0x608] sm:$0xff]  ;;  %v265_v17 = vld [vmem:[#allocation3 + $0x618] sm:$0xff]  ;;  %v4356_v19 = vpack.c.bf16 %v254_v10, %v246_v7 }
  0x47   :  { %4341 = vmatpush1.bf16.msra.mxu0 %v4340_v34  ;;  %v271_v15 = vld [vmem:[#allocation3 + $0x648] sm:$0xff]  ;;  %v273_v18 = vld [vmem:[#allocation3 + $0x658] sm:$0xff]  ;;  %v4420_v20 = vpack.c.bf16 %v256_v12, %v248_v11  ;;  %v262_v22 = vld [vmem:[#allocation3 + $0x600] sm:$0xff] }
  0x48   :  { %4405 = vmatpush1.bf16.msra.mxu1 %v4404_v35  ;;  %4343 = vmatprep.subr.bf16.mxu0 %v4342_v36  ;;  %v7199_v16 = vld [vmem:[%s9019_s0 + $0x8] sm:$0xff]  ;;  %v4358_v21 = vpack.c.bf16 %v271_v15, %v263_v14  ;;  %v270_v23 = vld [vmem:[#allocation3 + $0x640] sm:$0xff]  ;;  %v264_v24 = vld [vmem:[#allocation3 + $0x610] sm:$0xff]  ;;  %v4422_v25 = vpack.c.bf16 %v273_v18, %v265_v17 }
  0x49   :  { %4407 = vmatprep.subr.bf16.mxu1 %v4406_v40  ;;  %432 = vmatprep.mubr.f32.mxu0 %v7199_v16  ;;  %v272_v26 = vld [vmem:[#allocation3 + $0x650] sm:$0xff]  ;;  %v279_v27 = vld [vmem:[#allocation3 + $0x688] sm:$0xff]  ;;  %v281_v29 = vld [vmem:[#allocation3 + $0x698] sm:$0xff]  ;;  %v4360_v31 = vpack.c.bf16 %v270_v23, %v262_v22 }
  0x4a   :  { %545 = vmatprep.mubr.f32.mxu1 %v7199_v16  ;;  %v287_v28 = vld [vmem:[#allocation3 + $0x6c8] sm:$0xff]  ;;  %v289_v30 = vld [vmem:[#allocation3 + $0x6d8] sm:$0xff]  ;;  %v4424_v32 = vpack.c.bf16 %v272_v26, %v264_v24  ;;  %v278_v34 = vld [vmem:[#allocation3 + $0x680] sm:$0xff] }
  0x4b   :  { %4345 = vmatpush1.bf16.msra.mxu0 %v4344_v46  ;;  %v4362_v33 = vpack.c.bf16 %v287_v28, %v279_v27  ;;  %v286_v35 = vld [vmem:[#allocation3 + $0x6c0] sm:$0xff]  ;;  %v280_v36 = vld [vmem:[#allocation3 + $0x690] sm:$0xff]  ;;  %v4426_v37 = vpack.c.bf16 %v289_v30, %v281_v29  ;;  %v295_v39 = vld [vmem:[#allocation3 + $0x708] sm:$0xff] }
  0x4c   :  { %4409 = vmatpush1.bf16.msra.mxu1 %v4408_v47  ;;  %4347 = vmatprep.subr.bf16.mxu0 %v4346_v48  ;;  %v288_v38 = vld [vmem:[#allocation3 + $0x6d0] sm:$0xff]  ;;  %v303_v40 = vld [vmem:[#allocation3 + $0x748] sm:$0xff]  ;;  %v297_v41 = vld [vmem:[#allocation3 + $0x718] sm:$0xff]  ;;  %v4364_v43 = vpack.c.bf16 %v286_v35, %v278_v34 }
  0x4d   :  { %4411 = vmatprep.subr.bf16.mxu1 %v4410_v52  ;;  %v305_v42 = vld [vmem:[#allocation3 + $0x758] sm:$0xff]  ;;  %v4428_v44 = vpack.c.bf16 %v288_v38, %v280_v36  ;;  %v4366_v45 = vpack.c.bf16 %v303_v40, %v295_v39  ;;  %v294_v46 = vld [vmem:[#allocation3 + $0x700] sm:$0xff]  ;;  %v296_v48 = vld [vmem:[#allocation3 + $0x710] sm:$0xff] }
  0x4e   :  { %v302_v47 = vld [vmem:[#allocation3 + $0x740] sm:$0xff]  ;;  %v4430_v49 = vpack.c.bf16 %v305_v42, %v297_v41  ;;  %v304_v50 = vld [vmem:[#allocation3 + $0x750] sm:$0xff]  ;;  %v311_v51 = vld [vmem:[#allocation3 + $0x788] sm:$0xff] }
  0x4f   :  { %4349 = vmatpush1.bf16.msra.mxu0 %v4348_v58  ;;  %v319_v52 = vld [vmem:[#allocation3 + $0x7c8] sm:$0xff]  ;;  %v313_v53 = vld [vmem:[#allocation3 + $0x798] sm:$0xff]  ;;  %v4368_v55 = vpack.c.bf16 %v302_v47, %v294_v46  ;;  %v4432_v56 = vpack.c.bf16 %v304_v50, %v296_v48  ;;  %v310_v58 = vld [vmem:[#allocation3 + $0x780] sm:$0xff] }
  0x50   :  { %4413 = vmatpush1.bf16.msra.mxu1 %v4412_v59  ;;  %4351 = vmatprep.subr.bf16.mxu0 %v4350_v60  ;;  %v321_v54 = vld [vmem:[#allocation3 + $0x7d8] sm:$0xff]  ;;  %v4370_v57 = vpack.c.bf16 %v319_v52, %v311_v51  ;;  %v318_v59 = vld [vmem:[#allocation3 + $0x7c0] sm:$0xff]  ;;  %v312_v60 = vld [vmem:[#allocation3 + $0x790] sm:$0xff] }
  0x51   :  { %4415 = vmatprep.subr.bf16.mxu1 %v4414_v0  ;;  %v4434_v61 = vpack.c.bf16 %v321_v54, %v313_v53  ;;  %v320_v62 = vld [vmem:[#allocation3 + $0x7d0] sm:$0xff]  ;;  %v75_v63 = vld [vmem:[#allocation3 + $0x28] sm:$0xff]  ;;  %v77_v1 = vld [vmem:[#allocation3 + $0x38] sm:$0xff]  ;;  %v4372_v3 = vpack.c.bf16 %v318_v59, %v310_v58 }
  0x52   :  { %v83_v0 = vld [vmem:[#allocation3 + $0x68] sm:$0xff]  ;;  %v85_v2 = vld [vmem:[#allocation3 + $0x78] sm:$0xff]  ;;  %v4436_v4 = vpack.c.bf16 %v320_v62, %v312_v60  ;;  %v82_v7 = vld [vmem:[#allocation3 + $0x60] sm:$0xff] }
  0x53   :  { %4353 = vmatpush1.bf16.msra.mxu0 %v4352_v6  ;;  %v4438_v5 = vpack.c.bf16 %v83_v0, %v75_v63  ;;  %v74_v6 = vld [vmem:[#allocation3 + $0x20] sm:$0xff]  ;;  %v84_v10 = vld [vmem:[#allocation3 + $0x70] sm:$0xff]  ;;  %v91_v11 = vld [vmem:[#allocation3 + $0xa8] sm:$0xff] }
  0x54   :  { %4417 = vmatpush1.bf16.msra.mxu1 %v4416_v8  ;;  %4355 = vmatprep.subr.bf16.mxu0 %v4354_v9  ;;  %v76_v8 = vld [vmem:[#allocation3 + $0x30] sm:$0xff]  ;;  %v4502_v9 = vpack.c.bf16 %v85_v2, %v77_v1  ;;  %v99_v12 = vld [vmem:[#allocation3 + $0xe8] sm:$0xff]  ;;  %v101_v14 = vld [vmem:[#allocation3 + $0xf8] sm:$0xff]  ;;  %v4440_v17 = vpack.c.bf16 %v82_v7, %v74_v6 }
  0x55   :  { %4419 = vmatprep.subr.bf16.mxu1 %v4418_v13  ;;  %v93_v13 = vld [vmem:[#allocation3 + $0xb8] sm:$0xff]  ;;  %v7206_v15 = vld [vmem:[%s9019_s0] sm:$0xff]  ;;  %v4504_v18 = vpack.c.bf16 %v84_v10, %v76_v8  ;;  %v92_v22 = vld [vmem:[#allocation3 + $0xb0] sm:$0xff] }
  0x56   :  { %v4506_v23 = vpack.c.bf16 %v101_v14, %v93_v13  ;;  %v100_v24 = vld [vmem:[#allocation3 + $0xf0] sm:$0xff]  ;;  %v115_v26 = vld [vmem:[#allocation3 + $0x168] sm:$0xff]  ;;  %v109_v27 = vld [vmem:[#allocation3 + $0x138] sm:$0xff] }
  0x57   :  { %4357 = vmatpush1.bf16.msra.mxu0 %v4356_v19  ;;  %v4442_v19 = vpack.c.bf16 %v99_v12, %v91_v11  ;;  %v117_v28 = vld [vmem:[#allocation3 + $0x178] sm:$0xff]  ;;  %v114_v34 = vld [vmem:[#allocation3 + $0x160] sm:$0xff]  ;;  %v108_v35 = vld [vmem:[#allocation3 + $0x130] sm:$0xff] }
  0x58   :  { %4421 = vmatpush1.bf16.msra.mxu1 %v4420_v20  ;;  %4359 = vmatprep.subr.bf16.mxu0 %v4358_v21  ;;  %v90_v20 = vld [vmem:[#allocation3 + $0xa0] sm:$0xff]  ;;  %v7212_v29 = vld [vmem:[%s9019_s0 + $0x18] sm:$0xff]  ;;  %v7218_v36 = vld [vmem:[%s9019_s0 + $0x10] sm:$0xff] }
  0x59   :  { %4423 = vmatprep.subr.bf16.mxu1 %v4422_v25  ;;  %v98_v21 = vld [vmem:[#allocation3 + $0xe0] sm:$0xff]  ;;  %v107_v25 = vld [vmem:[#allocation3 + $0x128] sm:$0xff]  ;;  %v116_v38 = vld [vmem:[#allocation3 + $0x170] sm:$0xff] }
  0x5a   :  { %v4444_v30 = vpack.c.bf16 %v98_v21, %v90_v20  ;;  %v123_v39 = vld [vmem:[#allocation3 + $0x1a8] sm:$0xff]  ;;  %v125_v41 = vld [vmem:[#allocation3 + $0x1b8] sm:$0xff]  ;;  %v4512_v46 = vpack.c.bf16 %v116_v38, %v108_v35  ;;  %v122_v48 = vld [vmem:[#allocation3 + $0x1a0] sm:$0xff] }
  0x5b   :  { %4361 = vmatpush1.bf16.msra.mxu0 %v4360_v31  ;;  %v106_v31 = vld [vmem:[#allocation3 + $0x120] sm:$0xff]  ;;  %v131_v40 = vld [vmem:[#allocation3 + $0x1e8] sm:$0xff]  ;;  %v133_v42 = vld [vmem:[#allocation3 + $0x1f8] sm:$0xff] }
  0x5c   :  { %4425 = vmatpush1.bf16.msra.mxu1 %v4424_v32  ;;  %4363 = vmatprep.subr.bf16.mxu0 %v4362_v33  ;;  %v4508_v32 = vpack.c.bf16 %v100_v24, %v92_v22  ;;  %v4446_v33 = vpack.c.bf16 %v115_v26, %v107_v25  ;;  %v4450_v47 = vpack.c.bf16 %v131_v40, %v123_v39  ;;  %v124_v50 = vld [vmem:[#allocation3 + $0x1b0] sm:$0xff]  ;;  %v139_v53 = vld [vmem:[#allocation3 + $0x228] sm:$0xff]  ;;  %v138_v62 = vld [vmem:[#allocation3 + $0x220] sm:$0xff] }
  0x5d   :  { %4427 = vmatprep.subr.bf16.mxu1 %v4426_v37  ;;  %v4510_v37 = vpack.c.bf16 %v117_v28, %v109_v27  ;;  %v4514_v51 = vpack.c.bf16 %v133_v42, %v125_v41  ;;  %v132_v52 = vld [vmem:[#allocation3 + $0x1f0] sm:$0xff]  ;;  %v147_v54 = vld [vmem:[#allocation3 + $0x268] sm:$0xff]  ;;  %v146_v63 = vld [vmem:[#allocation3 + $0x260] sm:$0xff] }
  0x5e   :  { %v7246_v59 = vld [vmem:[%s9019_s0 + $0x30] sm:$0xff]  ;;  %v4516_v60 = vpack.c.bf16 %v132_v52, %v124_v50  ;;  %v165_v6 = vld [vmem:[#allocation3 + $0x2f8] sm:$0xff]  ;;  %v7254_v7 = vld [vmem:[%s9019_s0 + $0x48] sm:$0xff]  ;;  %v4456_v8 = vpack.c.bf16 %v146_v63, %v138_v62 }
  0x5f   :  { %4365 = vmatpush1.bf16.msra.mxu0 %v4364_v43  ;;  %v7226_v43 = vld [vmem:[%s9019_s0 + $0x28] sm:$0xff]  ;;  %v140_v0 = vld [vmem:[#allocation3 + $0x230] sm:$0xff]  ;;  %v154_v12 = vld [vmem:[#allocation3 + $0x2a0] sm:$0xff] }
  0x60   :  { %4429 = vmatpush1.bf16.msra.mxu1 %v4428_v44  ;;  %4367 = vmatprep.subr.bf16.mxu0 %v4366_v45  ;;  %v4448_v44 = vpack.c.bf16 %v114_v34, %v106_v31  ;;  %v7232_v45 = vld [vmem:[%s9019_s0 + $0x20] sm:$0xff]  ;;  %v148_v2 = vld [vmem:[#allocation3 + $0x270] sm:$0xff]  ;;  %v179_v20 = vld [vmem:[#allocation3 + $0x368] sm:$0xff] }
  0x61   :  { %4431 = vmatprep.subr.bf16.mxu1 %v4430_v49  ;;  %v130_v49 = vld [vmem:[#allocation3 + $0x1e0] sm:$0xff]  ;;  %v4520_v10 = vpack.c.bf16 %v148_v2, %v140_v0  ;;  %v156_v14 = vld [vmem:[#allocation3 + $0x2b0] sm:$0xff]  ;;  %v173_v21 = vld [vmem:[#allocation3 + $0x338] sm:$0xff] }
  0x62   :  { %v4452_v58 = vpack.c.bf16 %v130_v49, %v122_v48  ;;  %v162_v13 = vld [vmem:[#allocation3 + $0x2e0] sm:$0xff]  ;;  %v181_v22 = vld [vmem:[#allocation3 + $0x378] sm:$0xff]  ;;  %v7274_v25 = vld [vmem:[%s9019_s0 + $0x50] sm:$0xff] }
  0x63   :  { %4369 = vmatpush1.bf16.msra.mxu0 %v4368_v55  ;;  %v141_v55 = vld [vmem:[#allocation3 + $0x238] sm:$0xff]  ;;  %v4460_v24 = vpack.c.bf16 %v162_v13, %v154_v12  ;;  %v170_v28 = vld [vmem:[#allocation3 + $0x320] sm:$0xff]  ;;  %v172_v31 = vld [vmem:[#allocation3 + $0x330] sm:$0xff] }
  0x64   :  { %4433 = vmatpush1.bf16.msra.mxu1 %v4432_v56  ;;  %4371 = vmatprep.subr.bf16.mxu0 %v4370_v57  ;;  %v149_v56 = vld [vmem:[#allocation3 + $0x278] sm:$0xff]  ;;  %v187_v34 = vld [vmem:[#allocation3 + $0x3a8] sm:$0xff]  ;;  %v7288_v41 = vld [vmem:[%s9019_s0 + $0x60] sm:$0xff] }
  0x65   :  { %4435 = vmatprep.subr.bf16.mxu1 %v4434_v61  ;;  %v7240_v57 = vld [vmem:[%s9019_s0 + $0x38] sm:$0xff]  ;;  %v4454_v61 = vpack.c.bf16 %v147_v54, %v139_v53  ;;  %v4518_v1 = vpack.c.bf16 %v149_v56, %v141_v55  ;;  %v195_v35 = vld [vmem:[#allocation3 + $0x3e8] sm:$0xff]  ;;  %v188_v48 = vld [vmem:[#allocation3 + $0x3b0] sm:$0xff] }
  0x66   :  { %v197_v38 = vld [vmem:[#allocation3 + $0x3f8] sm:$0xff]  ;;  %v7282_v39 = vld [vmem:[%s9019_s0 + $0x68] sm:$0xff]  ;;  %v196_v50 = vld [vmem:[#allocation3 + $0x3f0] sm:$0xff] }
  0x67   :  { %4373 = vmatpush1.bf16.msra.mxu0 %v4372_v3  ;;  %v155_v3 = vld [vmem:[#allocation3 + $0x2a8] sm:$0xff]  ;;  %v205_v53 = vld [vmem:[#allocation3 + $0x438] sm:$0xff]  ;;  %v202_v62 = vld [vmem:[#allocation3 + $0x420] sm:$0xff] }
  0x68   :  { %4437 = vmatpush1.bf16.msra.mxu1 %v4436_v4  ;;  %4439 = vmatprep.subr.bf16.mxu0 %v4438_v5  ;;  %v163_v4 = vld [vmem:[#allocation3 + $0x2e8] sm:$0xff]  ;;  %v157_v5 = vld [vmem:[#allocation3 + $0x2b8] sm:$0xff]  ;;  %v210_v63 = vld [vmem:[#allocation3 + $0x460] sm:$0xff] }
  0x69   :  { %4503 = vmatprep.subr.bf16.mxu1 %v4502_v9  ;;  %v7260_v9 = vld [vmem:[%s9019_s0 + $0x40] sm:$0xff]  ;;  %v4458_v11 = vpack.c.bf16 %v163_v4, %v155_v3  ;;  %v211_v52 = vld [vmem:[#allocation3 + $0x468] sm:$0xff]  ;;  %v213_v54 = vld [vmem:[#allocation3 + $0x478] sm:$0xff] }
  0x6a   :  { %433 = vmatmul.mubr.f32.vlgmr.msra.gmra.mrb[0].mxu0 %v7206_v15  ;;  %v7296_v55 = vld [vmem:[%s9019_s0 + $0x78] sm:$0xff]  ;;  %v204_v0 = vld [vmem:[#allocation3 + $0x430] sm:$0xff]  ;;  %v219_v3 = vld [vmem:[#allocation3 + $0x4a8] sm:$0xff] }
  0x6b   :  { %546 = vmatmul.mubr.f32.vlgmr.msra.gmra.mrb[0].mxu1 %v7206_v15  ;;  %4441 = vmatpush1.bf16.msra.mxu0 %v4440_v17  ;;  %v4522_v17 = vpack.c.bf16 %v165_v6, %v157_v5  ;;  %v212_v2 = vld [vmem:[#allocation3 + $0x470] sm:$0xff]  ;;  %v227_v4 = vld [vmem:[#allocation3 + $0x4e8] sm:$0xff]  ;;  %v221_v5 = vld [vmem:[#allocation3 + $0x4b8] sm:$0xff] }
  0x6c   :  { %4505 = vmatpush1.bf16.msra.mxu1 %v4504_v18  ;;  %4443 = vmatprep.subr.bf16.mxu0 %v4442_v19  ;;  %v164_v18 = vld [vmem:[#allocation3 + $0x2f0] sm:$0xff]  ;;  %v171_v19 = vld [vmem:[#allocation3 + $0x328] sm:$0xff]  ;;  %v229_v6 = vld [vmem:[#allocation3 + $0x4f8] sm:$0xff] }
  0x6d   :  { %4507 = vmatprep.subr.bf16.mxu1 %v4506_v23  ;;  %438 = vmatprep.mubr.f32.mxu0 %v7212_v29  ;;  %v7268_v23 = vld [vmem:[%s9019_s0 + $0x58] sm:$0xff]  ;;  %v4524_v26 = vpack.c.bf16 %v164_v18, %v156_v14  ;;  %v4462_v27 = vpack.c.bf16 %v179_v20, %v171_v19  ;;  %v218_v12 = vld [vmem:[#allocation3 + $0x4a0] sm:$0xff]  ;;  %v220_v14 = vld [vmem:[#allocation3 + $0x4b0] sm:$0xff] }
  0x6e   :  { %551 = vmatprep.mubr.f32.mxu1 %v7212_v29  ;;  %439 = vmatmul.mubr.f32.gmra.mrb[2].mxu0 %v7218_v36  ;;  %v226_v13 = vld [vmem:[#allocation3 + $0x4e0] sm:$0xff]  ;;  %v228_v18 = vld [vmem:[#allocation3 + $0x4f0] sm:$0xff]  ;;  %v235_v19 = vld [vmem:[#allocation3 + $0x528] sm:$0xff] }
  0x6f   :  { %4445 = vmatpush1.bf16.msra.mxu0 %v4444_v30  ;;  %552 = vmatmul.mubr.f32.gmra.mrb[2].mxu1 %v7218_v36  ;;  %v178_v30 = vld [vmem:[#allocation3 + $0x360] sm:$0xff]  ;;  %v243_v20 = vld [vmem:[#allocation3 + $0x568] sm:$0xff] }
  0x70   :  { %4509 = vmatpush1.bf16.msra.mxu1 %v4508_v32  ;;  %4447 = vmatprep.subr.bf16.mxu0 %v4446_v33  ;;  %v4526_v32 = vpack.c.bf16 %v181_v22, %v173_v21  ;;  %v180_v33 = vld [vmem:[#allocation3 + $0x370] sm:$0xff]  ;;  %v4464_v40 = vpack.c.bf16 %v178_v30, %v170_v28  ;;  %v237_v21 = vld [vmem:[#allocation3 + $0x538] sm:$0xff]  ;;  %v234_v28 = vld [vmem:[#allocation3 + $0x520] sm:$0xff] }
  0x71   :  { %4511 = vmatprep.subr.bf16.mxu1 %v4510_v37  ;;  %444 = vmatprep.mubr.f32.mxu0 %v7226_v43  ;;  %v189_v37 = vld [vmem:[#allocation3 + $0x3b8] sm:$0xff]  ;;  %v4528_v42 = vpack.c.bf16 %v180_v33, %v172_v31  ;;  %v242_v30 = vld [vmem:[#allocation3 + $0x560] sm:$0xff]  ;;  %v236_v31 = vld [vmem:[#allocation3 + $0x530] sm:$0xff] }
  0x72   :  { %557 = vmatprep.mubr.f32.mxu1 %v7226_v43  ;;  %445 = vmatmul.mubr.f32.gmra.mrb[4].mxu0 %v7232_v45  ;;  %v4530_v49 = vpack.c.bf16 %v197_v38, %v189_v37  ;;  %v245_v22 = vld [vmem:[#allocation3 + $0x578] sm:$0xff]  ;;  %v244_v33 = vld [vmem:[#allocation3 + $0x570] sm:$0xff] }
  0x73   :  { %4449 = vmatpush1.bf16.msra.mxu0 %v4448_v44  ;;  %558 = vmatmul.mubr.f32.gmra.mrb[4].mxu1 %v7232_v45  ;;  %v4466_v44 = vpack.c.bf16 %v195_v35, %v187_v34  ;;  %v251_v34 = vld [vmem:[#allocation3 + $0x5a8] sm:$0xff]  ;;  %v253_v37 = vld [vmem:[#allocation3 + $0x5b8] sm:$0xff] }
  0x74   :  { %4513 = vmatpush1.bf16.msra.mxu1 %v4512_v46  ;;  %4451 = vmatprep.subr.bf16.mxu0 %v4450_v47  ;;  %v186_v46 = vld [vmem:[#allocation3 + $0x3a0] sm:$0xff]  ;;  %v259_v35 = vld [vmem:[#allocation3 + $0x5e8] sm:$0xff]  ;;  %v261_v38 = vld [vmem:[#allocation3 + $0x5f8] sm:$0xff] }
  0x75   :  { %4515 = vmatprep.subr.bf16.mxu1 %v4514_v51  ;;  %450 = vmatprep.mubr.f32.mxu0 %v7240_v57  ;;  %v194_v47 = vld [vmem:[#allocation3 + $0x3e0] sm:$0xff]  ;;  %v203_v51 = vld [vmem:[#allocation3 + $0x428] sm:$0xff] }
  0x76   :  { %563 = vmatprep.mubr.f32.mxu1 %v7240_v57  ;;  %451 = vmatmul.mubr.f32.gmra.mrb[6].mxu0 %v7246_v59  ;;  %v4468_v56 = vpack.c.bf16 %v194_v47, %v186_v46  ;;  %v258_v46 = vld [vmem:[#allocation3 + $0x5e0] sm:$0xff]  ;;  %v252_v47 = vld [vmem:[#allocation3 + $0x5b0] sm:$0xff] }
  0x77   :  { %4453 = vmatpush1.bf16.msra.mxu0 %v4452_v58  ;;  %564 = vmatmul.mubr.f32.gmra.mrb[6].mxu1 %v7246_v59  ;;  %v7302_v58 = vld [vmem:[%s9019_s0 + $0x70] sm:$0xff] }
  0x78   :  { %4517 = vmatpush1.bf16.msra.mxu1 %v4516_v60  ;;  %4455 = vmatprep.subr.bf16.mxu0 %v4454_v61  ;;  %v4532_v60 = vpack.c.bf16 %v196_v50, %v188_v48  ;;  %v4470_v61 = vpack.c.bf16 %v211_v52, %v203_v51  ;;  %v4546_v48 = vpack.c.bf16 %v261_v38, %v253_v37  ;;  %v267_v50 = vld [vmem:[#allocation3 + $0x628] sm:$0xff]  ;;  %v269_v52 = vld [vmem:[#allocation3 + $0x638] sm:$0xff] }
  0x79   :  { %4519 = vmatprep.subr.bf16.mxu1 %v4518_v1  ;;  %456 = vmatprep.mubr.f32.mxu0 %v7254_v7  ;;  %v4534_v1 = vpack.c.bf16 %v213_v54, %v205_v53  ;;  %v275_v51 = vld [vmem:[#allocation3 + $0x668] sm:$0xff]  ;;  %v277_v53 = vld [vmem:[#allocation3 + $0x678] sm:$0xff] }
  0x7a   :  { %569 = vmatprep.mubr.f32.mxu1 %v7254_v7  ;;  %457 = vmatmul.mubr.f32.gmra.mrb[8].mxu0 %v7260_v9  ;;  %v325_v37 = vld [vmem:[#allocation3 + $0x7f8] sm:$0xff] }
  0x7b   :  { %4457 = vmatpush1.bf16.msra.mxu0 %v4456_v8  ;;  %570 = vmatmul.mubr.f32.gmra.mrb[8].mxu1 %v7260_v9  ;;  %v4472_v8 = vpack.c.bf16 %v210_v63, %v202_v62  ;;  %v274_v62 = vld [vmem:[#allocation3 + $0x660] sm:$0xff]  ;;  %v268_v63 = vld [vmem:[#allocation3 + $0x630] sm:$0xff] }
  0x7c   :  { %4521 = vmatpush1.bf16.msra.mxu1 %v4520_v10  ;;  %4459 = vmatprep.subr.bf16.mxu0 %v4458_v11  ;;  %v4536_v10 = vpack.c.bf16 %v212_v2, %v204_v0  ;;  %v4474_v11 = vpack.c.bf16 %v227_v4, %v219_v3  ;;  %v4550_v0 = vpack.c.bf16 %v277_v53, %v269_v52  ;;  %v283_v2 = vld [vmem:[#allocation3 + $0x6a8] sm:$0xff]  ;;  %v285_v4 = vld [vmem:[#allocation3 + $0x6b8] sm:$0xff] }
  0x7d   :  { %4523 = vmatprep.subr.bf16.mxu1 %v4522_v17  ;;  %462 = vmatprep.mubr.f32.mxu0 %v7268_v23  ;;  %v4538_v17 = vpack.c.bf16 %v229_v6, %v221_v5  ;;  %v291_v3 = vld [vmem:[#allocation3 + $0x6e8] sm:$0xff]  ;;  %v293_v5 = vld [vmem:[#allocation3 + $0x6f8] sm:$0xff] }
  0x7e   :  { %575 = vmatprep.mubr.f32.mxu1 %v7268_v23  ;;  %463 = vmatmul.mubr.f32.gmra.mrb[10].mxu0 %v7274_v25  ;;  %v903_v52 = vld [vmem:[#allocation6 + $0x58] sm:$0xff] }
  0x7f   :  { %4461 = vmatpush1.bf16.msra.mxu0 %v4460_v24  ;;  %576 = vmatmul.mubr.f32.gmra.mrb[10].mxu1 %v7274_v25  ;;  %v4476_v24 = vpack.c.bf16 %v226_v13, %v218_v12  ;;  %v290_v12 = vld [vmem:[#allocation3 + $0x6e0] sm:$0xff]  ;;  %v284_v13 = vld [vmem:[#allocation3 + $0x6b0] sm:$0xff] }
  0x80   :  { %4525 = vmatpush1.bf16.msra.mxu1 %v4524_v26  ;;  %4463 = vmatprep.subr.bf16.mxu0 %v4462_v27  ;;  %v4540_v26 = vpack.c.bf16 %v228_v18, %v220_v14  ;;  %v4478_v27 = vpack.c.bf16 %v243_v20, %v235_v19  ;;  %v4554_v14 = vpack.c.bf16 %v293_v5, %v285_v4  ;;  %v299_v18 = vld [vmem:[#allocation3 + $0x728] sm:$0xff]  ;;  %v301_v20 = vld [vmem:[#allocation3 + $0x738] sm:$0xff] }
  0x81   :  { %4527 = vmatprep.subr.bf16.mxu1 %v4526_v32  ;;  %468 = vmatprep.mubr.f32.mxu0 %v7282_v39  ;;  %v4542_v32 = vpack.c.bf16 %v245_v22, %v237_v21  ;;  %v307_v19 = vld [vmem:[#allocation3 + $0x768] sm:$0xff]  ;;  %v309_v21 = vld [vmem:[#allocation3 + $0x778] sm:$0xff] }
  0x82   :  { %581 = vmatprep.mubr.f32.mxu1 %v7282_v39  ;;  %469 = vmatmul.mubr.f32.gmra.mrb[12].mxu0 %v7288_v41  ;;  %v919_v4 = vld [vmem:[#allocation6 + $0xd8] sm:$0xff] }
  0x83   :  { %4465 = vmatpush1.bf16.msra.mxu0 %v4464_v40  ;;  %582 = vmatmul.mubr.f32.gmra.mrb[12].mxu1 %v7288_v41  ;;  %v4480_v40 = vpack.c.bf16 %v242_v30, %v234_v28  ;;  %v306_v28 = vld [vmem:[#allocation3 + $0x760] sm:$0xff]  ;;  %v300_v30 = vld [vmem:[#allocation3 + $0x730] sm:$0xff] }
  0x84   :  { %4529 = vmatpush1.bf16.msra.mxu1 %v4528_v42  ;;  %4467 = vmatprep.subr.bf16.mxu0 %v4466_v44  ;;  %v4482_v42 = vpack.c.bf16 %v259_v35, %v251_v34  ;;  %v250_v44 = vld [vmem:[#allocation3 + $0x5a0] sm:$0xff]  ;;  %v323_v34 = vld [vmem:[#allocation3 + $0x7e8] sm:$0xff]  ;;  %v317_v35 = vld [vmem:[#allocation3 + $0x7b8] sm:$0xff] }
  0x85   :  { %4531 = vmatprep.subr.bf16.mxu1 %v4530_v49  ;;  %474 = vmatprep.mubr.f32.mxu0 %v7296_v55  ;;  %v260_v49 = vld [vmem:[#allocation3 + $0x5f0] sm:$0xff]  ;;  %v4484_v54 = vpack.c.bf16 %v258_v46, %v250_v44  ;;  %v322_v44 = vld [vmem:[#allocation3 + $0x7e0] sm:$0xff] }
  0x86   :  { %587 = vmatprep.mubr.f32.mxu1 %v7296_v55  ;;  %475 = vmatmul.mubr.f32.gmra.mrb[14].mxu0 %v7302_v58  ;;  %v316_v46 = vld [vmem:[#allocation3 + $0x7b0] sm:$0xff] }
  0x87   :  { %4469 = vmatpush1.bf16.msra.mxu0 %v4468_v56  ;;  %588 = vmatmul.mubr.f32.gmra.mrb[14].mxu1 %v7302_v58  ;;  %v4548_v56 = vpack.c.bf16 %v260_v49, %v252_v47  ;;  %v4562_v47 = vpack.c.bf16 %v325_v37, %v317_v35  ;;  %v893_v49 = vld [vmem:[#allocation6 + $0x8] sm:$0xff] }
  0x88   :  { %4533 = vmatpush1.bf16.msra.mxu1 %v4532_v60  ;;  %4471 = vmatprep.subr.bf16.mxu0 %v4470_v61  ;;  %v4486_v60 = vpack.c.bf16 %v275_v51, %v267_v50  ;;  %v266_v61 = vld [vmem:[#allocation3 + $0x620] sm:$0xff]  ;;  %v901_v50 = vld [vmem:[#allocation6 + $0x48] sm:$0xff]  ;;  %v895_v51 = vld [vmem:[#allocation6 + $0x18] sm:$0xff] }
  0x89   :  { %4535 = vmatprep.subr.bf16.mxu1 %v4534_v1  ;;  %658 = vmatprep.mubr.f32.mxu0 %v7199_v16  ;;  %v276_v1 = vld [vmem:[#allocation3 + $0x670] sm:$0xff]  ;;  %v4488_v6 = vpack.c.bf16 %v274_v62, %v266_v61  ;;  %v900_v61 = vld [vmem:[#allocation6 + $0x40] sm:$0xff] }
  0x8a   :  { %771 = vmatprep.mubr.f32.mxu1 %v7199_v16  ;;  %v4544_v16 = vpack.c.bf16 %v244_v33, %v236_v31  ;;  %v4558_v31 = vpack.c.bf16 %v309_v21, %v301_v20  ;;  %v315_v33 = vld [vmem:[#allocation3 + $0x7a8] sm:$0xff]  ;;  %v894_v62 = vld [vmem:[#allocation6 + $0x10] sm:$0xff]  ;;  %v935_v20 = vld [vmem:[#allocation6 + $0x158] sm:$0xff] }
  0x8b   :  { %4473 = vmatpush1.bf16.msra.mxu0 %v4472_v8  ;;  %v4552_v8 = vpack.c.bf16 %v276_v1, %v268_v63  ;;  %v7312_v63 = vpack.c.bf16 %v903_v52, %v895_v51  ;;  %v909_v1 = vld [vmem:[#allocation6 + $0x88] sm:$0xff]  ;;  %v956_v52 = vld [vmem:[#allocation6 + $0x200] sm:$0xff] }
  0x8c   :  { %4537 = vmatpush1.bf16.msra.mxu1 %v4536_v10  ;;  %4475 = vmatprep.subr.bf16.mxu0 %v4474_v11  ;;  %v4490_v10 = vpack.c.bf16 %v291_v3, %v283_v2  ;;  %v282_v11 = vld [vmem:[#allocation3 + $0x6a0] sm:$0xff]  ;;  %v917_v2 = vld [vmem:[#allocation6 + $0xc8] sm:$0xff]  ;;  %v911_v3 = vld [vmem:[#allocation6 + $0x98] sm:$0xff] }
  0x8d   :  { %4539 = vmatprep.subr.bf16.mxu1 %v4538_v17  ;;  %v292_v17 = vld [vmem:[#allocation3 + $0x6f0] sm:$0xff]  ;;  %v4492_v22 = vpack.c.bf16 %v290_v12, %v282_v11  ;;  %9333 = vst [vmem:[#allocation13_spill] sm:$0xff] %v7312_v63  ;;  %v916_v11 = vld [vmem:[#allocation6 + $0xc0] sm:$0xff] }
  0x8e   :  { %v910_v12 = vld [vmem:[#allocation6 + $0x90] sm:$0xff] }
  0x8f   :  { %4477 = vmatpush1.bf16.msra.mxu0 %v4476_v24  ;;  %v4556_v24 = vpack.c.bf16 %v292_v17, %v284_v13  ;;  %v7322_v13 = vpack.c.bf16 %v919_v4, %v911_v3  ;;  %v925_v17 = vld [vmem:[#allocation6 + $0x108] sm:$0xff]  ;;  %v972_v4 = vld [vmem:[#allocation6 + $0x280] sm:$0xff] }
  0x90   :  { %4541 = vmatpush1.bf16.msra.mxu1 %v4540_v26  ;;  %4479 = vmatprep.subr.bf16.mxu0 %v4478_v27  ;;  %v4494_v26 = vpack.c.bf16 %v307_v19, %v299_v18  ;;  %v298_v27 = vld [vmem:[#allocation3 + $0x720] sm:$0xff]  ;;  %v933_v18 = vld [vmem:[#allocation6 + $0x148] sm:$0xff]  ;;  %v927_v19 = vld [vmem:[#allocation6 + $0x118] sm:$0xff] }
  0x91   :  { %4543 = vmatprep.subr.bf16.mxu1 %v4542_v32  ;;  %v308_v32 = vld [vmem:[#allocation3 + $0x770] sm:$0xff]  ;;  %v4496_v38 = vpack.c.bf16 %v306_v28, %v298_v27  ;;  %9337 = vst [vmem:[#allocation17_spill] sm:$0xff] %v7322_v13  ;;  %v932_v27 = vld [vmem:[#allocation6 + $0x140] sm:$0xff] }
  0x92   :  { %v926_v28 = vld [vmem:[#allocation6 + $0x110] sm:$0xff] }
  0x93   :  { %4481 = vmatpush1.bf16.msra.mxu0 %v4480_v40  ;;  %v4560_v40 = vpack.c.bf16 %v308_v32, %v300_v30  ;;  %v7336_v30 = vpack.c.bf16 %v935_v20, %v927_v19  ;;  %v949_v32 = vld [vmem:[#allocation6 + $0x1c8] sm:$0xff] }
  0x94   :  { %4545 = vmatpush1.bf16.msra.mxu1 %v4544_v16  ;;  %4483 = vmatprep.subr.bf16.mxu0 %v4482_v42  ;;  %v4498_v16 = vpack.c.bf16 %v323_v34, %v315_v33  ;;  %v314_v42 = vld [vmem:[#allocation3 + $0x7a0] sm:$0xff]  ;;  %v943_v33 = vld [vmem:[#allocation6 + $0x198] sm:$0xff] }
  0x95   :  { %4547 = vmatprep.subr.bf16.mxu1 %v4546_v48  ;;  %v324_v48 = vld [vmem:[#allocation3 + $0x7f0] sm:$0xff]  ;;  %v4500_v53 = vpack.c.bf16 %v322_v44, %v314_v42  ;;  %9341 = vst [vmem:[#allocation21_spill] sm:$0xff] %v7336_v30  ;;  %v951_v34 = vld [vmem:[#allocation6 + $0x1d8] sm:$0xff] }
  0x96   :  { %v942_v42 = vld [vmem:[#allocation6 + $0x190] sm:$0xff] }
  0x97   :  { %4485 = vmatpush1.bf16.msra.mxu0 %v4484_v54  ;;  %v4564_v54 = vpack.c.bf16 %v324_v48, %v316_v46  ;;  %v950_v44 = vld [vmem:[#allocation6 + $0x1d0] sm:$0xff]  ;;  %v957_v46 = vld [vmem:[#allocation6 + $0x208] sm:$0xff]  ;;  %v967_v48 = vld [vmem:[#allocation6 + $0x258] sm:$0xff] }
  0x98   :  { %4549 = vmatpush1.bf16.msra.mxu1 %v4548_v56  ;;  %4487 = vmatprep.subr.bf16.mxu0 %v4486_v60  ;;  %v7310_v56 = vpack.c.bf16 %v901_v50, %v893_v49  ;;  %v892_v60 = vld [vmem:[#allocation6] sm:$0xff]  ;;  %v7363_v50 = vpack.c.bf16 %v950_v44, %v942_v42 }
  0x99   :  { %4551 = vmatprep.subr.bf16.mxu1 %v4550_v0  ;;  %v902_v0 = vld [vmem:[#allocation6 + $0x50] sm:$0xff]  ;;  %v7314_v5 = vpack.c.bf16 %v900_v61, %v892_v60  ;;  %v973_v61 = vld [vmem:[#allocation6 + $0x288] sm:$0xff]  ;;  %v1004_v44 = vld [vmem:[#allocation6 + $0x380] sm:$0xff] }
  0x9a   :  { %9332 = vst [vmem:[#allocation12_spill] sm:$0xff] %v7310_v56  ;;  %9347 = vst [vmem:[#allocation27_spill] sm:$0xff] %v7363_v50  ;;  %v966_v60 = vld [vmem:[#allocation6 + $0x250] sm:$0xff] }
  0x9b   :  { %4489 = vmatpush1.bf16.msra.mxu0 %v4488_v6  ;;  %9334 = vst [vmem:[#allocation14_spill] sm:$0xff] %v7314_v5  ;;  %v7317_v6 = vpack.c.bf16 %v902_v0, %v894_v62  ;;  %v981_v62 = vld [vmem:[#allocation6 + $0x2c8] sm:$0xff]  ;;  %v983_v0 = vld [vmem:[#allocation6 + $0x2d8] sm:$0xff] }
  0x9c   :  { %4553 = vmatpush1.bf16.msra.mxu1 %v4552_v8  ;;  %4491 = vmatprep.subr.bf16.mxu0 %v4490_v10  ;;  %v7319_v8 = vpack.c.bf16 %v917_v2, %v909_v1  ;;  %v908_v10 = vld [vmem:[#allocation6 + $0x80] sm:$0xff]  ;;  %v7381_v3 = vpack.c.bf16 %v981_v62, %v973_v61 }
  0x9d   :  { %4555 = vmatprep.subr.bf16.mxu1 %v4554_v14  ;;  %9335 = vst [vmem:[#allocation15_spill] sm:$0xff] %v7317_v6  ;;  %v918_v14 = vld [vmem:[#allocation6 + $0xd0] sm:$0xff]  ;;  %v7327_v21 = vpack.c.bf16 %v916_v11, %v908_v10  ;;  %v980_v10 = vld [vmem:[#allocation6 + $0x2c0] sm:$0xff] }
  0x9e   :  { %9336 = vst [vmem:[#allocation16_spill] sm:$0xff] %v7319_v8  ;;  %9352 = vst [vmem:[#allocation32_spill] sm:$0xff] %v7381_v3  ;;  %v974_v11 = vld [vmem:[#allocation6 + $0x290] sm:$0xff]  ;;  %v7390_v19 = vpack.c.bf16 %v980_v10, %v972_v4  ;;  %v1020_v62 = vld [vmem:[#allocation6 + $0x400] sm:$0xff] }
  0x9f   :  { %4493 = vmatpush1.bf16.msra.mxu0 %v4492_v22  ;;  %9338 = vst [vmem:[#allocation18_spill] sm:$0xff] %v7327_v21  ;;  %v7331_v22 = vpack.c.bf16 %v918_v14, %v910_v12  ;;  %v982_v12 = vld [vmem:[#allocation6 + $0x2d0] sm:$0xff]  ;;  %v989_v14 = vld [vmem:[#allocation6 + $0x308] sm:$0xff] }
  0xa0   :  { %4557 = vmatpush1.bf16.msra.mxu1 %v4556_v24  ;;  %4495 = vmatprep.subr.bf16.mxu0 %v4494_v26  ;;  %v7333_v24 = vpack.c.bf16 %v933_v18, %v925_v17  ;;  %v924_v26 = vld [vmem:[#allocation6 + $0x100] sm:$0xff]  ;;  %v997_v17 = vld [vmem:[#allocation6 + $0x348] sm:$0xff]  ;;  %v999_v18 = vld [vmem:[#allocation6 + $0x358] sm:$0xff]  ;;  %9354 = vst [vmem:[#allocation34_spill] sm:$0xff] %v7390_v19  ;;  %v7395_v20 = vpack.c.bf16 %v982_v12, %v974_v11 }
  0xa1   :  { %4559 = vmatprep.subr.bf16.mxu1 %v4558_v31  ;;  %9339 = vst [vmem:[#allocation19_spill] sm:$0xff] %v7331_v22  ;;  %v941_v31 = vld [vmem:[#allocation6 + $0x188] sm:$0xff]  ;;  %v7342_v35 = vpack.c.bf16 %v932_v27, %v924_v26  ;;  %v7397_v26 = vpack.c.bf16 %v997_v17, %v989_v14  ;;  %v988_v27 = vld [vmem:[#allocation6 + $0x300] sm:$0xff]  ;;  %v1030_v4 = vld [vmem:[#allocation6 + $0x450] sm:$0xff] }
  0xa2   :  { %9340 = vst [vmem:[#allocation20_spill] sm:$0xff] %v7333_v24  ;;  %9355 = vst [vmem:[#allocation35_spill] sm:$0xff] %v7395_v20  ;;  %v1037_v10 = vld [vmem:[#allocation6 + $0x488] sm:$0xff]  ;;  %v1047_v12 = vld [vmem:[#allocation6 + $0x4d8] sm:$0xff] }
  0xa3   :  { %4497 = vmatpush1.bf16.msra.mxu0 %v4496_v38  ;;  %9342 = vst [vmem:[#allocation22_spill] sm:$0xff] %v7342_v35  ;;  %v7349_v38 = vpack.c.bf16 %v949_v32, %v941_v31  ;;  %9356 = vst [vmem:[#allocation36_spill] sm:$0xff] %v7397_v26  ;;  %v998_v31 = vld [vmem:[#allocation6 + $0x350] sm:$0xff]  ;;  %v1005_v32 = vld [vmem:[#allocation6 + $0x388] sm:$0xff] }
  0xa4   :  { %4561 = vmatpush1.bf16.msra.mxu1 %v4560_v40  ;;  %4499 = vmatprep.subr.bf16.mxu0 %v4498_v16  ;;  %v940_v40 = vld [vmem:[#allocation6 + $0x180] sm:$0xff]  ;;  %v1045_v11 = vld [vmem:[#allocation6 + $0x4c8] sm:$0xff] }
  0xa5   :  { %4563 = vmatprep.subr.bf16.mxu1 %v4562_v47  ;;  %9344 = vst [vmem:[#allocation24_spill] sm:$0xff] %v7349_v38  ;;  %v948_v16 = vld [vmem:[#allocation6 + $0x1c0] sm:$0xff]  ;;  %v965_v47 = vld [vmem:[#allocation6 + $0x248] sm:$0xff] }
  0xa6   :  { %v7358_v49 = vpack.c.bf16 %v948_v16, %v940_v40  ;;  %v7365_v51 = vpack.c.bf16 %v965_v47, %v957_v46  ;;  %v1012_v46 = vld [vmem:[#allocation6 + $0x3c0] sm:$0xff]  ;;  %v1006_v47 = vld [vmem:[#allocation6 + $0x390] sm:$0xff] }
  0xa7   :  { %4501 = vmatpush1.bf16.msra.mxu0 %v4500_v53  ;;  %v964_v53 = vld [vmem:[#allocation6 + $0x240] sm:$0xff] }
  0xa8   :  { %4565 = vmatpush1.bf16.msra.mxu1 %v4564_v54  ;;  %4567 = vmatprep.subr.bf16.mxu0 %v7310_v56  ;;  %9346 = vst [vmem:[#allocation26_spill] sm:$0xff] %v7358_v49  ;;  %9348 = vst [vmem:[#allocation28_spill] sm:$0xff] %v7365_v51  ;;  %v958_v54 = vld [vmem:[#allocation6 + $0x210] sm:$0xff]  ;;  %v7374_v1 = vpack.c.bf16 %v964_v53, %v956_v52  ;;  %v1029_v52 = vld [vmem:[#allocation6 + $0x448] sm:$0xff] }
  0xa9   :  { %4631 = vmatprep.subr.bf16.mxu1 %v7312_v63  ;;  %v7379_v2 = vpack.c.bf16 %v966_v60, %v958_v54  ;;  %v1031_v53 = vld [vmem:[#allocation6 + $0x458] sm:$0xff]  ;;  %v7422_v54 = vpack.c.bf16 %v1012_v46, %v1004_v44 }
  0xaa   :  { %659 = vmatmul.mubr.f32.vlgmr.msra.gmra.mrb[16].mxu0 %v7206_v15  ;;  %9350 = vst [vmem:[#allocation30_spill] sm:$0xff] %v7374_v1 }
  0xab   :  { %772 = vmatmul.mubr.f32.vlgmr.msra.gmra.mrb[16].mxu1 %v7206_v15  ;;  %4569 = vmatpush1.bf16.msra.mxu0 %v7314_v5  ;;  %v934_v15 = vld [vmem:[#allocation6 + $0x150] sm:$0xff]  ;;  %9351 = vst [vmem:[#allocation31_spill] sm:$0xff] %v7379_v2  ;;  %9362 = vst [vmem:[#allocation42_spill] sm:$0xff] %v7422_v54 }
  0xac   :  { %4633 = vmatpush1.bf16.msra.mxu1 %v7317_v6  ;;  %4571 = vmatprep.subr.bf16.mxu0 %v7319_v8  ;;  %v7347_v37 = vpack.c.bf16 %v934_v15, %v926_v28  ;;  %v996_v28 = vld [vmem:[#allocation6 + $0x340] sm:$0xff]  ;;  %v990_v15 = vld [vmem:[#allocation6 + $0x310] sm:$0xff] }
  0xad   :  { %4635 = vmatprep.subr.bf16.mxu1 %v7322_v13  ;;  %664 = vmatprep.mubr.f32.mxu0 %v7212_v29  ;;  %v7406_v40 = vpack.c.bf16 %v996_v28, %v988_v27  ;;  %v7411_v16 = vpack.c.bf16 %v998_v31, %v990_v15  ;;  %v1044_v27 = vld [vmem:[#allocation6 + $0x4c0] sm:$0xff]  ;;  %v1038_v28 = vld [vmem:[#allocation6 + $0x490] sm:$0xff]  ;;  %v1053_v31 = vld [vmem:[#allocation6 + $0x508] sm:$0xff] }
  0xae   :  { %777 = vmatprep.mubr.f32.mxu1 %v7212_v29  ;;  %665 = vmatmul.mubr.f32.gmra.mrb[18].mxu0 %v7218_v36  ;;  %9343 = vst [vmem:[#allocation23_spill] sm:$0xff] %v7347_v37  ;;  %v7352_v29 = vpack.c.bf16 %v951_v34, %v943_v33  ;;  %v1013_v33 = vld [vmem:[#allocation6 + $0x3c8] sm:$0xff]  ;;  %v1015_v34 = vld [vmem:[#allocation6 + $0x3d8] sm:$0xff]  ;;  %v1046_v15 = vld [vmem:[#allocation6 + $0x4d0] sm:$0xff] }
  0xaf   :  { %4573 = vmatpush1.bf16.msra.mxu0 %v7327_v21  ;;  %778 = vmatmul.mubr.f32.gmra.mrb[18].mxu1 %v7218_v36  ;;  %v959_v36 = vld [vmem:[#allocation6 + $0x218] sm:$0xff]  ;;  %9358 = vst [vmem:[#allocation38_spill] sm:$0xff] %v7406_v40  ;;  %9359 = vst [vmem:[#allocation39_spill] sm:$0xff] %v7411_v16  ;;  %v7413_v42 = vpack.c.bf16 %v1013_v33, %v1005_v32  ;;  %v1061_v32 = vld [vmem:[#allocation6 + $0x548] sm:$0xff]  ;;  %v9027_v33 = vmov 0.0   ;;  %v7457_v44 = vpack.c.bf16 %v1046_v15, %v1038_v28 }
  0xb0   :  { %4637 = vmatpush1.bf16.msra.mxu1 %v7331_v22  ;;  %4575 = vmatprep.subr.bf16.mxu0 %v7333_v24  ;;  %9345 = vst [vmem:[#allocation25_spill] sm:$0xff] %v7352_v29  ;;  %v7459_v46 = vpack.c.bf16 %v1061_v32, %v1053_v31  ;;  %v1078_v28 = vld [vmem:[#allocation6 + $0x5d0] sm:$0xff]  ;;  %v1085_v15 = vld [vmem:[#allocation6 + $0x608] sm:$0xff]  ;;  %v1087_v32 = vld [vmem:[#allocation6 + $0x618] sm:$0xff] }
  0xb1   :  { %4639 = vmatprep.subr.bf16.mxu1 %v7336_v30  ;;  %670 = vmatprep.mubr.f32.mxu0 %v7226_v43  ;;  %9360 = vst [vmem:[#allocation40_spill] sm:$0xff] %v7413_v42  ;;  %9371 = vst [vmem:[#allocation51_spill] sm:$0xff] %v7457_v44  ;;  %v1093_v31 = vld [vmem:[#allocation6 + $0x648] sm:$0xff] }
  0xb2   :  { %783 = vmatprep.mubr.f32.mxu1 %v7226_v43  ;;  %671 = vmatmul.mubr.f32.gmra.mrb[20].mxu0 %v7232_v45  ;;  %v7368_v43 = vpack.c.bf16 %v967_v48, %v959_v36  ;;  %v1014_v36 = vld [vmem:[#allocation6 + $0x3d0] sm:$0xff]  ;;  %v1021_v48 = vld [vmem:[#allocation6 + $0x408] sm:$0xff]  ;;  %9372 = vst [vmem:[#allocation52_spill] sm:$0xff] %v7459_v46 }
  0xb3   :  { %4577 = vmatpush1.bf16.msra.mxu0 %v7342_v35  ;;  %784 = vmatmul.mubr.f32.gmra.mrb[20].mxu1 %v7232_v45  ;;  %v975_v45 = vld [vmem:[#allocation6 + $0x298] sm:$0xff]  ;;  %v7427_v60 = vpack.c.bf16 %v1014_v36, %v1006_v47  ;;  %v7429_v61 = vpack.c.bf16 %v1029_v52, %v1021_v48  ;;  %v1052_v47 = vld [vmem:[#allocation6 + $0x500] sm:$0xff]  ;;  %v1054_v48 = vld [vmem:[#allocation6 + $0x510] sm:$0xff] }
  0xb4   :  { %4641 = vmatpush1.bf16.msra.mxu1 %v7347_v37  ;;  %4579 = vmatprep.subr.bf16.mxu0 %v7349_v38  ;;  %9349 = vst [vmem:[#allocation29_spill] sm:$0xff] %v7368_v43  ;;  %v1060_v36 = vld [vmem:[#allocation6 + $0x540] sm:$0xff] }
  0xb5   :  { %4643 = vmatprep.subr.bf16.mxu1 %v7352_v29  ;;  %676 = vmatprep.mubr.f32.mxu0 %v7240_v57  ;;  %9363 = vst [vmem:[#allocation43_spill] sm:$0xff] %v7427_v60  ;;  %9364 = vst [vmem:[#allocation44_spill] sm:$0xff] %v7429_v61 }
  0xb6   :  { %789 = vmatprep.mubr.f32.mxu1 %v7240_v57  ;;  %677 = vmatmul.mubr.f32.gmra.mrb[22].mxu0 %v7246_v59  ;;  %v7384_v57 = vpack.c.bf16 %v983_v0, %v975_v45  ;;  %v1028_v45 = vld [vmem:[#allocation6 + $0x440] sm:$0xff]  ;;  %v1022_v0 = vld [vmem:[#allocation6 + $0x410] sm:$0xff] }
  0xb7   :  { %4581 = vmatpush1.bf16.msra.mxu0 %v7358_v49  ;;  %790 = vmatmul.mubr.f32.gmra.mrb[22].mxu1 %v7246_v59  ;;  %v991_v59 = vld [vmem:[#allocation6 + $0x318] sm:$0xff]  ;;  %v7438_v14 = vpack.c.bf16 %v1028_v45, %v1020_v62  ;;  %v7443_v17 = vpack.c.bf16 %v1030_v4, %v1022_v0  ;;  %v1077_v62 = vld [vmem:[#allocation6 + $0x5c8] sm:$0xff]  ;;  %v7465_v4 = vpack.c.bf16 %v1060_v36, %v1052_v47 }
  0xb8   :  { %4645 = vmatpush1.bf16.msra.mxu1 %v7363_v50  ;;  %4583 = vmatprep.subr.bf16.mxu0 %v7365_v51  ;;  %9353 = vst [vmem:[#allocation33_spill] sm:$0xff] %v7384_v57  ;;  %v1071_v45 = vld [vmem:[#allocation6 + $0x598] sm:$0xff]  ;;  %v7483_v36 = vpack.c.bf16 %v1093_v31, %v1085_v15  ;;  %v1100_v15 = vld [vmem:[#allocation6 + $0x680] sm:$0xff] }
  0xb9   :  { %4647 = vmatprep.subr.bf16.mxu1 %v7368_v43  ;;  %682 = vmatprep.mubr.f32.mxu0 %v7254_v7  ;;  %9366 = vst [vmem:[#allocation46_spill] sm:$0xff] %v7438_v14  ;;  %9367 = vst [vmem:[#allocation47_spill] sm:$0xff] %v7443_v17  ;;  %v1079_v0 = vld [vmem:[#allocation6 + $0x5d8] sm:$0xff]  ;;  %v1108_v31 = vld [vmem:[#allocation6 + $0x6c0] sm:$0xff] }
  0xba   :  { %795 = vmatprep.mubr.f32.mxu1 %v7254_v7  ;;  %683 = vmatmul.mubr.f32.gmra.mrb[24].mxu0 %v7260_v9  ;;  %v7400_v7 = vpack.c.bf16 %v999_v18, %v991_v59  ;;  %v7445_v59 = vpack.c.bf16 %v1045_v11, %v1037_v10  ;;  %v1036_v18 = vld [vmem:[#allocation6 + $0x480] sm:$0xff]  ;;  %9374 = vst [vmem:[#allocation54_spill] sm:$0xff] %v7465_v4  ;;  %9380 = vst [vmem:[#allocation60_spill] sm:$0xff] %v7483_v36 }
  0xbb   :  { %4585 = vmatpush1.bf16.msra.mxu0 %v7374_v1  ;;  %796 = vmatmul.mubr.f32.gmra.mrb[24].mxu1 %v7260_v9  ;;  %v1007_v9 = vld [vmem:[#allocation6 + $0x398] sm:$0xff] }
  0xbc   :  { %4649 = vmatpush1.bf16.msra.mxu1 %v7379_v2  ;;  %4587 = vmatprep.subr.bf16.mxu0 %v7381_v3  ;;  %9357 = vst [vmem:[#allocation37_spill] sm:$0xff] %v7400_v7  ;;  %9368 = vst [vmem:[#allocation48_spill] sm:$0xff] %v7445_v59 }
  0xbd   :  { %4651 = vmatprep.subr.bf16.mxu1 %v7384_v57  ;;  %688 = vmatprep.mubr.f32.mxu0 %v7268_v23 }
  0xbe   :  { %801 = vmatprep.mubr.f32.mxu1 %v7268_v23  ;;  %689 = vmatmul.mubr.f32.gmra.mrb[26].mxu0 %v7274_v25  ;;  %v7416_v23 = vpack.c.bf16 %v1015_v34, %v1007_v9  ;;  %v1063_v9 = vld [vmem:[#allocation6 + $0x558] sm:$0xff]  ;;  %v7453_v34 = vpack.c.bf16 %v1044_v27, %v1036_v18  ;;  %v1070_v18 = vld [vmem:[#allocation6 + $0x590] sm:$0xff]  ;;  %v7474_v27 = vpack.c.bf16 %v1079_v0, %v1071_v45  ;;  %v1101_v0 = vld [vmem:[#allocation6 + $0x688] sm:$0xff] }
  0xbf   :  { %4589 = vmatpush1.bf16.msra.mxu0 %v7390_v19  ;;  %802 = vmatmul.mubr.f32.gmra.mrb[26].mxu1 %v7274_v25  ;;  %v1023_v25 = vld [vmem:[#allocation6 + $0x418] sm:$0xff]  ;;  %v7481_v47 = vpack.c.bf16 %v1078_v28, %v1070_v18  ;;  %v1094_v45 = vld [vmem:[#allocation6 + $0x650] sm:$0xff] }
  0xc0   :  { %4653 = vmatpush1.bf16.msra.mxu1 %v7395_v20  ;;  %4591 = vmatprep.subr.bf16.mxu0 %v7397_v26  ;;  %9361 = vst [vmem:[#allocation41_spill] sm:$0xff] %v7416_v23  ;;  %9370 = vst [vmem:[#allocation50_spill] sm:$0xff] %v7453_v34 }
  0xc1   :  { %4655 = vmatprep.subr.bf16.mxu1 %v7400_v7  ;;  %694 = vmatprep.mubr.f32.mxu0 %v7282_v39  ;;  %9377 = vst [vmem:[#allocation57_spill] sm:$0xff] %v7474_v27  ;;  %9379 = vst [vmem:[#allocation59_spill] sm:$0xff] %v7481_v47 }
  0xc2   :  { %807 = vmatprep.mubr.f32.mxu1 %v7282_v39  ;;  %695 = vmatmul.mubr.f32.gmra.mrb[28].mxu0 %v7288_v41  ;;  %v7432_v39 = vpack.c.bf16 %v1031_v53, %v1023_v25  ;;  %v1062_v25 = vld [vmem:[#allocation6 + $0x550] sm:$0xff]  ;;  %v1069_v53 = vld [vmem:[#allocation6 + $0x588] sm:$0xff] }
  0xc3   :  { %4593 = vmatpush1.bf16.msra.mxu0 %v7406_v40  ;;  %808 = vmatmul.mubr.f32.gmra.mrb[28].mxu1 %v7288_v41  ;;  %v1039_v41 = vld [vmem:[#allocation6 + $0x498] sm:$0xff]  ;;  %v7469_v10 = vpack.c.bf16 %v1062_v25, %v1054_v48  ;;  %v7471_v11 = vpack.c.bf16 %v1077_v62, %v1069_v53  ;;  %v1084_v48 = vld [vmem:[#allocation6 + $0x600] sm:$0xff]  ;;  %v1086_v53 = vld [vmem:[#allocation6 + $0x610] sm:$0xff] }
  0xc4   :  { %4657 = vmatpush1.bf16.msra.mxu1 %v7411_v16  ;;  %4595 = vmatprep.subr.bf16.mxu0 %v7413_v42  ;;  %9365 = vst [vmem:[#allocation45_spill] sm:$0xff] %v7432_v39  ;;  %v1092_v25 = vld [vmem:[#allocation6 + $0x640] sm:$0xff]  ;;  %v7493_v18 = vpack.c.bf16 %v1094_v45, %v1086_v53 }
  0xc5   :  { %4659 = vmatprep.subr.bf16.mxu1 %v7416_v23  ;;  %700 = vmatprep.mubr.f32.mxu0 %v7296_v55  ;;  %9375 = vst [vmem:[#allocation55_spill] sm:$0xff] %v7469_v10  ;;  %9376 = vst [vmem:[#allocation56_spill] sm:$0xff] %v7471_v11  ;;  %v1116_v45 = vld [vmem:[#allocation6 + $0x700] sm:$0xff] }
  0xc6   :  { %813 = vmatprep.mubr.f32.mxu1 %v7296_v55  ;;  %701 = vmatmul.mubr.f32.gmra.mrb[30].mxu0 %v7302_v58  ;;  %v7448_v55 = vpack.c.bf16 %v1047_v12, %v1039_v41  ;;  %v1068_v41 = vld [vmem:[#allocation6 + $0x580] sm:$0xff]  ;;  %9383 = vst [vmem:[#allocation63_spill] sm:$0xff] %v7493_v18 }
  0xc7   :  { %4597 = vmatpush1.bf16.msra.mxu0 %v7422_v54  ;;  %814 = vmatmul.mubr.f32.gmra.mrb[30].mxu1 %v7302_v58  ;;  %v1055_v58 = vld [vmem:[#allocation6 + $0x518] sm:$0xff]  ;;  %v1076_v12 = vld [vmem:[#allocation6 + $0x5c0] sm:$0xff] }
  0xc8   :  { %4661 = vmatpush1.bf16.msra.mxu1 %v7427_v60  ;;  %4599 = vmatprep.subr.bf16.mxu0 %v7429_v61  ;;  %9369 = vst [vmem:[#allocation49_spill] sm:$0xff] %v7448_v55  ;;  %v7462_v52 = vpack.c.bf16 %v1063_v9, %v1055_v58  ;;  %v1095_v58 = vld [vmem:[#allocation6 + $0x658] sm:$0xff]  ;;  %v7477_v9 = vpack.c.bf16 %v1076_v12, %v1068_v41 }
  0xc9   :  { %4663 = vmatprep.subr.bf16.mxu1 %v7432_v39  ;;  %1212 = vmatprep.mubr.f32.mxu0 %v9027_v33  ;;  %v7486_v62 = vpack.c.bf16 %v1095_v58, %v1087_v32  ;;  %v1103_v41 = vld [vmem:[#allocation6 + $0x698] sm:$0xff]  ;;  %v1102_v32 = vld [vmem:[#allocation6 + $0x690] sm:$0xff] }
  0xca   :  { %1283 = vmatprep.mubr.f32.mxu1 %v9027_v33  ;;  %9373 = vst [vmem:[#allocation53_spill] sm:$0xff] %v7462_v52  ;;  %9378 = vst [vmem:[#allocation58_spill] sm:$0xff] %v7477_v9  ;;  %v1109_v33 = vld [vmem:[#allocation6 + $0x6c8] sm:$0xff]  ;;  %v1111_v12 = vld [vmem:[#allocation6 + $0x6d8] sm:$0xff] }
  0xcb   :  { %4601 = vmatpush1.bf16.msra.mxu0 %v7438_v14  ;;  %9381 = vst [vmem:[#allocation61_spill] sm:$0xff] %v7486_v62  ;;  %v7495_v28 = vpack.c.bf16 %v1109_v33, %v1101_v0  ;;  %v7498_v58 = vpack.c.bf16 %v1111_v12, %v1103_v41  ;;  %v1124_v0 = vld [vmem:[#allocation6 + $0x740] sm:$0xff]  ;;  %v1118_v41 = vld [vmem:[#allocation6 + $0x710] sm:$0xff] }
  0xcc   :  { %4665 = vmatpush1.bf16.msra.mxu1 %v7443_v17  ;;  %4603 = vmatprep.subr.bf16.mxu0 %v7445_v59 }
  0xcd   :  { %4667 = vmatprep.subr.bf16.mxu1 %v7448_v55  ;;  %9384 = vst [vmem:[#allocation64_spill] sm:$0xff] %v7495_v28  ;;  %9385 = vst [vmem:[#allocation65_spill] sm:$0xff] %v7498_v58 }
  0xcf   :  { %4605 = vmatpush1.bf16.msra.mxu0 %v7453_v34 }
  0xd0   :  { %4669 = vmatpush1.bf16.msra.mxu1 %v7457_v44  ;;  %4607 = vmatprep.subr.bf16.mxu0 %v7459_v46 }
  0xd1   :  { %4671 = vmatprep.subr.bf16.mxu1 %v7462_v52 }
  0xd3   :  { %4609 = vmatpush1.bf16.msra.mxu0 %v7465_v4  ;;  %v945_v4 = vld [vmem:[#allocation6 + $0x1a8] sm:$0xff] }
  0xd4   :  { %4673 = vmatpush1.bf16.msra.mxu1 %v7469_v10  ;;  %4611 = vmatprep.subr.bf16.mxu0 %v7471_v11  ;;  %v7489_v10 = vpack.c.bf16 %v1092_v25, %v1084_v48  ;;  %v1117_v11 = vld [vmem:[#allocation6 + $0x708] sm:$0xff]  ;;  %v1119_v48 = vld [vmem:[#allocation6 + $0x718] sm:$0xff] }
  0xd5   :  { %4675 = vmatprep.subr.bf16.mxu1 %v7474_v27  ;;  %v1110_v27 = vld [vmem:[#allocation6 + $0x6d0] sm:$0xff]  ;;  %v1127_v25 = vld [vmem:[#allocation6 + $0x758] sm:$0xff] }
  0xd6   :  { %9382 = vst [vmem:[#allocation62_spill] sm:$0xff] %v7489_v10  ;;  %v7505_v33 = vpack.c.bf16 %v1110_v27, %v1102_v32  ;;  %v7510_v12 = vpack.c.bf16 %v1127_v25, %v1119_v48  ;;  %v1140_v32 = vld [vmem:[#allocation6 + $0x7c0] sm:$0xff]  ;;  %v1134_v48 = vld [vmem:[#allocation6 + $0x790] sm:$0xff] }
  0xd7   :  { %4613 = vmatpush1.bf16.msra.mxu0 %v7477_v9  ;;  %v1125_v9 = vld [vmem:[#allocation6 + $0x748] sm:$0xff] }
  0xd8   :  { %4677 = vmatpush1.bf16.msra.mxu1 %v7481_v47  ;;  %4615 = vmatprep.subr.bf16.mxu0 %v7483_v36  ;;  %v7501_v47 = vpack.c.bf16 %v1108_v31, %v1100_v15  ;;  %9387 = vst [vmem:[#allocation67_spill] sm:$0xff] %v7505_v33  ;;  %v7507_v53 = vpack.c.bf16 %v1125_v9, %v1117_v11  ;;  %9389 = vst [vmem:[#allocation69_spill] sm:$0xff] %v7510_v12  ;;  %v1133_v36 = vld [vmem:[#allocation6 + $0x788] sm:$0xff]  ;;  %v1135_v15 = vld [vmem:[#allocation6 + $0x798] sm:$0xff] }
  0xd9   :  { %4679 = vmatprep.subr.bf16.mxu1 %v7486_v62  ;;  %v1126_v62 = vld [vmem:[#allocation6 + $0x750] sm:$0xff]  ;;  %v1143_v31 = vld [vmem:[#allocation6 + $0x7d8] sm:$0xff]  ;;  %v1132_v9 = vld [vmem:[#allocation6 + $0x780] sm:$0xff] }
  0xda   :  { %9386 = vst [vmem:[#allocation66_spill] sm:$0xff] %v7501_v47  ;;  %9388 = vst [vmem:[#allocation68_spill] sm:$0xff] %v7507_v53  ;;  %v7517_v11 = vpack.c.bf16 %v1126_v62, %v1118_v41  ;;  %v7522_v25 = vpack.c.bf16 %v1143_v31, %v1135_v15  ;;  %v896_v62 = vld [vmem:[#allocation6 + $0x20] sm:$0xff]  ;;  %v898_v15 = vld [vmem:[#allocation6 + $0x30] sm:$0xff] }
  0xdb   :  { %4617 = vmatpush1.bf16.msra.mxu0 %v7489_v10  ;;  %v1141_v10 = vld [vmem:[#allocation6 + $0x7c8] sm:$0xff]  ;;  %v904_v41 = vld [vmem:[#allocation6 + $0x60] sm:$0xff] }
  0xdc   :  { %4681 = vmatpush1.bf16.msra.mxu1 %v7493_v18  ;;  %4619 = vmatprep.subr.bf16.mxu0 %v7495_v28  ;;  %v7513_v18 = vpack.c.bf16 %v1124_v0, %v1116_v45  ;;  %9391 = vst [vmem:[#allocation71_spill] sm:$0xff] %v7517_v11  ;;  %v7519_v27 = vpack.c.bf16 %v1141_v10, %v1133_v36  ;;  %9393 = vst [vmem:[#allocation73_spill] sm:$0xff] %v7522_v25  ;;  %v897_v28 = vld [vmem:[#allocation6 + $0x28] sm:$0xff]  ;;  %v899_v45 = vld [vmem:[#allocation6 + $0x38] sm:$0xff] }
  0xdd   :  { %4683 = vmatprep.subr.bf16.mxu1 %v7498_v58  ;;  %v1142_v58 = vld [vmem:[#allocation6 + $0x7d0] sm:$0xff]  ;;  %v907_v0 = vld [vmem:[#allocation6 + $0x78] sm:$0xff] }
  0xde   :  { %9390 = vst [vmem:[#allocation70_spill] sm:$0xff] %v7513_v18  ;;  %9392 = vst [vmem:[#allocation72_spill] sm:$0xff] %v7519_v27  ;;  %v7529_v10 = vpack.c.bf16 %v1142_v58, %v1134_v48  ;;  %v7534_v31 = vpack.c.bf16 %v907_v0, %v899_v45  ;;  %v912_v58 = vld [vmem:[#allocation6 + $0xa0] sm:$0xff]  ;;  %v914_v45 = vld [vmem:[#allocation6 + $0xb0] sm:$0xff] }
  0xdf   :  { %4621 = vmatpush1.bf16.msra.mxu0 %v7501_v47  ;;  %v905_v47 = vld [vmem:[#allocation6 + $0x68] sm:$0xff]  ;;  %v920_v48 = vld [vmem:[#allocation6 + $0xe0] sm:$0xff] }
  0xe0   :  { %4685 = vmatpush1.bf16.msra.mxu1 %v7505_v33  ;;  %4623 = vmatprep.subr.bf16.mxu0 %v7507_v53  ;;  %v7525_v33 = vpack.c.bf16 %v1140_v32, %v1132_v9  ;;  %9395 = vst [vmem:[#allocation75_spill] sm:$0xff] %v7529_v10  ;;  %v7531_v36 = vpack.c.bf16 %v905_v47, %v897_v28  ;;  %9397 = vst [vmem:[#allocation77_spill] sm:$0xff] %v7534_v31  ;;  %v913_v53 = vld [vmem:[#allocation6 + $0xa8] sm:$0xff]  ;;  %v915_v9 = vld [vmem:[#allocation6 + $0xb8] sm:$0xff] }
  0xe1   :  { %4687 = vmatprep.subr.bf16.mxu1 %v7510_v12  ;;  %v906_v12 = vld [vmem:[#allocation6 + $0x70] sm:$0xff]  ;;  %v923_v32 = vld [vmem:[#allocation6 + $0xf8] sm:$0xff] }
  0xe2   :  { %9394 = vst [vmem:[#allocation74_spill] sm:$0xff] %v7525_v33  ;;  %9396 = vst [vmem:[#allocation76_spill] sm:$0xff] %v7531_v36  ;;  %v7541_v47 = vpack.c.bf16 %v906_v12, %v898_v15  ;;  %v7546_v0 = vpack.c.bf16 %v923_v32, %v915_v9  ;;  %v928_v15 = vld [vmem:[#allocation6 + $0x120] sm:$0xff]  ;;  %v930_v32 = vld [vmem:[#allocation6 + $0x130] sm:$0xff] }
  0xe3   :  { %4625 = vmatpush1.bf16.msra.mxu0 %v7513_v18  ;;  %v921_v18 = vld [vmem:[#allocation6 + $0xe8] sm:$0xff]  ;;  %v936_v9 = vld [vmem:[#allocation6 + $0x160] sm:$0xff] }
  0xe4   :  { %4689 = vmatpush1.bf16.msra.mxu1 %v7517_v11  ;;  %4627 = vmatprep.subr.bf16.mxu0 %v7519_v27  ;;  %v7537_v11 = vpack.c.bf16 %v904_v41, %v896_v62  ;;  %9399 = vst [vmem:[#allocation79_spill] sm:$0xff] %v7541_v47  ;;  %v7543_v28 = vpack.c.bf16 %v921_v18, %v913_v53  ;;  %9401 = vst [vmem:[#allocation81_spill] sm:$0xff] %v7546_v0  ;;  %v929_v27 = vld [vmem:[#allocation6 + $0x128] sm:$0xff]  ;;  %v9402_v62 = vmov 0.0   ;;  %v931_v41 = vld [vmem:[#allocation6 + $0x138] sm:$0xff] }
  0xe5   :  { %4691 = vmatprep.subr.bf16.mxu1 %v7522_v25  ;;  %v922_v25 = vld [vmem:[#allocation6 + $0xf0] sm:$0xff]  ;;  %v7551_v18 = vpack.c.bf16 %v920_v48, %v912_v58  ;;  %v947_v58 = vld [vmem:[#allocation6 + $0x1b8] sm:$0xff] }
  0xe6   :  { %9398 = vst [vmem:[#allocation78_spill] sm:$0xff] %v7537_v11  ;;  %9400 = vst [vmem:[#allocation80_spill] sm:$0xff] %v7543_v28  ;;  %v7555_v53 = vpack.c.bf16 %v922_v25, %v914_v45  ;;  %v955_v48 = vld [vmem:[#allocation6 + $0x1f8] sm:$0xff]  ;;  %v952_v45 = vld [vmem:[#allocation6 + $0x1e0] sm:$0xff] }
  0xe7   :  { %4629 = vmatpush1.bf16.msra.mxu0 %v7525_v33  ;;  %v937_v33 = vld [vmem:[#allocation6 + $0x168] sm:$0xff]  ;;  %9403 = vst [vmem:[#allocation82_spill] sm:$0xff] %v7551_v18 }
  0xe8   :  { %4693 = vmatpush1.bf16.msra.mxu1 %v7529_v10  ;;  %4695 = vmatprep.subr.bf16.mxu0 %v7531_v36  ;;  %v939_v10 = vld [vmem:[#allocation6 + $0x178] sm:$0xff]  ;;  %9404 = vst [vmem:[#allocation83_spill] sm:$0xff] %v7555_v53  ;;  %v7557_v12 = vpack.c.bf16 %v937_v33, %v929_v27  ;;  %v938_v36 = vld [vmem:[#allocation6 + $0x170] sm:$0xff]  ;;  %v7565_v33 = vpack.c.bf16 %v936_v9, %v928_v15 }
  0xe9   :  { %4759 = vmatprep.subr.bf16.mxu1 %v7534_v31  ;;  %v7560_v31 = vpack.c.bf16 %v939_v10, %v931_v41  ;;  %v7569_v27 = vpack.c.bf16 %v938_v36, %v930_v32  ;;  %v944_v10 = vld [vmem:[#allocation6 + $0x1a0] sm:$0xff]  ;;  %v946_v41 = vld [vmem:[#allocation6 + $0x1b0] sm:$0xff]  ;;  %v963_v15 = vld [vmem:[#allocation6 + $0x238] sm:$0xff] }
  0xea   :  { %1213 = vmatmul.mubr.f32.vlgmr.msra.gmra.mrb[0].mxu0 %v9402_v62  ;;  %9405 = vst [vmem:[#allocation84_spill] sm:$0xff] %v7557_v12  ;;  %9407 = vst [vmem:[#allocation86_spill] sm:$0xff] %v7565_v33  ;;  %v971_v9 = vld [vmem:[#allocation6 + $0x278] sm:$0xff]  ;;  %v960_v36 = vld [vmem:[#allocation6 + $0x220] sm:$0xff] }
  0xeb   :  { %1284 = vmatmul.mubr.f32.vlgmr.msra.gmra.mrb[0].mxu1 %v9402_v62  ;;  %4697 = vmatpush1.bf16.msra.mxu0 %v7537_v11  ;;  %9406 = vst [vmem:[#allocation85_spill] sm:$0xff] %v7560_v31  ;;  %v953_v11 = vld [vmem:[#allocation6 + $0x1e8] sm:$0xff]  ;;  %9408 = vst [vmem:[#allocation87_spill] sm:$0xff] %v7569_v27  ;;  %v968_v32 = vld [vmem:[#allocation6 + $0x260] sm:$0xff] }
  0xec   :  { %4761 = vmatpush1.bf16.msra.mxu1 %v7541_v47  ;;  %4699 = vmatprep.subr.bf16.mxu0 %v7543_v28  ;;  %v7571_v25 = vpack.c.bf16 %v953_v11, %v945_v4  ;;  %v954_v28 = vld [vmem:[#allocation6 + $0x1f0] sm:$0xff]  ;;  %v961_v47 = vld [vmem:[#allocation6 + $0x228] sm:$0xff] }
  0xed   :  { %4763 = vmatprep.subr.bf16.mxu1 %v7546_v0  ;;  %1354 = vmatprep.mubr.f32.mxu0 %v9402_v62  ;;  %v7574_v0 = vpack.c.bf16 %v955_v48, %v947_v58  ;;  %v7581_v4 = vpack.c.bf16 %v954_v28, %v946_v41  ;;  %v962_v58 = vld [vmem:[#allocation6 + $0x230] sm:$0xff]  ;;  %v7586_v48 = vpack.c.bf16 %v971_v9, %v963_v15  ;;  %v984_v41 = vld [vmem:[#allocation6 + $0x2e0] sm:$0xff] }
  0xee   :  { %1425 = vmatprep.mubr.f32.mxu1 %v9402_v62  ;;  %9409 = vst [vmem:[#allocation88_spill] sm:$0xff] %v7571_v25  ;;  %v978_v15 = vld [vmem:[#allocation6 + $0x2b0] sm:$0xff] }
  0xef   :  { %4701 = vmatpush1.bf16.msra.mxu0 %v7551_v18  ;;  %9410 = vst [vmem:[#allocation89_spill] sm:$0xff] %v7574_v0  ;;  %v969_v18 = vld [vmem:[#allocation6 + $0x268] sm:$0xff]  ;;  %9412 = vst [vmem:[#allocation91_spill] sm:$0xff] %v7581_v4 }
  0xf0   :  { %4765 = vmatpush1.bf16.msra.mxu1 %v7555_v53  ;;  %4703 = vmatprep.subr.bf16.mxu0 %v7557_v12  ;;  %v7577_v53 = vpack.c.bf16 %v952_v45, %v944_v10  ;;  %v7583_v11 = vpack.c.bf16 %v969_v18, %v961_v47  ;;  %9414 = vst [vmem:[#allocation93_spill] sm:$0xff] %v7586_v48  ;;  %v977_v12 = vld [vmem:[#allocation6 + $0x2a8] sm:$0xff]  ;;  %v979_v10 = vld [vmem:[#allocation6 + $0x2b8] sm:$0xff]  ;;  %v976_v18 = vld [vmem:[#allocation6 + $0x2a0] sm:$0xff] }
  0xf1   :  { %4767 = vmatprep.subr.bf16.mxu1 %v7560_v31  ;;  %v970_v31 = vld [vmem:[#allocation6 + $0x270] sm:$0xff]  ;;  %v987_v45 = vld [vmem:[#allocation6 + $0x2f8] sm:$0xff] }
  0xf2   :  { %9411 = vst [vmem:[#allocation90_spill] sm:$0xff] %v7577_v53  ;;  %9413 = vst [vmem:[#allocation92_spill] sm:$0xff] %v7583_v11  ;;  %v7593_v47 = vpack.c.bf16 %v970_v31, %v962_v58  ;;  %v7598_v9 = vpack.c.bf16 %v987_v45, %v979_v10  ;;  %v1000_v58 = vld [vmem:[#allocation6 + $0x360] sm:$0xff]  ;;  %v994_v10 = vld [vmem:[#allocation6 + $0x330] sm:$0xff] }
  0xf3   :  { %4705 = vmatpush1.bf16.msra.mxu0 %v7565_v33  ;;  %v985_v33 = vld [vmem:[#allocation6 + $0x2e8] sm:$0xff] }
  0xf4   :  { %4769 = vmatpush1.bf16.msra.mxu1 %v7569_v27  ;;  %4707 = vmatprep.subr.bf16.mxu0 %v7571_v25  ;;  %v7589_v27 = vpack.c.bf16 %v968_v32, %v960_v36  ;;  %9416 = vst [vmem:[#allocation95_spill] sm:$0xff] %v7593_v47  ;;  %v7595_v28 = vpack.c.bf16 %v985_v33, %v977_v12  ;;  %9418 = vst [vmem:[#allocation97_spill] sm:$0xff] %v7598_v9  ;;  %v993_v25 = vld [vmem:[#allocation6 + $0x328] sm:$0xff]  ;;  %v995_v36 = vld [vmem:[#allocation6 + $0x338] sm:$0xff] }
  0xf5   :  { %4771 = vmatprep.subr.bf16.mxu1 %v7574_v0  ;;  %v986_v0 = vld [vmem:[#allocation6 + $0x2f0] sm:$0xff]  ;;  %v1003_v32 = vld [vmem:[#allocation6 + $0x378] sm:$0xff]  ;;  %v992_v33 = vld [vmem:[#allocation6 + $0x320] sm:$0xff] }
  0xf6   :  { %9415 = vst [vmem:[#allocation94_spill] sm:$0xff] %v7589_v27  ;;  %9417 = vst [vmem:[#allocation96_spill] sm:$0xff] %v7595_v28  ;;  %v7605_v31 = vpack.c.bf16 %v986_v0, %v978_v15  ;;  %v7610_v45 = vpack.c.bf16 %v1003_v32, %v995_v36  ;;  %v1016_v15 = vld [vmem:[#allocation6 + $0x3e0] sm:$0xff]  ;;  %v1010_v36 = vld [vmem:[#allocation6 + $0x3b0] sm:$0xff] }
  0xf7   :  { %4709 = vmatpush1.bf16.msra.mxu0 %v7577_v53  ;;  %v1001_v53 = vld [vmem:[#allocation6 + $0x368] sm:$0xff] }
  0xf8   :  { %4773 = vmatpush1.bf16.msra.mxu1 %v7581_v4  ;;  %4711 = vmatprep.subr.bf16.mxu0 %v7583_v11  ;;  %v7601_v4 = vpack.c.bf16 %v984_v41, %v976_v18  ;;  %9420 = vst [vmem:[#allocation99_spill] sm:$0xff] %v7605_v31  ;;  %v7607_v12 = vpack.c.bf16 %v1001_v53, %v993_v25  ;;  %9422 = vst [vmem:[#allocation101_spill] sm:$0xff] %v7610_v45  ;;  %v1009_v11 = vld [vmem:[#allocation6 + $0x3a8] sm:$0xff]  ;;  %v1011_v18 = vld [vmem:[#allocation6 + $0x3b8] sm:$0xff] }
  0xf9   :  { %4775 = vmatprep.subr.bf16.mxu1 %v7586_v48  ;;  %v1002_v48 = vld [vmem:[#allocation6 + $0x370] sm:$0xff]  ;;  %v1019_v41 = vld [vmem:[#allocation6 + $0x3f8] sm:$0xff]  ;;  %v1008_v25 = vld [vmem:[#allocation6 + $0x3a0] sm:$0xff] }
  0xfa   :  { %9419 = vst [vmem:[#allocation98_spill] sm:$0xff] %v7601_v4  ;;  %9421 = vst [vmem:[#allocation100_spill] sm:$0xff] %v7607_v12  ;;  %v7617_v0 = vpack.c.bf16 %v1002_v48, %v994_v10  ;;  %v7622_v32 = vpack.c.bf16 %v1019_v41, %v1011_v18  ;;  %v1024_v48 = vld [vmem:[#allocation6 + $0x420] sm:$0xff]  ;;  %v1026_v18 = vld [vmem:[#allocation6 + $0x430] sm:$0xff] }
  0xfb   :  { %4713 = vmatpush1.bf16.msra.mxu0 %v7589_v27  ;;  %v1017_v27 = vld [vmem:[#allocation6 + $0x3e8] sm:$0xff]  ;;  %v1032_v10 = vld [vmem:[#allocation6 + $0x460] sm:$0xff] }
  0xfc   :  { %4777 = vmatpush1.bf16.msra.mxu1 %v7593_v47  ;;  %4715 = vmatprep.subr.bf16.mxu0 %v7595_v28  ;;  %v7613_v47 = vpack.c.bf16 %v1000_v58, %v992_v33  ;;  %9424 = vst [vmem:[#allocation103_spill] sm:$0xff] %v7617_v0  ;;  %v7619_v53 = vpack.c.bf16 %v1017_v27, %v1009_v11  ;;  %9426 = vst [vmem:[#allocation105_spill] sm:$0xff] %v7622_v32  ;;  %v1025_v28 = vld [vmem:[#allocation6 + $0x428] sm:$0xff]  ;;  %v1027_v33 = vld [vmem:[#allocation6 + $0x438] sm:$0xff] }
  0xfd   :  { %4779 = vmatprep.subr.bf16.mxu1 %v7598_v9  ;;  %v1018_v9 = vld [vmem:[#allocation6 + $0x3f0] sm:$0xff]  ;;  %v1035_v58 = vld [vmem:[#allocation6 + $0x478] sm:$0xff] }
  0xfe   :  { %9423 = vst [vmem:[#allocation102_spill] sm:$0xff] %v7613_v47  ;;  %9425 = vst [vmem:[#allocation104_spill] sm:$0xff] %v7619_v53  ;;  %v7629_v27 = vpack.c.bf16 %v1018_v9, %v1010_v36  ;;  %v7634_v41 = vpack.c.bf16 %v1035_v58, %v1027_v33  ;;  %v1040_v9 = vld [vmem:[#allocation6 + $0x4a0] sm:$0xff]  ;;  %v1042_v33 = vld [vmem:[#allocation6 + $0x4b0] sm:$0xff] }
  0xff   :  { %4717 = vmatpush1.bf16.msra.mxu0 %v7601_v4  ;;  %v1033_v4 = vld [vmem:[#allocation6 + $0x468] sm:$0xff]  ;;  %v1048_v36 = vld [vmem:[#allocation6 + $0x4e0] sm:$0xff] }
 0x100   :  { %4781 = vmatpush1.bf16.msra.mxu1 %v7605_v31  ;;  %4719 = vmatprep.subr.bf16.mxu0 %v7607_v12  ;;  %v7625_v31 = vpack.c.bf16 %v1016_v15, %v1008_v25  ;;  %9428 = vst [vmem:[#allocation107_spill] sm:$0xff] %v7629_v27  ;;  %v7631_v11 = vpack.c.bf16 %v1033_v4, %v1025_v28  ;;  %9430 = vst [vmem:[#allocation109_spill] sm:$0xff] %v7634_v41  ;;  %v1041_v12 = vld [vmem:[#allocation6 + $0x4a8] sm:$0xff]  ;;  %v1043_v25 = vld [vmem:[#allocation6 + $0x4b8] sm:$0xff] }
 0x101   :  { %4783 = vmatprep.subr.bf16.mxu1 %v7610_v45  ;;  %v1034_v45 = vld [vmem:[#allocation6 + $0x470] sm:$0xff]  ;;  %v1051_v15 = vld [vmem:[#allocation6 + $0x4f8] sm:$0xff] }
 0x102   :  { %9427 = vst [vmem:[#allocation106_spill] sm:$0xff] %v7625_v31  ;;  %9429 = vst [vmem:[#allocation108_spill] sm:$0xff] %v7631_v11  ;;  %v7641_v4 = vpack.c.bf16 %v1034_v45, %v1026_v18  ;;  %v7646_v58 = vpack.c.bf16 %v1051_v15, %v1043_v25  ;;  %v1056_v45 = vld [vmem:[#allocation6 + $0x520] sm:$0xff]  ;;  %v1058_v25 = vld [vmem:[#allocation6 + $0x530] sm:$0xff] }
 0x103   :  { %4721 = vmatpush1.bf16.msra.mxu0 %v7613_v47  ;;  %v1049_v47 = vld [vmem:[#allocation6 + $0x4e8] sm:$0xff]  ;;  %v1064_v18 = vld [vmem:[#allocation6 + $0x560] sm:$0xff] }
 0x104   :  { %4785 = vmatpush1.bf16.msra.mxu1 %v7617_v0  ;;  %4723 = vmatprep.subr.bf16.mxu0 %v7619_v53  ;;  %v7637_v0 = vpack.c.bf16 %v1032_v10, %v1024_v48  ;;  %9432 = vst [vmem:[#allocation111_spill] sm:$0xff] %v7641_v4  ;;  %v7643_v28 = vpack.c.bf16 %v1049_v47, %v1041_v12  ;;  %9434 = vst [vmem:[#allocation113_spill] sm:$0xff] %v7646_v58  ;;  %v1057_v53 = vld [vmem:[#allocation6 + $0x528] sm:$0xff]  ;;  %v1059_v48 = vld [vmem:[#allocation6 + $0x538] sm:$0xff] }
 0x105   :  { %4787 = vmatprep.subr.bf16.mxu1 %v7622_v32  ;;  %v1050_v32 = vld [vmem:[#allocation6 + $0x4f0] sm:$0xff]  ;;  %v1067_v10 = vld [vmem:[#allocation6 + $0x578] sm:$0xff] }
 0x106   :  { %9431 = vst [vmem:[#allocation110_spill] sm:$0xff] %v7637_v0  ;;  %9433 = vst [vmem:[#allocation112_spill] sm:$0xff] %v7643_v28  ;;  %v7653_v47 = vpack.c.bf16 %v1050_v32, %v1042_v33  ;;  %v7658_v15 = vpack.c.bf16 %v1067_v10, %v1059_v48  ;;  %v1072_v32 = vld [vmem:[#allocation6 + $0x5a0] sm:$0xff]  ;;  %v1074_v48 = vld [vmem:[#allocation6 + $0x5b0] sm:$0xff] }
 0x107   :  { %4725 = vmatpush1.bf16.msra.mxu0 %v7625_v31  ;;  %v1065_v31 = vld [vmem:[#allocation6 + $0x568] sm:$0xff]  ;;  %v1080_v33 = vld [vmem:[#allocation6 + $0x5e0] sm:$0xff] }
 0x108   :  { %4789 = vmatpush1.bf16.msra.mxu1 %v7629_v27  ;;  %4727 = vmatprep.subr.bf16.mxu0 %v7631_v11  ;;  %v7649_v27 = vpack.c.bf16 %v1048_v36, %v1040_v9  ;;  %9436 = vst [vmem:[#allocation115_spill] sm:$0xff] %v7653_v47  ;;  %v7655_v12 = vpack.c.bf16 %v1065_v31, %v1057_v53  ;;  %9438 = vst [vmem:[#allocation117_spill] sm:$0xff] %v7658_v15  ;;  %v1073_v11 = vld [vmem:[#allocation6 + $0x5a8] sm:$0xff]  ;;  %v1075_v9 = vld [vmem:[#allocation6 + $0x5b8] sm:$0xff] }
 0x109   :  { %4791 = vmatprep.subr.bf16.mxu1 %v7634_v41  ;;  %v1066_v41 = vld [vmem:[#allocation6 + $0x570] sm:$0xff]  ;;  %v1083_v36 = vld [vmem:[#allocation6 + $0x5f8] sm:$0xff] }
 0x10a   :  { %9435 = vst [vmem:[#allocation114_spill] sm:$0xff] %v7649_v27  ;;  %9437 = vst [vmem:[#allocation116_spill] sm:$0xff] %v7655_v12  ;;  %v7665_v31 = vpack.c.bf16 %v1066_v41, %v1058_v25  ;;  %v7670_v10 = vpack.c.bf16 %v1083_v36, %v1075_v9  ;;  %v1088_v41 = vld [vmem:[#allocation6 + $0x620] sm:$0xff]  ;;  %v1090_v9 = vld [vmem:[#allocation6 + $0x630] sm:$0xff] }
 0x10b   :  { %4729 = vmatpush1.bf16.msra.mxu0 %v7637_v0  ;;  %v1081_v0 = vld [vmem:[#allocation6 + $0x5e8] sm:$0xff]  ;;  %v1096_v25 = vld [vmem:[#allocation6 + $0x660] sm:$0xff] }
 0x10c   :  { %4793 = vmatpush1.bf16.msra.mxu1 %v7641_v4  ;;  %4731 = vmatprep.subr.bf16.mxu0 %v7643_v28  ;;  %v7661_v4 = vpack.c.bf16 %v1064_v18, %v1056_v45  ;;  %9440 = vst [vmem:[#allocation119_spill] sm:$0xff] %v7665_v31  ;;  %v7667_v53 = vpack.c.bf16 %v1081_v0, %v1073_v11  ;;  %9442 = vst [vmem:[#allocation121_spill] sm:$0xff] %v7670_v10  ;;  %v1089_v28 = vld [vmem:[#allocation6 + $0x628] sm:$0xff]  ;;  %v1091_v45 = vld [vmem:[#allocation6 + $0x638] sm:$0xff] }
 0x10d   :  { %4795 = vmatprep.subr.bf16.mxu1 %v7646_v58  ;;  %v1082_v58 = vld [vmem:[#allocation6 + $0x5f0] sm:$0xff]  ;;  %v1099_v18 = vld [vmem:[#allocation6 + $0x678] sm:$0xff] }
 0x10e   :  { %9439 = vst [vmem:[#allocation118_spill] sm:$0xff] %v7661_v4  ;;  %9441 = vst [vmem:[#allocation120_spill] sm:$0xff] %v7667_v53  ;;  %v7677_v0 = vpack.c.bf16 %v1082_v58, %v1074_v48  ;;  %v7682_v36 = vpack.c.bf16 %v1099_v18, %v1091_v45  ;;  %v1104_v58 = vld [vmem:[#allocation6 + $0x6a0] sm:$0xff]  ;;  %v1106_v45 = vld [vmem:[#allocation6 + $0x6b0] sm:$0xff] }
 0x10f   :  { %4733 = vmatpush1.bf16.msra.mxu0 %v7649_v27  ;;  %v1097_v27 = vld [vmem:[#allocation6 + $0x668] sm:$0xff]  ;;  %v1112_v48 = vld [vmem:[#allocation6 + $0x6e0] sm:$0xff] }
 0x110   :  { %4797 = vmatpush1.bf16.msra.mxu1 %v7653_v47  ;;  %4735 = vmatprep.subr.bf16.mxu0 %v7655_v12  ;;  %v7673_v47 = vpack.c.bf16 %v1080_v33, %v1072_v32  ;;  %9444 = vst [vmem:[#allocation123_spill] sm:$0xff] %v7677_v0  ;;  %v7679_v11 = vpack.c.bf16 %v1097_v27, %v1089_v28  ;;  %9446 = vst [vmem:[#allocation125_spill] sm:$0xff] %v7682_v36  ;;  %v1105_v12 = vld [vmem:[#allocation6 + $0x6a8] sm:$0xff]  ;;  %v1107_v32 = vld [vmem:[#allocation6 + $0x6b8] sm:$0xff] }
 0x111   :  { %4799 = vmatprep.subr.bf16.mxu1 %v7658_v15  ;;  %v1098_v15 = vld [vmem:[#allocation6 + $0x670] sm:$0xff]  ;;  %v1115_v33 = vld [vmem:[#allocation6 + $0x6f8] sm:$0xff] }
 0x112   :  { %9443 = vst [vmem:[#allocation122_spill] sm:$0xff] %v7673_v47  ;;  %9445 = vst [vmem:[#allocation124_spill] sm:$0xff] %v7679_v11  ;;  %v7689_v27 = vpack.c.bf16 %v1098_v15, %v1090_v9  ;;  %v7694_v18 = vpack.c.bf16 %v1115_v33, %v1107_v32  ;;  %v1120_v15 = vld [vmem:[#allocation6 + $0x720] sm:$0xff]  ;;  %v1122_v32 = vld [vmem:[#allocation6 + $0x730] sm:$0xff] }
 0x113   :  { %4737 = vmatpush1.bf16.msra.mxu0 %v7661_v4  ;;  %v1113_v4 = vld [vmem:[#allocation6 + $0x6e8] sm:$0xff]  ;;  %v1128_v9 = vld [vmem:[#allocation6 + $0x760] sm:$0xff] }
 0x114   :  { %4801 = vmatpush1.bf16.msra.mxu1 %v7665_v31  ;;  %4739 = vmatprep.subr.bf16.mxu0 %v7667_v53  ;;  %v7685_v31 = vpack.c.bf16 %v1096_v25, %v1088_v41  ;;  %9448 = vst [vmem:[#allocation127_spill] sm:$0xff] %v7689_v27  ;;  %v7691_v28 = vpack.c.bf16 %v1113_v4, %v1105_v12  ;;  %9450 = vst [vmem:[#allocation129_spill] sm:$0xff] %v7694_v18  ;;  %v1121_v53 = vld [vmem:[#allocation6 + $0x728] sm:$0xff]  ;;  %v1123_v41 = vld [vmem:[#allocation6 + $0x738] sm:$0xff] }
 0x115   :  { %4803 = vmatprep.subr.bf16.mxu1 %v7670_v10  ;;  %v1114_v10 = vld [vmem:[#allocation6 + $0x6f0] sm:$0xff]  ;;  %v1131_v25 = vld [vmem:[#allocation6 + $0x778] sm:$0xff] }
 0x116   :  { %9447 = vst [vmem:[#allocation126_spill] sm:$0xff] %v7685_v31  ;;  %9449 = vst [vmem:[#allocation128_spill] sm:$0xff] %v7691_v28  ;;  %v7701_v4 = vpack.c.bf16 %v1114_v10, %v1106_v45  ;;  %v7706_v33 = vpack.c.bf16 %v1131_v25, %v1123_v41  ;;  %v1136_v10 = vld [vmem:[#allocation6 + $0x7a0] sm:$0xff]  ;;  %v1138_v25 = vld [vmem:[#allocation6 + $0x7b0] sm:$0xff] }
 0x117   :  { %4741 = vmatpush1.bf16.msra.mxu0 %v7673_v47  ;;  %v1129_v47 = vld [vmem:[#allocation6 + $0x768] sm:$0xff]  ;;  %v1144_v45 = vld [vmem:[#allocation6 + $0x7e0] sm:$0xff] }
 0x118   :  { %4805 = vmatpush1.bf16.msra.mxu1 %v7677_v0  ;;  %4743 = vmatprep.subr.bf16.mxu0 %v7679_v11  ;;  %v7697_v0 = vpack.c.bf16 %v1112_v48, %v1104_v58  ;;  %9452 = vst [vmem:[#allocation131_spill] sm:$0xff] %v7701_v4  ;;  %v7703_v12 = vpack.c.bf16 %v1129_v47, %v1121_v53  ;;  %9454 = vst [vmem:[#allocation133_spill] sm:$0xff] %v7706_v33  ;;  %v1137_v11 = vld [vmem:[#allocation6 + $0x7a8] sm:$0xff]  ;;  %v1139_v58 = vld [vmem:[#allocation6 + $0x7b8] sm:$0xff] }
 0x119   :  { %4807 = vmatprep.subr.bf16.mxu1 %v7682_v36  ;;  %v1130_v36 = vld [vmem:[#allocation6 + $0x770] sm:$0xff]  ;;  %v1147_v48 = vld [vmem:[#allocation6 + $0x7f8] sm:$0xff] }
 0x11a   :  { %9451 = vst [vmem:[#allocation130_spill] sm:$0xff] %v7697_v0  ;;  %9453 = vst [vmem:[#allocation132_spill] sm:$0xff] %v7703_v12  ;;  %v7713_v47 = vpack.c.bf16 %v1130_v36, %v1122_v32  ;;  %v7718_v41 = vpack.c.bf16 %v1147_v48, %v1139_v58  ;;  %v9466_v32 = vld [vmem:[#allocation59_spill] sm:$0xff]  ;;  %v9467_v58 = vld [vmem:[#allocation60_spill] sm:$0xff] }
 0x11b   :  { %4745 = vmatpush1.bf16.msra.mxu0 %v7685_v31  ;;  %v1145_v31 = vld [vmem:[#allocation6 + $0x7e8] sm:$0xff]  ;;  %v9468_v48 = vld [vmem:[#allocation61_spill] sm:$0xff] }
 0x11c   :  { %4809 = vmatpush1.bf16.msra.mxu1 %v7689_v27  ;;  %4747 = vmatprep.subr.bf16.mxu0 %v7691_v28  ;;  %v7709_v27 = vpack.c.bf16 %v1128_v9, %v1120_v15  ;;  %9456 = vst [vmem:[#allocation135_spill] sm:$0xff] %v7713_v47  ;;  %v7715_v53 = vpack.c.bf16 %v1145_v31, %v1137_v11  ;;  %9458 = vst [vmem:[#allocation137_spill] sm:$0xff] %v7718_v41  ;;  %v9462_v31 = vld [vmem:[#allocation55_spill] sm:$0xff]  ;;  %v9463_v11 = vld [vmem:[#allocation56_spill] sm:$0xff] }
 0x11d   :  { %4811 = vmatprep.subr.bf16.mxu1 %v7694_v18  ;;  %v1146_v18 = vld [vmem:[#allocation6 + $0x7f0] sm:$0xff]  ;;  %v7721_v15 = vpack.c.bf16 %v1144_v45, %v1136_v10  ;;  %v9465_v9 = vld [vmem:[#allocation58_spill] sm:$0xff]  ;;  %v9470_v45 = vld [vmem:[#allocation63_spill] sm:$0xff] }
 0x11e   :  { %9455 = vst [vmem:[#allocation134_spill] sm:$0xff] %v7709_v27  ;;  %9457 = vst [vmem:[#allocation136_spill] sm:$0xff] %v7715_v53  ;;  %v7725_v36 = vpack.c.bf16 %v1146_v18, %v1138_v25  ;;  %v9464_v18 = vld [vmem:[#allocation57_spill] sm:$0xff]  ;;  %v9469_v10 = vld [vmem:[#allocation62_spill] sm:$0xff] }
 0x11f   :  { %4749 = vmatpush1.bf16.msra.mxu0 %v7697_v0  ;;  %9459 = vst [vmem:[#allocation138_spill] sm:$0xff] %v7721_v15  ;;  %v9471_v25 = vld [vmem:[#allocation64_spill] sm:$0xff] }
 0x120   :  { %4813 = vmatpush1.bf16.msra.mxu1 %v7701_v4  ;;  %4751 = vmatprep.subr.bf16.mxu0 %v7703_v12  ;;  %9460 = vst [vmem:[#allocation139_spill] sm:$0xff] %v7725_v36 }
 0x121   :  { %4815 = vmatprep.subr.bf16.mxu1 %v7706_v33 }
 0x123   :  { %4753 = vmatpush1.bf16.msra.mxu0 %v7709_v27 }
 0x124   :  { %4817 = vmatpush1.bf16.msra.mxu1 %v7713_v47  ;;  %4755 = vmatprep.subr.bf16.mxu0 %v7715_v53 }
 0x125   :  { %4819 = vmatprep.subr.bf16.mxu1 %v7718_v41 }
 0x127   :  { %4757 = vmatpush1.bf16.msra.mxu0 %v7721_v15 }
 0x128   :  { %4821 = vmatpush1.bf16.msra.mxu1 %v7725_v36  ;;  %4823 = vmatprep.subr.bf16.mxu0 %v7310_v56 }
 0x129   :  { %4887 = vmatprep.subr.bf16.mxu1 %v7312_v63 }
 0x12a   :  { %1355 = vmatmul.mubr.f32.vlgmr.msra.gmra.mrb[30].mxu0 %v9402_v62 }
 0x12b   :  { %1426 = vmatmul.mubr.f32.vlgmr.msra.gmra.mrb[30].mxu1 %v9402_v62  ;;  %4825 = vmatpush1.bf16.msra.mxu0 %v7314_v5  ;;  %v9461_v62 = vld [vmem:[#allocation54_spill] sm:$0xff] }
 0x12c   :  { %4889 = vmatpush1.bf16.msra.mxu1 %v7317_v6  ;;  %4827 = vmatprep.subr.bf16.mxu0 %v7319_v8 }
 0x12d   :  { %4891 = vmatprep.subr.bf16.mxu1 %v7322_v13 }
 0x12f   :  { %4829 = vmatpush1.bf16.msra.mxu0 %v7327_v21 }
 0x130   :  { %4893 = vmatpush1.bf16.msra.mxu1 %v7331_v22  ;;  %4831 = vmatprep.subr.bf16.mxu0 %v7333_v24 }
 0x131   :  { %4895 = vmatprep.subr.bf16.mxu1 %v7336_v30 }
 0x133   :  { %4833 = vmatpush1.bf16.msra.mxu0 %v7342_v35 }
 0x134   :  { %4897 = vmatpush1.bf16.msra.mxu1 %v7347_v37  ;;  %4835 = vmatprep.subr.bf16.mxu0 %v7349_v38 }
 0x135   :  { %4899 = vmatprep.subr.bf16.mxu1 %v7352_v29 }
 0x137   :  { %4837 = vmatpush1.bf16.msra.mxu0 %v7358_v49 }
 0x138   :  { %4901 = vmatpush1.bf16.msra.mxu1 %v7363_v50  ;;  %4839 = vmatprep.subr.bf16.mxu0 %v7365_v51 }
 0x139   :  { %4903 = vmatprep.subr.bf16.mxu1 %v7368_v43 }
 0x13b   :  { %4841 = vmatpush1.bf16.msra.mxu0 %v7374_v1 }
 0x13c   :  { %4905 = vmatpush1.bf16.msra.mxu1 %v7379_v2  ;;  %4843 = vmatprep.subr.bf16.mxu0 %v7381_v3 }
 0x13d   :  { %4907 = vmatprep.subr.bf16.mxu1 %v7384_v57 }
 0x13f   :  { %4845 = vmatpush1.bf16.msra.mxu0 %v7390_v19 }
 0x140   :  { %4909 = vmatpush1.bf16.msra.mxu1 %v7395_v20  ;;  %4847 = vmatprep.subr.bf16.mxu0 %v7397_v26 }
 0x141   :  { %4911 = vmatprep.subr.bf16.mxu1 %v7400_v7 }
 0x143   :  { %4849 = vmatpush1.bf16.msra.mxu0 %v7406_v40 }
 0x144   :  { %4913 = vmatpush1.bf16.msra.mxu1 %v7411_v16  ;;  %4851 = vmatprep.subr.bf16.mxu0 %v7413_v42 }
 0x145   :  { %4915 = vmatprep.subr.bf16.mxu1 %v7416_v23 }
 0x147   :  { %4853 = vmatpush1.bf16.msra.mxu0 %v7422_v54 }
 0x148   :  { %4917 = vmatpush1.bf16.msra.mxu1 %v7427_v60  ;;  %4855 = vmatprep.subr.bf16.mxu0 %v7429_v61 }
 0x149   :  { %4919 = vmatprep.subr.bf16.mxu1 %v7432_v39 }
 0x14b   :  { %4857 = vmatpush1.bf16.msra.mxu0 %v7438_v14 }
 0x14c   :  { %4921 = vmatpush1.bf16.msra.mxu1 %v7443_v17  ;;  %4859 = vmatprep.subr.bf16.mxu0 %v7445_v59 }
 0x14d   :  { %4923 = vmatprep.subr.bf16.mxu1 %v7448_v55 }
 0x14f   :  { %4861 = vmatpush1.bf16.msra.mxu0 %v7453_v34 }
 0x150   :  { %4925 = vmatpush1.bf16.msra.mxu1 %v7457_v44  ;;  %4863 = vmatprep.subr.bf16.mxu0 %v7459_v46 }
 0x151   :  { %4927 = vmatprep.subr.bf16.mxu1 %v7462_v52 }
 0x153   :  { %4865 = vmatpush1.bf16.msra.mxu0 %v9461_v62  ;;  %v9472_v62 = vld [vmem:[#allocation65_spill] sm:$0xff] }
 0x154   :  { %4929 = vmatpush1.bf16.msra.mxu1 %v9462_v31  ;;  %4867 = vmatprep.subr.bf16.mxu0 %v9463_v11  ;;  %v9473_v31 = vld [vmem:[#allocation66_spill] sm:$0xff]  ;;  %v9474_v11 = vld [vmem:[#allocation67_spill] sm:$0xff] }
 0x155   :  { %4931 = vmatprep.subr.bf16.mxu1 %v9464_v18  ;;  %v9475_v18 = vld [vmem:[#allocation68_spill] sm:$0xff] }
 0x157   :  { %4869 = vmatpush1.bf16.msra.mxu0 %v9465_v9  ;;  %v9476_v9 = vld [vmem:[#allocation69_spill] sm:$0xff] }
 0x158   :  { %4933 = vmatpush1.bf16.msra.mxu1 %v9466_v32  ;;  %4871 = vmatprep.subr.bf16.mxu0 %v9467_v58  ;;  %v9477_v32 = vld [vmem:[#allocation70_spill] sm:$0xff]  ;;  %v9478_v58 = vld [vmem:[#allocation71_spill] sm:$0xff] }
 0x159   :  { %4935 = vmatprep.subr.bf16.mxu1 %v9468_v48  ;;  %v9479_v48 = vld [vmem:[#allocation72_spill] sm:$0xff] }
 0x15b   :  { %4873 = vmatpush1.bf16.msra.mxu0 %v9469_v10  ;;  %v9480_v10 = vld [vmem:[#allocation73_spill] sm:$0xff] }
 0x15c   :  { %4937 = vmatpush1.bf16.msra.mxu1 %v9470_v45  ;;  %4875 = vmatprep.subr.bf16.mxu0 %v9471_v25  ;;  %v9481_v45 = vld [vmem:[#allocation74_spill] sm:$0xff]  ;;  %v9482_v25 = vld [vmem:[#allocation75_spill] sm:$0xff] }
 0x15d   :  { %4939 = vmatprep.subr.bf16.mxu1 %v9472_v62  ;;  %v9483_v62 = vld [vmem:[#allocation76_spill] sm:$0xff] }
 0x15f   :  { %4877 = vmatpush1.bf16.msra.mxu0 %v9473_v31  ;;  %v9484_v31 = vld [vmem:[#allocation77_spill] sm:$0xff] }
 0x160   :  { %4941 = vmatpush1.bf16.msra.mxu1 %v9474_v11  ;;  %4879 = vmatprep.subr.bf16.mxu0 %v9475_v18  ;;  %v328_v11 = vlaneseq }
 0x161   :  { %4943 = vmatprep.subr.bf16.mxu1 %v9476_v9 }
 0x162   :  { %v329_v18 = vshrl.u32 %v328_v11, 7 }
 0x163   :  { %4881 = vmatpush1.bf16.msra.mxu0 %v9477_v32  ;;  %v326_v32 = vld [vmem:[%s9021_s2] sm:$0xff] }
 0x164   :  { %4945 = vmatpush1.bf16.msra.mxu1 %v9478_v58  ;;  %4883 = vmatprep.subr.bf16.mxu0 %v9479_v48  ;;  %v330_v52 = vsub.s32 0, %v329_v18  ;;  %v334_v58 = vsub.s32 1, %v329_v18  ;;  %v338_v34 = vsub.s32 2, %v329_v18 }
 0x165   :  { %4947 = vmatprep.subr.bf16.mxu1 %v9480_v10 }
 0x166   :  { %v7801_v9 = vrot.slane %v326_v32, %v330_v52  ;;  %v7803_v48 = vrot.slane %v326_v32, %v334_v58  ;;  %v7807_v55 = vrot.slane %v326_v32, %v338_v34 }
 0x167   :  { %4885 = vmatpush1.bf16.msra.mxu0 %v9481_v45 }
 0x168   :  { %4949 = vmatpush1.bf16.msra.mxu1 %v9482_v25  ;;  %4951 = vmatprep.subr.bf16.mxu0 %v9483_v62  ;;  %9485 = vst [vmem:[#allocation140_spill] sm:$0xff] %v7801_v9  ;;  %9486 = vst [vmem:[#allocation141_spill] sm:$0xff] %v7803_v48 }
 0x169   :  { %5015 = vmatprep.subr.bf16.mxu1 %v9484_v31  ;;  %9487 = vst [vmem:[#allocation142_spill] sm:$0xff] %v7807_v55 }
 0x1bd   :  { %v1214_v10 = vpop.f32.mrb[0].mxu0 }
 0x1be   :  { %v6646_v45 = vadd.f32 %v1214_v10, %v7801_v9  ;;  %v1285_v25 = vpop.f32.mrb[0].mxu1  ;;  %v1216_v46 = vpop.f32.mrb[1].mxu0 }
 0x1bf   :  { %v6647_v62 = vadd.f32 %v1216_v46, %v7803_v48  ;;  %v1287_v31 = vpop.f32.mrb[1].mxu1  ;;  %v6662_v52 = vadd.f32 %v1285_v25, %v7807_v55  ;;  %v342_v25 = vsub.s32 3, %v329_v18 }
 0x1c0   :  { %v4226_v44 = vmul.f32 -1.442695, %v6646_v45 }
 0x1c1   :  { %v4227_v11 = vmul.f32 -1.442695, %v6647_v62 }
 0x1c2   :  { %6780 = vpow2.f32 %v4226_v44  ;;  %v346_v44 = vsub.s32 4, %v329_v18 }
 0x1c3   :  { %6782 = vpow2.f32 %v4227_v11  ;;  %v350_v11 = vsub.s32 5, %v329_v18 }
 0x1c4   :  { %6784 = vtanh.f32 %v6662_v52  ;;  %v7812_v34 = vrot.slane %v326_v32, %v346_v44 }
 0x1c5   :  { %v7814_v39 = vrot.slane %v326_v32, %v350_v11 }
 0x1c6   :  { %9488 = vst [vmem:[#allocation143_spill] sm:$0xff] %v7812_v34 }
 0x1c7   :  { %9489 = vst [vmem:[#allocation144_spill] sm:$0xff] %v7814_v39 }
 0x1cc   :  { %v6781_v59 = vpop.eup %6780 }
 0x1cd   :  { %v6783_v58 = vpop.eup %6782  ;;  %v1443_v17 = vadd.f32 1.0, %v6781_v59  ;;  %v358_v59 = vsub.s32 7, %v329_v18 }
 0x1ce   :  { %v1449_v14 = vadd.f32 1.0, %v6783_v58  ;;  %v6785_v10 = vpop.eup %6784 }
 0x1cf   :  { %6786 = vrcp.f32 %v1443_v17 }
 0x1d0   :  { %6788 = vrcp.f32 %v1449_v14 }
 0x1d9   :  { %v6787_v9 = vpop.eup %6786 }
 0x1da   :  { %v6789_v46 = vpop.eup %6788  ;;  %v1460_v48 = vmul.f32 %v6787_v9, %v6785_v10  ;;  %v7818_v9 = vrot.slane %v326_v32, %v342_v25 }
 0x1db   :  { %v1459_v45 = vmul.f32 0.0, %v6789_v46  ;;  %v7820_v46 = vrot.slane %v326_v32, %v358_v59 }
 0x1dc   :  { %v6663_v44 = vadd.f32 %v1287_v31, %v7818_v9 }
 0x1dd   :  { %v7810_v62 = vadd.f32 %v1460_v48, %v1459_v45  ;;  %v354_v45 = vsub.s32 6, %v329_v18 }
 0x1df   :  { %v7824_v60 = vrot.slane %v326_v32, %v354_v45 }
 0x1fd   :  { %v1356_v55 = vpop.f32.mrb[30].mxu0 }
 0x1fe   :  { %v6692_v52 = vadd.f32 %v1356_v55, %v7812_v34  ;;  %v1427_v17 = vpop.f32.mrb[30].mxu1  ;;  %v1358_v14 = vpop.f32.mrb[31].mxu0  ;;  %v4228_v55 = vmul.f32 -1.442695, %v6663_v44 }
 0x1ff   :  { %v6693_v58 = vadd.f32 %v1358_v14, %v7814_v39  ;;  %v1429_v61 = vpop.f32.mrb[31].mxu1  ;;  %v6708_v14 = vadd.f32 %v1427_v17, %v7824_v60 }
 0x200   :  { %v4229_v48 = vmul.f32 -1.442695, %v6692_v52  ;;  %v6709_v11 = vadd.f32 %v1429_v61, %v7820_v46 }
 0x201   :  { %v4230_v10 = vmul.f32 -1.442695, %v6693_v58 }
 0x202   :  { %6790 = vpow2.f32 %v4229_v48  ;;  %v4231_v34 = vmul.f32 -1.442695, %v6709_v11 }
 0x203   :  { %6792 = vpow2.f32 %v4230_v10 }
 0x204   :  { %6794 = vpow2.f32 %v4228_v55 }
 0x205   :  { %6796 = vpow2.f32 %v4231_v34 }
 0x206   :  { %6798 = vtanh.f32 %v6708_v14 }
 0x20c   :  { %v6791_v39 = vpop.eup %6790 }
 0x20d   :  { %v6793_v25 = vpop.eup %6792  ;;  %v1467_v52 = vadd.f32 1.0, %v6791_v39 }
 0x20e   :  { %v1473_v59 = vadd.f32 1.0, %v6793_v25  ;;  %v6795_v18 = vpop.eup %6794 }
 0x20f   :  { %6800 = vrcp.f32 %v1467_v52  ;;  %v6797_v58 = vpop.eup %6796  ;;  %v1456_v44 = vadd.f32 1.0, %v6795_v18  ;;  %v9492_v52 = vld [vmem:[#allocation78_spill] sm:$0xff]  ;;  %v9494_v18 = vld [vmem:[#allocation80_spill] sm:$0xff] }
 0x210   :  { %6802 = vrcp.f32 %v1473_v59  ;;  %v6799_v31 = vpop.eup %6798  ;;  %v1480_v10 = vadd.f32 1.0, %v6797_v58  ;;  %v9493_v59 = vld [vmem:[#allocation79_spill] sm:$0xff]  ;;  %v9495_v58 = vld [vmem:[#allocation81_spill] sm:$0xff] }
 0x211   :  { %6804 = vtanh.f32 %v7810_v62 }
 0x212   :  { %6806 = vrcp.f32 %v1480_v10  ;;  %v9500_v10 = vld [vmem:[#allocation86_spill] sm:$0xff] }
 0x219   :  { %v6801_v48 = vpop.eup %6800 }
 0x21a   :  { %v6803_v61 = vpop.eup %6802  ;;  %v1484_v32 = vmul.f32 %v6801_v48, %v6799_v31  ;;  %v9496_v31 = vld [vmem:[#allocation82_spill] sm:$0xff]  ;;  %v9497_v48 = vld [vmem:[#allocation83_spill] sm:$0xff] }
 0x21b   :  { %v1483_v45 = vmul.f32 0.0, %v6803_v61  ;;  %v6805_v39 = vpop.eup %6804  ;;  %v9498_v61 = vld [vmem:[#allocation84_spill] sm:$0xff] }
 0x21c   :  { %v6807_v34 = vpop.eup %6806 }
 0x21d   :  { %v7828_v17 = vadd.f32 %v1484_v32, %v1483_v45  ;;  %v9499_v32 = vld [vmem:[#allocation85_spill] sm:$0xff]  ;;  %v9501_v45 = vld [vmem:[#allocation87_spill] sm:$0xff] }
 0x21f   :  { %6808 = vtanh.f32 %v7828_v17 }
 0x220   :  { %6810 = vrcp.f32 %v1456_v44  ;;  %v9502_v44 = vld [vmem:[#allocation88_spill] sm:$0xff] }
 0x229   :  { %v6809_v11 = vpop.eup %6808 }
 0x22a   :  { %v6811_v55 = vpop.eup %6810  ;;  %v7831_v14 = vmul.f32 %v6809_v11, %v6807_v34  ;;  %v9504_v34 = vld [vmem:[#allocation90_spill] sm:$0xff]  ;;  %v9505_v11 = vld [vmem:[#allocation91_spill] sm:$0xff] }
 0x22b   :  { %v7833_v25 = vmul.f32 %v6811_v55, %v6805_v39  ;;  %v9503_v39 = vld [vmem:[#allocation89_spill] sm:$0xff]  ;;  %v9506_v55 = vld [vmem:[#allocation92_spill] sm:$0xff] }
 0x22c   :  { %9490 = vst [vmem:[#allocation145_spill] sm:$0xff] %v7831_v14  ;;  %1560 = vmatprep.mubr.f32.mxu0 %v7831_v14  ;;  %1631 = vmatprep.mubr.f32.mxu1 %v7831_v14 }
 0x22d   :  { %9491 = vst [vmem:[#allocation146_spill] sm:$0xff] %v7833_v25  ;;  %1561 = vmatmul.mubr.f32.vlgmr.msra.gmra.mrb[2].mxu0 %v7833_v25  ;;  %1632 = vmatmul.mubr.f32.vlgmr.msra.gmra.mrb[2].mxu1 %v7833_v25 }
 0x22e   :  { %4953 = vmatpush1.bf16.msra.mxu0 %v9492_v52  ;;  %5017 = vmatpush1.bf16.msra.mxu1 %v9493_v59 }
 0x22f   :  { %1702 = vmatprep.mubr.f32.mxu0 %v7831_v14  ;;  %1773 = vmatprep.mubr.f32.mxu1 %v7831_v14  ;;  %v9507_v14 = vld [vmem:[#allocation93_spill] sm:$0xff] }
 0x230   :  { %4955 = vmatprep.subr.bf16.mxu0 %v9494_v18  ;;  %5019 = vmatprep.subr.bf16.mxu1 %v9495_v58 }
 0x232   :  { %4957 = vmatpush1.bf16.msra.mxu0 %v9496_v31  ;;  %5021 = vmatpush1.bf16.msra.mxu1 %v9497_v48  ;;  %v9508_v48 = vld [vmem:[#allocation94_spill] sm:$0xff] }
 0x233   :  { %4959 = vmatprep.subr.bf16.mxu0 %v9498_v61  ;;  %5023 = vmatprep.subr.bf16.mxu1 %v9499_v32  ;;  %v9509_v61 = vld [vmem:[#allocation95_spill] sm:$0xff]  ;;  %v9510_v32 = vld [vmem:[#allocation96_spill] sm:$0xff] }
 0x236   :  { %4961 = vmatpush1.bf16.msra.mxu0 %v9500_v10  ;;  %5025 = vmatpush1.bf16.msra.mxu1 %v9501_v45  ;;  %v9511_v10 = vld [vmem:[#allocation97_spill] sm:$0xff]  ;;  %v9512_v45 = vld [vmem:[#allocation98_spill] sm:$0xff] }
 0x237   :  { %4963 = vmatprep.subr.bf16.mxu0 %v9502_v44  ;;  %5027 = vmatprep.subr.bf16.mxu1 %v9503_v39  ;;  %v9513_v44 = vld [vmem:[#allocation99_spill] sm:$0xff]  ;;  %v9514_v39 = vld [vmem:[#allocation100_spill] sm:$0xff] }
 0x23a   :  { %4965 = vmatpush1.bf16.msra.mxu0 %v9504_v34  ;;  %5029 = vmatpush1.bf16.msra.mxu1 %v9505_v11  ;;  %v9515_v34 = vld [vmem:[#allocation101_spill] sm:$0xff]  ;;  %v9516_v11 = vld [vmem:[#allocation102_spill] sm:$0xff] }
 0x23b   :  { %4967 = vmatprep.subr.bf16.mxu0 %v9506_v55  ;;  %5031 = vmatprep.subr.bf16.mxu1 %v9507_v14  ;;  %v9517_v55 = vld [vmem:[#allocation103_spill] sm:$0xff]  ;;  %v9518_v14 = vld [vmem:[#allocation104_spill] sm:$0xff] }
 0x23e   :  { %4969 = vmatpush1.bf16.msra.mxu0 %v9508_v48  ;;  %5033 = vmatpush1.bf16.msra.mxu1 %v9509_v61  ;;  %v9519_v48 = vld [vmem:[#allocation105_spill] sm:$0xff]  ;;  %v9520_v61 = vld [vmem:[#allocation106_spill] sm:$0xff] }
 0x23f   :  { %4971 = vmatprep.subr.bf16.mxu0 %v9510_v32  ;;  %5035 = vmatprep.subr.bf16.mxu1 %v9511_v10  ;;  %v9521_v32 = vld [vmem:[#allocation107_spill] sm:$0xff]  ;;  %v9522_v10 = vld [vmem:[#allocation108_spill] sm:$0xff] }
 0x242   :  { %4973 = vmatpush1.bf16.msra.mxu0 %v9512_v45  ;;  %5037 = vmatpush1.bf16.msra.mxu1 %v9513_v44  ;;  %v9523_v45 = vld [vmem:[#allocation109_spill] sm:$0xff]  ;;  %v9524_v44 = vld [vmem:[#allocation110_spill] sm:$0xff] }
 0x243   :  { %4975 = vmatprep.subr.bf16.mxu0 %v9514_v39  ;;  %5039 = vmatprep.subr.bf16.mxu1 %v9515_v34  ;;  %v9525_v39 = vld [vmem:[#allocation111_spill] sm:$0xff]  ;;  %v9526_v34 = vld [vmem:[#allocation112_spill] sm:$0xff] }
 0x246   :  { %4977 = vmatpush1.bf16.msra.mxu0 %v9516_v11  ;;  %5041 = vmatpush1.bf16.msra.mxu1 %v9517_v55  ;;  %v9527_v11 = vld [vmem:[#allocation113_spill] sm:$0xff]  ;;  %v9528_v55 = vld [vmem:[#allocation114_spill] sm:$0xff] }
 0x247   :  { %4979 = vmatprep.subr.bf16.mxu0 %v9518_v14  ;;  %5043 = vmatprep.subr.bf16.mxu1 %v9519_v48  ;;  %v9529_v14 = vld [vmem:[#allocation115_spill] sm:$0xff]  ;;  %v9530_v48 = vld [vmem:[#allocation116_spill] sm:$0xff] }
 0x24a   :  { %4981 = vmatpush1.bf16.msra.mxu0 %v9520_v61  ;;  %5045 = vmatpush1.bf16.msra.mxu1 %v9521_v32  ;;  %v9531_v61 = vld [vmem:[#allocation117_spill] sm:$0xff]  ;;  %v9532_v32 = vld [vmem:[#allocation118_spill] sm:$0xff] }
 0x24b   :  { %4983 = vmatprep.subr.bf16.mxu0 %v9522_v10  ;;  %5047 = vmatprep.subr.bf16.mxu1 %v9523_v45  ;;  %v9533_v10 = vld [vmem:[#allocation119_spill] sm:$0xff]  ;;  %v9534_v45 = vld [vmem:[#allocation120_spill] sm:$0xff] }
 0x24e   :  { %4985 = vmatpush1.bf16.msra.mxu0 %v9524_v44  ;;  %5049 = vmatpush1.bf16.msra.mxu1 %v9525_v39  ;;  %v9535_v44 = vld [vmem:[#allocation121_spill] sm:$0xff]  ;;  %v9536_v39 = vld [vmem:[#allocation122_spill] sm:$0xff] }
 0x24f   :  { %4987 = vmatprep.subr.bf16.mxu0 %v9526_v34  ;;  %5051 = vmatprep.subr.bf16.mxu1 %v9527_v11  ;;  %v9537_v34 = vld [vmem:[#allocation123_spill] sm:$0xff]  ;;  %v9538_v11 = vld [vmem:[#allocation124_spill] sm:$0xff] }
 0x252   :  { %4989 = vmatpush1.bf16.msra.mxu0 %v9528_v55  ;;  %5053 = vmatpush1.bf16.msra.mxu1 %v9529_v14  ;;  %v9539_v55 = vld [vmem:[#allocation125_spill] sm:$0xff]  ;;  %v9540_v14 = vld [vmem:[#allocation126_spill] sm:$0xff] }
 0x253   :  { %4991 = vmatprep.subr.bf16.mxu0 %v9530_v48  ;;  %5055 = vmatprep.subr.bf16.mxu1 %v9531_v61  ;;  %v9541_v48 = vld [vmem:[#allocation127_spill] sm:$0xff] }
 0x256   :  { %4993 = vmatpush1.bf16.msra.mxu0 %v9532_v32  ;;  %5057 = vmatpush1.bf16.msra.mxu1 %v9533_v10  ;;  %v9542_v32 = vld [vmem:[#allocation129_spill] sm:$0xff] }
 0x257   :  { %4995 = vmatprep.subr.bf16.mxu0 %v9534_v45  ;;  %5059 = vmatprep.subr.bf16.mxu1 %v9535_v44 }
 0x25a   :  { %4997 = vmatpush1.bf16.msra.mxu0 %v9536_v39  ;;  %5061 = vmatpush1.bf16.msra.mxu1 %v9537_v34 }
 0x25b   :  { %4999 = vmatprep.subr.bf16.mxu0 %v9538_v11  ;;  %5063 = vmatprep.subr.bf16.mxu1 %v9539_v55 }
 0x25e   :  { %5001 = vmatpush1.bf16.msra.mxu0 %v9540_v14  ;;  %5065 = vmatpush1.bf16.msra.mxu1 %v9541_v48 }
 0x25f   :  { %5003 = vmatprep.subr.bf16.mxu0 %v7691_v28  ;;  %5067 = vmatprep.subr.bf16.mxu1 %v9542_v32 }
 0x262   :  { %5005 = vmatpush1.bf16.msra.mxu0 %v7697_v0  ;;  %5069 = vmatpush1.bf16.msra.mxu1 %v7701_v4 }
 0x263   :  { %5007 = vmatprep.subr.bf16.mxu0 %v7703_v12  ;;  %5071 = vmatprep.subr.bf16.mxu1 %v7706_v33 }
 0x266   :  { %5009 = vmatpush1.bf16.msra.mxu0 %v7709_v27  ;;  %5073 = vmatpush1.bf16.msra.mxu1 %v7713_v47 }
 0x267   :  { %5011 = vmatprep.subr.bf16.mxu0 %v7715_v53  ;;  %5075 = vmatprep.subr.bf16.mxu1 %v7718_v41 }
 0x26a   :  { %5013 = vmatpush1.bf16.msra.mxu0 %v7721_v15  ;;  %5077 = vmatpush1.bf16.msra.mxu1 %v7725_v36 }
 0x26b   :  { %5079 = vmatprep.subr.bf16.mxu0 %v7310_v56  ;;  %5143 = vmatprep.subr.bf16.mxu1 %v7312_v63 }
 0x26d   :  { %1703 = vmatmul.mubr.f32.vlgmr.msra.gmra.mrb[28].mxu0 %v7833_v25  ;;  %1774 = vmatmul.mubr.f32.vlgmr.msra.gmra.mrb[28].mxu1 %v7833_v25  ;;  %v9543_v25 = vld [vmem:[#allocation43_spill] sm:$0xff] }
 0x26e   :  { %5081 = vmatpush1.bf16.msra.mxu0 %v7314_v5  ;;  %5145 = vmatpush1.bf16.msra.mxu1 %v7317_v6 }
 0x26f   :  { %5083 = vmatprep.subr.bf16.mxu0 %v7319_v8  ;;  %5147 = vmatprep.subr.bf16.mxu1 %v7322_v13 }
 0x272   :  { %5085 = vmatpush1.bf16.msra.mxu0 %v7327_v21  ;;  %5149 = vmatpush1.bf16.msra.mxu1 %v7331_v22 }
 0x273   :  { %5087 = vmatprep.subr.bf16.mxu0 %v7333_v24  ;;  %5151 = vmatprep.subr.bf16.mxu1 %v7336_v30 }
 0x276   :  { %5089 = vmatpush1.bf16.msra.mxu0 %v7342_v35  ;;  %5153 = vmatpush1.bf16.msra.mxu1 %v7347_v37 }
 0x277   :  { %5091 = vmatprep.subr.bf16.mxu0 %v7349_v38  ;;  %5155 = vmatprep.subr.bf16.mxu1 %v7352_v29 }
 0x27a   :  { %5093 = vmatpush1.bf16.msra.mxu0 %v7358_v49  ;;  %5157 = vmatpush1.bf16.msra.mxu1 %v7363_v50 }
 0x27b   :  { %5095 = vmatprep.subr.bf16.mxu0 %v7365_v51  ;;  %5159 = vmatprep.subr.bf16.mxu1 %v7368_v43 }
 0x27e   :  { %5097 = vmatpush1.bf16.msra.mxu0 %v7374_v1  ;;  %5161 = vmatpush1.bf16.msra.mxu1 %v7379_v2  ;;  %v9579_v1 = vld [vmem:[#allocation141_spill] sm:$0xff] }
 0x27f   :  { %5099 = vmatprep.subr.bf16.mxu0 %v7381_v3  ;;  %5163 = vmatprep.subr.bf16.mxu1 %v7384_v57  ;;  %v9544_v57 = vld [vmem:[#allocation44_spill] sm:$0xff] }
 0x280   :  { %v9578_v3 = vld [vmem:[#allocation140_spill] sm:$0xff] }
 0x282   :  { %5101 = vmatpush1.bf16.msra.mxu0 %v7390_v19  ;;  %5165 = vmatpush1.bf16.msra.mxu1 %v7395_v20  ;;  %v9545_v19 = vld [vmem:[#allocation45_spill] sm:$0xff]  ;;  %v9546_v20 = vld [vmem:[#allocation46_spill] sm:$0xff] }
 0x283   :  { %5103 = vmatprep.subr.bf16.mxu0 %v7397_v26  ;;  %5167 = vmatprep.subr.bf16.mxu1 %v7400_v7  ;;  %v9547_v26 = vld [vmem:[#allocation47_spill] sm:$0xff]  ;;  %v9548_v7 = vld [vmem:[#allocation48_spill] sm:$0xff] }
 0x286   :  { %5105 = vmatpush1.bf16.msra.mxu0 %v7406_v40  ;;  %5169 = vmatpush1.bf16.msra.mxu1 %v7411_v16  ;;  %v9549_v40 = vld [vmem:[#allocation49_spill] sm:$0xff]  ;;  %v9550_v16 = vld [vmem:[#allocation50_spill] sm:$0xff] }
 0x287   :  { %5107 = vmatprep.subr.bf16.mxu0 %v7413_v42  ;;  %5171 = vmatprep.subr.bf16.mxu1 %v7416_v23  ;;  %v9551_v42 = vld [vmem:[#allocation51_spill] sm:$0xff]  ;;  %v9552_v23 = vld [vmem:[#allocation52_spill] sm:$0xff] }
 0x28a   :  { %5109 = vmatpush1.bf16.msra.mxu0 %v7422_v54  ;;  %5173 = vmatpush1.bf16.msra.mxu1 %v9543_v25  ;;  %v9553_v54 = vld [vmem:[#allocation53_spill] sm:$0xff]  ;;  %v9554_v25 = vld [vmem:[#allocation54_spill] sm:$0xff] }
 0x28b   :  { %5111 = vmatprep.subr.bf16.mxu0 %v9544_v57  ;;  %5175 = vmatprep.subr.bf16.mxu1 %v9545_v19  ;;  %v9555_v57 = vld [vmem:[#allocation55_spill] sm:$0xff]  ;;  %v9556_v19 = vld [vmem:[#allocation56_spill] sm:$0xff] }
 0x28e   :  { %5113 = vmatpush1.bf16.msra.mxu0 %v9546_v20  ;;  %5177 = vmatpush1.bf16.msra.mxu1 %v9547_v26  ;;  %v9557_v20 = vld [vmem:[#allocation57_spill] sm:$0xff]  ;;  %v9558_v26 = vld [vmem:[#allocation58_spill] sm:$0xff] }
 0x28f   :  { %5115 = vmatprep.subr.bf16.mxu0 %v9548_v7  ;;  %5179 = vmatprep.subr.bf16.mxu1 %v9549_v40  ;;  %v9559_v7 = vld [vmem:[#allocation59_spill] sm:$0xff]  ;;  %v9560_v40 = vld [vmem:[#allocation60_spill] sm:$0xff] }
 0x292   :  { %5117 = vmatpush1.bf16.msra.mxu0 %v9550_v16  ;;  %5181 = vmatpush1.bf16.msra.mxu1 %v9551_v42  ;;  %v9561_v16 = vld [vmem:[#allocation61_spill] sm:$0xff]  ;;  %v9562_v42 = vld [vmem:[#allocation62_spill] sm:$0xff] }
 0x293   :  { %5119 = vmatprep.subr.bf16.mxu0 %v9552_v23  ;;  %5183 = vmatprep.subr.bf16.mxu1 %v9553_v54  ;;  %v9563_v23 = vld [vmem:[#allocation63_spill] sm:$0xff]  ;;  %v9564_v54 = vld [vmem:[#allocation64_spill] sm:$0xff] }
 0x296   :  { %5121 = vmatpush1.bf16.msra.mxu0 %v9554_v25  ;;  %5185 = vmatpush1.bf16.msra.mxu1 %v9555_v57  ;;  %v9565_v25 = vld [vmem:[#allocation65_spill] sm:$0xff]  ;;  %v9566_v57 = vld [vmem:[#allocation66_spill] sm:$0xff] }
 0x297   :  { %5123 = vmatprep.subr.bf16.mxu0 %v9556_v19  ;;  %5187 = vmatprep.subr.bf16.mxu1 %v9557_v20  ;;  %v9567_v19 = vld [vmem:[#allocation67_spill] sm:$0xff]  ;;  %v9568_v20 = vld [vmem:[#allocation68_spill] sm:$0xff] }
 0x29a   :  { %5125 = vmatpush1.bf16.msra.mxu0 %v9558_v26  ;;  %5189 = vmatpush1.bf16.msra.mxu1 %v9559_v7  ;;  %v9569_v26 = vld [vmem:[#allocation69_spill] sm:$0xff]  ;;  %v9570_v7 = vld [vmem:[#allocation70_spill] sm:$0xff] }
 0x29b   :  { %5127 = vmatprep.subr.bf16.mxu0 %v9560_v40  ;;  %5191 = vmatprep.subr.bf16.mxu1 %v9561_v16  ;;  %v9571_v40 = vld [vmem:[#allocation71_spill] sm:$0xff]  ;;  %v9572_v16 = vld [vmem:[#allocation72_spill] sm:$0xff] }
 0x29e   :  { %5129 = vmatpush1.bf16.msra.mxu0 %v9562_v42  ;;  %5193 = vmatpush1.bf16.msra.mxu1 %v9563_v23  ;;  %v9573_v42 = vld [vmem:[#allocation73_spill] sm:$0xff]  ;;  %v9574_v23 = vld [vmem:[#allocation74_spill] sm:$0xff] }
 0x29f   :  { %5131 = vmatprep.subr.bf16.mxu0 %v9564_v54  ;;  %5195 = vmatprep.subr.bf16.mxu1 %v9565_v25  ;;  %v9575_v54 = vld [vmem:[#allocation75_spill] sm:$0xff]  ;;  %v9576_v25 = vld [vmem:[#allocation76_spill] sm:$0xff] }
 0x2a2   :  { %5133 = vmatpush1.bf16.msra.mxu0 %v9566_v57  ;;  %5197 = vmatpush1.bf16.msra.mxu1 %v9567_v19  ;;  %v9577_v57 = vld [vmem:[#allocation77_spill] sm:$0xff] }
 0x2a3   :  { %5135 = vmatprep.subr.bf16.mxu0 %v9568_v20  ;;  %5199 = vmatprep.subr.bf16.mxu1 %v9569_v26 }
 0x2a6   :  { %5137 = vmatpush1.bf16.msra.mxu0 %v9570_v7  ;;  %5201 = vmatpush1.bf16.msra.mxu1 %v9571_v40 }
 0x2a7   :  { %5139 = vmatprep.subr.bf16.mxu0 %v9572_v16  ;;  %5203 = vmatprep.subr.bf16.mxu1 %v9573_v42  ;;  %v9580_v42 = vld [vmem:[#allocation142_spill] sm:$0xff] }
 0x2aa   :  { %5141 = vmatpush1.bf16.msra.mxu0 %v9574_v23  ;;  %5205 = vmatpush1.bf16.msra.mxu1 %v9575_v54 }
 0x2ab   :  { %5207 = vmatprep.subr.bf16.mxu0 %v9576_v25  ;;  %5271 = vmatprep.subr.bf16.mxu1 %v9577_v57 }
 0x300   :  { %v1562_v19 = vpop.f32.mrb[2].mxu0  ;;  %v1633_v20 = vpop.f32.mrb[2].mxu1 }
 0x301   :  { %v6648_v26 = vadd.f32 %v1562_v19, %v9578_v3  ;;  %v1564_v2 = vpop.f32.mrb[3].mxu0  ;;  %v1635_v7 = vpop.f32.mrb[3].mxu1  ;;  %v6664_v23 = vadd.f32 %v1633_v20, %v9580_v42 }
 0x302   :  { %v6649_v40 = vadd.f32 %v1564_v2, %v9579_v1  ;;  %v9582_v1 = vld [vmem:[#allocation144_spill] sm:$0xff] }
 0x303   :  { %v4232_v43 = vmul.f32 -1.442695, %v6648_v26 }
 0x304   :  { %v4233_v16 = vmul.f32 -1.442695, %v6649_v40  ;;  %v9581_v40 = vld [vmem:[#allocation143_spill] sm:$0xff] }
 0x305   :  { %6812 = vpow2.f32 %v4232_v43 }
 0x306   :  { %6814 = vpow2.f32 %v4233_v16 }
 0x307   :  { %6816 = vtanh.f32 %v6664_v23 }
 0x30f   :  { %v6813_v51 = vpop.eup %6812 }
 0x310   :  { %v6815_v54 = vpop.eup %6814  ;;  %v1791_v50 = vadd.f32 1.0, %v6813_v51 }
 0x311   :  { %v1797_v25 = vadd.f32 1.0, %v6815_v54  ;;  %v6817_v57 = vpop.eup %6816 }
 0x312   :  { %6818 = vrcp.f32 %v1791_v50  ;;  %v6665_v50 = vadd.f32 %v1635_v7, %v7818_v9 }
 0x313   :  { %6820 = vrcp.f32 %v1797_v25 }
 0x31c   :  { %v6819_v49 = vpop.eup %6818 }
 0x31d   :  { %v6821_v19 = vpop.eup %6820  ;;  %v1808_v3 = vmul.f32 %v6819_v49, %v6817_v57  ;;  %v4234_v57 = vmul.f32 -1.442695, %v6665_v50 }
 0x31e   :  { %v1807_v29 = vmul.f32 %v6821_v19, %v7810_v62 }
 0x320   :  { %v7975_v2 = vadd.f32 %v1808_v3, %v1807_v29 }
 0x340   :  { %v1704_v26 = vpop.f32.mrb[28].mxu0  ;;  %v1775_v43 = vpop.f32.mrb[28].mxu1 }
 0x341   :  { %v6690_v16 = vadd.f32 %v1704_v26, %v9581_v40  ;;  %v1706_v20 = vpop.f32.mrb[29].mxu0  ;;  %v1777_v42 = vpop.f32.mrb[29].mxu1  ;;  %v6706_v29 = vadd.f32 %v1775_v43, %v7824_v60 }
 0x342   :  { %v6691_v51 = vadd.f32 %v1706_v20, %v9582_v1  ;;  %v6707_v49 = vadd.f32 %v1777_v42, %v7820_v46 }
 0x343   :  { %v4235_v23 = vmul.f32 -1.442695, %v6690_v16 }
 0x344   :  { %v4236_v54 = vmul.f32 -1.442695, %v6691_v51  ;;  %v4237_v62 = vmul.f32 -1.442695, %v6707_v49 }
 0x345   :  { %6822 = vpow2.f32 %v4235_v23 }
 0x346   :  { %6824 = vpow2.f32 %v4236_v54 }
 0x347   :  { %6826 = vpow2.f32 %v4234_v57 }
 0x348   :  { %6828 = vpow2.f32 %v4237_v62 }
 0x349   :  { %6830 = vtanh.f32 %v6706_v29 }
 0x34f   :  { %v6823_v3 = vpop.eup %6822 }
 0x350   :  { %v6825_v25 = vpop.eup %6824  ;;  %v1815_v19 = vadd.f32 1.0, %v6823_v3 }
 0x351   :  { %v1821_v26 = vadd.f32 1.0, %v6825_v25  ;;  %v6827_v16 = vpop.eup %6826 }
 0x352   :  { %6832 = vrcp.f32 %v1815_v19  ;;  %v6829_v20 = vpop.eup %6828  ;;  %v1804_v49 = vadd.f32 1.0, %v6827_v16  ;;  %v9587_v16 = vld [vmem:[#allocation85_spill] sm:$0xff] }
 0x353   :  { %6834 = vrcp.f32 %v1821_v26  ;;  %v6831_v51 = vpop.eup %6830  ;;  %v1828_v42 = vadd.f32 1.0, %v6829_v20  ;;  %v9586_v26 = vld [vmem:[#allocation84_spill] sm:$0xff]  ;;  %v9588_v20 = vld [vmem:[#allocation86_spill] sm:$0xff] }
 0x354   :  { %6836 = vtanh.f32 %v7975_v2 }
 0x355   :  { %6838 = vrcp.f32 %v1828_v42  ;;  %v9593_v42 = vld [vmem:[#allocation91_spill] sm:$0xff] }
 0x35c   :  { %v6833_v23 = vpop.eup %6832 }
 0x35d   :  { %v6835_v7 = vpop.eup %6834  ;;  %v1832_v54 = vmul.f32 %v6833_v23, %v6831_v51  ;;  %v9589_v51 = vld [vmem:[#allocation87_spill] sm:$0xff]  ;;  %v9590_v23 = vld [vmem:[#allocation88_spill] sm:$0xff] }
 0x35e   :  { %v1831_v50 = vmul.f32 %v6835_v7, %v7828_v17  ;;  %v6837_v57 = vpop.eup %6836  ;;  %v9585_v17 = vld [vmem:[#allocation83_spill] sm:$0xff]  ;;  %v9591_v7 = vld [vmem:[#allocation89_spill] sm:$0xff] }
 0x35f   :  { %v6839_v62 = vpop.eup %6838 }
 0x360   :  { %v7984_v43 = vadd.f32 %v1832_v54, %v1831_v50  ;;  %v9592_v54 = vld [vmem:[#allocation90_spill] sm:$0xff]  ;;  %v9594_v50 = vld [vmem:[#allocation92_spill] sm:$0xff] }
 0x362   :  { %6840 = vtanh.f32 %v7984_v43 }
 0x363   :  { %6842 = vrcp.f32 %v1804_v49  ;;  %v9595_v49 = vld [vmem:[#allocation93_spill] sm:$0xff] }
 0x36c   :  { %v6841_v29 = vpop.eup %6840 }
 0x36d   :  { %v6843_v3 = vpop.eup %6842  ;;  %v7987_v25 = vmul.f32 %v6841_v29, %v6839_v62  ;;  %v9597_v62 = vld [vmem:[#allocation95_spill] sm:$0xff]  ;;  %v9598_v29 = vld [vmem:[#allocation96_spill] sm:$0xff] }
 0x36e   :  { %v7989_v19 = vmul.f32 %v6843_v3, %v6837_v57  ;;  %v9596_v57 = vld [vmem:[#allocation94_spill] sm:$0xff]  ;;  %v9599_v3 = vld [vmem:[#allocation97_spill] sm:$0xff] }
 0x36f   :  { %9583 = vst [vmem:[#allocation78_spill] sm:$0xff] %v7987_v25  ;;  %1908 = vmatprep.mubr.f32.mxu0 %v7987_v25  ;;  %1979 = vmatprep.mubr.f32.mxu1 %v7987_v25 }
 0x370   :  { %9584 = vst [vmem:[#allocation79_spill] sm:$0xff] %v7989_v19  ;;  %1909 = vmatmul.mubr.f32.vlgmr.msra.gmra.mrb[4].mxu0 %v7989_v19  ;;  %1980 = vmatmul.mubr.f32.vlgmr.msra.gmra.mrb[4].mxu1 %v7989_v19 }
 0x371   :  { %5209 = vmatpush1.bf16.msra.mxu0 %v9492_v52  ;;  %5273 = vmatpush1.bf16.msra.mxu1 %v9493_v59 }
 0x372   :  { %2050 = vmatprep.mubr.f32.mxu0 %v7987_v25  ;;  %2121 = vmatprep.mubr.f32.mxu1 %v7987_v25  ;;  %v9600_v25 = vld [vmem:[#allocation98_spill] sm:$0xff] }
 0x373   :  { %5211 = vmatprep.subr.bf16.mxu0 %v9494_v18  ;;  %5275 = vmatprep.subr.bf16.mxu1 %v9495_v58 }
 0x375   :  { %5213 = vmatpush1.bf16.msra.mxu0 %v9496_v31  ;;  %5277 = vmatpush1.bf16.msra.mxu1 %v9585_v17 }
 0x376   :  { %5215 = vmatprep.subr.bf16.mxu0 %v9586_v26  ;;  %5279 = vmatprep.subr.bf16.mxu1 %v9587_v16 }
 0x379   :  { %5217 = vmatpush1.bf16.msra.mxu0 %v9588_v20  ;;  %5281 = vmatpush1.bf16.msra.mxu1 %v9589_v51 }
 0x37a   :  { %5219 = vmatprep.subr.bf16.mxu0 %v9590_v23  ;;  %5283 = vmatprep.subr.bf16.mxu1 %v9591_v7  ;;  %v9601_v23 = vld [vmem:[#allocation99_spill] sm:$0xff]  ;;  %v9602_v7 = vld [vmem:[#allocation100_spill] sm:$0xff] }
 0x37d   :  { %5221 = vmatpush1.bf16.msra.mxu0 %v9592_v54  ;;  %5285 = vmatpush1.bf16.msra.mxu1 %v9593_v42  ;;  %v9603_v54 = vld [vmem:[#allocation101_spill] sm:$0xff]  ;;  %v9604_v42 = vld [vmem:[#allocation102_spill] sm:$0xff] }
 0x37e   :  { %5223 = vmatprep.subr.bf16.mxu0 %v9594_v50  ;;  %5287 = vmatprep.subr.bf16.mxu1 %v9595_v49  ;;  %v9605_v50 = vld [vmem:[#allocation103_spill] sm:$0xff]  ;;  %v9606_v49 = vld [vmem:[#allocation104_spill] sm:$0xff] }
 0x381   :  { %5225 = vmatpush1.bf16.msra.mxu0 %v9596_v57  ;;  %5289 = vmatpush1.bf16.msra.mxu1 %v9597_v62  ;;  %v9607_v57 = vld [vmem:[#allocation105_spill] sm:$0xff]  ;;  %v9608_v62 = vld [vmem:[#allocation106_spill] sm:$0xff] }
 0x382   :  { %5227 = vmatprep.subr.bf16.mxu0 %v9598_v29  ;;  %5291 = vmatprep.subr.bf16.mxu1 %v9599_v3  ;;  %v9609_v29 = vld [vmem:[#allocation107_spill] sm:$0xff]  ;;  %v9610_v3 = vld [vmem:[#allocation108_spill] sm:$0xff] }
 0x385   :  { %5229 = vmatpush1.bf16.msra.mxu0 %v9600_v25  ;;  %5293 = vmatpush1.bf16.msra.mxu1 %v9601_v23  ;;  %v9611_v25 = vld [vmem:[#allocation109_spill] sm:$0xff]  ;;  %v9612_v23 = vld [vmem:[#allocation110_spill] sm:$0xff] }
 0x386   :  { %5231 = vmatprep.subr.bf16.mxu0 %v9602_v7  ;;  %5295 = vmatprep.subr.bf16.mxu1 %v9603_v54  ;;  %v9613_v7 = vld [vmem:[#allocation111_spill] sm:$0xff]  ;;  %v9614_v54 = vld [vmem:[#allocation112_spill] sm:$0xff] }
 0x389   :  { %5233 = vmatpush1.bf16.msra.mxu0 %v9604_v42  ;;  %5297 = vmatpush1.bf16.msra.mxu1 %v9605_v50  ;;  %v9615_v42 = vld [vmem:[#allocation113_spill] sm:$0xff]  ;;  %v9616_v50 = vld [vmem:[#allocation114_spill] sm:$0xff] }
 0x38a   :  { %5235 = vmatprep.subr.bf16.mxu0 %v9606_v49  ;;  %5299 = vmatprep.subr.bf16.mxu1 %v9607_v57  ;;  %v9617_v49 = vld [vmem:[#allocation115_spill] sm:$0xff]  ;;  %v9618_v57 = vld [vmem:[#allocation116_spill] sm:$0xff] }
 0x38d   :  { %5237 = vmatpush1.bf16.msra.mxu0 %v9608_v62  ;;  %5301 = vmatpush1.bf16.msra.mxu1 %v9609_v29  ;;  %v9619_v29 = vld [vmem:[#allocation118_spill] sm:$0xff] }
 0x38e   :  { %5239 = vmatprep.subr.bf16.mxu0 %v9610_v3  ;;  %5303 = vmatprep.subr.bf16.mxu1 %v9611_v25 }
 0x391   :  { %5241 = vmatpush1.bf16.msra.mxu0 %v9612_v23  ;;  %5305 = vmatpush1.bf16.msra.mxu1 %v9613_v7 }
 0x392   :  { %5243 = vmatprep.subr.bf16.mxu0 %v9614_v54  ;;  %5307 = vmatprep.subr.bf16.mxu1 %v9615_v42 }
 0x395   :  { %5245 = vmatpush1.bf16.msra.mxu0 %v9616_v50  ;;  %5309 = vmatpush1.bf16.msra.mxu1 %v9617_v49 }
 0x396   :  { %5247 = vmatprep.subr.bf16.mxu0 %v9618_v57  ;;  %5311 = vmatprep.subr.bf16.mxu1 %v9531_v61 }
 0x399   :  { %5249 = vmatpush1.bf16.msra.mxu0 %v9619_v29  ;;  %5313 = vmatpush1.bf16.msra.mxu1 %v9533_v10 }
 0x39a   :  { %5251 = vmatprep.subr.bf16.mxu0 %v9534_v45  ;;  %5315 = vmatprep.subr.bf16.mxu1 %v9535_v44 }
 0x39d   :  { %5253 = vmatpush1.bf16.msra.mxu0 %v9536_v39  ;;  %5317 = vmatpush1.bf16.msra.mxu1 %v9537_v34 }
 0x39e   :  { %5255 = vmatprep.subr.bf16.mxu0 %v9538_v11  ;;  %5319 = vmatprep.subr.bf16.mxu1 %v9539_v55 }
 0x3a1   :  { %5257 = vmatpush1.bf16.msra.mxu0 %v9540_v14  ;;  %5321 = vmatpush1.bf16.msra.mxu1 %v9541_v48 }
 0x3a2   :  { %5259 = vmatprep.subr.bf16.mxu0 %v7691_v28  ;;  %5323 = vmatprep.subr.bf16.mxu1 %v9542_v32 }
 0x3a5   :  { %5261 = vmatpush1.bf16.msra.mxu0 %v7697_v0  ;;  %5325 = vmatpush1.bf16.msra.mxu1 %v7701_v4 }
 0x3a6   :  { %5263 = vmatprep.subr.bf16.mxu0 %v7703_v12  ;;  %5327 = vmatprep.subr.bf16.mxu1 %v7706_v33 }
 0x3a9   :  { %5265 = vmatpush1.bf16.msra.mxu0 %v7709_v27  ;;  %5329 = vmatpush1.bf16.msra.mxu1 %v7713_v47 }
 0x3aa   :  { %5267 = vmatprep.subr.bf16.mxu0 %v7715_v53  ;;  %5331 = vmatprep.subr.bf16.mxu1 %v7718_v41 }
 0x3ad   :  { %5269 = vmatpush1.bf16.msra.mxu0 %v7721_v15  ;;  %5333 = vmatpush1.bf16.msra.mxu1 %v7725_v36 }
 0x3ae   :  { %5335 = vmatprep.subr.bf16.mxu0 %v7310_v56  ;;  %5399 = vmatprep.subr.bf16.mxu1 %v7312_v63  ;;  %v9674_v56 = vld [vmem:[#allocation141_spill] sm:$0xff] }
 0x3b0   :  { %2051 = vmatmul.mubr.f32.vlgmr.msra.gmra.mrb[26].mxu0 %v7989_v19  ;;  %2122 = vmatmul.mubr.f32.vlgmr.msra.gmra.mrb[26].mxu1 %v7989_v19  ;;  %v9620_v19 = vld [vmem:[#allocation25_spill] sm:$0xff] }
 0x3b1   :  { %5337 = vmatpush1.bf16.msra.mxu0 %v7314_v5  ;;  %5401 = vmatpush1.bf16.msra.mxu1 %v7317_v6  ;;  %v9621_v6 = vld [vmem:[#allocation26_spill] sm:$0xff]  ;;  %v9673_v5 = vld [vmem:[#allocation140_spill] sm:$0xff] }
 0x3b2   :  { %5339 = vmatprep.subr.bf16.mxu0 %v7319_v8  ;;  %5403 = vmatprep.subr.bf16.mxu1 %v7322_v13  ;;  %v9622_v8 = vld [vmem:[#allocation27_spill] sm:$0xff]  ;;  %v9623_v13 = vld [vmem:[#allocation28_spill] sm:$0xff] }
 0x3b5   :  { %5341 = vmatpush1.bf16.msra.mxu0 %v7327_v21  ;;  %5405 = vmatpush1.bf16.msra.mxu1 %v7331_v22  ;;  %v9624_v21 = vld [vmem:[#allocation29_spill] sm:$0xff]  ;;  %v9625_v22 = vld [vmem:[#allocation30_spill] sm:$0xff] }
 0x3b6   :  { %5343 = vmatprep.subr.bf16.mxu0 %v7333_v24  ;;  %5407 = vmatprep.subr.bf16.mxu1 %v7336_v30  ;;  %v9626_v24 = vld [vmem:[#allocation31_spill] sm:$0xff]  ;;  %v9627_v30 = vld [vmem:[#allocation32_spill] sm:$0xff] }
 0x3b9   :  { %5345 = vmatpush1.bf16.msra.mxu0 %v7342_v35  ;;  %5409 = vmatpush1.bf16.msra.mxu1 %v7347_v37  ;;  %v9628_v35 = vld [vmem:[#allocation33_spill] sm:$0xff]  ;;  %v9629_v37 = vld [vmem:[#allocation34_spill] sm:$0xff] }
 0x3ba   :  { %5347 = vmatprep.subr.bf16.mxu0 %v7349_v38  ;;  %5411 = vmatprep.subr.bf16.mxu1 %v9620_v19  ;;  %v9630_v38 = vld [vmem:[#allocation35_spill] sm:$0xff]  ;;  %v9631_v19 = vld [vmem:[#allocation36_spill] sm:$0xff] }
 0x3bd   :  { %5349 = vmatpush1.bf16.msra.mxu0 %v9621_v6  ;;  %5413 = vmatpush1.bf16.msra.mxu1 %v9622_v8  ;;  %v9632_v6 = vld [vmem:[#allocation37_spill] sm:$0xff]  ;;  %v9633_v8 = vld [vmem:[#allocation38_spill] sm:$0xff] }
 0x3be   :  { %5351 = vmatprep.subr.bf16.mxu0 %v9623_v13  ;;  %5415 = vmatprep.subr.bf16.mxu1 %v9624_v21  ;;  %v9634_v13 = vld [vmem:[#allocation39_spill] sm:$0xff]  ;;  %v9635_v21 = vld [vmem:[#allocation40_spill] sm:$0xff] }
 0x3c1   :  { %5353 = vmatpush1.bf16.msra.mxu0 %v9625_v22  ;;  %5417 = vmatpush1.bf16.msra.mxu1 %v9626_v24  ;;  %v9636_v22 = vld [vmem:[#allocation41_spill] sm:$0xff]  ;;  %v9637_v24 = vld [vmem:[#allocation42_spill] sm:$0xff] }
 0x3c2   :  { %5355 = vmatprep.subr.bf16.mxu0 %v9627_v30  ;;  %5419 = vmatprep.subr.bf16.mxu1 %v9628_v35  ;;  %v9638_v30 = vld [vmem:[#allocation43_spill] sm:$0xff]  ;;  %v9639_v35 = vld [vmem:[#allocation44_spill] sm:$0xff] }
 0x3c5   :  { %5357 = vmatpush1.bf16.msra.mxu0 %v9629_v37  ;;  %5421 = vmatpush1.bf16.msra.mxu1 %v9630_v38  ;;  %v9640_v37 = vld [vmem:[#allocation45_spill] sm:$0xff]  ;;  %v9641_v38 = vld [vmem:[#allocation46_spill] sm:$0xff] }
 0x3c6   :  { %5359 = vmatprep.subr.bf16.mxu0 %v9631_v19  ;;  %5423 = vmatprep.subr.bf16.mxu1 %v9632_v6  ;;  %v9642_v19 = vld [vmem:[#allocation47_spill] sm:$0xff]  ;;  %v9643_v6 = vld [vmem:[#allocation48_spill] sm:$0xff] }
 0x3c9   :  { %5361 = vmatpush1.bf16.msra.mxu0 %v9633_v8  ;;  %5425 = vmatpush1.bf16.msra.mxu1 %v9634_v13  ;;  %v9644_v8 = vld [vmem:[#allocation49_spill] sm:$0xff]  ;;  %v9645_v13 = vld [vmem:[#allocation50_spill] sm:$0xff] }
 0x3ca   :  { %5363 = vmatprep.subr.bf16.mxu0 %v9635_v21  ;;  %5427 = vmatprep.subr.bf16.mxu1 %v9636_v22  ;;  %v9646_v21 = vld [vmem:[#allocation51_spill] sm:$0xff]  ;;  %v9647_v22 = vld [vmem:[#allocation52_spill] sm:$0xff] }
 0x3cd   :  { %5365 = vmatpush1.bf16.msra.mxu0 %v9637_v24  ;;  %5429 = vmatpush1.bf16.msra.mxu1 %v9638_v30  ;;  %v9648_v24 = vld [vmem:[#allocation53_spill] sm:$0xff]  ;;  %v9649_v30 = vld [vmem:[#allocation54_spill] sm:$0xff] }
 0x3ce   :  { %5367 = vmatprep.subr.bf16.mxu0 %v9639_v35  ;;  %5431 = vmatprep.subr.bf16.mxu1 %v9640_v37  ;;  %v9650_v35 = vld [vmem:[#allocation55_spill] sm:$0xff]  ;;  %v9651_v37 = vld [vmem:[#allocation56_spill] sm:$0xff] }
 0x3d1   :  { %5369 = vmatpush1.bf16.msra.mxu0 %v9641_v38  ;;  %5433 = vmatpush1.bf16.msra.mxu1 %v9642_v19  ;;  %v9652_v38 = vld [vmem:[#allocation57_spill] sm:$0xff]  ;;  %v9653_v19 = vld [vmem:[#allocation58_spill] sm:$0xff] }
 0x3d2   :  { %5371 = vmatprep.subr.bf16.mxu0 %v9643_v6  ;;  %5435 = vmatprep.subr.bf16.mxu1 %v9644_v8  ;;  %v9654_v6 = vld [vmem:[#allocation59_spill] sm:$0xff]  ;;  %v9655_v8 = vld [vmem:[#allocation60_spill] sm:$0xff] }
 0x3d5   :  { %5373 = vmatpush1.bf16.msra.mxu0 %v9645_v13  ;;  %5437 = vmatpush1.bf16.msra.mxu1 %v9646_v21  ;;  %v9656_v13 = vld [vmem:[#allocation61_spill] sm:$0xff]  ;;  %v9657_v21 = vld [vmem:[#allocation62_spill] sm:$0xff] }
 0x3d6   :  { %5375 = vmatprep.subr.bf16.mxu0 %v9647_v22  ;;  %5439 = vmatprep.subr.bf16.mxu1 %v9648_v24  ;;  %v9658_v22 = vld [vmem:[#allocation63_spill] sm:$0xff]  ;;  %v9659_v24 = vld [vmem:[#allocation64_spill] sm:$0xff] }
 0x3d9   :  { %5377 = vmatpush1.bf16.msra.mxu0 %v9649_v30  ;;  %5441 = vmatpush1.bf16.msra.mxu1 %v9650_v35  ;;  %v9660_v30 = vld [vmem:[#allocation65_spill] sm:$0xff]  ;;  %v9661_v35 = vld [vmem:[#allocation66_spill] sm:$0xff] }
 0x3da   :  { %5379 = vmatprep.subr.bf16.mxu0 %v9651_v37  ;;  %5443 = vmatprep.subr.bf16.mxu1 %v9652_v38  ;;  %v9662_v37 = vld [vmem:[#allocation67_spill] sm:$0xff]  ;;  %v9663_v38 = vld [vmem:[#allocation68_spill] sm:$0xff] }
 0x3dd   :  { %5381 = vmatpush1.bf16.msra.mxu0 %v9653_v19  ;;  %5445 = vmatpush1.bf16.msra.mxu1 %v9654_v6  ;;  %v9664_v19 = vld [vmem:[#allocation69_spill] sm:$0xff]  ;;  %v9665_v6 = vld [vmem:[#allocation70_spill] sm:$0xff] }
 0x3de   :  { %5383 = vmatprep.subr.bf16.mxu0 %v9655_v8  ;;  %5447 = vmatprep.subr.bf16.mxu1 %v9656_v13  ;;  %v9666_v8 = vld [vmem:[#allocation71_spill] sm:$0xff]  ;;  %v9667_v13 = vld [vmem:[#allocation72_spill] sm:$0xff] }
 0x3e1   :  { %5385 = vmatpush1.bf16.msra.mxu0 %v9657_v21  ;;  %5449 = vmatpush1.bf16.msra.mxu1 %v9658_v22  ;;  %v9668_v21 = vld [vmem:[#allocation73_spill] sm:$0xff]  ;;  %v9669_v22 = vld [vmem:[#allocation74_spill] sm:$0xff] }
 0x3e2   :  { %5387 = vmatprep.subr.bf16.mxu0 %v9659_v24  ;;  %5451 = vmatprep.subr.bf16.mxu1 %v9660_v30  ;;  %v9670_v24 = vld [vmem:[#allocation75_spill] sm:$0xff]  ;;  %v9671_v30 = vld [vmem:[#allocation76_spill] sm:$0xff] }
 0x3e5   :  { %5389 = vmatpush1.bf16.msra.mxu0 %v9661_v35  ;;  %5453 = vmatpush1.bf16.msra.mxu1 %v9662_v37  ;;  %v9672_v35 = vld [vmem:[#allocation77_spill] sm:$0xff] }
 0x3e6   :  { %5391 = vmatprep.subr.bf16.mxu0 %v9663_v38  ;;  %5455 = vmatprep.subr.bf16.mxu1 %v9664_v19 }
 0x3e9   :  { %5393 = vmatpush1.bf16.msra.mxu0 %v9665_v6  ;;  %5457 = vmatpush1.bf16.msra.mxu1 %v9666_v8 }
 0x3ea   :  { %5395 = vmatprep.subr.bf16.mxu0 %v9667_v13  ;;  %5459 = vmatprep.subr.bf16.mxu1 %v9668_v21  ;;  %v9675_v21 = vld [vmem:[#allocation142_spill] sm:$0xff] }
 0x3ed   :  { %5397 = vmatpush1.bf16.msra.mxu0 %v9669_v22  ;;  %5461 = vmatpush1.bf16.msra.mxu1 %v9670_v24 }
 0x3ee   :  { %5463 = vmatprep.subr.bf16.mxu0 %v9671_v30  ;;  %5527 = vmatprep.subr.bf16.mxu1 %v9672_v35 }
 0x443   :  { %v1910_v37 = vpop.f32.mrb[4].mxu0  ;;  %v1981_v38 = vpop.f32.mrb[4].mxu1 }
 0x444   :  { %v6650_v19 = vadd.f32 %v1910_v37, %v9673_v5  ;;  %v1912_v63 = vpop.f32.mrb[5].mxu0  ;;  %v1983_v6 = vpop.f32.mrb[5].mxu1  ;;  %v6666_v22 = vadd.f32 %v1981_v38, %v9675_v21 }
 0x445   :  { %v6651_v8 = vadd.f32 %v1912_v63, %v9674_v56 }
 0x446   :  { %v4238_v36 = vmul.f32 -1.442695, %v6650_v19 }
 0x447   :  { %v4239_v13 = vmul.f32 -1.442695, %v6651_v8 }
 0x448   :  { %6844 = vpow2.f32 %v4238_v36 }
 0x449   :  { %6846 = vpow2.f32 %v4239_v13 }
 0x44a   :  { %6848 = vtanh.f32 %v6666_v22 }
 0x452   :  { %v6845_v15 = vpop.eup %6844 }
 0x453   :  { %v6847_v24 = vpop.eup %6846  ;;  %v2139_v41 = vadd.f32 1.0, %v6845_v15 }
 0x454   :  { %v2145_v30 = vadd.f32 1.0, %v6847_v24  ;;  %v6849_v35 = vpop.eup %6848 }
 0x455   :  { %6850 = vrcp.f32 %v2139_v41 }
 0x456   :  { %6852 = vrcp.f32 %v2145_v30  ;;  %v6667_v30 = vadd.f32 %v1983_v6, %v7818_v9 }
 0x45f   :  { %v6851_v53 = vpop.eup %6850 }
 0x460   :  { %v6853_v37 = vpop.eup %6852  ;;  %v2156_v5 = vmul.f32 %v6851_v53, %v6849_v35  ;;  %v4240_v53 = vmul.f32 -1.442695, %v6667_v30 }
 0x461   :  { %v2155_v47 = vmul.f32 %v6853_v37, %v7975_v2 }
 0x463   :  { %v8131_v63 = vadd.f32 %v2156_v5, %v2155_v47 }
 0x483   :  { %v2052_v8 = vpop.f32.mrb[26].mxu0  ;;  %v2123_v36 = vpop.f32.mrb[26].mxu1 }
 0x484   :  { %v6688_v13 = vadd.f32 %v2052_v8, %v9581_v40  ;;  %v2054_v38 = vpop.f32.mrb[27].mxu0  ;;  %v2125_v19 = vpop.f32.mrb[27].mxu1  ;;  %v6704_v5 = vadd.f32 %v2123_v36, %v7824_v60 }
 0x485   :  { %v6689_v15 = vadd.f32 %v2054_v38, %v9582_v1  ;;  %v6705_v35 = vadd.f32 %v2125_v19, %v7820_v46 }
 0x486   :  { %v4241_v22 = vmul.f32 -1.442695, %v6688_v13 }
 0x487   :  { %v4242_v24 = vmul.f32 -1.442695, %v6689_v15  ;;  %v4243_v41 = vmul.f32 -1.442695, %v6705_v35 }
 0x488   :  { %6854 = vpow2.f32 %v4241_v22 }
 0x489   :  { %6856 = vpow2.f32 %v4242_v24 }
 0x48a   :  { %6858 = vpow2.f32 %v4240_v53 }
 0x48b   :  { %6860 = vpow2.f32 %v4243_v41 }
 0x48c   :  { %6862 = vtanh.f32 %v6704_v5 }
 0x492   :  { %v6855_v47 = vpop.eup %6854 }
 0x493   :  { %v6857_v2 = vpop.eup %6856  ;;  %v2163_v37 = vadd.f32 1.0, %v6855_v47 }
 0x494   :  { %v2169_v8 = vadd.f32 1.0, %v6857_v2  ;;  %v6859_v13 = vpop.eup %6858 }
 0x495   :  { %6864 = vrcp.f32 %v2163_v37  ;;  %v6861_v38 = vpop.eup %6860  ;;  %v2152_v35 = vadd.f32 1.0, %v6859_v13  ;;  %v9680_v13 = vld [vmem:[#allocation90_spill] sm:$0xff] }
 0x496   :  { %6866 = vrcp.f32 %v2169_v8  ;;  %v6863_v15 = vpop.eup %6862  ;;  %v2176_v19 = vadd.f32 1.0, %v6861_v38  ;;  %v9679_v8 = vld [vmem:[#allocation89_spill] sm:$0xff]  ;;  %v9681_v38 = vld [vmem:[#allocation91_spill] sm:$0xff] }
 0x497   :  { %6868 = vtanh.f32 %v8131_v63 }
 0x498   :  { %6870 = vrcp.f32 %v2176_v19  ;;  %v9686_v19 = vld [vmem:[#allocation96_spill] sm:$0xff] }
 0x49f   :  { %v6865_v22 = vpop.eup %6864 }
 0x4a0   :  { %v6867_v6 = vpop.eup %6866  ;;  %v2180_v24 = vmul.f32 %v6865_v22, %v6863_v15  ;;  %v9682_v15 = vld [vmem:[#allocation92_spill] sm:$0xff]  ;;  %v9683_v22 = vld [vmem:[#allocation93_spill] sm:$0xff] }
 0x4a1   :  { %v2179_v30 = vmul.f32 %v6867_v6, %v7984_v43  ;;  %v6869_v53 = vpop.eup %6868  ;;  %v9678_v43 = vld [vmem:[#allocation88_spill] sm:$0xff]  ;;  %v9684_v6 = vld [vmem:[#allocation94_spill] sm:$0xff] }
 0x4a2   :  { %v6871_v41 = vpop.eup %6870 }
 0x4a3   :  { %v8140_v36 = vadd.f32 %v2180_v24, %v2179_v30  ;;  %v9685_v24 = vld [vmem:[#allocation95_spill] sm:$0xff]  ;;  %v9687_v30 = vld [vmem:[#allocation97_spill] sm:$0xff] }
 0x4a5   :  { %6872 = vtanh.f32 %v8140_v36 }
 0x4a6   :  { %6874 = vrcp.f32 %v2152_v35  ;;  %v9688_v35 = vld [vmem:[#allocation98_spill] sm:$0xff] }
 0x4af   :  { %v6873_v5 = vpop.eup %6872 }
 0x4b0   :  { %v6875_v47 = vpop.eup %6874  ;;  %v8143_v2 = vmul.f32 %v6873_v5, %v6871_v41  ;;  %v9690_v41 = vld [vmem:[#allocation100_spill] sm:$0xff]  ;;  %v9691_v5 = vld [vmem:[#allocation101_spill] sm:$0xff] }
 0x4b1   :  { %v8145_v37 = vmul.f32 %v6875_v47, %v6869_v53  ;;  %v9689_v53 = vld [vmem:[#allocation99_spill] sm:$0xff]  ;;  %v9692_v47 = vld [vmem:[#allocation102_spill] sm:$0xff] }
 0x4b2   :  { %9676 = vst [vmem:[#allocation80_spill] sm:$0xff] %v8143_v2  ;;  %2256 = vmatprep.mubr.f32.mxu0 %v8143_v2  ;;  %2327 = vmatprep.mubr.f32.mxu1 %v8143_v2 }
 0x4b3   :  { %9677 = vst [vmem:[#allocation81_spill] sm:$0xff] %v8145_v37  ;;  %2257 = vmatmul.mubr.f32.vlgmr.msra.gmra.mrb[6].mxu0 %v8145_v37  ;;  %2328 = vmatmul.mubr.f32.vlgmr.msra.gmra.mrb[6].mxu1 %v8145_v37 }
 0x4b4   :  { %5465 = vmatpush1.bf16.msra.mxu0 %v9492_v52  ;;  %5529 = vmatpush1.bf16.msra.mxu1 %v9493_v59 }
 0x4b5   :  { %2398 = vmatprep.mubr.f32.mxu0 %v8143_v2  ;;  %2469 = vmatprep.mubr.f32.mxu1 %v8143_v2  ;;  %v9693_v2 = vld [vmem:[#allocation103_spill] sm:$0xff] }
 0x4b6   :  { %5467 = vmatprep.subr.bf16.mxu0 %v9494_v18  ;;  %5531 = vmatprep.subr.bf16.mxu1 %v9495_v58 }
 0x4b8   :  { %5469 = vmatpush1.bf16.msra.mxu0 %v9496_v31  ;;  %5533 = vmatpush1.bf16.msra.mxu1 %v9585_v17 }
 0x4b9   :  { %5471 = vmatprep.subr.bf16.mxu0 %v9586_v26  ;;  %5535 = vmatprep.subr.bf16.mxu1 %v9587_v16 }
 0x4bc   :  { %5473 = vmatpush1.bf16.msra.mxu0 %v9588_v20  ;;  %5537 = vmatpush1.bf16.msra.mxu1 %v9589_v51 }
 0x4bd   :  { %5475 = vmatprep.subr.bf16.mxu0 %v9678_v43  ;;  %5539 = vmatprep.subr.bf16.mxu1 %v9679_v8 }
 0x4c0   :  { %5477 = vmatpush1.bf16.msra.mxu0 %v9680_v13  ;;  %5541 = vmatpush1.bf16.msra.mxu1 %v9681_v38 }
 0x4c1   :  { %5479 = vmatprep.subr.bf16.mxu0 %v9682_v15  ;;  %5543 = vmatprep.subr.bf16.mxu1 %v9683_v22  ;;  %v9694_v22 = vld [vmem:[#allocation104_spill] sm:$0xff] }
 0x4c4   :  { %5481 = vmatpush1.bf16.msra.mxu0 %v9684_v6  ;;  %5545 = vmatpush1.bf16.msra.mxu1 %v9685_v24  ;;  %v9695_v6 = vld [vmem:[#allocation105_spill] sm:$0xff] }
 0x4c5   :  { %5483 = vmatprep.subr.bf16.mxu0 %v9686_v19  ;;  %5547 = vmatprep.subr.bf16.mxu1 %v9687_v30  ;;  %v9696_v19 = vld [vmem:[#allocation107_spill] sm:$0xff] }
 0x4c8   :  { %5485 = vmatpush1.bf16.msra.mxu0 %v9688_v35  ;;  %5549 = vmatpush1.bf16.msra.mxu1 %v9689_v53 }
 0x4c9   :  { %5487 = vmatprep.subr.bf16.mxu0 %v9690_v41  ;;  %5551 = vmatprep.subr.bf16.mxu1 %v9691_v5 }
 0x4cc   :  { %5489 = vmatpush1.bf16.msra.mxu0 %v9692_v47  ;;  %5553 = vmatpush1.bf16.msra.mxu1 %v9693_v2 }
 0x4cd   :  { %5491 = vmatprep.subr.bf16.mxu0 %v9694_v22  ;;  %5555 = vmatprep.subr.bf16.mxu1 %v9695_v6 }
 0x4d0   :  { %5493 = vmatpush1.bf16.msra.mxu0 %v9608_v62  ;;  %5557 = vmatpush1.bf16.msra.mxu1 %v9696_v19 }
 0x4d1   :  { %5495 = vmatprep.subr.bf16.mxu0 %v9610_v3  ;;  %5559 = vmatprep.subr.bf16.mxu1 %v9611_v25 }
 0x4d4   :  { %5497 = vmatpush1.bf16.msra.mxu0 %v9612_v23  ;;  %5561 = vmatpush1.bf16.msra.mxu1 %v9613_v7 }
 0x4d5   :  { %5499 = vmatprep.subr.bf16.mxu0 %v9614_v54  ;;  %5563 = vmatprep.subr.bf16.mxu1 %v9615_v42 }
 0x4d8   :  { %5501 = vmatpush1.bf16.msra.mxu0 %v9616_v50  ;;  %5565 = vmatpush1.bf16.msra.mxu1 %v9617_v49 }
 0x4d9   :  { %5503 = vmatprep.subr.bf16.mxu0 %v9618_v57  ;;  %5567 = vmatprep.subr.bf16.mxu1 %v9531_v61 }
 0x4dc   :  { %5505 = vmatpush1.bf16.msra.mxu0 %v9619_v29  ;;  %5569 = vmatpush1.bf16.msra.mxu1 %v9533_v10 }
 0x4dd   :  { %5507 = vmatprep.subr.bf16.mxu0 %v9534_v45  ;;  %5571 = vmatprep.subr.bf16.mxu1 %v9535_v44 }
 0x4e0   :  { %5509 = vmatpush1.bf16.msra.mxu0 %v9536_v39  ;;  %5573 = vmatpush1.bf16.msra.mxu1 %v9537_v34 }
 0x4e1   :  { %5511 = vmatprep.subr.bf16.mxu0 %v9538_v11  ;;  %5575 = vmatprep.subr.bf16.mxu1 %v9539_v55  ;;  %v9697_v11 = vld [vmem:[#allocation135_spill] sm:$0xff]  ;;  %v9698_v55 = vld [vmem:[#allocation136_spill] sm:$0xff] }
 0x4e4   :  { %5513 = vmatpush1.bf16.msra.mxu0 %v9540_v14  ;;  %5577 = vmatpush1.bf16.msra.mxu1 %v9541_v48  ;;  %v9699_v14 = vld [vmem:[#allocation137_spill] sm:$0xff]  ;;  %v9700_v48 = vld [vmem:[#allocation138_spill] sm:$0xff] }
 0x4e5   :  { %5515 = vmatprep.subr.bf16.mxu0 %v7691_v28  ;;  %5579 = vmatprep.subr.bf16.mxu1 %v9542_v32  ;;  %v9701_v28 = vld [vmem:[#allocation139_spill] sm:$0xff]  ;;  %v9702_v32 = vld [vmem:[#allocation12_spill] sm:$0xff] }
 0x4e8   :  { %5517 = vmatpush1.bf16.msra.mxu0 %v7697_v0  ;;  %5581 = vmatpush1.bf16.msra.mxu1 %v7701_v4  ;;  %v9703_v0 = vld [vmem:[#allocation13_spill] sm:$0xff]  ;;  %v9768_v4 = vld [vmem:[#allocation140_spill] sm:$0xff] }
 0x4e9   :  { %5519 = vmatprep.subr.bf16.mxu0 %v7703_v12  ;;  %5583 = vmatprep.subr.bf16.mxu1 %v7706_v33  ;;  %v9704_v33 = vld [vmem:[#allocation14_spill] sm:$0xff]  ;;  %v9713_v12 = vld [vmem:[#allocation23_spill] sm:$0xff] }
 0x4ec   :  { %5521 = vmatpush1.bf16.msra.mxu0 %v7709_v27  ;;  %5585 = vmatpush1.bf16.msra.mxu1 %v9697_v11  ;;  %v9705_v27 = vld [vmem:[#allocation15_spill] sm:$0xff]  ;;  %v9706_v11 = vld [vmem:[#allocation16_spill] sm:$0xff] }
 0x4ed   :  { %5523 = vmatprep.subr.bf16.mxu0 %v9698_v55  ;;  %5587 = vmatprep.subr.bf16.mxu1 %v9699_v14  ;;  %v9707_v55 = vld [vmem:[#allocation17_spill] sm:$0xff]  ;;  %v9708_v14 = vld [vmem:[#allocation18_spill] sm:$0xff] }
 0x4f0   :  { %5525 = vmatpush1.bf16.msra.mxu0 %v9700_v48  ;;  %5589 = vmatpush1.bf16.msra.mxu1 %v9701_v28  ;;  %v9709_v48 = vld [vmem:[#allocation19_spill] sm:$0xff]  ;;  %v9710_v28 = vld [vmem:[#allocation20_spill] sm:$0xff] }
 0x4f1   :  { %5591 = vmatprep.subr.bf16.mxu0 %v9702_v32  ;;  %5655 = vmatprep.subr.bf16.mxu1 %v9703_v0  ;;  %v9711_v32 = vld [vmem:[#allocation21_spill] sm:$0xff]  ;;  %v9712_v0 = vld [vmem:[#allocation22_spill] sm:$0xff] }
 0x4f3   :  { %2399 = vmatmul.mubr.f32.vlgmr.msra.gmra.mrb[24].mxu0 %v8145_v37  ;;  %2470 = vmatmul.mubr.f32.vlgmr.msra.gmra.mrb[24].mxu1 %v8145_v37  ;;  %v9714_v37 = vld [vmem:[#allocation24_spill] sm:$0xff] }
 0x4f4   :  { %5593 = vmatpush1.bf16.msra.mxu0 %v9704_v33  ;;  %5657 = vmatpush1.bf16.msra.mxu1 %v9705_v27  ;;  %v9715_v33 = vld [vmem:[#allocation25_spill] sm:$0xff]  ;;  %v9716_v27 = vld [vmem:[#allocation26_spill] sm:$0xff] }
 0x4f5   :  { %5595 = vmatprep.subr.bf16.mxu0 %v9706_v11  ;;  %5659 = vmatprep.subr.bf16.mxu1 %v9707_v55  ;;  %v9717_v11 = vld [vmem:[#allocation27_spill] sm:$0xff]  ;;  %v9718_v55 = vld [vmem:[#allocation28_spill] sm:$0xff] }
 0x4f8   :  { %5597 = vmatpush1.bf16.msra.mxu0 %v9708_v14  ;;  %5661 = vmatpush1.bf16.msra.mxu1 %v9709_v48  ;;  %v9719_v14 = vld [vmem:[#allocation29_spill] sm:$0xff]  ;;  %v9720_v48 = vld [vmem:[#allocation30_spill] sm:$0xff] }
 0x4f9   :  { %5599 = vmatprep.subr.bf16.mxu0 %v9710_v28  ;;  %5663 = vmatprep.subr.bf16.mxu1 %v9711_v32  ;;  %v9721_v28 = vld [vmem:[#allocation31_spill] sm:$0xff]  ;;  %v9722_v32 = vld [vmem:[#allocation32_spill] sm:$0xff] }
 0x4fc   :  { %5601 = vmatpush1.bf16.msra.mxu0 %v9712_v0  ;;  %5665 = vmatpush1.bf16.msra.mxu1 %v9713_v12  ;;  %v9723_v0 = vld [vmem:[#allocation33_spill] sm:$0xff]  ;;  %v9724_v12 = vld [vmem:[#allocation34_spill] sm:$0xff] }
 0x4fd   :  { %5603 = vmatprep.subr.bf16.mxu0 %v9714_v37  ;;  %5667 = vmatprep.subr.bf16.mxu1 %v9715_v33  ;;  %v9725_v37 = vld [vmem:[#allocation35_spill] sm:$0xff]  ;;  %v9726_v33 = vld [vmem:[#allocation36_spill] sm:$0xff] }
 0x500   :  { %5605 = vmatpush1.bf16.msra.mxu0 %v9716_v27  ;;  %5669 = vmatpush1.bf16.msra.mxu1 %v9717_v11  ;;  %v9727_v27 = vld [vmem:[#allocation37_spill] sm:$0xff]  ;;  %v9728_v11 = vld [vmem:[#allocation38_spill] sm:$0xff] }
 0x501   :  { %5607 = vmatprep.subr.bf16.mxu0 %v9718_v55  ;;  %5671 = vmatprep.subr.bf16.mxu1 %v9719_v14  ;;  %v9729_v55 = vld [vmem:[#allocation39_spill] sm:$0xff]  ;;  %v9730_v14 = vld [vmem:[#allocation40_spill] sm:$0xff] }
 0x504   :  { %5609 = vmatpush1.bf16.msra.mxu0 %v9720_v48  ;;  %5673 = vmatpush1.bf16.msra.mxu1 %v9721_v28  ;;  %v9731_v48 = vld [vmem:[#allocation41_spill] sm:$0xff]  ;;  %v9732_v28 = vld [vmem:[#allocation42_spill] sm:$0xff] }
 0x505   :  { %5611 = vmatprep.subr.bf16.mxu0 %v9722_v32  ;;  %5675 = vmatprep.subr.bf16.mxu1 %v9723_v0  ;;  %v9733_v32 = vld [vmem:[#allocation43_spill] sm:$0xff]  ;;  %v9734_v0 = vld [vmem:[#allocation44_spill] sm:$0xff] }
 0x508   :  { %5613 = vmatpush1.bf16.msra.mxu0 %v9724_v12  ;;  %5677 = vmatpush1.bf16.msra.mxu1 %v9725_v37  ;;  %v9735_v12 = vld [vmem:[#allocation45_spill] sm:$0xff]  ;;  %v9736_v37 = vld [vmem:[#allocation46_spill] sm:$0xff] }
 0x509   :  { %5615 = vmatprep.subr.bf16.mxu0 %v9726_v33  ;;  %5679 = vmatprep.subr.bf16.mxu1 %v9727_v27  ;;  %v9737_v33 = vld [vmem:[#allocation47_spill] sm:$0xff]  ;;  %v9738_v27 = vld [vmem:[#allocation48_spill] sm:$0xff] }
 0x50c   :  { %5617 = vmatpush1.bf16.msra.mxu0 %v9728_v11  ;;  %5681 = vmatpush1.bf16.msra.mxu1 %v9729_v55  ;;  %v9739_v11 = vld [vmem:[#allocation49_spill] sm:$0xff]  ;;  %v9740_v55 = vld [vmem:[#allocation50_spill] sm:$0xff] }
 0x50d   :  { %5619 = vmatprep.subr.bf16.mxu0 %v9730_v14  ;;  %5683 = vmatprep.subr.bf16.mxu1 %v9731_v48  ;;  %v9741_v14 = vld [vmem:[#allocation51_spill] sm:$0xff]  ;;  %v9742_v48 = vld [vmem:[#allocation52_spill] sm:$0xff] }
 0x510   :  { %5621 = vmatpush1.bf16.msra.mxu0 %v9732_v28  ;;  %5685 = vmatpush1.bf16.msra.mxu1 %v9733_v32  ;;  %v9743_v28 = vld [vmem:[#allocation53_spill] sm:$0xff]  ;;  %v9744_v32 = vld [vmem:[#allocation54_spill] sm:$0xff] }
 0x511   :  { %5623 = vmatprep.subr.bf16.mxu0 %v9734_v0  ;;  %5687 = vmatprep.subr.bf16.mxu1 %v9735_v12  ;;  %v9745_v0 = vld [vmem:[#allocation55_spill] sm:$0xff]  ;;  %v9746_v12 = vld [vmem:[#allocation56_spill] sm:$0xff] }
 0x514   :  { %5625 = vmatpush1.bf16.msra.mxu0 %v9736_v37  ;;  %5689 = vmatpush1.bf16.msra.mxu1 %v9737_v33  ;;  %v9747_v37 = vld [vmem:[#allocation57_spill] sm:$0xff]  ;;  %v9748_v33 = vld [vmem:[#allocation58_spill] sm:$0xff] }
 0x515   :  { %5627 = vmatprep.subr.bf16.mxu0 %v9738_v27  ;;  %5691 = vmatprep.subr.bf16.mxu1 %v9739_v11  ;;  %v9749_v27 = vld [vmem:[#allocation59_spill] sm:$0xff]  ;;  %v9750_v11 = vld [vmem:[#allocation60_spill] sm:$0xff] }
 0x518   :  { %5629 = vmatpush1.bf16.msra.mxu0 %v9740_v55  ;;  %5693 = vmatpush1.bf16.msra.mxu1 %v9741_v14  ;;  %v9751_v55 = vld [vmem:[#allocation61_spill] sm:$0xff]  ;;  %v9752_v14 = vld [vmem:[#allocation62_spill] sm:$0xff] }
 0x519   :  { %5631 = vmatprep.subr.bf16.mxu0 %v9742_v48  ;;  %5695 = vmatprep.subr.bf16.mxu1 %v9743_v28  ;;  %v9753_v48 = vld [vmem:[#allocation63_spill] sm:$0xff]  ;;  %v9754_v28 = vld [vmem:[#allocation64_spill] sm:$0xff] }
 0x51c   :  { %5633 = vmatpush1.bf16.msra.mxu0 %v9744_v32  ;;  %5697 = vmatpush1.bf16.msra.mxu1 %v9745_v0  ;;  %v9755_v32 = vld [vmem:[#allocation65_spill] sm:$0xff]  ;;  %v9756_v0 = vld [vmem:[#allocation66_spill] sm:$0xff] }
 0x51d   :  { %5635 = vmatprep.subr.bf16.mxu0 %v9746_v12  ;;  %5699 = vmatprep.subr.bf16.mxu1 %v9747_v37  ;;  %v9757_v12 = vld [vmem:[#allocation67_spill] sm:$0xff]  ;;  %v9758_v37 = vld [vmem:[#allocation68_spill] sm:$0xff] }
 0x520   :  { %5637 = vmatpush1.bf16.msra.mxu0 %v9748_v33  ;;  %5701 = vmatpush1.bf16.msra.mxu1 %v9749_v27  ;;  %v9759_v33 = vld [vmem:[#allocation69_spill] sm:$0xff]  ;;  %v9760_v27 = vld [vmem:[#allocation70_spill] sm:$0xff] }
 0x521   :  { %5639 = vmatprep.subr.bf16.mxu0 %v9750_v11  ;;  %5703 = vmatprep.subr.bf16.mxu1 %v9751_v55  ;;  %v9761_v11 = vld [vmem:[#allocation71_spill] sm:$0xff]  ;;  %v9762_v55 = vld [vmem:[#allocation72_spill] sm:$0xff] }
 0x524   :  { %5641 = vmatpush1.bf16.msra.mxu0 %v9752_v14  ;;  %5705 = vmatpush1.bf16.msra.mxu1 %v9753_v48  ;;  %v9763_v14 = vld [vmem:[#allocation73_spill] sm:$0xff]  ;;  %v9764_v48 = vld [vmem:[#allocation74_spill] sm:$0xff] }
 0x525   :  { %5643 = vmatprep.subr.bf16.mxu0 %v9754_v28  ;;  %5707 = vmatprep.subr.bf16.mxu1 %v9755_v32  ;;  %v9765_v28 = vld [vmem:[#allocation75_spill] sm:$0xff]  ;;  %v9766_v32 = vld [vmem:[#allocation76_spill] sm:$0xff] }
 0x528   :  { %5645 = vmatpush1.bf16.msra.mxu0 %v9756_v0  ;;  %5709 = vmatpush1.bf16.msra.mxu1 %v9757_v12  ;;  %v9767_v0 = vld [vmem:[#allocation77_spill] sm:$0xff] }
 0x529   :  { %5647 = vmatprep.subr.bf16.mxu0 %v9758_v37  ;;  %5711 = vmatprep.subr.bf16.mxu1 %v9759_v33 }
 0x52c   :  { %5649 = vmatpush1.bf16.msra.mxu0 %v9760_v27  ;;  %5713 = vmatpush1.bf16.msra.mxu1 %v9761_v11 }
 0x52d   :  { %5651 = vmatprep.subr.bf16.mxu0 %v9762_v55  ;;  %5715 = vmatprep.subr.bf16.mxu1 %v9763_v14 }
 0x530   :  { %5653 = vmatpush1.bf16.msra.mxu0 %v9764_v48  ;;  %5717 = vmatpush1.bf16.msra.mxu1 %v9765_v28 }
 0x531   :  { %5719 = vmatprep.subr.bf16.mxu0 %v9766_v32  ;;  %5783 = vmatprep.subr.bf16.mxu1 %v9767_v0 }
 0x586   :  { %v2258_v12 = vpop.f32.mrb[6].mxu0  ;;  %v2329_v37 = vpop.f32.mrb[6].mxu1 }
 0x587   :  { %v6652_v33 = vadd.f32 %v2258_v12, %v9768_v4  ;;  %v2260_v34 = vpop.f32.mrb[7].mxu0  ;;  %v2331_v27 = vpop.f32.mrb[7].mxu1  ;;  %v6668_v48 = vadd.f32 %v2329_v37, %v9675_v21 }
 0x588   :  { %v6653_v11 = vadd.f32 %v2260_v34, %v9674_v56 }
 0x589   :  { %v4244_v39 = vmul.f32 -1.442695, %v6652_v33 }
 0x58a   :  { %v4245_v55 = vmul.f32 -1.442695, %v6653_v11 }
 0x58b   :  { %6876 = vpow2.f32 %v4244_v39 }
 0x58c   :  { %6878 = vpow2.f32 %v4245_v55 }
 0x58d   :  { %6880 = vtanh.f32 %v6668_v48 }
 0x595   :  { %v6877_v14 = vpop.eup %6876 }
 0x596   :  { %v6879_v28 = vpop.eup %6878  ;;  %v2487_v44 = vadd.f32 1.0, %v6877_v14 }
 0x597   :  { %v2493_v32 = vadd.f32 1.0, %v6879_v28  ;;  %v6881_v0 = vpop.eup %6880 }
 0x598   :  { %6882 = vrcp.f32 %v2487_v44 }
 0x599   :  { %6884 = vrcp.f32 %v2493_v32  ;;  %v6669_v32 = vadd.f32 %v2331_v27, %v7818_v9 }
 0x5a2   :  { %v6883_v45 = vpop.eup %6882 }
 0x5a3   :  { %v6885_v12 = vpop.eup %6884  ;;  %v2504_v4 = vmul.f32 %v6883_v45, %v6881_v0  ;;  %v4246_v45 = vmul.f32 -1.442695, %v6669_v32 }
 0x5a4   :  { %v2503_v10 = vmul.f32 %v6885_v12, %v8131_v63 }
 0x5a6   :  { %v8287_v34 = vadd.f32 %v2504_v4, %v2503_v10 }
 0x5c6   :  { %v2400_v33 = vpop.f32.mrb[24].mxu0  ;;  %v2471_v39 = vpop.f32.mrb[24].mxu1 }
 0x5c7   :  { %v6686_v11 = vadd.f32 %v2400_v33, %v9581_v40  ;;  %v2402_v55 = vpop.f32.mrb[25].mxu0  ;;  %v2473_v37 = vpop.f32.mrb[25].mxu1  ;;  %v6702_v4 = vadd.f32 %v2471_v39, %v7824_v60 }
 0x5c8   :  { %v6687_v14 = vadd.f32 %v2402_v55, %v9582_v1  ;;  %v6703_v0 = vadd.f32 %v2473_v37, %v7820_v46 }
 0x5c9   :  { %v4247_v48 = vmul.f32 -1.442695, %v6686_v11 }
 0x5ca   :  { %v4248_v28 = vmul.f32 -1.442695, %v6687_v14  ;;  %v4249_v44 = vmul.f32 -1.442695, %v6703_v0 }
 0x5cb   :  { %6886 = vpow2.f32 %v4247_v48 }
 0x5cc   :  { %6888 = vpow2.f32 %v4248_v28 }
 0x5cd   :  { %6890 = vpow2.f32 %v4246_v45 }
 0x5ce   :  { %6892 = vpow2.f32 %v4249_v44 }
 0x5cf   :  { %6894 = vtanh.f32 %v6702_v4 }
 0x5d5   :  { %v6887_v10 = vpop.eup %6886 }
 0x5d6   :  { %v6889_v63 = vpop.eup %6888  ;;  %v2511_v12 = vadd.f32 1.0, %v6887_v10 }
 0x5d7   :  { %v2517_v33 = vadd.f32 1.0, %v6889_v63  ;;  %v6891_v11 = vpop.eup %6890 }
 0x5d8   :  { %6896 = vrcp.f32 %v2511_v12  ;;  %v6893_v55 = vpop.eup %6892  ;;  %v2500_v0 = vadd.f32 1.0, %v6891_v11  ;;  %v9773_v11 = vld [vmem:[#allocation96_spill] sm:$0xff] }
 0x5d9   :  { %6898 = vrcp.f32 %v2517_v33  ;;  %v6895_v14 = vpop.eup %6894  ;;  %v2524_v37 = vadd.f32 1.0, %v6893_v55  ;;  %v9772_v33 = vld [vmem:[#allocation94_spill] sm:$0xff]  ;;  %v9774_v55 = vld [vmem:[#allocation119_spill] sm:$0xff] }
 0x5da   :  { %6900 = vtanh.f32 %v8287_v34 }
 0x5db   :  { %6902 = vrcp.f32 %v2524_v37  ;;  %v9779_v37 = vld [vmem:[#allocation124_spill] sm:$0xff] }
 0x5e2   :  { %v6897_v48 = vpop.eup %6896 }
 0x5e3   :  { %v6899_v27 = vpop.eup %6898  ;;  %v2528_v28 = vmul.f32 %v6897_v48, %v6895_v14  ;;  %v9775_v14 = vld [vmem:[#allocation120_spill] sm:$0xff]  ;;  %v9776_v48 = vld [vmem:[#allocation121_spill] sm:$0xff] }
 0x5e4   :  { %v2527_v32 = vmul.f32 %v6899_v27, %v8140_v36  ;;  %v6901_v45 = vpop.eup %6900  ;;  %v9771_v36 = vld [vmem:[#allocation93_spill] sm:$0xff]  ;;  %v9777_v27 = vld [vmem:[#allocation122_spill] sm:$0xff] }
 0x5e5   :  { %v6903_v44 = vpop.eup %6902 }
 0x5e6   :  { %v8296_v39 = vadd.f32 %v2528_v28, %v2527_v32  ;;  %v9778_v28 = vld [vmem:[#allocation123_spill] sm:$0xff]  ;;  %v9780_v32 = vld [vmem:[#allocation125_spill] sm:$0xff] }
 0x5e8   :  { %6904 = vtanh.f32 %v8296_v39 }
 0x5e9   :  { %6906 = vrcp.f32 %v2500_v0  ;;  %v9781_v0 = vld [vmem:[#allocation126_spill] sm:$0xff] }
 0x5f2   :  { %v6905_v4 = vpop.eup %6904 }
 0x5f3   :  { %v6907_v10 = vpop.eup %6906  ;;  %v8299_v63 = vmul.f32 %v6905_v4, %v6903_v44  ;;  %v9783_v44 = vld [vmem:[#allocation128_spill] sm:$0xff]  ;;  %v9784_v4 = vld [vmem:[#allocation129_spill] sm:$0xff] }
 0x5f4   :  { %v8301_v12 = vmul.f32 %v6907_v10, %v6901_v45  ;;  %v9782_v45 = vld [vmem:[#allocation127_spill] sm:$0xff]  ;;  %v9785_v10 = vld [vmem:[#allocation130_spill] sm:$0xff] }
 0x5f5   :  { %9769 = vst [vmem:[#allocation82_spill] sm:$0xff] %v8299_v63  ;;  %2604 = vmatprep.mubr.f32.mxu0 %v8299_v63  ;;  %2675 = vmatprep.mubr.f32.mxu1 %v8299_v63 }
 0x5f6   :  { %9770 = vst [vmem:[#allocation143_spill] sm:$0xff] %v8301_v12  ;;  %2605 = vmatmul.mubr.f32.vlgmr.msra.gmra.mrb[8].mxu0 %v8301_v12  ;;  %2676 = vmatmul.mubr.f32.vlgmr.msra.gmra.mrb[8].mxu1 %v8301_v12 }
 0x5f7   :  { %5721 = vmatpush1.bf16.msra.mxu0 %v9492_v52  ;;  %5785 = vmatpush1.bf16.msra.mxu1 %v9493_v59 }
 0x5f8   :  { %2746 = vmatprep.mubr.f32.mxu0 %v8299_v63  ;;  %2817 = vmatprep.mubr.f32.mxu1 %v8299_v63  ;;  %v9786_v63 = vld [vmem:[#allocation131_spill] sm:$0xff] }
 0x5f9   :  { %5723 = vmatprep.subr.bf16.mxu0 %v9494_v18  ;;  %5787 = vmatprep.subr.bf16.mxu1 %v9495_v58 }
 0x5fb   :  { %5725 = vmatpush1.bf16.msra.mxu0 %v9496_v31  ;;  %5789 = vmatpush1.bf16.msra.mxu1 %v9585_v17 }
 0x5fc   :  { %5727 = vmatprep.subr.bf16.mxu0 %v9586_v26  ;;  %5791 = vmatprep.subr.bf16.mxu1 %v9587_v16 }
 0x5ff   :  { %5729 = vmatpush1.bf16.msra.mxu0 %v9588_v20  ;;  %5793 = vmatpush1.bf16.msra.mxu1 %v9589_v51 }
 0x600   :  { %5731 = vmatprep.subr.bf16.mxu0 %v9678_v43  ;;  %5795 = vmatprep.subr.bf16.mxu1 %v9679_v8 }
 0x603   :  { %5733 = vmatpush1.bf16.msra.mxu0 %v9680_v13  ;;  %5797 = vmatpush1.bf16.msra.mxu1 %v9681_v38 }
 0x604   :  { %5735 = vmatprep.subr.bf16.mxu0 %v9682_v15  ;;  %5799 = vmatprep.subr.bf16.mxu1 %v9771_v36 }
 0x607   :  { %5737 = vmatpush1.bf16.msra.mxu0 %v9772_v33  ;;  %5801 = vmatpush1.bf16.msra.mxu1 %v9685_v24 }
 0x608   :  { %5739 = vmatprep.subr.bf16.mxu0 %v9773_v11  ;;  %5803 = vmatprep.subr.bf16.mxu1 %v9687_v30 }
 0x60b   :  { %5741 = vmatpush1.bf16.msra.mxu0 %v9688_v35  ;;  %5805 = vmatpush1.bf16.msra.mxu1 %v9689_v53 }
 0x60c   :  { %5743 = vmatprep.subr.bf16.mxu0 %v9690_v41  ;;  %5807 = vmatprep.subr.bf16.mxu1 %v9691_v5 }
 0x60f   :  { %5745 = vmatpush1.bf16.msra.mxu0 %v9692_v47  ;;  %5809 = vmatpush1.bf16.msra.mxu1 %v9693_v2 }
 0x610   :  { %5747 = vmatprep.subr.bf16.mxu0 %v9694_v22  ;;  %5811 = vmatprep.subr.bf16.mxu1 %v9695_v6 }
 0x613   :  { %5749 = vmatpush1.bf16.msra.mxu0 %v9608_v62  ;;  %5813 = vmatpush1.bf16.msra.mxu1 %v9696_v19 }
 0x614   :  { %5751 = vmatprep.subr.bf16.mxu0 %v9610_v3  ;;  %5815 = vmatprep.subr.bf16.mxu1 %v9611_v25 }
 0x617   :  { %5753 = vmatpush1.bf16.msra.mxu0 %v9612_v23  ;;  %5817 = vmatpush1.bf16.msra.mxu1 %v9613_v7 }
 0x618   :  { %5755 = vmatprep.subr.bf16.mxu0 %v9614_v54  ;;  %5819 = vmatprep.subr.bf16.mxu1 %v9615_v42 }
 0x61b   :  { %5757 = vmatpush1.bf16.msra.mxu0 %v9616_v50  ;;  %5821 = vmatpush1.bf16.msra.mxu1 %v9617_v49 }
 0x61c   :  { %5759 = vmatprep.subr.bf16.mxu0 %v9618_v57  ;;  %5823 = vmatprep.subr.bf16.mxu1 %v9531_v61 }
 0x61f   :  { %5761 = vmatpush1.bf16.msra.mxu0 %v9619_v29  ;;  %5825 = vmatpush1.bf16.msra.mxu1 %v9774_v55 }
 0x620   :  { %5763 = vmatprep.subr.bf16.mxu0 %v9775_v14  ;;  %5827 = vmatprep.subr.bf16.mxu1 %v9776_v48  ;;  %v9787_v48 = vld [vmem:[#allocation132_spill] sm:$0xff] }
 0x623   :  { %5765 = vmatpush1.bf16.msra.mxu0 %v9777_v27  ;;  %5829 = vmatpush1.bf16.msra.mxu1 %v9778_v28  ;;  %v9788_v27 = vld [vmem:[#allocation133_spill] sm:$0xff]  ;;  %v9789_v28 = vld [vmem:[#allocation134_spill] sm:$0xff] }
 0x624   :  { %5767 = vmatprep.subr.bf16.mxu0 %v9779_v37  ;;  %5831 = vmatprep.subr.bf16.mxu1 %v9780_v32  ;;  %v9790_v37 = vld [vmem:[#allocation135_spill] sm:$0xff]  ;;  %v9791_v32 = vld [vmem:[#allocation136_spill] sm:$0xff] }
 0x627   :  { %5769 = vmatpush1.bf16.msra.mxu0 %v9781_v0  ;;  %5833 = vmatpush1.bf16.msra.mxu1 %v9782_v45  ;;  %v9792_v0 = vld [vmem:[#allocation137_spill] sm:$0xff]  ;;  %v9793_v45 = vld [vmem:[#allocation138_spill] sm:$0xff] }
 0x628   :  { %5771 = vmatprep.subr.bf16.mxu0 %v9783_v44  ;;  %5835 = vmatprep.subr.bf16.mxu1 %v9784_v4  ;;  %v9794_v44 = vld [vmem:[#allocation139_spill] sm:$0xff]  ;;  %v9795_v4 = vld [vmem:[#allocation12_spill] sm:$0xff] }
 0x62b   :  { %5773 = vmatpush1.bf16.msra.mxu0 %v9785_v10  ;;  %5837 = vmatpush1.bf16.msra.mxu1 %v9786_v63  ;;  %v9796_v10 = vld [vmem:[#allocation13_spill] sm:$0xff]  ;;  %v9861_v63 = vld [vmem:[#allocation140_spill] sm:$0xff] }
 0x62c   :  { %5775 = vmatprep.subr.bf16.mxu0 %v9787_v48  ;;  %5839 = vmatprep.subr.bf16.mxu1 %v9788_v27  ;;  %v9797_v27 = vld [vmem:[#allocation14_spill] sm:$0xff]  ;;  %v9806_v48 = vld [vmem:[#allocation23_spill] sm:$0xff] }
 0x62f   :  { %5777 = vmatpush1.bf16.msra.mxu0 %v9789_v28  ;;  %5841 = vmatpush1.bf16.msra.mxu1 %v9790_v37  ;;  %v9798_v28 = vld [vmem:[#allocation15_spill] sm:$0xff]  ;;  %v9799_v37 = vld [vmem:[#allocation16_spill] sm:$0xff] }
 0x630   :  { %5779 = vmatprep.subr.bf16.mxu0 %v9791_v32  ;;  %5843 = vmatprep.subr.bf16.mxu1 %v9792_v0  ;;  %v9800_v32 = vld [vmem:[#allocation17_spill] sm:$0xff]  ;;  %v9801_v0 = vld [vmem:[#allocation18_spill] sm:$0xff] }
 0x633   :  { %5781 = vmatpush1.bf16.msra.mxu0 %v9793_v45  ;;  %5845 = vmatpush1.bf16.msra.mxu1 %v9794_v44  ;;  %v9802_v45 = vld [vmem:[#allocation19_spill] sm:$0xff]  ;;  %v9803_v44 = vld [vmem:[#allocation20_spill] sm:$0xff] }
 0x634   :  { %5847 = vmatprep.subr.bf16.mxu0 %v9795_v4  ;;  %5911 = vmatprep.subr.bf16.mxu1 %v9796_v10  ;;  %v9804_v4 = vld [vmem:[#allocation21_spill] sm:$0xff]  ;;  %v9805_v10 = vld [vmem:[#allocation22_spill] sm:$0xff] }
 0x636   :  { %2747 = vmatmul.mubr.f32.vlgmr.msra.gmra.mrb[22].mxu0 %v8301_v12  ;;  %2818 = vmatmul.mubr.f32.vlgmr.msra.gmra.mrb[22].mxu1 %v8301_v12  ;;  %v9807_v12 = vld [vmem:[#allocation24_spill] sm:$0xff] }
 0x637   :  { %5849 = vmatpush1.bf16.msra.mxu0 %v9797_v27  ;;  %5913 = vmatpush1.bf16.msra.mxu1 %v9798_v28  ;;  %v9808_v27 = vld [vmem:[#allocation25_spill] sm:$0xff]  ;;  %v9809_v28 = vld [vmem:[#allocation26_spill] sm:$0xff] }
 0x638   :  { %5851 = vmatprep.subr.bf16.mxu0 %v9799_v37  ;;  %5915 = vmatprep.subr.bf16.mxu1 %v9800_v32  ;;  %v9810_v37 = vld [vmem:[#allocation27_spill] sm:$0xff]  ;;  %v9811_v32 = vld [vmem:[#allocation28_spill] sm:$0xff] }
 0x63b   :  { %5853 = vmatpush1.bf16.msra.mxu0 %v9801_v0  ;;  %5917 = vmatpush1.bf16.msra.mxu1 %v9802_v45  ;;  %v9812_v0 = vld [vmem:[#allocation29_spill] sm:$0xff]  ;;  %v9813_v45 = vld [vmem:[#allocation30_spill] sm:$0xff] }
 0x63c   :  { %5855 = vmatprep.subr.bf16.mxu0 %v9803_v44  ;;  %5919 = vmatprep.subr.bf16.mxu1 %v9804_v4  ;;  %v9814_v44 = vld [vmem:[#allocation31_spill] sm:$0xff]  ;;  %v9815_v4 = vld [vmem:[#allocation32_spill] sm:$0xff] }
 0x63f   :  { %5857 = vmatpush1.bf16.msra.mxu0 %v9805_v10  ;;  %5921 = vmatpush1.bf16.msra.mxu1 %v9806_v48  ;;  %v9816_v10 = vld [vmem:[#allocation33_spill] sm:$0xff]  ;;  %v9817_v48 = vld [vmem:[#allocation34_spill] sm:$0xff] }
 0x640   :  { %5859 = vmatprep.subr.bf16.mxu0 %v9807_v12  ;;  %5923 = vmatprep.subr.bf16.mxu1 %v9808_v27  ;;  %v9818_v12 = vld [vmem:[#allocation35_spill] sm:$0xff]  ;;  %v9819_v27 = vld [vmem:[#allocation36_spill] sm:$0xff] }
 0x643   :  { %5861 = vmatpush1.bf16.msra.mxu0 %v9809_v28  ;;  %5925 = vmatpush1.bf16.msra.mxu1 %v9810_v37  ;;  %v9820_v28 = vld [vmem:[#allocation37_spill] sm:$0xff]  ;;  %v9821_v37 = vld [vmem:[#allocation38_spill] sm:$0xff] }
 0x644   :  { %5863 = vmatprep.subr.bf16.mxu0 %v9811_v32  ;;  %5927 = vmatprep.subr.bf16.mxu1 %v9812_v0  ;;  %v9822_v32 = vld [vmem:[#allocation39_spill] sm:$0xff]  ;;  %v9823_v0 = vld [vmem:[#allocation40_spill] sm:$0xff] }
 0x647   :  { %5865 = vmatpush1.bf16.msra.mxu0 %v9813_v45  ;;  %5929 = vmatpush1.bf16.msra.mxu1 %v9814_v44  ;;  %v9824_v45 = vld [vmem:[#allocation41_spill] sm:$0xff]  ;;  %v9825_v44 = vld [vmem:[#allocation42_spill] sm:$0xff] }
 0x648   :  { %5867 = vmatprep.subr.bf16.mxu0 %v9815_v4  ;;  %5931 = vmatprep.subr.bf16.mxu1 %v9816_v10  ;;  %v9826_v4 = vld [vmem:[#allocation43_spill] sm:$0xff]  ;;  %v9827_v10 = vld [vmem:[#allocation44_spill] sm:$0xff] }
 0x64b   :  { %5869 = vmatpush1.bf16.msra.mxu0 %v9817_v48  ;;  %5933 = vmatpush1.bf16.msra.mxu1 %v9818_v12  ;;  %v9828_v48 = vld [vmem:[#allocation45_spill] sm:$0xff]  ;;  %v9829_v12 = vld [vmem:[#allocation46_spill] sm:$0xff] }
 0x64c   :  { %5871 = vmatprep.subr.bf16.mxu0 %v9819_v27  ;;  %5935 = vmatprep.subr.bf16.mxu1 %v9820_v28  ;;  %v9830_v27 = vld [vmem:[#allocation47_spill] sm:$0xff]  ;;  %v9831_v28 = vld [vmem:[#allocation48_spill] sm:$0xff] }
 0x64f   :  { %5873 = vmatpush1.bf16.msra.mxu0 %v9821_v37  ;;  %5937 = vmatpush1.bf16.msra.mxu1 %v9822_v32  ;;  %v9832_v37 = vld [vmem:[#allocation49_spill] sm:$0xff]  ;;  %v9833_v32 = vld [vmem:[#allocation50_spill] sm:$0xff] }
 0x650   :  { %5875 = vmatprep.subr.bf16.mxu0 %v9823_v0  ;;  %5939 = vmatprep.subr.bf16.mxu1 %v9824_v45  ;;  %v9834_v0 = vld [vmem:[#allocation51_spill] sm:$0xff]  ;;  %v9835_v45 = vld [vmem:[#allocation52_spill] sm:$0xff] }
 0x653   :  { %5877 = vmatpush1.bf16.msra.mxu0 %v9825_v44  ;;  %5941 = vmatpush1.bf16.msra.mxu1 %v9826_v4  ;;  %v9836_v44 = vld [vmem:[#allocation53_spill] sm:$0xff]  ;;  %v9837_v4 = vld [vmem:[#allocation54_spill] sm:$0xff] }
 0x654   :  { %5879 = vmatprep.subr.bf16.mxu0 %v9827_v10  ;;  %5943 = vmatprep.subr.bf16.mxu1 %v9828_v48  ;;  %v9838_v10 = vld [vmem:[#allocation55_spill] sm:$0xff]  ;;  %v9839_v48 = vld [vmem:[#allocation56_spill] sm:$0xff] }
 0x657   :  { %5881 = vmatpush1.bf16.msra.mxu0 %v9829_v12  ;;  %5945 = vmatpush1.bf16.msra.mxu1 %v9830_v27  ;;  %v9840_v12 = vld [vmem:[#allocation57_spill] sm:$0xff]  ;;  %v9841_v27 = vld [vmem:[#allocation58_spill] sm:$0xff] }
 0x658   :  { %5883 = vmatprep.subr.bf16.mxu0 %v9831_v28  ;;  %5947 = vmatprep.subr.bf16.mxu1 %v9832_v37  ;;  %v9842_v28 = vld [vmem:[#allocation59_spill] sm:$0xff]  ;;  %v9843_v37 = vld [vmem:[#allocation60_spill] sm:$0xff] }
 0x65b   :  { %5885 = vmatpush1.bf16.msra.mxu0 %v9833_v32  ;;  %5949 = vmatpush1.bf16.msra.mxu1 %v9834_v0  ;;  %v9844_v32 = vld [vmem:[#allocation61_spill] sm:$0xff]  ;;  %v9845_v0 = vld [vmem:[#allocation62_spill] sm:$0xff] }
 0x65c   :  { %5887 = vmatprep.subr.bf16.mxu0 %v9835_v45  ;;  %5951 = vmatprep.subr.bf16.mxu1 %v9836_v44  ;;  %v9846_v45 = vld [vmem:[#allocation63_spill] sm:$0xff]  ;;  %v9847_v44 = vld [vmem:[#allocation64_spill] sm:$0xff] }
 0x65f   :  { %5889 = vmatpush1.bf16.msra.mxu0 %v9837_v4  ;;  %5953 = vmatpush1.bf16.msra.mxu1 %v9838_v10  ;;  %v9848_v4 = vld [vmem:[#allocation65_spill] sm:$0xff]  ;;  %v9849_v10 = vld [vmem:[#allocation66_spill] sm:$0xff] }
 0x660   :  { %5891 = vmatprep.subr.bf16.mxu0 %v9839_v48  ;;  %5955 = vmatprep.subr.bf16.mxu1 %v9840_v12  ;;  %v9850_v48 = vld [vmem:[#allocation67_spill] sm:$0xff]  ;;  %v9851_v12 = vld [vmem:[#allocation68_spill] sm:$0xff] }
 0x663   :  { %5893 = vmatpush1.bf16.msra.mxu0 %v9841_v27  ;;  %5957 = vmatpush1.bf16.msra.mxu1 %v9842_v28  ;;  %v9852_v27 = vld [vmem:[#allocation69_spill] sm:$0xff]  ;;  %v9853_v28 = vld [vmem:[#allocation70_spill] sm:$0xff] }
 0x664   :  { %5895 = vmatprep.subr.bf16.mxu0 %v9843_v37  ;;  %5959 = vmatprep.subr.bf16.mxu1 %v9844_v32  ;;  %v9854_v37 = vld [vmem:[#allocation71_spill] sm:$0xff]  ;;  %v9855_v32 = vld [vmem:[#allocation72_spill] sm:$0xff] }
 0x667   :  { %5897 = vmatpush1.bf16.msra.mxu0 %v9845_v0  ;;  %5961 = vmatpush1.bf16.msra.mxu1 %v9846_v45  ;;  %v9856_v0 = vld [vmem:[#allocation73_spill] sm:$0xff]  ;;  %v9857_v45 = vld [vmem:[#allocation74_spill] sm:$0xff] }
 0x668   :  { %5899 = vmatprep.subr.bf16.mxu0 %v9847_v44  ;;  %5963 = vmatprep.subr.bf16.mxu1 %v9848_v4  ;;  %v9858_v44 = vld [vmem:[#allocation75_spill] sm:$0xff]  ;;  %v9859_v4 = vld [vmem:[#allocation76_spill] sm:$0xff] }
 0x66b   :  { %5901 = vmatpush1.bf16.msra.mxu0 %v9849_v10  ;;  %5965 = vmatpush1.bf16.msra.mxu1 %v9850_v48  ;;  %v9860_v10 = vld [vmem:[#allocation77_spill] sm:$0xff] }
 0x66c   :  { %5903 = vmatprep.subr.bf16.mxu0 %v9851_v12  ;;  %5967 = vmatprep.subr.bf16.mxu1 %v9852_v27 }
 0x66f   :  { %5905 = vmatpush1.bf16.msra.mxu0 %v9853_v28  ;;  %5969 = vmatpush1.bf16.msra.mxu1 %v9854_v37 }
 0x670   :  { %5907 = vmatprep.subr.bf16.mxu0 %v9855_v32  ;;  %5971 = vmatprep.subr.bf16.mxu1 %v9856_v0 }
 0x673   :  { %5909 = vmatpush1.bf16.msra.mxu0 %v9857_v45  ;;  %5973 = vmatpush1.bf16.msra.mxu1 %v9858_v44 }
 0x674   :  { %5975 = vmatprep.subr.bf16.mxu0 %v9859_v4  ;;  %6039 = vmatprep.subr.bf16.mxu1 %v9860_v10 }
 0x6c9   :  { %v2606_v48 = vpop.f32.mrb[8].mxu0  ;;  %v2677_v12 = vpop.f32.mrb[8].mxu1 }
 0x6ca   :  { %v6654_v27 = vadd.f32 %v2606_v48, %v9861_v63  ;;  %v2608_v14 = vpop.f32.mrb[9].mxu0  ;;  %v2679_v28 = vpop.f32.mrb[9].mxu1  ;;  %v6670_v45 = vadd.f32 %v2677_v12, %v9675_v21 }
 0x6cb   :  { %v6655_v37 = vadd.f32 %v2608_v14, %v9674_v56 }
 0x6cc   :  { %v4250_v55 = vmul.f32 -1.442695, %v6654_v27 }
 0x6cd   :  { %v4251_v32 = vmul.f32 -1.442695, %v6655_v37 }
 0x6ce   :  { %6908 = vpow2.f32 %v4250_v55 }
 0x6cf   :  { %6910 = vpow2.f32 %v4251_v32 }
 0x6d0   :  { %6912 = vtanh.f32 %v6670_v45 }
 0x6d8   :  { %v6909_v0 = vpop.eup %6908 }
 0x6d9   :  { %v6911_v44 = vpop.eup %6910  ;;  %v2835_v29 = vadd.f32 1.0, %v6909_v0 }
 0x6da   :  { %v2841_v4 = vadd.f32 1.0, %v6911_v44  ;;  %v6913_v10 = vpop.eup %6912 }
 0x6db   :  { %6914 = vrcp.f32 %v2835_v29  ;;  %v6671_v29 = vadd.f32 %v2679_v28, %v7818_v9 }
 0x6dc   :  { %6916 = vrcp.f32 %v2841_v4 }
 0x6dd   :  { %v4252_v4 = vmul.f32 -1.442695, %v6671_v29 }
 0x6e5   :  { %v6915_v61 = vpop.eup %6914 }
 0x6e6   :  { %v6917_v48 = vpop.eup %6916  ;;  %v2852_v63 = vmul.f32 %v6915_v61, %v6913_v10 }
 0x6e7   :  { %v2851_v57 = vmul.f32 %v6917_v48, %v8287_v34 }
 0x6e9   :  { %v8443_v14 = vadd.f32 %v2852_v63, %v2851_v57 }
 0x709   :  { %v2748_v27 = vpop.f32.mrb[22].mxu0  ;;  %v2819_v55 = vpop.f32.mrb[22].mxu1 }
 0x70a   :  { %v6684_v37 = vadd.f32 %v2748_v27, %v9581_v40  ;;  %v2750_v12 = vpop.f32.mrb[23].mxu0  ;;  %v2821_v32 = vpop.f32.mrb[23].mxu1  ;;  %v6700_v57 = vadd.f32 %v2819_v55, %v7824_v60 }
 0x70b   :  { %v6685_v0 = vadd.f32 %v2750_v12, %v9582_v1  ;;  %v6701_v61 = vadd.f32 %v2821_v32, %v7820_v46 }
 0x70c   :  { %v4253_v45 = vmul.f32 -1.442695, %v6684_v37 }
 0x70d   :  { %v4254_v44 = vmul.f32 -1.442695, %v6685_v0  ;;  %v4255_v34 = vmul.f32 -1.442695, %v6701_v61 }
 0x70e   :  { %6918 = vpow2.f32 %v4253_v45 }
 0x70f   :  { %6920 = vpow2.f32 %v4254_v44 }
 0x710   :  { %6922 = vpow2.f32 %v4252_v4 }
 0x711   :  { %6924 = vpow2.f32 %v4255_v34 }
 0x712   :  { %6926 = vtanh.f32 %v6700_v57 }
 0x718   :  { %v6919_v63 = vpop.eup %6918 }
 0x719   :  { %v6921_v10 = vpop.eup %6920  ;;  %v2859_v48 = vadd.f32 1.0, %v6919_v63 }
 0x71a   :  { %v2865_v27 = vadd.f32 1.0, %v6921_v10  ;;  %v6923_v37 = vpop.eup %6922 }
 0x71b   :  { %6928 = vrcp.f32 %v2859_v48  ;;  %v6925_v12 = vpop.eup %6924  ;;  %v2848_v61 = vadd.f32 1.0, %v6923_v37  ;;  %v9866_v37 = vld [vmem:[#allocation118_spill] sm:$0xff] }
 0x71c   :  { %6930 = vrcp.f32 %v2865_v27  ;;  %v6927_v0 = vpop.eup %6926  ;;  %v2872_v32 = vadd.f32 1.0, %v6925_v12  ;;  %v9865_v27 = vld [vmem:[#allocation117_spill] sm:$0xff]  ;;  %v9867_v12 = vld [vmem:[#allocation119_spill] sm:$0xff] }
 0x71d   :  { %6932 = vtanh.f32 %v8443_v14 }
 0x71e   :  { %6934 = vrcp.f32 %v2872_v32  ;;  %v9872_v32 = vld [vmem:[#allocation124_spill] sm:$0xff] }
 0x725   :  { %v6929_v45 = vpop.eup %6928 }
 0x726   :  { %v6931_v28 = vpop.eup %6930  ;;  %v2876_v44 = vmul.f32 %v6929_v45, %v6927_v0  ;;  %v9868_v0 = vld [vmem:[#allocation120_spill] sm:$0xff]  ;;  %v9869_v45 = vld [vmem:[#allocation121_spill] sm:$0xff] }
 0x727   :  { %v2875_v29 = vmul.f32 %v6931_v28, %v8296_v39  ;;  %v6933_v4 = vpop.eup %6932  ;;  %v9864_v39 = vld [vmem:[#allocation116_spill] sm:$0xff]  ;;  %v9870_v28 = vld [vmem:[#allocation122_spill] sm:$0xff] }
 0x728   :  { %v6935_v34 = vpop.eup %6934 }
 0x729   :  { %v8452_v55 = vadd.f32 %v2876_v44, %v2875_v29  ;;  %v9871_v44 = vld [vmem:[#allocation123_spill] sm:$0xff]  ;;  %v9873_v29 = vld [vmem:[#allocation125_spill] sm:$0xff] }
 0x72b   :  { %6936 = vtanh.f32 %v8452_v55 }
 0x72c   :  { %6938 = vrcp.f32 %v2848_v61  ;;  %v9874_v61 = vld [vmem:[#allocation126_spill] sm:$0xff] }
 0x735   :  { %v6937_v57 = vpop.eup %6936 }
 0x736   :  { %v6939_v63 = vpop.eup %6938  ;;  %v8455_v10 = vmul.f32 %v6937_v57, %v6935_v34  ;;  %v9876_v34 = vld [vmem:[#allocation128_spill] sm:$0xff]  ;;  %v9877_v57 = vld [vmem:[#allocation129_spill] sm:$0xff] }
 0x737   :  { %v8457_v48 = vmul.f32 %v6939_v63, %v6933_v4  ;;  %v9875_v4 = vld [vmem:[#allocation127_spill] sm:$0xff]  ;;  %v9878_v63 = vld [vmem:[#allocation130_spill] sm:$0xff] }
 0x738   :  { %9862 = vst [vmem:[#allocation144_spill] sm:$0xff] %v8455_v10  ;;  %2952 = vmatprep.mubr.f32.mxu0 %v8455_v10  ;;  %3023 = vmatprep.mubr.f32.mxu1 %v8455_v10 }
 0x739   :  { %9863 = vst [vmem:[#allocation83_spill] sm:$0xff] %v8457_v48  ;;  %2953 = vmatmul.mubr.f32.vlgmr.msra.gmra.mrb[10].mxu0 %v8457_v48  ;;  %3024 = vmatmul.mubr.f32.vlgmr.msra.gmra.mrb[10].mxu1 %v8457_v48 }
 0x73a   :  { %5977 = vmatpush1.bf16.msra.mxu0 %v9492_v52  ;;  %6041 = vmatpush1.bf16.msra.mxu1 %v9493_v59 }
 0x73b   :  { %3094 = vmatprep.mubr.f32.mxu0 %v8455_v10  ;;  %3165 = vmatprep.mubr.f32.mxu1 %v8455_v10  ;;  %v9879_v10 = vld [vmem:[#allocation131_spill] sm:$0xff] }
 0x73c   :  { %5979 = vmatprep.subr.bf16.mxu0 %v9494_v18  ;;  %6043 = vmatprep.subr.bf16.mxu1 %v9495_v58 }
 0x73e   :  { %5981 = vmatpush1.bf16.msra.mxu0 %v9496_v31  ;;  %6045 = vmatpush1.bf16.msra.mxu1 %v9585_v17 }
 0x73f   :  { %5983 = vmatprep.subr.bf16.mxu0 %v9586_v26  ;;  %6047 = vmatprep.subr.bf16.mxu1 %v9587_v16 }
 0x742   :  { %5985 = vmatpush1.bf16.msra.mxu0 %v9588_v20  ;;  %6049 = vmatpush1.bf16.msra.mxu1 %v9589_v51 }
 0x743   :  { %5987 = vmatprep.subr.bf16.mxu0 %v9678_v43  ;;  %6051 = vmatprep.subr.bf16.mxu1 %v9679_v8 }
 0x746   :  { %5989 = vmatpush1.bf16.msra.mxu0 %v9680_v13  ;;  %6053 = vmatpush1.bf16.msra.mxu1 %v9681_v38 }
 0x747   :  { %5991 = vmatprep.subr.bf16.mxu0 %v9682_v15  ;;  %6055 = vmatprep.subr.bf16.mxu1 %v9771_v36 }
 0x74a   :  { %5993 = vmatpush1.bf16.msra.mxu0 %v9772_v33  ;;  %6057 = vmatpush1.bf16.msra.mxu1 %v9685_v24 }
 0x74b   :  { %5995 = vmatprep.subr.bf16.mxu0 %v9773_v11  ;;  %6059 = vmatprep.subr.bf16.mxu1 %v9687_v30 }
 0x74e   :  { %5997 = vmatpush1.bf16.msra.mxu0 %v9688_v35  ;;  %6061 = vmatpush1.bf16.msra.mxu1 %v9689_v53 }
 0x74f   :  { %5999 = vmatprep.subr.bf16.mxu0 %v9690_v41  ;;  %6063 = vmatprep.subr.bf16.mxu1 %v9691_v5 }
 0x752   :  { %6001 = vmatpush1.bf16.msra.mxu0 %v9692_v47  ;;  %6065 = vmatpush1.bf16.msra.mxu1 %v9693_v2 }
 0x753   :  { %6003 = vmatprep.subr.bf16.mxu0 %v9694_v22  ;;  %6067 = vmatprep.subr.bf16.mxu1 %v9695_v6 }
 0x756   :  { %6005 = vmatpush1.bf16.msra.mxu0 %v9608_v62  ;;  %6069 = vmatpush1.bf16.msra.mxu1 %v9696_v19 }
 0x757   :  { %6007 = vmatprep.subr.bf16.mxu0 %v9610_v3  ;;  %6071 = vmatprep.subr.bf16.mxu1 %v9611_v25 }
 0x75a   :  { %6009 = vmatpush1.bf16.msra.mxu0 %v9612_v23  ;;  %6073 = vmatpush1.bf16.msra.mxu1 %v9613_v7 }
 0x75b   :  { %6011 = vmatprep.subr.bf16.mxu0 %v9614_v54  ;;  %6075 = vmatprep.subr.bf16.mxu1 %v9615_v42 }
 0x75e   :  { %6013 = vmatpush1.bf16.msra.mxu0 %v9616_v50  ;;  %6077 = vmatpush1.bf16.msra.mxu1 %v9617_v49 }
 0x75f   :  { %6015 = vmatprep.subr.bf16.mxu0 %v9864_v39  ;;  %6079 = vmatprep.subr.bf16.mxu1 %v9865_v27 }
 0x762   :  { %6017 = vmatpush1.bf16.msra.mxu0 %v9866_v37  ;;  %6081 = vmatpush1.bf16.msra.mxu1 %v9867_v12 }
 0x763   :  { %6019 = vmatprep.subr.bf16.mxu0 %v9868_v0  ;;  %6083 = vmatprep.subr.bf16.mxu1 %v9869_v45  ;;  %v9880_v45 = vld [vmem:[#allocation132_spill] sm:$0xff] }
 0x766   :  { %6021 = vmatpush1.bf16.msra.mxu0 %v9870_v28  ;;  %6085 = vmatpush1.bf16.msra.mxu1 %v9871_v44  ;;  %v9881_v28 = vld [vmem:[#allocation133_spill] sm:$0xff]  ;;  %v9882_v44 = vld [vmem:[#allocation134_spill] sm:$0xff] }
 0x767   :  { %6023 = vmatprep.subr.bf16.mxu0 %v9872_v32  ;;  %6087 = vmatprep.subr.bf16.mxu1 %v9873_v29  ;;  %v9883_v32 = vld [vmem:[#allocation135_spill] sm:$0xff]  ;;  %v9884_v29 = vld [vmem:[#allocation136_spill] sm:$0xff] }
 0x76a   :  { %6025 = vmatpush1.bf16.msra.mxu0 %v9874_v61  ;;  %6089 = vmatpush1.bf16.msra.mxu1 %v9875_v4  ;;  %v9885_v61 = vld [vmem:[#allocation137_spill] sm:$0xff]  ;;  %v9886_v4 = vld [vmem:[#allocation138_spill] sm:$0xff] }
 0x76b   :  { %6027 = vmatprep.subr.bf16.mxu0 %v9876_v34  ;;  %6091 = vmatprep.subr.bf16.mxu1 %v9877_v57  ;;  %v9887_v34 = vld [vmem:[#allocation139_spill] sm:$0xff]  ;;  %v9888_v57 = vld [vmem:[#allocation12_spill] sm:$0xff] }
 0x76e   :  { %6029 = vmatpush1.bf16.msra.mxu0 %v9878_v63  ;;  %6093 = vmatpush1.bf16.msra.mxu1 %v9879_v10  ;;  %v9889_v63 = vld [vmem:[#allocation13_spill] sm:$0xff]  ;;  %v9954_v10 = vld [vmem:[#allocation140_spill] sm:$0xff] }
 0x76f   :  { %6031 = vmatprep.subr.bf16.mxu0 %v9880_v45  ;;  %6095 = vmatprep.subr.bf16.mxu1 %v9881_v28  ;;  %v9890_v28 = vld [vmem:[#allocation14_spill] sm:$0xff]  ;;  %v9899_v45 = vld [vmem:[#allocation23_spill] sm:$0xff] }
 0x772   :  { %6033 = vmatpush1.bf16.msra.mxu0 %v9882_v44  ;;  %6097 = vmatpush1.bf16.msra.mxu1 %v9883_v32  ;;  %v9891_v44 = vld [vmem:[#allocation15_spill] sm:$0xff]  ;;  %v9892_v32 = vld [vmem:[#allocation16_spill] sm:$0xff] }
 0x773   :  { %6035 = vmatprep.subr.bf16.mxu0 %v9884_v29  ;;  %6099 = vmatprep.subr.bf16.mxu1 %v9885_v61  ;;  %v9893_v29 = vld [vmem:[#allocation17_spill] sm:$0xff]  ;;  %v9894_v61 = vld [vmem:[#allocation18_spill] sm:$0xff] }
 0x776   :  { %6037 = vmatpush1.bf16.msra.mxu0 %v9886_v4  ;;  %6101 = vmatpush1.bf16.msra.mxu1 %v9887_v34  ;;  %v9895_v4 = vld [vmem:[#allocation19_spill] sm:$0xff]  ;;  %v9896_v34 = vld [vmem:[#allocation20_spill] sm:$0xff] }
 0x777   :  { %6103 = vmatprep.subr.bf16.mxu0 %v9888_v57  ;;  %6167 = vmatprep.subr.bf16.mxu1 %v9889_v63  ;;  %v9897_v57 = vld [vmem:[#allocation21_spill] sm:$0xff]  ;;  %v9898_v63 = vld [vmem:[#allocation22_spill] sm:$0xff] }
 0x779   :  { %3095 = vmatmul.mubr.f32.vlgmr.msra.gmra.mrb[20].mxu0 %v8457_v48  ;;  %3166 = vmatmul.mubr.f32.vlgmr.msra.gmra.mrb[20].mxu1 %v8457_v48  ;;  %v9900_v48 = vld [vmem:[#allocation24_spill] sm:$0xff] }
 0x77a   :  { %6105 = vmatpush1.bf16.msra.mxu0 %v9890_v28  ;;  %6169 = vmatpush1.bf16.msra.mxu1 %v9891_v44  ;;  %v9901_v28 = vld [vmem:[#allocation25_spill] sm:$0xff]  ;;  %v9902_v44 = vld [vmem:[#allocation26_spill] sm:$0xff] }
 0x77b   :  { %6107 = vmatprep.subr.bf16.mxu0 %v9892_v32  ;;  %6171 = vmatprep.subr.bf16.mxu1 %v9893_v29  ;;  %v9903_v32 = vld [vmem:[#allocation27_spill] sm:$0xff]  ;;  %v9904_v29 = vld [vmem:[#allocation28_spill] sm:$0xff] }
 0x77e   :  { %6109 = vmatpush1.bf16.msra.mxu0 %v9894_v61  ;;  %6173 = vmatpush1.bf16.msra.mxu1 %v9895_v4  ;;  %v9905_v61 = vld [vmem:[#allocation29_spill] sm:$0xff]  ;;  %v9906_v4 = vld [vmem:[#allocation30_spill] sm:$0xff] }
 0x77f   :  { %6111 = vmatprep.subr.bf16.mxu0 %v9896_v34  ;;  %6175 = vmatprep.subr.bf16.mxu1 %v9897_v57  ;;  %v9907_v34 = vld [vmem:[#allocation31_spill] sm:$0xff]  ;;  %v9908_v57 = vld [vmem:[#allocation32_spill] sm:$0xff] }
 0x782   :  { %6113 = vmatpush1.bf16.msra.mxu0 %v9898_v63  ;;  %6177 = vmatpush1.bf16.msra.mxu1 %v9899_v45  ;;  %v9909_v63 = vld [vmem:[#allocation33_spill] sm:$0xff]  ;;  %v9910_v45 = vld [vmem:[#allocation34_spill] sm:$0xff] }
 0x783   :  { %6115 = vmatprep.subr.bf16.mxu0 %v9900_v48  ;;  %6179 = vmatprep.subr.bf16.mxu1 %v9901_v28  ;;  %v9911_v48 = vld [vmem:[#allocation35_spill] sm:$0xff]  ;;  %v9912_v28 = vld [vmem:[#allocation36_spill] sm:$0xff] }
 0x786   :  { %6117 = vmatpush1.bf16.msra.mxu0 %v9902_v44  ;;  %6181 = vmatpush1.bf16.msra.mxu1 %v9903_v32  ;;  %v9913_v44 = vld [vmem:[#allocation37_spill] sm:$0xff]  ;;  %v9914_v32 = vld [vmem:[#allocation38_spill] sm:$0xff] }
 0x787   :  { %6119 = vmatprep.subr.bf16.mxu0 %v9904_v29  ;;  %6183 = vmatprep.subr.bf16.mxu1 %v9905_v61  ;;  %v9915_v29 = vld [vmem:[#allocation39_spill] sm:$0xff]  ;;  %v9916_v61 = vld [vmem:[#allocation40_spill] sm:$0xff] }
 0x78a   :  { %6121 = vmatpush1.bf16.msra.mxu0 %v9906_v4  ;;  %6185 = vmatpush1.bf16.msra.mxu1 %v9907_v34  ;;  %v9917_v4 = vld [vmem:[#allocation41_spill] sm:$0xff]  ;;  %v9918_v34 = vld [vmem:[#allocation42_spill] sm:$0xff] }
 0x78b   :  { %6123 = vmatprep.subr.bf16.mxu0 %v9908_v57  ;;  %6187 = vmatprep.subr.bf16.mxu1 %v9909_v63  ;;  %v9919_v57 = vld [vmem:[#allocation43_spill] sm:$0xff]  ;;  %v9920_v63 = vld [vmem:[#allocation44_spill] sm:$0xff] }
 0x78e   :  { %6125 = vmatpush1.bf16.msra.mxu0 %v9910_v45  ;;  %6189 = vmatpush1.bf16.msra.mxu1 %v9911_v48  ;;  %v9921_v45 = vld [vmem:[#allocation45_spill] sm:$0xff]  ;;  %v9922_v48 = vld [vmem:[#allocation46_spill] sm:$0xff] }
 0x78f   :  { %6127 = vmatprep.subr.bf16.mxu0 %v9912_v28  ;;  %6191 = vmatprep.subr.bf16.mxu1 %v9913_v44  ;;  %v9923_v28 = vld [vmem:[#allocation47_spill] sm:$0xff]  ;;  %v9924_v44 = vld [vmem:[#allocation48_spill] sm:$0xff] }
 0x792   :  { %6129 = vmatpush1.bf16.msra.mxu0 %v9914_v32  ;;  %6193 = vmatpush1.bf16.msra.mxu1 %v9915_v29  ;;  %v9925_v32 = vld [vmem:[#allocation49_spill] sm:$0xff]  ;;  %v9926_v29 = vld [vmem:[#allocation50_spill] sm:$0xff] }
 0x793   :  { %6131 = vmatprep.subr.bf16.mxu0 %v9916_v61  ;;  %6195 = vmatprep.subr.bf16.mxu1 %v9917_v4  ;;  %v9927_v61 = vld [vmem:[#allocation51_spill] sm:$0xff]  ;;  %v9928_v4 = vld [vmem:[#allocation52_spill] sm:$0xff] }
 0x796   :  { %6133 = vmatpush1.bf16.msra.mxu0 %v9918_v34  ;;  %6197 = vmatpush1.bf16.msra.mxu1 %v9919_v57  ;;  %v9929_v34 = vld [vmem:[#allocation53_spill] sm:$0xff]  ;;  %v9930_v57 = vld [vmem:[#allocation54_spill] sm:$0xff] }
 0x797   :  { %6135 = vmatprep.subr.bf16.mxu0 %v9920_v63  ;;  %6199 = vmatprep.subr.bf16.mxu1 %v9921_v45  ;;  %v9931_v63 = vld [vmem:[#allocation55_spill] sm:$0xff]  ;;  %v9932_v45 = vld [vmem:[#allocation56_spill] sm:$0xff] }
 0x79a   :  { %6137 = vmatpush1.bf16.msra.mxu0 %v9922_v48  ;;  %6201 = vmatpush1.bf16.msra.mxu1 %v9923_v28  ;;  %v9933_v48 = vld [vmem:[#allocation57_spill] sm:$0xff]  ;;  %v9934_v28 = vld [vmem:[#allocation58_spill] sm:$0xff] }
 0x79b   :  { %6139 = vmatprep.subr.bf16.mxu0 %v9924_v44  ;;  %6203 = vmatprep.subr.bf16.mxu1 %v9925_v32  ;;  %v9935_v44 = vld [vmem:[#allocation59_spill] sm:$0xff]  ;;  %v9936_v32 = vld [vmem:[#allocation60_spill] sm:$0xff] }
 0x79e   :  { %6141 = vmatpush1.bf16.msra.mxu0 %v9926_v29  ;;  %6205 = vmatpush1.bf16.msra.mxu1 %v9927_v61  ;;  %v9937_v29 = vld [vmem:[#allocation61_spill] sm:$0xff]  ;;  %v9938_v61 = vld [vmem:[#allocation62_spill] sm:$0xff] }
 0x79f   :  { %6143 = vmatprep.subr.bf16.mxu0 %v9928_v4  ;;  %6207 = vmatprep.subr.bf16.mxu1 %v9929_v34  ;;  %v9939_v4 = vld [vmem:[#allocation63_spill] sm:$0xff]  ;;  %v9940_v34 = vld [vmem:[#allocation64_spill] sm:$0xff] }
 0x7a2   :  { %6145 = vmatpush1.bf16.msra.mxu0 %v9930_v57  ;;  %6209 = vmatpush1.bf16.msra.mxu1 %v9931_v63  ;;  %v9941_v57 = vld [vmem:[#allocation65_spill] sm:$0xff]  ;;  %v9942_v63 = vld [vmem:[#allocation66_spill] sm:$0xff] }
 0x7a3   :  { %6147 = vmatprep.subr.bf16.mxu0 %v9932_v45  ;;  %6211 = vmatprep.subr.bf16.mxu1 %v9933_v48  ;;  %v9943_v45 = vld [vmem:[#allocation67_spill] sm:$0xff]  ;;  %v9944_v48 = vld [vmem:[#allocation68_spill] sm:$0xff] }
 0x7a6   :  { %6149 = vmatpush1.bf16.msra.mxu0 %v9934_v28  ;;  %6213 = vmatpush1.bf16.msra.mxu1 %v9935_v44  ;;  %v9945_v28 = vld [vmem:[#allocation69_spill] sm:$0xff]  ;;  %v9946_v44 = vld [vmem:[#allocation70_spill] sm:$0xff] }
 0x7a7   :  { %6151 = vmatprep.subr.bf16.mxu0 %v9936_v32  ;;  %6215 = vmatprep.subr.bf16.mxu1 %v9937_v29  ;;  %v9947_v32 = vld [vmem:[#allocation71_spill] sm:$0xff]  ;;  %v9948_v29 = vld [vmem:[#allocation72_spill] sm:$0xff] }
 0x7aa   :  { %6153 = vmatpush1.bf16.msra.mxu0 %v9938_v61  ;;  %6217 = vmatpush1.bf16.msra.mxu1 %v9939_v4  ;;  %v9949_v61 = vld [vmem:[#allocation73_spill] sm:$0xff]  ;;  %v9950_v4 = vld [vmem:[#allocation74_spill] sm:$0xff] }
 0x7ab   :  { %6155 = vmatprep.subr.bf16.mxu0 %v9940_v34  ;;  %6219 = vmatprep.subr.bf16.mxu1 %v9941_v57  ;;  %v9951_v34 = vld [vmem:[#allocation75_spill] sm:$0xff]  ;;  %v9952_v57 = vld [vmem:[#allocation76_spill] sm:$0xff] }
 0x7ae   :  { %6157 = vmatpush1.bf16.msra.mxu0 %v9942_v63  ;;  %6221 = vmatpush1.bf16.msra.mxu1 %v9943_v45  ;;  %v9953_v63 = vld [vmem:[#allocation77_spill] sm:$0xff] }
 0x7af   :  { %6159 = vmatprep.subr.bf16.mxu0 %v9944_v48  ;;  %6223 = vmatprep.subr.bf16.mxu1 %v9945_v28 }
 0x7b2   :  { %6161 = vmatpush1.bf16.msra.mxu0 %v9946_v44  ;;  %6225 = vmatpush1.bf16.msra.mxu1 %v9947_v32 }
 0x7b3   :  { %6163 = vmatprep.subr.bf16.mxu0 %v9948_v29  ;;  %6227 = vmatprep.subr.bf16.mxu1 %v9949_v61 }
 0x7b6   :  { %6165 = vmatpush1.bf16.msra.mxu0 %v9950_v4  ;;  %6229 = vmatpush1.bf16.msra.mxu1 %v9951_v34 }
 0x7b7   :  { %6231 = vmatprep.subr.bf16.mxu0 %v9952_v57  ;;  %6295 = vmatprep.subr.bf16.mxu1 %v9953_v63 }
 0x80c   :  { %v2954_v45 = vpop.f32.mrb[10].mxu0  ;;  %v3025_v48 = vpop.f32.mrb[10].mxu1 }
 0x80d   :  { %v6656_v28 = vadd.f32 %v2954_v45, %v9954_v10  ;;  %v2956_v0 = vpop.f32.mrb[11].mxu0  ;;  %v3027_v44 = vpop.f32.mrb[11].mxu1  ;;  %v6672_v4 = vadd.f32 %v3025_v48, %v9675_v21 }
 0x80e   :  { %v6657_v32 = vadd.f32 %v2956_v0, %v9674_v56 }
 0x80f   :  { %v4256_v12 = vmul.f32 -1.442695, %v6656_v28 }
 0x810   :  { %v4257_v29 = vmul.f32 -1.442695, %v6657_v32 }
 0x811   :  { %6940 = vpow2.f32 %v4256_v12 }
 0x812   :  { %6942 = vpow2.f32 %v4257_v29 }
 0x813   :  { %6944 = vtanh.f32 %v6672_v4 }
 0x81b   :  { %v6941_v61 = vpop.eup %6940 }
 0x81c   :  { %v6943_v34 = vpop.eup %6942  ;;  %v3183_v37 = vadd.f32 1.0, %v6941_v61 }
 0x81d   :  { %v3189_v57 = vadd.f32 1.0, %v6943_v34  ;;  %v6945_v63 = vpop.eup %6944 }
 0x81e   :  { %6946 = vrcp.f32 %v3183_v37  ;;  %v6673_v37 = vadd.f32 %v3027_v44, %v7818_v9 }
 0x81f   :  { %6948 = vrcp.f32 %v3189_v57 }
 0x820   :  { %v4258_v57 = vmul.f32 -1.442695, %v6673_v37 }
 0x828   :  { %v6947_v27 = vpop.eup %6946 }
 0x829   :  { %v6949_v45 = vpop.eup %6948  ;;  %v3200_v10 = vmul.f32 %v6947_v27, %v6945_v63 }
 0x82a   :  { %v3199_v39 = vmul.f32 %v6949_v45, %v8443_v14 }
 0x82c   :  { %v8599_v0 = vadd.f32 %v3200_v10, %v3199_v39 }
 0x84c   :  { %v3096_v28 = vpop.f32.mrb[20].mxu0  ;;  %v3167_v12 = vpop.f32.mrb[20].mxu1 }
 0x84d   :  { %v6682_v32 = vadd.f32 %v3096_v28, %v9581_v40  ;;  %v3098_v48 = vpop.f32.mrb[21].mxu0  ;;  %v3169_v29 = vpop.f32.mrb[21].mxu1  ;;  %v6698_v10 = vadd.f32 %v3167_v12, %v7824_v60 }
 0x84e   :  { %v6683_v61 = vadd.f32 %v3098_v48, %v9582_v1  ;;  %v6699_v27 = vadd.f32 %v3169_v29, %v7820_v46 }
 0x84f   :  { %v4259_v4 = vmul.f32 -1.442695, %v6682_v32 }
 0x850   :  { %v4260_v34 = vmul.f32 -1.442695, %v6683_v61  ;;  %v4261_v14 = vmul.f32 -1.442695, %v6699_v27 }
 0x851   :  { %6950 = vpow2.f32 %v4259_v4 }
 0x852   :  { %6952 = vpow2.f32 %v4260_v34 }
 0x853   :  { %6954 = vpow2.f32 %v4258_v57 }
 0x854   :  { %6956 = vpow2.f32 %v4261_v14 }
 0x855   :  { %6958 = vtanh.f32 %v6698_v10 }
 0x85b   :  { %v6951_v39 = vpop.eup %6950 }
 0x85c   :  { %v6953_v63 = vpop.eup %6952  ;;  %v3207_v45 = vadd.f32 1.0, %v6951_v39 }
 0x85d   :  { %v3213_v28 = vadd.f32 1.0, %v6953_v63  ;;  %v6955_v32 = vpop.eup %6954 }
 0x85e   :  { %6960 = vrcp.f32 %v3207_v45  ;;  %v6957_v48 = vpop.eup %6956  ;;  %v3196_v27 = vadd.f32 1.0, %v6955_v32  ;;  %v9959_v32 = vld [vmem:[#allocation118_spill] sm:$0xff] }
 0x85f   :  { %6962 = vrcp.f32 %v3213_v28  ;;  %v6959_v61 = vpop.eup %6958  ;;  %v3220_v29 = vadd.f32 1.0, %v6957_v48  ;;  %v9958_v28 = vld [vmem:[#allocation117_spill] sm:$0xff]  ;;  %v9960_v48 = vld [vmem:[#allocation119_spill] sm:$0xff] }
 0x860   :  { %6964 = vtanh.f32 %v8599_v0 }
 0x861   :  { %6966 = vrcp.f32 %v3220_v29  ;;  %v9965_v29 = vld [vmem:[#allocation124_spill] sm:$0xff] }
 0x868   :  { %v6961_v4 = vpop.eup %6960 }
 0x869   :  { %v6963_v44 = vpop.eup %6962  ;;  %v3224_v34 = vmul.f32 %v6961_v4, %v6959_v61  ;;  %v9961_v61 = vld [vmem:[#allocation120_spill] sm:$0xff]  ;;  %v9962_v4 = vld [vmem:[#allocation121_spill] sm:$0xff] }
 0x86a   :  { %v3223_v37 = vmul.f32 %v6963_v44, %v8452_v55  ;;  %v6965_v57 = vpop.eup %6964  ;;  %v9957_v55 = vld [vmem:[#allocation116_spill] sm:$0xff]  ;;  %v9963_v44 = vld [vmem:[#allocation122_spill] sm:$0xff] }
 0x86b   :  { %v6967_v14 = vpop.eup %6966 }
 0x86c   :  { %v8608_v12 = vadd.f32 %v3224_v34, %v3223_v37  ;;  %v9964_v34 = vld [vmem:[#allocation123_spill] sm:$0xff]  ;;  %v9966_v37 = vld [vmem:[#allocation125_spill] sm:$0xff] }
 0x86e   :  { %6968 = vtanh.f32 %v8608_v12 }
 0x86f   :  { %6970 = vrcp.f32 %v3196_v27  ;;  %v9967_v27 = vld [vmem:[#allocation126_spill] sm:$0xff] }
 0x878   :  { %v6969_v10 = vpop.eup %6968 }
 0x879   :  { %v6971_v39 = vpop.eup %6970  ;;  %v8611_v63 = vmul.f32 %v6969_v10, %v6967_v14  ;;  %v9969_v14 = vld [vmem:[#allocation128_spill] sm:$0xff]  ;;  %v9970_v10 = vld [vmem:[#allocation129_spill] sm:$0xff] }
 0x87a   :  { %v8613_v45 = vmul.f32 %v6971_v39, %v6965_v57  ;;  %v9968_v57 = vld [vmem:[#allocation127_spill] sm:$0xff]  ;;  %v9971_v39 = vld [vmem:[#allocation130_spill] sm:$0xff] }
 0x87b   :  { %9955 = vst [vmem:[#allocation84_spill] sm:$0xff] %v8611_v63  ;;  %3300 = vmatprep.mubr.f32.mxu0 %v8611_v63  ;;  %3371 = vmatprep.mubr.f32.mxu1 %v8611_v63 }
 0x87c   :  { %9956 = vst [vmem:[#allocation85_spill] sm:$0xff] %v8613_v45  ;;  %3301 = vmatmul.mubr.f32.vlgmr.msra.gmra.mrb[12].mxu0 %v8613_v45  ;;  %3372 = vmatmul.mubr.f32.vlgmr.msra.gmra.mrb[12].mxu1 %v8613_v45 }
 0x87d   :  { %6233 = vmatpush1.bf16.msra.mxu0 %v9492_v52  ;;  %6297 = vmatpush1.bf16.msra.mxu1 %v9493_v59 }
 0x87e   :  { %3442 = vmatprep.mubr.f32.mxu0 %v8611_v63  ;;  %3513 = vmatprep.mubr.f32.mxu1 %v8611_v63  ;;  %v9972_v63 = vld [vmem:[#allocation131_spill] sm:$0xff] }
 0x87f   :  { %6235 = vmatprep.subr.bf16.mxu0 %v9494_v18  ;;  %6299 = vmatprep.subr.bf16.mxu1 %v9495_v58 }
 0x881   :  { %6237 = vmatpush1.bf16.msra.mxu0 %v9496_v31  ;;  %6301 = vmatpush1.bf16.msra.mxu1 %v9585_v17 }
 0x882   :  { %6239 = vmatprep.subr.bf16.mxu0 %v9586_v26  ;;  %6303 = vmatprep.subr.bf16.mxu1 %v9587_v16 }
 0x885   :  { %6241 = vmatpush1.bf16.msra.mxu0 %v9588_v20  ;;  %6305 = vmatpush1.bf16.msra.mxu1 %v9589_v51 }
 0x886   :  { %6243 = vmatprep.subr.bf16.mxu0 %v9678_v43  ;;  %6307 = vmatprep.subr.bf16.mxu1 %v9679_v8 }
 0x889   :  { %6245 = vmatpush1.bf16.msra.mxu0 %v9680_v13  ;;  %6309 = vmatpush1.bf16.msra.mxu1 %v9681_v38 }
 0x88a   :  { %6247 = vmatprep.subr.bf16.mxu0 %v9682_v15  ;;  %6311 = vmatprep.subr.bf16.mxu1 %v9771_v36 }
 0x88d   :  { %6249 = vmatpush1.bf16.msra.mxu0 %v9772_v33  ;;  %6313 = vmatpush1.bf16.msra.mxu1 %v9685_v24 }
 0x88e   :  { %6251 = vmatprep.subr.bf16.mxu0 %v9773_v11  ;;  %6315 = vmatprep.subr.bf16.mxu1 %v9687_v30 }
 0x891   :  { %6253 = vmatpush1.bf16.msra.mxu0 %v9688_v35  ;;  %6317 = vmatpush1.bf16.msra.mxu1 %v9689_v53 }
 0x892   :  { %6255 = vmatprep.subr.bf16.mxu0 %v9690_v41  ;;  %6319 = vmatprep.subr.bf16.mxu1 %v9691_v5 }
 0x895   :  { %6257 = vmatpush1.bf16.msra.mxu0 %v9692_v47  ;;  %6321 = vmatpush1.bf16.msra.mxu1 %v9693_v2 }
 0x896   :  { %6259 = vmatprep.subr.bf16.mxu0 %v9694_v22  ;;  %6323 = vmatprep.subr.bf16.mxu1 %v9695_v6 }
 0x899   :  { %6261 = vmatpush1.bf16.msra.mxu0 %v9608_v62  ;;  %6325 = vmatpush1.bf16.msra.mxu1 %v9696_v19 }
 0x89a   :  { %6263 = vmatprep.subr.bf16.mxu0 %v9610_v3  ;;  %6327 = vmatprep.subr.bf16.mxu1 %v9611_v25 }
 0x89d   :  { %6265 = vmatpush1.bf16.msra.mxu0 %v9612_v23  ;;  %6329 = vmatpush1.bf16.msra.mxu1 %v9613_v7 }
 0x89e   :  { %6267 = vmatprep.subr.bf16.mxu0 %v9614_v54  ;;  %6331 = vmatprep.subr.bf16.mxu1 %v9615_v42 }
 0x8a1   :  { %6269 = vmatpush1.bf16.msra.mxu0 %v9616_v50  ;;  %6333 = vmatpush1.bf16.msra.mxu1 %v9617_v49 }
 0x8a2   :  { %6271 = vmatprep.subr.bf16.mxu0 %v9957_v55  ;;  %6335 = vmatprep.subr.bf16.mxu1 %v9958_v28 }
 0x8a5   :  { %6273 = vmatpush1.bf16.msra.mxu0 %v9959_v32  ;;  %6337 = vmatpush1.bf16.msra.mxu1 %v9960_v48 }
 0x8a6   :  { %6275 = vmatprep.subr.bf16.mxu0 %v9961_v61  ;;  %6339 = vmatprep.subr.bf16.mxu1 %v9962_v4  ;;  %v9973_v4 = vld [vmem:[#allocation132_spill] sm:$0xff] }
 0x8a9   :  { %6277 = vmatpush1.bf16.msra.mxu0 %v9963_v44  ;;  %6341 = vmatpush1.bf16.msra.mxu1 %v9964_v34  ;;  %v9974_v44 = vld [vmem:[#allocation133_spill] sm:$0xff]  ;;  %v9975_v34 = vld [vmem:[#allocation134_spill] sm:$0xff] }
 0x8aa   :  { %6279 = vmatprep.subr.bf16.mxu0 %v9965_v29  ;;  %6343 = vmatprep.subr.bf16.mxu1 %v9966_v37  ;;  %v9976_v29 = vld [vmem:[#allocation135_spill] sm:$0xff]  ;;  %v9977_v37 = vld [vmem:[#allocation136_spill] sm:$0xff] }
 0x8ad   :  { %6281 = vmatpush1.bf16.msra.mxu0 %v9967_v27  ;;  %6345 = vmatpush1.bf16.msra.mxu1 %v9968_v57  ;;  %v9978_v27 = vld [vmem:[#allocation137_spill] sm:$0xff]  ;;  %v9979_v57 = vld [vmem:[#allocation138_spill] sm:$0xff] }
 0x8ae   :  { %6283 = vmatprep.subr.bf16.mxu0 %v9969_v14  ;;  %6347 = vmatprep.subr.bf16.mxu1 %v9970_v10  ;;  %v9980_v14 = vld [vmem:[#allocation139_spill] sm:$0xff]  ;;  %v9981_v10 = vld [vmem:[#allocation12_spill] sm:$0xff] }
 0x8b1   :  { %6285 = vmatpush1.bf16.msra.mxu0 %v9971_v39  ;;  %6349 = vmatpush1.bf16.msra.mxu1 %v9972_v63  ;;  %v9982_v39 = vld [vmem:[#allocation13_spill] sm:$0xff]  ;;  %v10047_v63 = vld [vmem:[#allocation140_spill] sm:$0xff] }
 0x8b2   :  { %6287 = vmatprep.subr.bf16.mxu0 %v9973_v4  ;;  %6351 = vmatprep.subr.bf16.mxu1 %v9974_v44  ;;  %v9983_v44 = vld [vmem:[#allocation14_spill] sm:$0xff]  ;;  %v9992_v4 = vld [vmem:[#allocation23_spill] sm:$0xff] }
 0x8b5   :  { %6289 = vmatpush1.bf16.msra.mxu0 %v9975_v34  ;;  %6353 = vmatpush1.bf16.msra.mxu1 %v9976_v29  ;;  %v9984_v34 = vld [vmem:[#allocation15_spill] sm:$0xff]  ;;  %v9985_v29 = vld [vmem:[#allocation16_spill] sm:$0xff] }
 0x8b6   :  { %6291 = vmatprep.subr.bf16.mxu0 %v9977_v37  ;;  %6355 = vmatprep.subr.bf16.mxu1 %v9978_v27  ;;  %v9986_v37 = vld [vmem:[#allocation17_spill] sm:$0xff]  ;;  %v9987_v27 = vld [vmem:[#allocation18_spill] sm:$0xff] }
 0x8b9   :  { %6293 = vmatpush1.bf16.msra.mxu0 %v9979_v57  ;;  %6357 = vmatpush1.bf16.msra.mxu1 %v9980_v14  ;;  %v9988_v57 = vld [vmem:[#allocation19_spill] sm:$0xff]  ;;  %v9989_v14 = vld [vmem:[#allocation20_spill] sm:$0xff] }
 0x8ba   :  { %6359 = vmatprep.subr.bf16.mxu0 %v9981_v10  ;;  %6423 = vmatprep.subr.bf16.mxu1 %v9982_v39  ;;  %v9990_v10 = vld [vmem:[#allocation21_spill] sm:$0xff]  ;;  %v9991_v39 = vld [vmem:[#allocation22_spill] sm:$0xff] }
 0x8bc   :  { %3443 = vmatmul.mubr.f32.vlgmr.msra.gmra.mrb[18].mxu0 %v8613_v45  ;;  %3514 = vmatmul.mubr.f32.vlgmr.msra.gmra.mrb[18].mxu1 %v8613_v45  ;;  %v9993_v45 = vld [vmem:[#allocation24_spill] sm:$0xff] }
 0x8bd   :  { %6361 = vmatpush1.bf16.msra.mxu0 %v9983_v44  ;;  %6425 = vmatpush1.bf16.msra.mxu1 %v9984_v34  ;;  %v9994_v44 = vld [vmem:[#allocation25_spill] sm:$0xff]  ;;  %v9995_v34 = vld [vmem:[#allocation26_spill] sm:$0xff] }
 0x8be   :  { %6363 = vmatprep.subr.bf16.mxu0 %v9985_v29  ;;  %6427 = vmatprep.subr.bf16.mxu1 %v9986_v37  ;;  %v9996_v29 = vld [vmem:[#allocation27_spill] sm:$0xff]  ;;  %v9997_v37 = vld [vmem:[#allocation28_spill] sm:$0xff] }
 0x8c1   :  { %6365 = vmatpush1.bf16.msra.mxu0 %v9987_v27  ;;  %6429 = vmatpush1.bf16.msra.mxu1 %v9988_v57  ;;  %v9998_v27 = vld [vmem:[#allocation29_spill] sm:$0xff]  ;;  %v9999_v57 = vld [vmem:[#allocation30_spill] sm:$0xff] }
 0x8c2   :  { %6367 = vmatprep.subr.bf16.mxu0 %v9989_v14  ;;  %6431 = vmatprep.subr.bf16.mxu1 %v9990_v10  ;;  %v10000_v14 = vld [vmem:[#allocation31_spill] sm:$0xff]  ;;  %v10001_v10 = vld [vmem:[#allocation32_spill] sm:$0xff] }
 0x8c5   :  { %6369 = vmatpush1.bf16.msra.mxu0 %v9991_v39  ;;  %6433 = vmatpush1.bf16.msra.mxu1 %v9992_v4  ;;  %v10002_v39 = vld [vmem:[#allocation33_spill] sm:$0xff]  ;;  %v10003_v4 = vld [vmem:[#allocation34_spill] sm:$0xff] }
 0x8c6   :  { %6371 = vmatprep.subr.bf16.mxu0 %v9993_v45  ;;  %6435 = vmatprep.subr.bf16.mxu1 %v9994_v44  ;;  %v10004_v45 = vld [vmem:[#allocation35_spill] sm:$0xff]  ;;  %v10005_v44 = vld [vmem:[#allocation36_spill] sm:$0xff] }
 0x8c9   :  { %6373 = vmatpush1.bf16.msra.mxu0 %v9995_v34  ;;  %6437 = vmatpush1.bf16.msra.mxu1 %v9996_v29  ;;  %v10006_v34 = vld [vmem:[#allocation37_spill] sm:$0xff]  ;;  %v10007_v29 = vld [vmem:[#allocation38_spill] sm:$0xff] }
 0x8ca   :  { %6375 = vmatprep.subr.bf16.mxu0 %v9997_v37  ;;  %6439 = vmatprep.subr.bf16.mxu1 %v9998_v27  ;;  %v10008_v37 = vld [vmem:[#allocation39_spill] sm:$0xff]  ;;  %v10009_v27 = vld [vmem:[#allocation40_spill] sm:$0xff] }
 0x8cd   :  { %6377 = vmatpush1.bf16.msra.mxu0 %v9999_v57  ;;  %6441 = vmatpush1.bf16.msra.mxu1 %v10000_v14  ;;  %v10010_v57 = vld [vmem:[#allocation41_spill] sm:$0xff]  ;;  %v10011_v14 = vld [vmem:[#allocation42_spill] sm:$0xff] }
 0x8ce   :  { %6379 = vmatprep.subr.bf16.mxu0 %v10001_v10  ;;  %6443 = vmatprep.subr.bf16.mxu1 %v10002_v39  ;;  %v10012_v10 = vld [vmem:[#allocation43_spill] sm:$0xff]  ;;  %v10013_v39 = vld [vmem:[#allocation44_spill] sm:$0xff] }
 0x8d1   :  { %6381 = vmatpush1.bf16.msra.mxu0 %v10003_v4  ;;  %6445 = vmatpush1.bf16.msra.mxu1 %v10004_v45  ;;  %v10014_v4 = vld [vmem:[#allocation45_spill] sm:$0xff]  ;;  %v10015_v45 = vld [vmem:[#allocation46_spill] sm:$0xff] }
 0x8d2   :  { %6383 = vmatprep.subr.bf16.mxu0 %v10005_v44  ;;  %6447 = vmatprep.subr.bf16.mxu1 %v10006_v34  ;;  %v10016_v44 = vld [vmem:[#allocation47_spill] sm:$0xff]  ;;  %v10017_v34 = vld [vmem:[#allocation48_spill] sm:$0xff] }
 0x8d5   :  { %6385 = vmatpush1.bf16.msra.mxu0 %v10007_v29  ;;  %6449 = vmatpush1.bf16.msra.mxu1 %v10008_v37  ;;  %v10018_v29 = vld [vmem:[#allocation49_spill] sm:$0xff]  ;;  %v10019_v37 = vld [vmem:[#allocation50_spill] sm:$0xff] }
 0x8d6   :  { %6387 = vmatprep.subr.bf16.mxu0 %v10009_v27  ;;  %6451 = vmatprep.subr.bf16.mxu1 %v10010_v57  ;;  %v10020_v27 = vld [vmem:[#allocation51_spill] sm:$0xff]  ;;  %v10021_v57 = vld [vmem:[#allocation52_spill] sm:$0xff] }
 0x8d9   :  { %6389 = vmatpush1.bf16.msra.mxu0 %v10011_v14  ;;  %6453 = vmatpush1.bf16.msra.mxu1 %v10012_v10  ;;  %v10022_v14 = vld [vmem:[#allocation53_spill] sm:$0xff]  ;;  %v10023_v10 = vld [vmem:[#allocation54_spill] sm:$0xff] }
 0x8da   :  { %6391 = vmatprep.subr.bf16.mxu0 %v10013_v39  ;;  %6455 = vmatprep.subr.bf16.mxu1 %v10014_v4  ;;  %v10024_v39 = vld [vmem:[#allocation55_spill] sm:$0xff]  ;;  %v10025_v4 = vld [vmem:[#allocation56_spill] sm:$0xff] }
 0x8dd   :  { %6393 = vmatpush1.bf16.msra.mxu0 %v10015_v45  ;;  %6457 = vmatpush1.bf16.msra.mxu1 %v10016_v44  ;;  %v10026_v45 = vld [vmem:[#allocation57_spill] sm:$0xff]  ;;  %v10027_v44 = vld [vmem:[#allocation58_spill] sm:$0xff] }
 0x8de   :  { %6395 = vmatprep.subr.bf16.mxu0 %v10017_v34  ;;  %6459 = vmatprep.subr.bf16.mxu1 %v10018_v29  ;;  %v10028_v34 = vld [vmem:[#allocation59_spill] sm:$0xff]  ;;  %v10029_v29 = vld [vmem:[#allocation60_spill] sm:$0xff] }
 0x8e1   :  { %6397 = vmatpush1.bf16.msra.mxu0 %v10019_v37  ;;  %6461 = vmatpush1.bf16.msra.mxu1 %v10020_v27  ;;  %v10030_v37 = vld [vmem:[#allocation61_spill] sm:$0xff]  ;;  %v10031_v27 = vld [vmem:[#allocation62_spill] sm:$0xff] }
 0x8e2   :  { %6399 = vmatprep.subr.bf16.mxu0 %v10021_v57  ;;  %6463 = vmatprep.subr.bf16.mxu1 %v10022_v14  ;;  %v10032_v57 = vld [vmem:[#allocation63_spill] sm:$0xff]  ;;  %v10033_v14 = vld [vmem:[#allocation64_spill] sm:$0xff] }
 0x8e5   :  { %6401 = vmatpush1.bf16.msra.mxu0 %v10023_v10  ;;  %6465 = vmatpush1.bf16.msra.mxu1 %v10024_v39  ;;  %v10034_v10 = vld [vmem:[#allocation65_spill] sm:$0xff]  ;;  %v10035_v39 = vld [vmem:[#allocation66_spill] sm:$0xff] }
 0x8e6   :  { %6403 = vmatprep.subr.bf16.mxu0 %v10025_v4  ;;  %6467 = vmatprep.subr.bf16.mxu1 %v10026_v45  ;;  %v10036_v4 = vld [vmem:[#allocation67_spill] sm:$0xff]  ;;  %v10037_v45 = vld [vmem:[#allocation68_spill] sm:$0xff] }
 0x8e9   :  { %6405 = vmatpush1.bf16.msra.mxu0 %v10027_v44  ;;  %6469 = vmatpush1.bf16.msra.mxu1 %v10028_v34  ;;  %v10038_v44 = vld [vmem:[#allocation69_spill] sm:$0xff]  ;;  %v10039_v34 = vld [vmem:[#allocation70_spill] sm:$0xff] }
 0x8ea   :  { %6407 = vmatprep.subr.bf16.mxu0 %v10029_v29  ;;  %6471 = vmatprep.subr.bf16.mxu1 %v10030_v37  ;;  %v10040_v29 = vld [vmem:[#allocation71_spill] sm:$0xff]  ;;  %v10041_v37 = vld [vmem:[#allocation72_spill] sm:$0xff] }
 0x8ed   :  { %6409 = vmatpush1.bf16.msra.mxu0 %v10031_v27  ;;  %6473 = vmatpush1.bf16.msra.mxu1 %v10032_v57  ;;  %v10042_v27 = vld [vmem:[#allocation73_spill] sm:$0xff]  ;;  %v10043_v57 = vld [vmem:[#allocation74_spill] sm:$0xff] }
 0x8ee   :  { %6411 = vmatprep.subr.bf16.mxu0 %v10033_v14  ;;  %6475 = vmatprep.subr.bf16.mxu1 %v10034_v10  ;;  %v10044_v14 = vld [vmem:[#allocation75_spill] sm:$0xff]  ;;  %v10045_v10 = vld [vmem:[#allocation76_spill] sm:$0xff] }
 0x8f1   :  { %6413 = vmatpush1.bf16.msra.mxu0 %v10035_v39  ;;  %6477 = vmatpush1.bf16.msra.mxu1 %v10036_v4  ;;  %v10046_v39 = vld [vmem:[#allocation77_spill] sm:$0xff] }
 0x8f2   :  { %6415 = vmatprep.subr.bf16.mxu0 %v10037_v45  ;;  %6479 = vmatprep.subr.bf16.mxu1 %v10038_v44 }
 0x8f5   :  { %6417 = vmatpush1.bf16.msra.mxu0 %v10039_v34  ;;  %6481 = vmatpush1.bf16.msra.mxu1 %v10040_v29 }
 0x8f6   :  { %6419 = vmatprep.subr.bf16.mxu0 %v10041_v37  ;;  %6483 = vmatprep.subr.bf16.mxu1 %v10042_v27 }
 0x8f9   :  { %6421 = vmatpush1.bf16.msra.mxu0 %v10043_v57  ;;  %6485 = vmatpush1.bf16.msra.mxu1 %v10044_v14 }
 0x8fa   :  { %6487 = vmatprep.subr.bf16.mxu0 %v10045_v10  ;;  %6551 = vmatprep.subr.bf16.mxu1 %v10046_v39 }
 0x94f   :  { %v3302_v4 = vpop.f32.mrb[12].mxu0  ;;  %v3373_v45 = vpop.f32.mrb[12].mxu1 }
 0x950   :  { %v6658_v44 = vadd.f32 %v3302_v4, %v10047_v63  ;;  %v3304_v61 = vpop.f32.mrb[13].mxu0  ;;  %v3375_v34 = vpop.f32.mrb[13].mxu1  ;;  %v6674_v27 = vadd.f32 %v3373_v45, %v9675_v21 }
 0x951   :  { %v6659_v29 = vadd.f32 %v3304_v61, %v9674_v56 }
 0x952   :  { %v4262_v48 = vmul.f32 -1.442695, %v6658_v44 }
 0x953   :  { %v4263_v37 = vmul.f32 -1.442695, %v6659_v29 }
 0x954   :  { %6972 = vpow2.f32 %v4262_v48 }
 0x955   :  { %6974 = vpow2.f32 %v4263_v37 }
 0x956   :  { %6976 = vtanh.f32 %v6674_v27 }
 0x95e   :  { %v6973_v57 = vpop.eup %6972 }
 0x95f   :  { %v6975_v14 = vpop.eup %6974  ;;  %v3531_v32 = vadd.f32 1.0, %v6973_v57 }
 0x960   :  { %v3537_v10 = vadd.f32 1.0, %v6975_v14  ;;  %v6977_v39 = vpop.eup %6976 }
 0x961   :  { %6978 = vrcp.f32 %v3531_v32  ;;  %v6675_v32 = vadd.f32 %v3375_v34, %v7818_v9 }
 0x962   :  { %6980 = vrcp.f32 %v3537_v10 }
 0x963   :  { %v4264_v10 = vmul.f32 -1.442695, %v6675_v32 }
 0x96b   :  { %v6979_v28 = vpop.eup %6978 }
 0x96c   :  { %v6981_v4 = vpop.eup %6980  ;;  %v3548_v63 = vmul.f32 %v6979_v28, %v6977_v39 }
 0x96d   :  { %v3547_v55 = vmul.f32 %v6981_v4, %v8599_v0 }
 0x96f   :  { %v8755_v61 = vadd.f32 %v3548_v63, %v3547_v55 }
 0x98f   :  { %v3444_v44 = vpop.f32.mrb[18].mxu0  ;;  %v3515_v48 = vpop.f32.mrb[18].mxu1 }
 0x990   :  { %v6680_v29 = vadd.f32 %v3444_v44, %v9581_v40  ;;  %v3446_v45 = vpop.f32.mrb[19].mxu0  ;;  %v3517_v37 = vpop.f32.mrb[19].mxu1  ;;  %v6696_v63 = vadd.f32 %v3515_v48, %v7824_v60 }
 0x991   :  { %v6681_v57 = vadd.f32 %v3446_v45, %v9582_v1  ;;  %v6697_v28 = vadd.f32 %v3517_v37, %v7820_v46 }
 0x992   :  { %v4265_v27 = vmul.f32 -1.442695, %v6680_v29 }
 0x993   :  { %v4266_v14 = vmul.f32 -1.442695, %v6681_v57  ;;  %v4267_v0 = vmul.f32 -1.442695, %v6697_v28 }
 0x994   :  { %6982 = vpow2.f32 %v4265_v27 }
 0x995   :  { %6984 = vpow2.f32 %v4266_v14 }
 0x996   :  { %6986 = vpow2.f32 %v4264_v10 }
 0x997   :  { %6988 = vpow2.f32 %v4267_v0 }
 0x998   :  { %6990 = vtanh.f32 %v6696_v63 }
 0x99e   :  { %v6983_v55 = vpop.eup %6982 }
 0x99f   :  { %v6985_v39 = vpop.eup %6984  ;;  %v3555_v4 = vadd.f32 1.0, %v6983_v55 }
 0x9a0   :  { %v3561_v44 = vadd.f32 1.0, %v6985_v39  ;;  %v6987_v29 = vpop.eup %6986 }
 0x9a1   :  { %6992 = vrcp.f32 %v3555_v4  ;;  %v6989_v45 = vpop.eup %6988  ;;  %v3544_v28 = vadd.f32 1.0, %v6987_v29 }
 0x9a2   :  { %6994 = vrcp.f32 %v3561_v44  ;;  %v6991_v57 = vpop.eup %6990  ;;  %v3568_v37 = vadd.f32 1.0, %v6989_v45 }
 0x9a3   :  { %6996 = vtanh.f32 %v8755_v61 }
 0x9a4   :  { %6998 = vrcp.f32 %v3568_v37 }
 0x9ab   :  { %v6993_v27 = vpop.eup %6992 }
 0x9ac   :  { %v6995_v34 = vpop.eup %6994  ;;  %v3572_v14 = vmul.f32 %v6993_v27, %v6991_v57 }
 0x9ad   :  { %v3571_v32 = vmul.f32 %v6995_v34, %v8608_v12  ;;  %v6997_v10 = vpop.eup %6996 }
 0x9ae   :  { %v6999_v0 = vpop.eup %6998 }
 0x9af   :  { %v8764_v48 = vadd.f32 %v3572_v14, %v3571_v32 }
 0x9b1   :  { %7000 = vtanh.f32 %v8764_v48 }
 0x9b2   :  { %7002 = vrcp.f32 %v3544_v28 }
 0x9bb   :  { %v7001_v63 = vpop.eup %7000 }
 0x9bc   :  { %v7003_v55 = vpop.eup %7002  ;;  %v8767_v39 = vmul.f32 %v7001_v63, %v6999_v0 }
 0x9bd   :  { %v8769_v4 = vmul.f32 %v7003_v55, %v6997_v10 }
 0x9be   :  { %3648 = vmatprep.mubr.f32.mxu0 %v8767_v39  ;;  %3719 = vmatprep.mubr.f32.mxu1 %v8767_v39 }
 0x9bf   :  { %3649 = vmatmul.mubr.f32.vlgmr.msra.gmra.mrb[14].mxu0 %v8769_v4  ;;  %3720 = vmatmul.mubr.f32.vlgmr.msra.gmra.mrb[14].mxu1 %v8769_v4 }
 0x9c0   :  { %6489 = vmatpush1.bf16.msra.mxu0 %v9492_v52  ;;  %6553 = vmatpush1.bf16.msra.mxu1 %v9493_v59  ;;  %v10048_v52 = vld [vmem:[#allocation116_spill] sm:$0xff]  ;;  %v10049_v59 = vld [vmem:[#allocation117_spill] sm:$0xff] }
 0x9c1   :  { %3790 = vmatprep.mubr.f32.mxu0 %v8767_v39  ;;  %3861 = vmatprep.mubr.f32.mxu1 %v8767_v39 }
 0x9c2   :  { %6491 = vmatprep.subr.bf16.mxu0 %v9494_v18  ;;  %6555 = vmatprep.subr.bf16.mxu1 %v9495_v58  ;;  %v10050_v18 = vld [vmem:[#allocation118_spill] sm:$0xff]  ;;  %v10051_v58 = vld [vmem:[#allocation119_spill] sm:$0xff] }
 0x9c4   :  { %6493 = vmatpush1.bf16.msra.mxu0 %v9496_v31  ;;  %6557 = vmatpush1.bf16.msra.mxu1 %v9585_v17  ;;  %v10052_v31 = vld [vmem:[#allocation120_spill] sm:$0xff]  ;;  %v10054_v17 = vld [vmem:[#allocation122_spill] sm:$0xff] }
 0x9c5   :  { %6495 = vmatprep.subr.bf16.mxu0 %v9586_v26  ;;  %6559 = vmatprep.subr.bf16.mxu1 %v9587_v16  ;;  %v10055_v26 = vld [vmem:[#allocation123_spill] sm:$0xff]  ;;  %v10056_v16 = vld [vmem:[#allocation124_spill] sm:$0xff] }
 0x9c8   :  { %6497 = vmatpush1.bf16.msra.mxu0 %v9588_v20  ;;  %6561 = vmatpush1.bf16.msra.mxu1 %v9589_v51  ;;  %v10057_v20 = vld [vmem:[#allocation125_spill] sm:$0xff]  ;;  %v10058_v51 = vld [vmem:[#allocation126_spill] sm:$0xff] }
 0x9c9   :  { %6499 = vmatprep.subr.bf16.mxu0 %v9678_v43  ;;  %6563 = vmatprep.subr.bf16.mxu1 %v9679_v8  ;;  %v10068_v43 = vld [vmem:[#allocation136_spill] sm:$0xff]  ;;  %v10069_v8 = vld [vmem:[#allocation137_spill] sm:$0xff] }
 0x9cc   :  { %6501 = vmatpush1.bf16.msra.mxu0 %v9680_v13  ;;  %6565 = vmatpush1.bf16.msra.mxu1 %v9681_v38  ;;  %v10070_v13 = vld [vmem:[#allocation138_spill] sm:$0xff]  ;;  %v10071_v38 = vld [vmem:[#allocation139_spill] sm:$0xff] }
 0x9cd   :  { %6503 = vmatprep.subr.bf16.mxu0 %v9682_v15  ;;  %6567 = vmatprep.subr.bf16.mxu1 %v9771_v36 }
 0x9d0   :  { %6505 = vmatpush1.bf16.msra.mxu0 %v9772_v33  ;;  %6569 = vmatpush1.bf16.msra.mxu1 %v9685_v24 }
 0x9d1   :  { %6507 = vmatprep.subr.bf16.mxu0 %v9773_v11  ;;  %6571 = vmatprep.subr.bf16.mxu1 %v9687_v30 }
 0x9d4   :  { %6509 = vmatpush1.bf16.msra.mxu0 %v9688_v35  ;;  %6573 = vmatpush1.bf16.msra.mxu1 %v9689_v53 }
 0x9d5   :  { %6511 = vmatprep.subr.bf16.mxu0 %v9690_v41  ;;  %6575 = vmatprep.subr.bf16.mxu1 %v9691_v5 }
 0x9d8   :  { %6513 = vmatpush1.bf16.msra.mxu0 %v9692_v47  ;;  %6577 = vmatpush1.bf16.msra.mxu1 %v9693_v2  ;;  %v10067_v2 = vld [vmem:[#allocation135_spill] sm:$0xff] }
 0x9d9   :  { %6515 = vmatprep.subr.bf16.mxu0 %v9694_v22  ;;  %6579 = vmatprep.subr.bf16.mxu1 %v9695_v6  ;;  %v10072_v6 = vld [vmem:[#allocation140_spill] sm:$0xff] }
 0x9dc   :  { %6517 = vmatpush1.bf16.msra.mxu0 %v9608_v62  ;;  %6581 = vmatpush1.bf16.msra.mxu1 %v9696_v19  ;;  %v10065_v62 = vld [vmem:[#allocation133_spill] sm:$0xff] }
 0x9dd   :  { %6519 = vmatprep.subr.bf16.mxu0 %v9610_v3  ;;  %6583 = vmatprep.subr.bf16.mxu1 %v9611_v25  ;;  %v10053_v25 = vld [vmem:[#allocation121_spill] sm:$0xff]  ;;  %v10066_v3 = vld [vmem:[#allocation134_spill] sm:$0xff] }
 0x9e0   :  { %6521 = vmatpush1.bf16.msra.mxu0 %v9612_v23  ;;  %6585 = vmatpush1.bf16.msra.mxu1 %v9613_v7  ;;  %v10059_v23 = vld [vmem:[#allocation127_spill] sm:$0xff]  ;;  %v10060_v7 = vld [vmem:[#allocation128_spill] sm:$0xff] }
 0x9e1   :  { %6523 = vmatprep.subr.bf16.mxu0 %v9614_v54  ;;  %6587 = vmatprep.subr.bf16.mxu1 %v9615_v42  ;;  %v10061_v54 = vld [vmem:[#allocation129_spill] sm:$0xff]  ;;  %v10062_v42 = vld [vmem:[#allocation130_spill] sm:$0xff] }
 0x9e4   :  { %6525 = vmatpush1.bf16.msra.mxu0 %v9616_v50  ;;  %6589 = vmatpush1.bf16.msra.mxu1 %v9617_v49  ;;  %v10063_v50 = vld [vmem:[#allocation131_spill] sm:$0xff]  ;;  %v10064_v49 = vld [vmem:[#allocation132_spill] sm:$0xff] }
 0x9e5   :  { %6527 = vmatprep.subr.bf16.mxu0 %v10048_v52  ;;  %6591 = vmatprep.subr.bf16.mxu1 %v10049_v59 }
 0x9e8   :  { %6529 = vmatpush1.bf16.msra.mxu0 %v10050_v18  ;;  %6593 = vmatpush1.bf16.msra.mxu1 %v10051_v58 }
 0x9e9   :  { %6531 = vmatprep.subr.bf16.mxu0 %v10052_v31  ;;  %6595 = vmatprep.subr.bf16.mxu1 %v10053_v25 }
 0x9ec   :  { %6533 = vmatpush1.bf16.msra.mxu0 %v10054_v17  ;;  %6597 = vmatpush1.bf16.msra.mxu1 %v10055_v26 }
 0x9ed   :  { %6535 = vmatprep.subr.bf16.mxu0 %v10056_v16  ;;  %6599 = vmatprep.subr.bf16.mxu1 %v10057_v20 }
 0x9f0   :  { %6537 = vmatpush1.bf16.msra.mxu0 %v10058_v51  ;;  %6601 = vmatpush1.bf16.msra.mxu1 %v10059_v23 }
 0x9f1   :  { %6539 = vmatprep.subr.bf16.mxu0 %v10060_v7  ;;  %6603 = vmatprep.subr.bf16.mxu1 %v10061_v54 }
 0x9f4   :  { %6541 = vmatpush1.bf16.msra.mxu0 %v10062_v42  ;;  %6605 = vmatpush1.bf16.msra.mxu1 %v10063_v50 }
 0x9f5   :  { %6543 = vmatprep.subr.bf16.mxu0 %v10064_v49  ;;  %6607 = vmatprep.subr.bf16.mxu1 %v10065_v62 }
 0x9f8   :  { %6545 = vmatpush1.bf16.msra.mxu0 %v10066_v3  ;;  %6609 = vmatpush1.bf16.msra.mxu1 %v10067_v2 }
 0x9f9   :  { %6547 = vmatprep.subr.bf16.mxu0 %v10068_v43  ;;  %6611 = vmatprep.subr.bf16.mxu1 %v10069_v8 }
 0x9fc   :  { %6549 = vmatpush1.bf16.msra.mxu0 %v10070_v13  ;;  %6613 = vmatpush1.bf16.msra.mxu1 %v10071_v38 }
 0x9ff   :  { %3791 = vmatmul.mubr.f32.vlgmr.msra.gmra.mrb[16].mxu0 %v8769_v4  ;;  %3862 = vmatmul.mubr.f32.vlgmr.msra.gmra.mrb[16].mxu1 %v8769_v4 }
 0xa92   :  { %v3650_v15 = vpop.f32.mrb[14].mxu0  ;;  %v3721_v22 = vpop.f32.mrb[14].mxu1 }
 0xa93   :  { %v6660_v24 = vadd.f32 %v3650_v15, %v10072_v6  ;;  %v3652_v19 = vpop.f32.mrb[15].mxu0  ;;  %v3723_v30 = vpop.f32.mrb[15].mxu1  ;;  %v6676_v36 = vadd.f32 %v3721_v22, %v9675_v21 }
 0xa94   :  { %v6661_v35 = vadd.f32 %v3652_v19, %v9674_v56  ;;  %v6677_v5 = vadd.f32 %v3723_v30, %v7818_v9 }
 0xa95   :  { %v4268_v53 = vmul.f32 -1.442695, %v6660_v24 }
 0xa96   :  { %v4269_v41 = vmul.f32 -1.442695, %v6661_v35  ;;  %v4270_v47 = vmul.f32 -1.442695, %v6677_v5 }
 0xa97   :  { %7004 = vpow2.f32 %v4268_v53 }
 0xa98   :  { %7006 = vpow2.f32 %v4269_v41 }
 0xa99   :  { %7008 = vpow2.f32 %v4270_v47 }
 0xa9a   :  { %7010 = vtanh.f32 %v6676_v36 }
 0xaa1   :  { %v7005_v33 = vpop.eup %7004 }
 0xaa2   :  { %v7007_v11 = vpop.eup %7006  ;;  %v3879_v12 = vadd.f32 1.0, %v7005_v33 }
 0xaa3   :  { %v3885_v44 = vadd.f32 1.0, %v7007_v11  ;;  %v7009_v29 = vpop.eup %7008  ;;  %v10073_v11 = vld [vmem:[#allocation81_spill] sm:$0xff] }
 0xaa4   :  { %7012 = vrcp.f32 %v3879_v12  ;;  %v7011_v45 = vpop.eup %7010  ;;  %v3892_v34 = vadd.f32 1.0, %v7009_v29 }
 0xaa5   :  { %7014 = vrcp.f32 %v3885_v44  ;;  %v10074_v44 = vld [vmem:[#allocation84_spill] sm:$0xff] }
 0xaa6   :  { %7016 = vrcp.f32 %v3892_v34 }
 0xaae   :  { %v7013_v56 = vpop.eup %7012 }
 0xaaf   :  { %v7015_v57 = vpop.eup %7014  ;;  %v3896_v27 = vmul.f32 %v7013_v56, %v7011_v45  ;;  %v10075_v45 = vld [vmem:[#allocation146_spill] sm:$0xff] }
 0xab0   :  { %v3895_v14 = vmul.f32 %v7015_v57, %v8755_v61  ;;  %v7017_v21 = vpop.eup %7016 }
 0xab2   :  { %v3897_v9 = vadd.f32 %v3896_v27, %v3895_v14  ;;  %v10076_v27 = vld [vmem:[#allocation143_spill] sm:$0xff]  ;;  %v10077_v14 = vld [vmem:[#allocation144_spill] sm:$0xff] }
 0xab4   :  { %7018 = vtanh.f32 %v3897_v9 }
 0xabe   :  { %v7019_v37 = vpop.eup %7018 }
 0xabf   :  { %v8846_v32 = vmul.f32 %v7019_v37, %v7017_v21 }
 0xac1   :  { %v3927_v42 = vrot.slane %v8846_v32, 2  ;;  %v3929_v50 = vrot.slane %v8846_v32, 3  ;;  %v3954_v13 = vrot.slane %v8846_v32, 4 }
 0xad2   :  { %v3792_v28 = vpop.f32.mrb[16].mxu0  ;;  %v3863_v10 = vpop.f32.mrb[16].mxu1 }
 0xad3   :  { %v6678_v0 = vadd.f32 %v3792_v28, %v9581_v40  ;;  %v3794_v63 = vpop.f32.mrb[17].mxu0  ;;  %v3865_v55 = vpop.f32.mrb[17].mxu1  ;;  %v6694_v31 = vadd.f32 %v3863_v10, %v7824_v60  ;;  %v3925_v60 = vrot.slane %v8846_v32, 1  ;;  %v10078_v28 = vld [vmem:[#allocation79_spill] sm:$0xff] }
 0xad4   :  { %v6679_v52 = vadd.f32 %v3794_v63, %v9582_v1  ;;  %v6695_v61 = vadd.f32 %v3865_v55, %v7820_v46  ;;  %v10079_v63 = vld [vmem:[#allocation85_spill] sm:$0xff] }
 0xad5   :  { %v4271_v59 = vmul.f32 -1.442695, %v6678_v0  ;;  %v3941_v49 = vsel %vm3940_vm0, %v8846_v32, %v3925_v60  ;;  %v3956_v62 = vsel %vm3940_vm0, %v3925_v60, %v3927_v42  ;;  %v4096_v60 = vld [vmem:[%s9023_s4 + $0x80] sm:$0xff] }
 0xad6   :  { %v4272_v18 = vmul.f32 -1.442695, %v6679_v52  ;;  %v4273_v58 = vmul.f32 -1.442695, %v6695_v61  ;;  %v3943_v8 = vsel %vm3942_vm1, %v3941_v49, %v3927_v42  ;;  %v10080_v52 = vld [vmem:[#allocation80_spill] sm:$0xff] }
 0xad7   :  { %7020 = vpow2.f32 %v4271_v59  ;;  %v3945_v6 = vsel %vm3944_vm2, %v3943_v8, %v3929_v50  ;;  %v4097_v42 = vld [vmem:[%s9023_s4 + $0x88] sm:$0xff] }
 0xad8   :  { %7022 = vpow2.f32 %v4272_v18  ;;  %v6614_v49 = vpack.c.bf16 %v4097_v42, %v4096_v60 }
 0xad9   :  { %7024 = vpow2.f32 %v4273_v58  ;;  %v10081_v58 = vld [vmem:[#allocation83_spill] sm:$0xff] }
 0xada   :  { %7026 = vtanh.f32 %v6694_v31  ;;  %6615 = vmatprep.subr.bf16.mxu0 %v6614_v49 }
 0xae1   :  { %v7021_v25 = vpop.eup %7020 }
 0xae2   :  { %v7023_v17 = vpop.eup %7022  ;;  %v3903_v26 = vadd.f32 1.0, %v7021_v25  ;;  %v10082_v25 = vld [vmem:[#allocation82_spill] sm:$0xff] }
 0xae3   :  { %v3909_v16 = vadd.f32 1.0, %v7023_v17  ;;  %v7025_v40 = vpop.eup %7024 }
 0xae4   :  { %7028 = vrcp.f32 %v3903_v26  ;;  %v7027_v20 = vpop.eup %7026  ;;  %v3916_v7 = vadd.f32 1.0, %v7025_v40 }
 0xae5   :  { %7030 = vrcp.f32 %v3909_v16 }
 0xae6   :  { %7032 = vrcp.f32 %v3916_v7 }
 0xaee   :  { %v7029_v1 = vpop.eup %7028 }
 0xaef   :  { %v7031_v51 = vpop.eup %7030  ;;  %v3920_v23 = vmul.f32 %v7029_v1, %v7027_v20  ;;  %v10083_v20 = vld [vmem:[#allocation145_spill] sm:$0xff] }
 0xaf0   :  { %v3919_v54 = vmul.f32 %v7031_v51, %v8764_v48  ;;  %v7033_v3 = vpop.eup %7032  ;;  %v3957_v48 = vsel %vm3942_vm1, %v3956_v62, %v3929_v50  ;;  %v4080_v50 = vld [vmem:[%s9023_s4] sm:$0xff]  ;;  %v4081_v62 = vld [vmem:[%s9023_s4 + $0x8] sm:$0xff] }
 0xaf1   :  { %v3958_v24 = vsel %vm3944_vm2, %v3957_v48, %v3954_v13  ;;  %v6616_v8 = vpack.c.bf16 %v4081_v62, %v4080_v50  ;;  %v4082_v13 = vld [vmem:[%s9023_s4 + $0x10] sm:$0xff] }
 0xaf2   :  { %v3921_v46 = vadd.f32 %v3920_v23, %v3919_v54  ;;  %v10084_v23 = vld [vmem:[#allocation78_spill] sm:$0xff] }
 0xaf3   :  { %6617 = vmatpush3.bf16.msra.mxu0 %v6616_v8 }
 0xaf4   :  { %7034 = vtanh.f32 %v3921_v46 }
 0xafe   :  { %v7035_v2 = vpop.eup %7034 }
 0xaff   :  { %v8857_v43 = vmul.f32 %v7035_v2, %v7033_v3  ;;  %v4098_v3 = vld [vmem:[%s9023_s4 + $0x90] sm:$0xff]  ;;  %v4099_v2 = vld [vmem:[%s9023_s4 + $0x98] sm:$0xff] }
 0xb00   :  { %v6618_v48 = vpack.c.bf16 %v4099_v2, %v4098_v3 }
 0xb01   :  { %v3932_v38 = vrot.slane %v8857_v43, 4  ;;  %v3934_v15 = vrot.slane %v8857_v43, 5  ;;  %v3936_v22 = vrot.slane %v8857_v43, 6  ;;  %v3938_v19 = vrot.slane %v8857_v43, 7 }
 0xb02   :  { %6619 = vmatprep.subr.bf16.mxu0 %v6618_v48 }
 0xb03   :  { %v3947_v30 = vsel %vm3946_vm3, %v3945_v6, %v3932_v38  ;;  %v3959_v35 = vsel %vm3946_vm3, %v3958_v24, %v3934_v15  ;;  %v4083_v38 = vld [vmem:[%s9023_s4 + $0x18] sm:$0xff] }
 0xb04   :  { %v3949_v53 = vsel %vm3948_vm4, %v3947_v30, %v3934_v15  ;;  %v3960_v41 = vsel %vm3948_vm4, %v3959_v35, %v3936_v22  ;;  %v4100_v15 = vld [vmem:[%s9023_s4 + $0xa0] sm:$0xff]  ;;  %v6620_v6 = vpack.c.bf16 %v4083_v38, %v4082_v13  ;;  %v4085_v30 = vld [vmem:[%s9023_s4 + $0x28] sm:$0xff]  ;;  %v4102_v35 = vld [vmem:[%s9023_s4 + $0xb0] sm:$0xff] }
 0xb05   :  { %v3951_v5 = vsel %vm3950_vm5, %v3949_v53, %v3936_v22  ;;  %v3961_v47 = vsel %vm3950_vm5, %v3960_v41, %v3938_v19  ;;  %v4101_v22 = vld [vmem:[%s9023_s4 + $0xa8] sm:$0xff]  ;;  %v4103_v53 = vld [vmem:[%s9023_s4 + $0xb8] sm:$0xff] }
 0xb06   :  { %v3953_v36 = vsel %vm3952_vm6, %v3951_v5, %v3938_v19  ;;  %v3962_v33 = vsel %vm3952_vm6, %v3961_v47, %v8857_v43  ;;  %v6622_v24 = vpack.c.bf16 %v4101_v22, %v4100_v15  ;;  %v4084_v19 = vld [vmem:[%s9023_s4 + $0x20] sm:$0xff]  ;;  %6621 = vmatpush3.bf16.msra.mxu0 %v6620_v6  ;;  %v6626_v5 = vpack.c.bf16 %v4103_v53, %v4102_v35  ;;  %v4086_v47 = vld [vmem:[%s9023_s4 + $0x30] sm:$0xff] }
 0xb07   :  { %v3965_v12 = vmul.f32 %v3953_v36, %v10073_v11  ;;  %v3973_v29 = vmul.f32 %v3962_v33, %v10074_v44  ;;  %v3963_v56 = vmul.f32 %v3953_v36, %v10075_v45  ;;  %v3971_v57 = vmul.f32 %v3962_v33, %v8857_v43 }
 0xb08   :  { %v3966_v34 = vmul.f32 %v3953_v36, %v10076_v27  ;;  %v3974_v9 = vmul.f32 %v3962_v33, %v10077_v14  ;;  %v3964_v10 = vmul.f32 %v3953_v36, %v10078_v28  ;;  %v3972_v0 = vmul.f32 %v3962_v33, %v8767_v39  ;;  %6623 = vmatprep.subr.bf16.mxu0 %v6622_v24 }
 0xb09   :  { %v3981_v21 = vadd.f32 %v3973_v29, %v3965_v12  ;;  %v3979_v37 = vadd.f32 %v3971_v57, %v3963_v56  ;;  %v3968_v55 = vmul.f32 %v3953_v36, %v10079_v63  ;;  %v3976_v59 = vmul.f32 %v3962_v33, %v10080_v52  ;;  %v4105_v12 = vld [vmem:[%s9023_s4 + $0xc8] sm:$0xff]  ;;  %v4088_v57 = vld [vmem:[%s9023_s4 + $0x40] sm:$0xff] }
 0xb0a   :  { %v3982_v18 = vadd.f32 %v3974_v9, %v3966_v34  ;;  %v3980_v61 = vadd.f32 %v3972_v0, %v3964_v10  ;;  %v3967_v31 = vmul.f32 %v3953_v36, %v10081_v58  ;;  %v3975_v17 = vmul.f32 %v3962_v33, %v10082_v25  ;;  %v4089_v34 = vld [vmem:[%s9023_s4 + $0x48] sm:$0xff]  ;;  %v4106_v9 = vld [vmem:[%s9023_s4 + $0xd0] sm:$0xff] }
 0xb0b   :  { %3991 = vadd.xlane.f32.xlu1 %v3981_v21  ;;  %3987 = vadd.xlane.f32.xlu0 %v3979_v37  ;;  %v3984_v26 = vadd.f32 %v3976_v59, %v3968_v55  ;;  %v3970_v16 = vmul.f32 %v3953_v36, %v8846_v32  ;;  %v3978_v1 = vmul.f32 %v3962_v33, %v10083_v20  ;;  %v4107_v21 = vld [vmem:[%s9023_s4 + $0xd8] sm:$0xff]  ;;  %v4090_v0 = vld [vmem:[%s9023_s4 + $0x50] sm:$0xff]  ;;  %v4108_v59 = vld [vmem:[%s9023_s4 + $0xe0] sm:$0xff] }
 0xb0c   :  { %v3983_v40 = vadd.f32 %v3975_v17, %v3967_v31  ;;  %v3969_v51 = vmul.f32 %v3953_v36, %v8769_v4  ;;  %v3977_v7 = vmul.f32 %v3962_v33, %v10084_v23  ;;  %v6624_v41 = vpack.c.bf16 %v4085_v30, %v4084_v19  ;;  %v4087_v36 = vld [vmem:[%s9023_s4 + $0x38] sm:$0xff]  ;;  %v4104_v33 = vld [vmem:[%s9023_s4 + $0xc0] sm:$0xff] }
 0xb0d   :  { %v3986_v54 = vadd.f32 %v3978_v1, %v3970_v16  ;;  %v6628_v29 = vpack.c.bf16 %v4087_v36, %v4086_v47  ;;  %v6630_v56 = vpack.c.bf16 %v4105_v12, %v4104_v33  ;;  %v6632_v37 = vpack.c.bf16 %v4089_v34, %v4088_v57  ;;  %v4091_v55 = vld [vmem:[%s9023_s4 + $0x58] sm:$0xff]  ;;  %v4092_v17 = vld [vmem:[%s9023_s4 + $0x60] sm:$0xff]  ;;  %v4110_v16 = vld [vmem:[%s9023_s4 + $0xf0] sm:$0xff] }
 0xb0e   :  { %v3985_v46 = vadd.f32 %v3977_v7, %v3969_v51  ;;  %6625 = vmatpush3.bf16.msra.mxu0 %v6624_v41  ;;  %v6634_v10 = vpack.c.bf16 %v4107_v21, %v4106_v9  ;;  %v4094_v7 = vld [vmem:[%s9023_s4 + $0x70] sm:$0xff] }
 0xb0f   :  { %3993 = vadd.xlane.f32.xlu1 %v3982_v18  ;;  %3989 = vadd.xlane.f32.xlu0 %v3980_v61  ;;  %v4109_v18 = vld [vmem:[%s9023_s4 + $0xe8] sm:$0xff]  ;;  %v6636_v61 = vpack.c.bf16 %v4091_v55, %v4090_v0 }
 0xb10   :  { %6627 = vmatprep.subr.bf16.mxu0 %v6626_v5  ;;  %v6638_v31 = vpack.c.bf16 %v4109_v18, %v4108_v59 }
 0xb12   :  { %6629 = vmatpush3.bf16.msra.mxu0 %v6628_v29 }
 0xb13   :  { %3997 = vadd.xlane.f32.xlu1 %v3984_v26  ;;  %3995 = vadd.xlane.f32.xlu0 %v3983_v40  ;;  %v4093_v26 = vld [vmem:[%s9023_s4 + $0x68] sm:$0xff]  ;;  %v4111_v40 = vld [vmem:[%s9023_s4 + $0xf8] sm:$0xff] }
 0xb14   :  { %6631 = vmatprep.subr.bf16.mxu0 %v6630_v56  ;;  %v6640_v1 = vpack.c.bf16 %v4093_v26, %v4092_v17  ;;  %v6642_v51 = vpack.c.bf16 %v4111_v40, %v4110_v16 }
 0xb16   :  { %6633 = vmatpush3.bf16.msra.mxu0 %v6632_v37 }
 0xb17   :  { %4001 = vadd.xlane.f32.xlu1 %v3986_v54  ;;  %3999 = vadd.xlane.f32.xlu0 %v3985_v46  ;;  %v4095_v54 = vld [vmem:[%s9023_s4 + $0x78] sm:$0xff]  ;;  %s7131_s4 = smov [#allocation8]  }
 0xb18   :  { %6635 = vmatprep.subr.bf16.mxu0 %v6634_v10  ;;  %v6644_v46 = vpack.c.bf16 %v4095_v54, %v4094_v7  ;;  %s4214_s19 = sshll.u32 %s7131_s4, 4  ;;  %s4215_s19 = int_to_ptr.vmem [resolvable:$true] %s4214_s19 }
 0xb19   :  { %s7098_s20 = scalar_lea.vmem %s4215_s19, 128  ;;  %p7103_p3 = scmp.lt.s32.totalorder %s4215_s19, %s4215_s19 }
 0xb1a   :  { %6637 = vmatpush3.bf16.msra.mxu0 %v6636_v61  ;;  %p7099_p2 = scmp.ne.s32.totalorder %s4215_s19, %s7098_s20  ;;  %p7104_p4 = scmp.lt.s32.totalorder %s7098_s20, %s7098_s20 }
 0xb1b   :  { %6639 = vmatprep.subr.bf16.mxu0 %v6638_v31 }
 0xb1c   :  { %p7105_p5 = por %p7104_p4, %p7103_p3 }
 0xb1e   :  { %6641 = vmatpush3.bf16.msra.mxu0 %v6640_v1  ;;  %p7106_p6 = pnand %p7105_p5, %p7099_p2 }
 0xb1f   :  { %6643 = vmatprep.subr.bf16.mxu0 %v6642_v51 }
 0xb22   :  { %6645 = vmatpush3.bf16.msra.mxu0 %v6644_v46 }
 0xb98   :  { %v3992_v60 = vpop.xlane.xlu1 %3991  ;;  %v3988_v42 = vpop.xlane.xlu0 %3987 }
 0xb9c   :  { %v3994_v50 = vpop.xlane.xlu1 %3993  ;;  %v3990_v49 = vpop.xlane.xlu0 %3989 }
 0xba0   :  { %v3998_v62 = vpop.xlane.xlu1 %3997  ;;  %v3996_v3 = vpop.xlane.xlu0 %3995 }
 0xba1   :  { %v4004_v2 = vmax.f32 %v3990_v49, %v3998_v62  ;;  %v4003_v8 = vmax.f32 %v3988_v42, %v3996_v3 }
 0xba3   :  { %v4007_v22 = vmax.f32 %v4003_v8, %v4004_v2 }
 0xba4   :  { %v4002_v48 = vpop.xlane.xlu1 %4001  ;;  %v4000_v13 = vpop.xlane.xlu0 %3999 }
 0xba5   :  { %v4006_v38 = vmax.f32 %v3994_v50, %v4002_v48  ;;  %v4005_v15 = vmax.f32 %v3992_v60, %v4000_v13 }
 0xba7   :  { %v4008_v6 = vmax.f32 %v4005_v15, %v4006_v38 }
 0xba9   :  { %v4009_v24 = vmax.f32 %v4007_v22, %v4008_v6 }
 0xbab   :  { %v4010_v19 = vsub.f32 %v3988_v42, %v4009_v24  ;;  %v4011_v30 = vsub.f32 %v3990_v49, %v4009_v24  ;;  %v4012_v35 = vsub.f32 %v3992_v60, %v4009_v24  ;;  %v4013_v53 = vsub.f32 %v3994_v50, %v4009_v24 }
 0xbac   :  { %v4014_v47 = vsub.f32 %v3996_v3, %v4009_v24  ;;  %v4015_v33 = vsub.f32 %v3998_v62, %v4009_v24  ;;  %v4016_v29 = vsub.f32 %v4000_v13, %v4009_v24  ;;  %v4017_v57 = vsub.f32 %v4002_v48, %v4009_v24 }
 0xbad   :  { %v4018_v41 = vmul.f32 1.442695, %v4010_v19  ;;  %v4020_v5 = vmul.f32 1.442695, %v4011_v30  ;;  %v4022_v36 = vmul.f32 1.442695, %v4012_v35 }
 0xbae   :  { %v4024_v12 = vmul.f32 1.442695, %v4013_v53  ;;  %v4026_v56 = vmul.f32 1.442695, %v4014_v47  ;;  %v4028_v34 = vmul.f32 1.442695, %v4015_v33 }
 0xbaf   :  { %7036 = vpow2.f32 %v4018_v41  ;;  %v4030_v9 = vmul.f32 1.442695, %v4016_v29  ;;  %v4032_v21 = vmul.f32 1.442695, %v4017_v57 }
 0xbb0   :  { %7038 = vpow2.f32 %v4020_v5 }
 0xbb1   :  { %7040 = vpow2.f32 %v4022_v36 }
 0xbb2   :  { %7042 = vpow2.f32 %v4024_v12 }
 0xbb3   :  { %7044 = vpow2.f32 %v4026_v56 }
 0xbb4   :  { %7046 = vpow2.f32 %v4028_v34 }
 0xbb5   :  { %7048 = vpow2.f32 %v4030_v9 }
 0xbb6   :  { %7050 = vpow2.f32 %v4032_v21 }
 0xbb9   :  { %v7037_v37 = vpop.eup %7036 }
 0xbba   :  { %v7039_v10 = vpop.eup %7038 }
 0xbbb   :  { %v4034_v0 = vadd.f32 %v7039_v10, %v7037_v37  ;;  %v7041_v55 = vpop.eup %7040 }
 0xbbc   :  { %v7043_v18 = vpop.eup %7042 }
 0xbbd   :  { %v4035_v59 = vadd.f32 %v7041_v55, %v4034_v0  ;;  %v7045_v31 = vpop.eup %7044 }
 0xbbe   :  { %v7047_v26 = vpop.eup %7046 }
 0xbbf   :  { %v4036_v61 = vadd.f32 %v7043_v18, %v4035_v59  ;;  %v7049_v40 = vpop.eup %7048 }
 0xbc0   :  { %v7051_v51 = vpop.eup %7050 }
 0xbc1   :  { %v4037_v17 = vadd.f32 %v7045_v31, %v4036_v61 }
 0xbc3   :  { %v4038_v16 = vadd.f32 %v7047_v26, %v4037_v17 }
 0xbc5   :  { %v4039_v1 = vadd.f32 %v7049_v40, %v4038_v16 }
 0xbc7   :  { %v4040_v7 = vadd.f32 %v7051_v51, %v4039_v1 }
 0xbc9   :  { %7052 = vrcp.f32 %v4040_v7 }
 0xbd3   :  { %v7053_v54 = vpop.eup %7052 }
 0xbd4   :  { %v4042_v46 = vmul.f32 %v7053_v54, %v7037_v37  ;;  %v4043_v60 = vmul.f32 %v7053_v54, %v7039_v10  ;;  %v4044_v42 = vmul.f32 %v7053_v54, %v7041_v55  ;;  %v4045_v50 = vmul.f32 %v7053_v54, %v7043_v18 }
 0xbd5   :  { %v4046_v3 = vmul.f32 %v7053_v54, %v7045_v31  ;;  %v4047_v38 = vmul.f32 %v7053_v54, %v7047_v26  ;;  %v4048_v24 = vmul.f32 %v7053_v54, %v7049_v40  ;;  %v4049_v35 = vmul.f32 %v7053_v54, %v7051_v51 }
 0xbd6   :  { %v4065_v49 = vmul.f32 %v4042_v46, %v8857_v43  ;;  %v4066_v62 = vmul.f32 %v4043_v60, %v8767_v39  ;;  %v4067_v2 = vmul.f32 %v4044_v42, %v10074_v44  ;;  %v4050_v48 = vmul.f32 %v4042_v46, %v10075_v45 }
 0xbd7   :  { %v4051_v13 = vmul.f32 %v4043_v60, %v10078_v28  ;;  %v4068_v15 = vmul.f32 %v4045_v50, %v10077_v14  ;;  %v4052_v39 = vmul.f32 %v4044_v42, %v10073_v11  ;;  %v4192_v6 = vsel %vm4191_vm7, %v4042_v46, %v4043_v60 }
 0xbd8   :  { %v4073_v8 = vadd.f32 %v4066_v62, %v4065_v49  ;;  %v4069_v19 = vmul.f32 %v4046_v3, %v10082_v25  ;;  %v4194_v44 = vsel %vm4193_vm9, %v4192_v6, %v4044_v42  ;;  %v4053_v28 = vmul.f32 %v4045_v50, %v10076_v27 }
 0xbd9   :  { %v4058_v22 = vadd.f32 %v4051_v13, %v4050_v48  ;;  %v4196_v14 = vsel %vm4195_vm10, %v4194_v44, %v4045_v50  ;;  %v4070_v53 = vmul.f32 %v4047_v38, %v10080_v52  ;;  %v4054_v5 = vmul.f32 %v4046_v3, %v10081_v58 }
 0xbda   :  { %v4074_v43 = vadd.f32 %v4073_v8, %v4067_v2  ;;  %v4197_v11 = vsel %vm4189_vm8, %v4196_v14, %v4046_v3  ;;  %v4071_v36 = vmul.f32 %v4048_v24, %v10084_v23  ;;  %v4055_v12 = vmul.f32 %v4047_v38, %v10079_v63 }
 0xbdb   :  { %v4059_v30 = vadd.f32 %v4058_v22, %v4052_v39  ;;  %v4199_v25 = vsel %vm4198_vm11, %v4197_v11, %v4047_v38  ;;  %v4072_v52 = vmul.f32 %v4049_v35, %v10083_v20  ;;  %v4056_v34 = vmul.f32 %v4048_v24, %v8769_v4 }
 0xbdc   :  { %v4075_v45 = vadd.f32 %v4074_v43, %v4068_v15  ;;  %v4201_v33 = vsel %vm4200_vm12, %v4199_v25, %v4048_v24  ;;  %v4057_v21 = vmul.f32 %v4049_v35, %v8846_v32 }
 0xbdd   :  { %v4060_v47 = vadd.f32 %v4059_v30, %v4053_v28  ;;  %v4203_v56 = vsel %vm4202_vm13, %v4201_v33, %v4049_v35 }
 0xbde   :  { %v4076_v41 = vadd.f32 %v4075_v45, %v4069_v19  ;;  %4205 = vst.msk [vmem:[#allocation8] sm:$0xff] %vm4204_vm14, %v4203_v56 }
 0xbdf   :  { %v4061_v29 = vadd.f32 %v4060_v47, %v4054_v5 }
 0xbe0   :  { %v4077_v27 = vadd.f32 %v4076_v41, %v4070_v53 }
 0xbe1   :  { %v4062_v58 = vadd.f32 %v4061_v29, %v4055_v12 }
 0xbe2   :  { %v4078_v57 = vadd.f32 %v4077_v27, %v4071_v36 }
 0xbe3   :  { %v4063_v37 = vadd.f32 %v4062_v58, %v4056_v34 }
 0xbe4   :  { %v4079_v9 = vadd.f32 %v4078_v57, %v4072_v52 }
 0xbe5   :  { %v4064_v23 = vadd.f32 %v4063_v37, %v4057_v21 }
 0xbe6   :  { %4183 = vmatprep.mubr.f32.mxu0 %v4079_v9 }
 0xbe7   :  { %4184 = vmatmul.mubr.f32.vlgmr.msra.gmra.mrb[32].mxu0 %v4064_v23 }
 0xbe8   :  { %7109 = shalt.err (!%p7106_p6)
}
 0xbe9   :  { %s7110_s23 = scalar_lea.hbm %s9026_s7, 128 }
 0xbea   :  { %p7111_p7 = scmp.ne.s32.totalorder %s9026_s7, %s7110_s23  ;;  %p7114_p8 = scmp.lt.u32.totalorder %s7110_s23, %s9026_s7 }
 0xbec   :  { %p7116_p9 = pnand %p7114_p8, %p7111_p7 }
 0xbee   :  { %7119 = shalt.err (!%p7116_p9)
}
 0xbef   :  { %4217 = dma.vmem_to_hbm [thread:$0]  %s4215_s19, 128, %s9026_s7, [#allocation5]   ;;  %v4274_v32 = vld [vmem:[%s9024_s5] ss:$0 sm:$0xff] }
 0xcba   :  { %v4307_v4 = vpop.f32.mrb[32].mxu0 }
 0xcbb   :  { %v4308_v63 = vpop.f32.mrb[33].mxu0 }
 0xcbc   :  { %v4309_v20 = vadd.f32 %v4308_v63, %v4307_v4 }
 0xcbe   :  { %v4186_v10 = vadd.f32 %v4309_v20, %v4274_v32 }
 0xcc0   :  { %4190 = vst.msk [vmem:[%s9025_s6] sm:$0xff] %vm4189_vm8, %v4186_v10 }
 0xcc1   :  { %7124 = dma.done.wait [#allocation5], 128  }
 0xcc2   :  { %7125 = vsyncadd [#allocation5], 4294967168 }
 0xcc3   :  { %4223 = vsyncpa [#allocation4], 1 }
 0xcc4   :  { %4224 = vsyncpa [#allocation7], 1 }
 0xcc5   :  { %4225 = vsyncpa [#allocation5], 1 }

</bundles_post_ra>
